<compile_context>
chip_gen: v7x
topology: tpu7x:2x2x1
jax: 0.10.0
libtpu: 0.0.40
codegen_flags: <defaults>
</compile_context>

<pallas_src>
import jax
import jax.numpy as jnp
from jax.experimental import pallas as pl
from jax.experimental.pallas import tpu as pltpu

EPS = 1e-5
LANES = 128


def _round_up(x, m):
    return (x + m - 1) // m * m


# ----------------------------- Pallas kernels ------------------------------ #

def _convt_matmul_kernel(x_ref, w_ref, o_ref):
    """ConvTranspose2d with kernel_size == stride, padding 0, no bias.

    Each input pixel independently produces an (sh, sw) output patch, so the
    whole op is a matmul: (B*Hd*Wd, Cin) @ (Cin, sh*sw*Cp), tiled over rows.
    """
    o_ref[...] = jnp.dot(x_ref[...], w_ref[...],
                         preferred_element_type=jnp.float32)


def _bn_relu(v, gamma, beta):
    """Training-mode BatchNorm2d + ReLU on a lane-dense (N*H*W, Cp) matrix.

    Centered (two-pass) variance; per-channel scale/shift computed once and
    applied as one multiply-add.  Padded channels carry gamma=beta=0 -> exact 0.
    """
    n = v.shape[0]
    inv_n = 1.0 / n
    mean = jnp.sum(v, axis=0, keepdims=True) * inv_n
    centered = v - mean
    var = jnp.sum(centered * centered, axis=0, keepdims=True) * inv_n
    scale = gamma * jax.lax.rsqrt(var + EPS)          # (1, Cp) — hoisted
    shift = beta - mean * scale
    return jnp.maximum(v * scale + shift, 0.0)


def _decoder_tail_kernel(up_ref, cat_ref, bn_ref, w1_ref, w2_ref, o_ref,
                         pad_ref, col_ref):
    """BN1+ReLU, channel concat, ConvBlock (conv3x3/BN/ReLU x2), lane-dense.

    pad_ref: (B, H+2, W+2, Cw) zero-bordered concat buffer (border zeroed once,
             interior rewritten per conv; lanes [0:Cp) reused for conv2 input).
    col_ref: (B*H*W, 9*Cw) im2col slab; conv1 uses all columns, conv2 reuses
             the first 9*Cp columns.  Each conv is ONE fat-K MXU matmul.
    Cw == Cp  -> packed concat layout ([up|skip] inside one lane group, merged
                 with a single add-store).
    Cw == 2Cp -> split layout (up in lanes [0:Cp), skip in [Cp:Cp+Co)).
    """
    B, H, W, Cp = up_ref.shape
    Cw = pad_ref.shape[-1]
    NHW = B * H * W

    g1, b1 = bn_ref[0:1, :], bn_ref[1:2, :]
    g2, b2 = bn_ref[2:3, :], bn_ref[3:4, :]
    g3, b3 = bn_ref[4:5, :], bn_ref[5:6, :]

    # --- zero only the 1-pixel border of the padded buffer, once ---
    zrow = jnp.zeros((B, 1, W + 2, Cw), jnp.float32)
    zcol = jnp.zeros((B, H + 2, 1, Cw), jnp.float32)
    pad_ref[:, 0:1, :, :] = zrow
    pad_ref[:, H + 1:H + 2, :, :] = zrow
    pad_ref[:, :, 0:1, :] = zcol
    pad_ref[:, :, W + 1:W + 2, :] = zcol

    # --- bn1 + relu on the transposed-conv output (lane-dense, Cp lanes) ---
    h0 = _bn_relu(up_ref[...].reshape(NHW, Cp), g1, b1)

    # --- concat([up, skip], channel) written straight into the padded buffer ---
    if Cw == Cp:
        # packed: h0 is zero above Co, cat is zero below Co -> add == concat
        pad_ref[:, 1:H + 1, 1:W + 1, :] = h0.reshape(B, H, W, Cp) + cat_ref[...]
    else:
        pad_ref[:, 1:H + 1, 1:W + 1, 0:Cp] = h0.reshape(B, H, W, Cp)
        pad_ref[:, 1:H + 1, 1:W + 1, Cp:Cw] = cat_ref[..., Cp:Cw]

    # --- ConvBlock conv1 (3x3, pad 1): im2col slab, ONE matmul, K = 9*Cw ---
    for kh in range(3):
        for kw in range(3):
            k = kh * 3 + kw
            col_ref[:, k * Cw:(k + 1) * Cw] = (
                pad_ref[:, kh:kh + H, kw:kw + W, :].reshape(NHW, Cw))
    acc1 = jnp.dot(col_ref[...], w1_ref[...], preferred_element_type=jnp.float32)
    h1 = _bn_relu(acc1, g2, b2)

    # --- ConvBlock conv2 (3x3, pad 1): reuse zero border + first 9*Cp slab cols ---
    pad_ref[:, 1:H + 1, 1:W + 1, 0:Cp] = h1.reshape(B, H, W, Cp)
    for kh in range(3):
        for kw in range(3):
            k = kh * 3 + kw
            col_ref[:, k * Cp:(k + 1) * Cp] = (
                pad_ref[:, kh:kh + H, kw:kw + W, 0:Cp].reshape(NHW, Cp))
    acc2 = jnp.dot(col_ref[:, 0:9 * Cp], w2_ref[...],
                   preferred_element_type=jnp.float32)
    h2 = _bn_relu(acc2, g3, b3)

    o_ref[...] = h2.reshape(B, H, W, Cp)


# ------------------------------ JAX wrapper -------------------------------- #

@jax.jit
def decoder_block_forward(x_nchw, cat_nchw, params):
    """DecoderBlock.forward(input_tensor, concat_tensor) -> NCHW output."""
    B, Cin, Hd, Wd = x_nchw.shape
    _, Co, H, W = cat_nchw.shape
    sh, sw = H // Hd, W // Wd

    Cp = _round_up(max(Co, 1), LANES)                 # lane-dense channel count
    packed = (2 * Co <= Cp)                           # both halves fit one lane group
    Cw = Cp if packed else 2 * Cp                     # concat lane width
    skip_off = Co if packed else Cp                   # lane offset of skip channels

    wt = params["conv1_weight"]                       # (Cin, Co, sh, sw)
    w1 = params["cb_conv1_weight"]                    # (Co, 2*Co, 3, 3)
    w2 = params["cb_conv2_weight"]                    # (Co, Co, 3, 3)

    # ---------- layout glue (plain JAX, data movement only) ----------
    x_nhwc = jnp.transpose(x_nchw, (0, 2, 3, 1))
    cat_nhwc = jnp.transpose(cat_nchw, (0, 2, 3, 1))
    cat_p = jnp.zeros((B, H, W, Cw), jnp.float32)
    cat_p = cat_p.at[..., skip_off:skip_off + Co].set(cat_nhwc)

    # ConvTranspose weight -> (Cin, sh*sw*Cp), zero-padded output channels
    wt_p = jnp.zeros((Cin, sh, sw, Cp), jnp.float32)
    wt_p = wt_p.at[:, :, :, :Co].set(jnp.transpose(wt, (0, 2, 3, 1)))
    wt2d = wt_p.reshape(Cin, sh * sw * Cp)

    # ConvBlock conv1 weight -> (9*Cw, Cp): per-tap (Cw, Cp), up rows at [0:Co),
    # skip rows at [skip_off:skip_off+Co)
    w1_t = jnp.transpose(w1, (2, 3, 1, 0))            # (3,3,2Co,Co)
    w1_p = jnp.zeros((3, 3, Cw, Cp), jnp.float32)
    w1_p = w1_p.at[:, :, 0:Co, 0:Co].set(w1_t[:, :, 0:Co, :])
    w1_p = w1_p.at[:, :, skip_off:skip_off + Co, 0:Co].set(w1_t[:, :, Co:2 * Co, :])
    w1_p = w1_p.reshape(9 * Cw, Cp)

    # ConvBlock conv2 weight -> (9*Cp, Cp)
    w2_t = jnp.transpose(w2, (2, 3, 1, 0))            # (3,3,Co,Co)
    w2_p = jnp.zeros((3, 3, Cp, Cp), jnp.float32).at[:, :, 0:Co, 0:Co].set(w2_t)
    w2_p = w2_p.reshape(9 * Cp, Cp)

    # BN params packed into one (8, Cp) array; padded channels get gamma=beta=0
    bn_all = jnp.zeros((8, Cp), jnp.float32)
    for r, name in enumerate(["bn1_gamma", "bn1_beta", "cb_bn1_gamma",
                              "cb_bn1_beta", "cb_bn2_gamma", "cb_bn2_beta"]):
        bn_all = bn_all.at[r, :Co].set(params[name].astype(jnp.float32))

    # ---------- Pallas kernel 1: ConvTranspose as a gridded, pipelined matmul ----
    M = B * Hd * Wd
    Nw = sh * sw * Cp
    TM = 128 if M % 128 == 0 else M
    x2d = x_nhwc.reshape(M, Cin)
    y2d = pl.pallas_call(
        _convt_matmul_kernel,
        out_shape=jax.ShapeDtypeStruct((M, Nw), jnp.float32),
        grid=(M // TM,),
        in_specs=[pl.BlockSpec((TM, Cin), lambda i: (i, 0)),
                  pl.BlockSpec((Cin, Nw), lambda i: (0, 0))],
        out_specs=pl.BlockSpec((TM, Nw), lambda i: (i, 0)),
        compiler_params=pltpu.CompilerParams(
            dimension_semantics=("parallel",)),
    )(x2d, wt2d)

    # sub-pixel scatter onto the spatial grid (pure data movement)
    up = y2d.reshape(B, Hd, Wd, sh, sw, Cp).transpose(0, 1, 3, 2, 4, 5)
    up = up.reshape(B, H, W, Cp)

    # ---------- Pallas kernel 2: BN1+ReLU, concat, ConvBlock ----------
    NHW = B * H * W
    out_nhwc = pl.pallas_call(
        _decoder_tail_kernel,
        out_shape=jax.ShapeDtypeStruct((B, H, W, Cp), jnp.float32),
        scratch_shapes=[pltpu.VMEM((B, H + 2, W + 2, Cw), jnp.float32),
                        pltpu.VMEM((NHW, 9 * Cw), jnp.float32)],
        compiler_params=pltpu.CompilerParams(
            vmem_limit_bytes=32 * 1024 * 1024),       # headroom on v7x's 64 MiB
    )(up, cat_p, bn_all, w1_p, w2_p)

    return jnp.transpose(out_nhwc[..., :Co], (0, 3, 1, 2))   # back to NCHW


# -------------------------- pure-JAX reference ------------------------------ #

def reference_forward(x, cat, params):
    wt = params["conv1_weight"]
    B, Cin, Hd, Wd = x.shape
    _, Co, H, W = cat.shape

    # ConvTranspose2d with kernel==stride, padding 0
    y = jnp.einsum('bcij,codt->boidjt', x, wt).reshape(B, Co, H, W)

    def bn_relu(v, g, b):
        mean = jnp.mean(v, axis=(0, 2, 3), keepdims=True)
        var = jnp.mean((v - mean) ** 2, axis=(0, 2, 3), keepdims=True)
        vhat = (v - mean) / jnp.sqrt(var + EPS)
        return jnp.maximum(vhat * g.reshape(1, -1, 1, 1)
                           + b.reshape(1, -1, 1, 1), 0.0)

    def conv3x3(v, w):
        return jax.lax.conv_general_dilated(
            v, w, window_strides=(1, 1), padding=((1, 1), (1, 1)),
            dimension_numbers=('NCHW', 'OIHW', 'NCHW'))

    y = bn_relu(y, params["bn1_gamma"], params["bn1_beta"])
    z = jnp.concatenate([y, cat], axis=1)
    z = bn_relu(conv3x3(z, params["cb_conv1_weight"]),
                params["cb_bn1_gamma"], params["cb_bn1_beta"])
    z = bn_relu(conv3x3(z, params["cb_conv2_weight"]),
                params["cb_bn2_gamma"], params["cb_bn2_beta"])
    return z


# ---------------------------------- main ------------------------------------ #

if __name__ == "__main__":
    key = jax.random.PRNGKey(0)
    B, Cin, Co = 2, 8, 4
    Hd = Wd = 8
    sh = sw = 2                      # upsample=(2,2)
    H, W = Hd * sh, Wd * sw          # kernel_size=(3,3)

    ks = jax.random.split(key, 11)
    params = {
        # ConvTranspose2d weight: (in_channels, out_channels, kH, kW)
        "conv1_weight":    0.2 * jax.random.normal(ks[0], (Cin, Co, sh, sw), jnp.float32),
        "bn1_gamma":       1.0 + 0.1 * jax.random.normal(ks[1], (Co,), jnp.float32),
        "bn1_beta":        0.1 * jax.random.normal(ks[2], (Co,), jnp.float32),
        # ConvBlock conv weights: (out_channels, in_channels, 3, 3)
        "cb_conv1_weight": 0.2 * jax.random.normal(ks[3], (Co, 2 * Co, 3, 3), jnp.float32),
        "cb_bn1_gamma":    1.0 + 0.1 * jax.random.normal(ks[4], (Co,), jnp.float32),
        "cb_bn1_beta":     0.1 * jax.random.normal(ks[5], (Co,), jnp.float32),
        "cb_conv2_weight": 0.2 * jax.random.normal(ks[6], (Co, Co, 3, 3), jnp.float32),
        "cb_bn2_gamma":    1.0 + 0.1 * jax.random.normal(ks[7], (Co,), jnp.float32),
        "cb_bn2_beta":     0.1 * jax.random.normal(ks[8], (Co,), jnp.float32),
    }

    x = jax.random.normal(ks[9], (B, Cin, Hd, Wd), jnp.float32)     # NCHW
    cat = jax.random.normal(ks[10], (B, Co, H, W), jnp.float32)     # NCHW

    out = jax.block_until_ready(decoder_block_forward(x, cat, params))
    ref = jax.block_until_ready(reference_forward(x, cat, params))

    assert out.shape == (B, Co, H, W), out.shape
    err = float(jnp.max(jnp.abs(out - ref)))
    assert err < 3e-2, f"max abs error {err}"
    print("KERNEL_OK")
</pallas_src>

<mosaic_0001>
module attributes {stable_mosaic.version = 11 : i64} {
  func.func @_convt_matmul_kernel(%arg0: i32, %arg1: memref<128x8xf32, #tpu.memory_space<vmem>>, %arg2: memref<8x512xf32, #tpu.memory_space<vmem>>, %arg3: memref<128x512xf32, #tpu.memory_space<vmem>>) attributes {dimension_semantics = [#tpu.dimension_semantics<parallel>], iteration_bounds = array<i64: 1>, scalar_prefetch = 0 : i64, scratch_operands = 0 : i64, tpu.core_type = #tpu.core_type<tc>, window_params = [{transform_indices = @transform_0, window_bounds = array<i64: 128, 8>}, {pipeline_mode = #tpu.pipeline_mode<synchronous>, transform_indices = @transform_1, window_bounds = array<i64: 8, 512>}, {transform_indices = @transform_2, window_bounds = array<i64: 128, 512>}]} {
    %c0 = arith.constant 0 : index
    %c0_0 = arith.constant 0 : index
    %0 = vector.load %arg1[%c0, %c0_0] : memref<128x8xf32, #tpu.memory_space<vmem>>, vector<128x8xf32>
    %c0_1 = arith.constant 0 : index
    %c0_2 = arith.constant 0 : index
    %1 = vector.load %arg2[%c0_1, %c0_2] : memref<8x512xf32, #tpu.memory_space<vmem>>, vector<8x512xf32>
    %cst = arith.constant dense<0.000000e+00> : vector<128x512xf32>
    %2 = tpu.matmul %0, %1, %cst {dimension_numbers = #tpu.dot_dimension_numbers<[1], [0], [0], [1], [0, 0, 1, 1], [], []>} : vector<128x8xf32>, vector<8x512xf32>, vector<128x512xf32> -> vector<128x512xf32>
    %c0_3 = arith.constant 0 : index
    %c0_4 = arith.constant 0 : index
    %3 = vector.load %arg3[%c0_3, %c0_4] : memref<128x512xf32, #tpu.memory_space<vmem>>, vector<128x512xf32>
    tpu.vector_store %arg3[%c0_3, %c0_4], %2 {strides = array<i32>} : memref<128x512xf32, #tpu.memory_space<vmem>>, vector<128x512xf32>,
    return
  }
  func.func @transform_0(%arg0: i32) -> (i32, i32) {
    %c0_i32 = arith.constant 0 : i32
    %c0_i32_0 = arith.constant 0 : i32
    return %arg0, %c0_i32 : i32, i32
  }
  func.func @transform_1(%arg0: i32) -> (i32, i32) {
    %c0_i32 = arith.constant 0 : i32
    %c0_i32_0 = arith.constant 0 : i32
    %c0_i32_1 = arith.constant 0 : i32
    return %c0_i32, %c0_i32_0 : i32, i32
  }
  func.func @transform_2(%arg0: i32) -> (i32, i32) {
    %c0_i32 = arith.constant 0 : i32
    %c0_i32_0 = arith.constant 0 : i32
    return %arg0, %c0_i32 : i32, i32
  }
}

module attributes {stable_mosaic.version = 11 : i64} {
  func.func @_decoder_tail_kernel(%arg0: memref<2x16x16x128xf32, #tpu.memory_space<vmem>>, %arg1: memref<2x16x16x128xf32, #tpu.memory_space<vmem>>, %arg2: memref<8x128xf32, #tpu.memory_space<vmem>>, %arg3: memref<1152x128xf32, #tpu.memory_space<vmem>>, %arg4: memref<1152x128xf32, #tpu.memory_space<vmem>>, %arg5: memref<2x16x16x128xf32, #tpu.memory_space<vmem>>, %arg6: memref<2x18x18x128xf32, #tpu.memory_space<vmem>>, %arg7: memref<512x1152xf32, #tpu.memory_space<vmem>>) attributes {dimension_semantics = [], scalar_prefetch = 0 : i64, scratch_operands = 2 : i64, tpu.core_type = #tpu.core_type<tc>} {
    %c0 = arith.constant 0 : index
    %c0_0 = arith.constant 0 : index
    %0 = vector.load %arg2[%c0, %c0_0] : memref<8x128xf32, #tpu.memory_space<vmem>>, vector<1x128xf32>
    %c1 = arith.constant 1 : index
    %c0_1 = arith.constant 0 : index
    %1 = vector.load %arg2[%c1, %c0_1] : memref<8x128xf32, #tpu.memory_space<vmem>>, vector<1x128xf32>
    %c2 = arith.constant 2 : index
    %c0_2 = arith.constant 0 : index
    %2 = vector.load %arg2[%c2, %c0_2] : memref<8x128xf32, #tpu.memory_space<vmem>>, vector<1x128xf32>
    %c3 = arith.constant 3 : index
    %c0_3 = arith.constant 0 : index
    %3 = vector.load %arg2[%c3, %c0_3] : memref<8x128xf32, #tpu.memory_space<vmem>>, vector<1x128xf32>
    %c4 = arith.constant 4 : index
    %c0_4 = arith.constant 0 : index
    %4 = vector.load %arg2[%c4, %c0_4] : memref<8x128xf32, #tpu.memory_space<vmem>>, vector<1x128xf32>
    %c5 = arith.constant 5 : index
    %c0_5 = arith.constant 0 : index
    %5 = vector.load %arg2[%c5, %c0_5] : memref<8x128xf32, #tpu.memory_space<vmem>>, vector<1x128xf32>
    %cst = arith.constant 0.000000e+00 : f32
    %6 = vector.broadcast %cst : f32 to vector<2x1x18x128xf32>
    %cst_6 = arith.constant 0.000000e+00 : f32
    %7 = vector.broadcast %cst_6 : f32 to vector<2x18x1x128xf32>
    %c0_7 = arith.constant 0 : index
    %c0_8 = arith.constant 0 : index
    %c0_9 = arith.constant 0 : index
    %c0_10 = arith.constant 0 : index
    %8 = vector.load %arg6[%c0_7, %c0_8, %c0_9, %c0_10] : memref<2x18x18x128xf32, #tpu.memory_space<vmem>>, vector<2x1x18x128xf32>
    tpu.vector_store %arg6[%c0_7, %c0_8, %c0_9, %c0_10], %6 {strides = array<i32>} : memref<2x18x18x128xf32, #tpu.memory_space<vmem>>, vector<2x1x18x128xf32>,
    %c0_11 = arith.constant 0 : index
    %c17 = arith.constant 17 : index
    %c0_12 = arith.constant 0 : index
    %c0_13 = arith.constant 0 : index
    %9 = vector.load %arg6[%c0_11, %c17, %c0_12, %c0_13] : memref<2x18x18x128xf32, #tpu.memory_space<vmem>>, vector<2x1x18x128xf32>
    tpu.vector_store %arg6[%c0_11, %c17, %c0_12, %c0_13], %6 {strides = array<i32>} : memref<2x18x18x128xf32, #tpu.memory_space<vmem>>, vector<2x1x18x128xf32>,
    %c0_14 = arith.constant 0 : index
    %c0_15 = arith.constant 0 : index
    %c0_16 = arith.constant 0 : index
    %c0_17 = arith.constant 0 : index
    %10 = vector.load %arg6[%c0_14, %c0_15, %c0_16, %c0_17] : memref<2x18x18x128xf32, #tpu.memory_space<vmem>>, vector<2x18x1x128xf32>
    tpu.vector_store %arg6[%c0_14, %c0_15, %c0_16, %c0_17], %7 {strides = array<i32>} : memref<2x18x18x128xf32, #tpu.memory_space<vmem>>, vector<2x18x1x128xf32>,
    %c0_18 = arith.constant 0 : index
    %c0_19 = arith.constant 0 : index
    %c17_20 = arith.constant 17 : index
    %c0_21 = arith.constant 0 : index
    %11 = vector.load %arg6[%c0_18, %c0_19, %c17_20, %c0_21] : memref<2x18x18x128xf32, #tpu.memory_space<vmem>>, vector<2x18x1x128xf32>
    tpu.vector_store %arg6[%c0_18, %c0_19, %c17_20, %c0_21], %7 {strides = array<i32>} : memref<2x18x18x128xf32, #tpu.memory_space<vmem>>, vector<2x18x1x128xf32>,
    %c0_22 = arith.constant 0 : index
    %c0_23 = arith.constant 0 : index
    %c0_24 = arith.constant 0 : index
    %c0_25 = arith.constant 0 : index
    %12 = vector.load %arg0[%c0_22, %c0_23, %c0_24, %c0_25] : memref<2x16x16x128xf32, #tpu.memory_space<vmem>>, vector<2x16x16x128xf32>
    %13 = vector.shape_cast %12 : vector<2x16x16x128xf32> to vector<512x128xf32>
    %cst_26 = arith.constant dense<0.000000e+00> : vector<128xf32>
    %14 = vector.multi_reduction <add>, %13, %cst_26 [0] : vector<512x128xf32> to vector<128xf32>
    %15 = vector.shape_cast %14 : vector<128xf32> to vector<1x128xf32>
    %cst_27 = arith.constant 0.001953125 : f32
    %16 = vector.broadcast %cst_27 : f32 to vector<1x128xf32>
    %17 = arith.mulf %15, %16 : vector<1x128xf32>
    %18 = vector.broadcast %17 : vector<1x128xf32> to vector<512x128xf32>
    %19 = arith.subf %13, %18 : vector<512x128xf32>
    %20 = arith.mulf %19, %19 : vector<512x128xf32>
    %cst_28 = arith.constant dense<0.000000e+00> : vector<128xf32>
    %21 = vector.multi_reduction <add>, %20, %cst_28 [0] : vector<512x128xf32> to vector<128xf32>
    %22 = vector.shape_cast %21 : vector<128xf32> to vector<1x128xf32>
    %cst_29 = arith.constant 0.001953125 : f32
    %23 = vector.broadcast %cst_29 : f32 to vector<1x128xf32>
    %24 = arith.mulf %22, %23 : vector<1x128xf32>
    %cst_30 = arith.constant 9.99999974E-6 : f32
    %25 = vector.broadcast %cst_30 : f32 to vector<1x128xf32>
    %26 = arith.addf %24, %25 : vector<1x128xf32>
    %27 = math.rsqrt %26 : vector<1x128xf32>
    %28 = arith.mulf %0, %27 : vector<1x128xf32>
    %29 = arith.mulf %17, %28 : vector<1x128xf32>
    %30 = arith.subf %1, %29 : vector<1x128xf32>
    %31 = vector.broadcast %28 : vector<1x128xf32> to vector<512x128xf32>
    %32 = arith.mulf %13, %31 : vector<512x128xf32>
    %33 = vector.broadcast %30 : vector<1x128xf32> to vector<512x128xf32>
    %34 = arith.addf %32, %33 : vector<512x128xf32>
    %cst_31 = arith.constant 0.000000e+00 : f32
    %35 = vector.broadcast %cst_31 : f32 to vector<512x128xf32>
    %36 = arith.maximumf %34, %35 : vector<512x128xf32>
    %37 = vector.shape_cast %36 : vector<512x128xf32> to vector<2x16x16x128xf32>
    %c0_32 = arith.constant 0 : index
    %c0_33 = arith.constant 0 : index
    %c0_34 = arith.constant 0 : index
    %c0_35 = arith.constant 0 : index
    %38 = vector.load %arg1[%c0_32, %c0_33, %c0_34, %c0_35] : memref<2x16x16x128xf32, #tpu.memory_space<vmem>>, vector<2x16x16x128xf32>
    %39 = arith.addf %37, %38 : vector<2x16x16x128xf32>
    %c0_36 = arith.constant 0 : index
    %c1_37 = arith.constant 1 : index
    %c1_38 = arith.constant 1 : index
    %c0_39 = arith.constant 0 : index
    %40 = vector.load %arg6[%c0_36, %c1_37, %c1_38, %c0_39] : memref<2x18x18x128xf32, #tpu.memory_space<vmem>>, vector<2x16x16x128xf32>
    tpu.vector_store %arg6[%c0_36, %c1_37, %c1_38, %c0_39], %39 {strides = array<i32>} : memref<2x18x18x128xf32, #tpu.memory_space<vmem>>, vector<2x16x16x128xf32>,
    %c0_40 = arith.constant 0 : index
    %c0_41 = arith.constant 0 : index
    %c0_42 = arith.constant 0 : index
    %c0_43 = arith.constant 0 : index
    %41 = vector.load %arg6[%c0_40, %c0_41, %c0_42, %c0_43] : memref<2x18x18x128xf32, #tpu.memory_space<vmem>>, vector<2x16x16x128xf32>
    %42 = vector.shape_cast %41 : vector<2x16x16x128xf32> to vector<512x128xf32>
    %c0_44 = arith.constant 0 : index
    %c0_45 = arith.constant 0 : index
    %43 = vector.load %arg7[%c0_44, %c0_45] : memref<512x1152xf32, #tpu.memory_space<vmem>>, vector<512x128xf32>
    tpu.vector_store %arg7[%c0_44, %c0_45], %42 {strides = array<i32>} : memref<512x1152xf32, #tpu.memory_space<vmem>>, vector<512x128xf32>,
    %c0_46 = arith.constant 0 : index
    %c0_47 = arith.constant 0 : index
    %c1_48 = arith.constant 1 : index
    %c0_49 = arith.constant 0 : index
    %44 = vector.load %arg6[%c0_46, %c0_47, %c1_48, %c0_49] : memref<2x18x18x128xf32, #tpu.memory_space<vmem>>, vector<2x16x16x128xf32>
    %45 = vector.shape_cast %44 : vector<2x16x16x128xf32> to vector<512x128xf32>
    %c0_50 = arith.constant 0 : index
    %c128 = arith.constant 128 : index
    %46 = vector.load %arg7[%c0_50, %c128] : memref<512x1152xf32, #tpu.memory_space<vmem>>, vector<512x128xf32>
    tpu.vector_store %arg7[%c0_50, %c128], %45 {strides = array<i32>} : memref<512x1152xf32, #tpu.memory_space<vmem>>, vector<512x128xf32>,
    %c0_51 = arith.constant 0 : index
    %c0_52 = arith.constant 0 : index
    %c2_53 = arith.constant 2 : index
    %c0_54 = arith.constant 0 : index
    %47 = vector.load %arg6[%c0_51, %c0_52, %c2_53, %c0_54] : memref<2x18x18x128xf32, #tpu.memory_space<vmem>>, vector<2x16x16x128xf32>
    %48 = vector.shape_cast %47 : vector<2x16x16x128xf32> to vector<512x128xf32>
    %c0_55 = arith.constant 0 : index
    %c256 = arith.constant 256 : index
    %49 = vector.load %arg7[%c0_55, %c256] : memref<512x1152xf32, #tpu.memory_space<vmem>>, vector<512x128xf32>
    tpu.vector_store %arg7[%c0_55, %c256], %48 {strides = array<i32>} : memref<512x1152xf32, #tpu.memory_space<vmem>>, vector<512x128xf32>,
    %c0_56 = arith.constant 0 : index
    %c1_57 = arith.constant 1 : index
    %c0_58 = arith.constant 0 : index
    %c0_59 = arith.constant 0 : index
    %50 = vector.load %arg6[%c0_56, %c1_57, %c0_58, %c0_59] : memref<2x18x18x128xf32, #tpu.memory_space<vmem>>, vector<2x16x16x128xf32>
    %51 = vector.shape_cast %50 : vector<2x16x16x128xf32> to vector<512x128xf32>
    %c0_60 = arith.constant 0 : index
    %c384 = arith.constant 384 : index
    %52 = vector.load %arg7[%c0_60, %c384] : memref<512x1152xf32, #tpu.memory_space<vmem>>, vector<512x128xf32>
    tpu.vector_store %arg7[%c0_60, %c384], %51 {strides = array<i32>} : memref<512x1152xf32, #tpu.memory_space<vmem>>, vector<512x128xf32>,
    %c0_61 = arith.constant 0 : index
    %c1_62 = arith.constant 1 : index
    %c1_63 = arith.constant 1 : index
    %c0_64 = arith.constant 0 : index
    %53 = vector.load %arg6[%c0_61, %c1_62, %c1_63, %c0_64] : memref<2x18x18x128xf32, #tpu.memory_space<vmem>>, vector<2x16x16x128xf32>
    %54 = vector.shape_cast %53 : vector<2x16x16x128xf32> to vector<512x128xf32>
    %c0_65 = arith.constant 0 : index
    %c512 = arith.constant 512 : index
    %55 = vector.load %arg7[%c0_65, %c512] : memref<512x1152xf32, #tpu.memory_space<vmem>>, vector<512x128xf32>
    tpu.vector_store %arg7[%c0_65, %c512], %54 {strides = array<i32>} : memref<512x1152xf32, #tpu.memory_space<vmem>>, vector<512x128xf32>,
    %c0_66 = arith.constant 0 : index
    %c1_67 = arith.constant 1 : index
    %c2_68 = arith.constant 2 : index
    %c0_69 = arith.constant 0 : index
    %56 = vector.load %arg6[%c0_66, %c1_67, %c2_68, %c0_69] : memref<2x18x18x128xf32, #tpu.memory_space<vmem>>, vector<2x16x16x128xf32>
    %57 = vector.shape_cast %56 : vector<2x16x16x128xf32> to vector<512x128xf32>
    %c0_70 = arith.constant 0 : index
    %c640 = arith.constant 640 : index
    %58 = vector.load %arg7[%c0_70, %c640] : memref<512x1152xf32, #tpu.memory_space<vmem>>, vector<512x128xf32>
    tpu.vector_store %arg7[%c0_70, %c640], %57 {strides = array<i32>} : memref<512x1152xf32, #tpu.memory_space<vmem>>, vector<512x128xf32>,
    %c0_71 = arith.constant 0 : index
    %c2_72 = arith.constant 2 : index
    %c0_73 = arith.constant 0 : index
    %c0_74 = arith.constant 0 : index
    %59 = vector.load %arg6[%c0_71, %c2_72, %c0_73, %c0_74] : memref<2x18x18x128xf32, #tpu.memory_space<vmem>>, vector<2x16x16x128xf32>
    %60 = vector.shape_cast %59 : vector<2x16x16x128xf32> to vector<512x128xf32>
    %c0_75 = arith.constant 0 : index
    %c768 = arith.constant 768 : index
    %61 = vector.load %arg7[%c0_75, %c768] : memref<512x1152xf32, #tpu.memory_space<vmem>>, vector<512x128xf32>
    tpu.vector_store %arg7[%c0_75, %c768], %60 {strides = array<i32>} : memref<512x1152xf32, #tpu.memory_space<vmem>>, vector<512x128xf32>,
    %c0_76 = arith.constant 0 : index
    %c2_77 = arith.constant 2 : index
    %c1_78 = arith.constant 1 : index
    %c0_79 = arith.constant 0 : index
    %62 = vector.load %arg6[%c0_76, %c2_77, %c1_78, %c0_79] : memref<2x18x18x128xf32, #tpu.memory_space<vmem>>, vector<2x16x16x128xf32>
    %63 = vector.shape_cast %62 : vector<2x16x16x128xf32> to vector<512x128xf32>
    %c0_80 = arith.constant 0 : index
    %c896 = arith.constant 896 : index
    %64 = vector.load %arg7[%c0_80, %c896] : memref<512x1152xf32, #tpu.memory_space<vmem>>, vector<512x128xf32>
    tpu.vector_store %arg7[%c0_80, %c896], %63 {strides = array<i32>} : memref<512x1152xf32, #tpu.memory_space<vmem>>, vector<512x128xf32>,
    %c0_81 = arith.constant 0 : index
    %c2_82 = arith.constant 2 : index
    %c2_83 = arith.constant 2 : index
    %c0_84 = arith.constant 0 : index
    %65 = vector.load %arg6[%c0_81, %c2_82, %c2_83, %c0_84] : memref<2x18x18x128xf32, #tpu.memory_space<vmem>>, vector<2x16x16x128xf32>
    %66 = vector.shape_cast %65 : vector<2x16x16x128xf32> to vector<512x128xf32>
    %c0_85 = arith.constant 0 : index
    %c1024 = arith.constant 1024 : index
    %67 = vector.load %arg7[%c0_85, %c1024] : memref<512x1152xf32, #tpu.memory_space<vmem>>, vector<512x128xf32>
    tpu.vector_store %arg7[%c0_85, %c1024], %66 {strides = array<i32>} : memref<512x1152xf32, #tpu.memory_space<vmem>>, vector<512x128xf32>,
    %c0_86 = arith.constant 0 : index
    %c0_87 = arith.constant 0 : index
    %68 = vector.load %arg7[%c0_86, %c0_87] : memref<512x1152xf32, #tpu.memory_space<vmem>>, vector<512x1152xf32>
    %c0_88 = arith.constant 0 : index
    %c0_89 = arith.constant 0 : index
    %69 = vector.load %arg3[%c0_88, %c0_89] : memref<1152x128xf32, #tpu.memory_space<vmem>>, vector<1152x128xf32>
    %cst_90 = arith.constant dense<0.000000e+00> : vector<512x128xf32>
    %70 = tpu.matmul %68, %69, %cst_90 {dimension_numbers = #tpu.dot_dimension_numbers<[1], [0], [0], [1], [0, 0, 1, 1], [], []>} : vector<512x1152xf32>, vector<1152x128xf32>, vector<512x128xf32> -> vector<512x128xf32>
    %cst_91 = arith.constant dense<0.000000e+00> : vector<128xf32>
    %71 = vector.multi_reduction <add>, %70, %cst_91 [0] : vector<512x128xf32> to vector<128xf32>
    %72 = vector.shape_cast %71 : vector<128xf32> to vector<1x128xf32>
    %cst_92 = arith.constant 0.001953125 : f32
    %73 = vector.broadcast %cst_92 : f32 to vector<1x128xf32>
    %74 = arith.mulf %72, %73 : vector<1x128xf32>
    %75 = vector.broadcast %74 : vector<1x128xf32> to vector<512x128xf32>
    %76 = arith.subf %70, %75 : vector<512x128xf32>
    %77 = arith.mulf %76, %76 : vector<512x128xf32>
    %cst_93 = arith.constant dense<0.000000e+00> : vector<128xf32>
    %78 = vector.multi_reduction <add>, %77, %cst_93 [0] : vector<512x128xf32> to vector<128xf32>
    %79 = vector.shape_cast %78 : vector<128xf32> to vector<1x128xf32>
    %cst_94 = arith.constant 0.001953125 : f32
    %80 = vector.broadcast %cst_94 : f32 to vector<1x128xf32>
    %81 = arith.mulf %79, %80 : vector<1x128xf32>
    %cst_95 = arith.constant 9.99999974E-6 : f32
    %82 = vector.broadcast %cst_95 : f32 to vector<1x128xf32>
    %83 = arith.addf %81, %82 : vector<1x128xf32>
    %84 = math.rsqrt %83 : vector<1x128xf32>
    %85 = arith.mulf %2, %84 : vector<1x128xf32>
    %86 = arith.mulf %74, %85 : vector<1x128xf32>
    %87 = arith.subf %3, %86 : vector<1x128xf32>
    %88 = vector.broadcast %85 : vector<1x128xf32> to vector<512x128xf32>
    %89 = arith.mulf %70, %88 : vector<512x128xf32>
    %90 = vector.broadcast %87 : vector<1x128xf32> to vector<512x128xf32>
    %91 = arith.addf %89, %90 : vector<512x128xf32>
    %cst_96 = arith.constant 0.000000e+00 : f32
    %92 = vector.broadcast %cst_96 : f32 to vector<512x128xf32>
    %93 = arith.maximumf %91, %92 : vector<512x128xf32>
    %94 = vector.shape_cast %93 : vector<512x128xf32> to vector<2x16x16x128xf32>
    %c0_97 = arith.constant 0 : index
    %c1_98 = arith.constant 1 : index
    %c1_99 = arith.constant 1 : index
    %c0_100 = arith.constant 0 : index
    %95 = vector.load %arg6[%c0_97, %c1_98, %c1_99, %c0_100] : memref<2x18x18x128xf32, #tpu.memory_space<vmem>>, vector<2x16x16x128xf32>
    tpu.vector_store %arg6[%c0_97, %c1_98, %c1_99, %c0_100], %94 {strides = array<i32>} : memref<2x18x18x128xf32, #tpu.memory_space<vmem>>, vector<2x16x16x128xf32>,
    %c0_101 = arith.constant 0 : index
    %c0_102 = arith.constant 0 : index
    %c0_103 = arith.constant 0 : index
    %c0_104 = arith.constant 0 : index
    %96 = vector.load %arg6[%c0_101, %c0_102, %c0_103, %c0_104] : memref<2x18x18x128xf32, #tpu.memory_space<vmem>>, vector<2x16x16x128xf32>
    %97 = vector.shape_cast %96 : vector<2x16x16x128xf32> to vector<512x128xf32>
    %c0_105 = arith.constant 0 : index
    %c0_106 = arith.constant 0 : index
    %98 = vector.load %arg7[%c0_105, %c0_106] : memref<512x1152xf32, #tpu.memory_space<vmem>>, vector<512x128xf32>
    tpu.vector_store %arg7[%c0_105, %c0_106], %97 {strides = array<i32>} : memref<512x1152xf32, #tpu.memory_space<vmem>>, vector<512x128xf32>,
    %c0_107 = arith.constant 0 : index
    %c0_108 = arith.constant 0 : index
    %c1_109 = arith.constant 1 : index
    %c0_110 = arith.constant 0 : index
    %99 = vector.load %arg6[%c0_107, %c0_108, %c1_109, %c0_110] : memref<2x18x18x128xf32, #tpu.memory_space<vmem>>, vector<2x16x16x128xf32>
    %100 = vector.shape_cast %99 : vector<2x16x16x128xf32> to vector<512x128xf32>
    %c0_111 = arith.constant 0 : index
    %c128_112 = arith.constant 128 : index
    %101 = vector.load %arg7[%c0_111, %c128_112] : memref<512x1152xf32, #tpu.memory_space<vmem>>, vector<512x128xf32>
    tpu.vector_store %arg7[%c0_111, %c128_112], %100 {strides = array<i32>} : memref<512x1152xf32, #tpu.memory_space<vmem>>, vector<512x128xf32>,
    %c0_113 = arith.constant 0 : index
    %c0_114 = arith.constant 0 : index
    %c2_115 = arith.constant 2 : index
    %c0_116 = arith.constant 0 : index
    %102 = vector.load %arg6[%c0_113, %c0_114, %c2_115, %c0_116] : memref<2x18x18x128xf32, #tpu.memory_space<vmem>>, vector<2x16x16x128xf32>
    %103 = vector.shape_cast %102 : vector<2x16x16x128xf32> to vector<512x128xf32>
    %c0_117 = arith.constant 0 : index
    %c256_118 = arith.constant 256 : index
    %104 = vector.load %arg7[%c0_117, %c256_118] : memref<512x1152xf32, #tpu.memory_space<vmem>>, vector<512x128xf32>
    tpu.vector_store %arg7[%c0_117, %c256_118], %103 {strides = array<i32>} : memref<512x1152xf32, #tpu.memory_space<vmem>>, vector<512x128xf32>,
    %c0_119 = arith.constant 0 : index
    %c1_120 = arith.constant 1 : index
    %c0_121 = arith.constant 0 : index
    %c0_122 = arith.constant 0 : index
    %105 = vector.load %arg6[%c0_119, %c1_120, %c0_121, %c0_122] : memref<2x18x18x128xf32, #tpu.memory_space<vmem>>, vector<2x16x16x128xf32>
    %106 = vector.shape_cast %105 : vector<2x16x16x128xf32> to vector<512x128xf32>
    %c0_123 = arith.constant 0 : index
    %c384_124 = arith.constant 384 : index
    %107 = vector.load %arg7[%c0_123, %c384_124] : memref<512x1152xf32, #tpu.memory_space<vmem>>, vector<512x128xf32>
    tpu.vector_store %arg7[%c0_123, %c384_124], %106 {strides = array<i32>} : memref<512x1152xf32, #tpu.memory_space<vmem>>, vector<512x128xf32>,
    %c0_125 = arith.constant 0 : index
    %c1_126 = arith.constant 1 : index
    %c1_127 = arith.constant 1 : index
    %c0_128 = arith.constant 0 : index
    %108 = vector.load %arg6[%c0_125, %c1_126, %c1_127, %c0_128] : memref<2x18x18x128xf32, #tpu.memory_space<vmem>>, vector<2x16x16x128xf32>
    %109 = vector.shape_cast %108 : vector<2x16x16x128xf32> to vector<512x128xf32>
    %c0_129 = arith.constant 0 : index
    %c512_130 = arith.constant 512 : index
    %110 = vector.load %arg7[%c0_129, %c512_130] : memref<512x1152xf32, #tpu.memory_space<vmem>>, vector<512x128xf32>
    tpu.vector_store %arg7[%c0_129, %c512_130], %109 {strides = array<i32>} : memref<512x1152xf32, #tpu.memory_space<vmem>>, vector<512x128xf32>,
    %c0_131 = arith.constant 0 : index
    %c1_132 = arith.constant 1 : index
    %c2_133 = arith.constant 2 : index
    %c0_134 = arith.constant 0 : index
    %111 = vector.load %arg6[%c0_131, %c1_132, %c2_133, %c0_134] : memref<2x18x18x128xf32, #tpu.memory_space<vmem>>, vector<2x16x16x128xf32>
    %112 = vector.shape_cast %111 : vector<2x16x16x128xf32> to vector<512x128xf32>
    %c0_135 = arith.constant 0 : index
    %c640_136 = arith.constant 640 : index
    %113 = vector.load %arg7[%c0_135, %c640_136] : memref<512x1152xf32, #tpu.memory_space<vmem>>, vector<512x128xf32>
    tpu.vector_store %arg7[%c0_135, %c640_136], %112 {strides = array<i32>} : memref<512x1152xf32, #tpu.memory_space<vmem>>, vector<512x128xf32>,
    %c0_137 = arith.constant 0 : index
    %c2_138 = arith.constant 2 : index
    %c0_139 = arith.constant 0 : index
    %c0_140 = arith.constant 0 : index
    %114 = vector.load %arg6[%c0_137, %c2_138, %c0_139, %c0_140] : memref<2x18x18x128xf32, #tpu.memory_space<vmem>>, vector<2x16x16x128xf32>
    %115 = vector.shape_cast %114 : vector<2x16x16x128xf32> to vector<512x128xf32>
    %c0_141 = arith.constant 0 : index
    %c768_142 = arith.constant 768 : index
    %116 = vector.load %arg7[%c0_141, %c768_142] : memref<512x1152xf32, #tpu.memory_space<vmem>>, vector<512x128xf32>
    tpu.vector_store %arg7[%c0_141, %c768_142], %115 {strides = array<i32>} : memref<512x1152xf32, #tpu.memory_space<vmem>>, vector<512x128xf32>,
    %c0_143 = arith.constant 0 : index
    %c2_144 = arith.constant 2 : index
    %c1_145 = arith.constant 1 : index
    %c0_146 = arith.constant 0 : index
    %117 = vector.load %arg6[%c0_143, %c2_144, %c1_145, %c0_146] : memref<2x18x18x128xf32, #tpu.memory_space<vmem>>, vector<2x16x16x128xf32>
    %118 = vector.shape_cast %117 : vector<2x16x16x128xf32> to vector<512x128xf32>
    %c0_147 = arith.constant 0 : index
    %c896_148 = arith.constant 896 : index
    %119 = vector.load %arg7[%c0_147, %c896_148] : memref<512x1152xf32, #tpu.memory_space<vmem>>, vector<512x128xf32>
    tpu.vector_store %arg7[%c0_147, %c896_148], %118 {strides = array<i32>} : memref<512x1152xf32, #tpu.memory_space<vmem>>, vector<512x128xf32>,
    %c0_149 = arith.constant 0 : index
    %c2_150 = arith.constant 2 : index
    %c2_151 = arith.constant 2 : index
    %c0_152 = arith.constant 0 : index
    %120 = vector.load %arg6[%c0_149, %c2_150, %c2_151, %c0_152] : memref<2x18x18x128xf32, #tpu.memory_space<vmem>>, vector<2x16x16x128xf32>
    %121 = vector.shape_cast %120 : vector<2x16x16x128xf32> to vector<512x128xf32>
    %c0_153 = arith.constant 0 : index
    %c1024_154 = arith.constant 1024 : index
    %122 = vector.load %arg7[%c0_153, %c1024_154] : memref<512x1152xf32, #tpu.memory_space<vmem>>, vector<512x128xf32>
    tpu.vector_store %arg7[%c0_153, %c1024_154], %121 {strides = array<i32>} : memref<512x1152xf32, #tpu.memory_space<vmem>>, vector<512x128xf32>,
    %c0_155 = arith.constant 0 : index
    %c0_156 = arith.constant 0 : index
    %123 = vector.load %arg7[%c0_155, %c0_156] : memref<512x1152xf32, #tpu.memory_space<vmem>>, vector<512x1152xf32>
    %c0_157 = arith.constant 0 : index
    %c0_158 = arith.constant 0 : index
    %124 = vector.load %arg4[%c0_157, %c0_158] : memref<1152x128xf32, #tpu.memory_space<vmem>>, vector<1152x128xf32>
    %cst_159 = arith.constant dense<0.000000e+00> : vector<512x128xf32>
    %125 = tpu.matmul %123, %124, %cst_159 {dimension_numbers = #tpu.dot_dimension_numbers<[1], [0], [0], [1], [0, 0, 1, 1], [], []>} : vector<512x1152xf32>, vector<1152x128xf32>, vector<512x128xf32> -> vector<512x128xf32>
    %cst_160 = arith.constant dense<0.000000e+00> : vector<128xf32>
    %126 = vector.multi_reduction <add>, %125, %cst_160 [0] : vector<512x128xf32> to vector<128xf32>
    %127 = vector.shape_cast %126 : vector<128xf32> to vector<1x128xf32>
    %cst_161 = arith.constant 0.001953125 : f32
    %128 = vector.broadcast %cst_161 : f32 to vector<1x128xf32>
    %129 = arith.mulf %127, %128 : vector<1x128xf32>
    %130 = vector.broadcast %129 : vector<1x128xf32> to vector<512x128xf32>
    %131 = arith.subf %125, %130 : vector<512x128xf32>
    %132 = arith.mulf %131, %131 : vector<512x128xf32>
    %cst_162 = arith.constant dense<0.000000e+00> : vector<128xf32>
    %133 = vector.multi_reduction <add>, %132, %cst_162 [0] : vector<512x128xf32> to vector<128xf32>
    %134 = vector.shape_cast %133 : vector<128xf32> to vector<1x128xf32>
    %cst_163 = arith.constant 0.001953125 : f32
    %135 = vector.broadcast %cst_163 : f32 to vector<1x128xf32>
    %136 = arith.mulf %134, %135 : vector<1x128xf32>
    %cst_164 = arith.constant 9.99999974E-6 : f32
    %137 = vector.broadcast %cst_164 : f32 to vector<1x128xf32>
    %138 = arith.addf %136, %137 : vector<1x128xf32>
    %139 = math.rsqrt %138 : vector<1x128xf32>
    %140 = arith.mulf %4, %139 : vector<1x128xf32>
    %141 = arith.mulf %129, %140 : vector<1x128xf32>
    %142 = arith.subf %5, %141 : vector<1x128xf32>
    %143 = vector.broadcast %140 : vector<1x128xf32> to vector<512x128xf32>
    %144 = arith.mulf %125, %143 : vector<512x128xf32>
    %145 = vector.broadcast %142 : vector<1x128xf32> to vector<512x128xf32>
    %146 = arith.addf %144, %145 : vector<512x128xf32>
    %cst_165 = arith.constant 0.000000e+00 : f32
    %147 = vector.broadcast %cst_165 : f32 to vector<512x128xf32>
    %148 = arith.maximumf %146, %147 : vector<512x128xf32>
    %149 = vector.shape_cast %148 : vector<512x128xf32> to vector<2x16x16x128xf32>
    %c0_166 = arith.constant 0 : index
    %c0_167 = arith.constant 0 : index
    %c0_168 = arith.constant 0 : index
    %c0_169 = arith.constant 0 : index
    %150 = vector.load %arg5[%c0_166, %c0_167, %c0_168, %c0_169] : memref<2x16x16x128xf32, #tpu.memory_space<vmem>>, vector<2x16x16x128xf32>
    tpu.vector_store %arg5[%c0_166, %c0_167, %c0_168, %c0_169], %149 {strides = array<i32>} : memref<2x16x16x128xf32, #tpu.memory_space<vmem>>, vector<2x16x16x128xf32>,
    return
  }
}

</mosaic_0001>

<bundles_post_ra>
// kernel: decoder_block_forward.2
= control target key start
LH: loop header
LB: loop body
LE: loop exit
PB: predicated region body
PF: predicated region fallthrough
CT: control target
= control target key end

     0   :  { %v503_v3 = vmov 0.0   ;;  %vm31_vm0 = vcmask 64512   ;;  %s835_s1 = inlined_call_operand.vmem [shape: f32[8,512], index: 1, kind: input, shape index: {}]   ;;  %s836_s0 = inlined_call_operand.vmem [shape: f32[128,8], index: 0, kind: input, shape index: {}]   ;;  %s837_s2 = inlined_call_operand.vmem [shape: f32[128,512], index: 2, kind: output, shape index: {}]  }
   0x1   :  { %v28_v0 = vld [vmem:[%s835_s1 + $0x8] sm:$0xff]  ;;  %v30_v1 = vld [vmem:[%s835_s1 + $0x18] sm:$0xff]  ;;  %v27_v2 = vld [vmem:[%s835_s1] sm:$0xff]  ;;  %144 = vmatprep.mubr.f32.mxu0 %v503_v3  ;;  %305 = vmatprep.mubr.f32.mxu1 %v503_v3 }
   0x2   :  { %80 = vmatprep.subr.mxu0 %v28_v0  ;;  %241 = vmatprep.subr.mxu1 %v30_v1  ;;  %v29_v4 = vld [vmem:[%s835_s1 + $0x10] sm:$0xff]  ;;  %v11_v5 = vld [vmem:[%s836_s0] sm:$0xff]  ;;  %v12_v6 = vld [vmem:[%s836_s0 + $0x8] sm:$0xff] }
   0x3   :  { %81 = vmatpush1.msra.mxu0 %v27_v2  ;;  %242 = vmatpush1.msra.mxu1 %v29_v4  ;;  %v13_v7 = vld [vmem:[%s836_s0 + $0x10] sm:$0xff]  ;;  %v14_v8 = vld [vmem:[%s836_s0 + $0x18] sm:$0xff]  ;;  %v15_v9 = vld [vmem:[%s836_s0 + $0x20] sm:$0xff] }
   0x4   :  { %470 = vmatmul.mubr.msk.f32.vlgmr.msra.gmra.mrb[0].mxu0 %vm31_vm0, %v11_v5  ;;  %486 = vmatmul.mubr.msk.f32.vlgmr.msra.gmra.mrb[0].mxu1 %vm31_vm0, %v11_v5  ;;  %v16_v10 = vld [vmem:[%s836_s0 + $0x28] sm:$0xff]  ;;  %v17_v11 = vld [vmem:[%s836_s0 + $0x30] sm:$0xff]  ;;  %v18_v12 = vld [vmem:[%s836_s0 + $0x38] sm:$0xff] }
   0x5   :  { %150 = vmatprep.mubr.f32.mxu0 %v503_v3  ;;  %311 = vmatprep.mubr.f32.mxu1 %v503_v3  ;;  %v19_v13 = vld [vmem:[%s836_s0 + $0x40] sm:$0xff]  ;;  %v20_v14 = vld [vmem:[%s836_s0 + $0x48] sm:$0xff]  ;;  %v21_v15 = vld [vmem:[%s836_s0 + $0x50] sm:$0xff] }
   0x6   :  { %v22_v16 = vld [vmem:[%s836_s0 + $0x58] sm:$0xff]  ;;  %v23_v17 = vld [vmem:[%s836_s0 + $0x60] sm:$0xff]  ;;  %v24_v18 = vld [vmem:[%s836_s0 + $0x68] sm:$0xff] }
   0x7   :  { %v25_v19 = vld [vmem:[%s836_s0 + $0x70] sm:$0xff]  ;;  %v26_v20 = vld [vmem:[%s836_s0 + $0x78] sm:$0xff] }
   0x8   :  { %471 = vmatmul.mubr.msk.f32.gmra.mrb[2].mxu0 %vm31_vm0, %v12_v6  ;;  %487 = vmatmul.mubr.msk.f32.gmra.mrb[2].mxu1 %vm31_vm0, %v12_v6 }
   0x9   :  { %156 = vmatprep.mubr.f32.mxu0 %v503_v3  ;;  %317 = vmatprep.mubr.f32.mxu1 %v503_v3 }
   0xc   :  { %472 = vmatmul.mubr.msk.f32.gmra.mrb[4].mxu0 %vm31_vm0, %v13_v7  ;;  %488 = vmatmul.mubr.msk.f32.gmra.mrb[4].mxu1 %vm31_vm0, %v13_v7 }
   0xd   :  { %162 = vmatprep.mubr.f32.mxu0 %v503_v3  ;;  %323 = vmatprep.mubr.f32.mxu1 %v503_v3 }
  0x10   :  { %473 = vmatmul.mubr.msk.f32.gmra.mrb[6].mxu0 %vm31_vm0, %v14_v8  ;;  %489 = vmatmul.mubr.msk.f32.gmra.mrb[6].mxu1 %vm31_vm0, %v14_v8 }
  0x11   :  { %168 = vmatprep.mubr.f32.mxu0 %v503_v3  ;;  %329 = vmatprep.mubr.f32.mxu1 %v503_v3 }
  0x14   :  { %474 = vmatmul.mubr.msk.f32.gmra.mrb[8].mxu0 %vm31_vm0, %v15_v9  ;;  %490 = vmatmul.mubr.msk.f32.gmra.mrb[8].mxu1 %vm31_vm0, %v15_v9 }
  0x15   :  { %174 = vmatprep.mubr.f32.mxu0 %v503_v3  ;;  %335 = vmatprep.mubr.f32.mxu1 %v503_v3 }
  0x18   :  { %475 = vmatmul.mubr.msk.f32.gmra.mrb[10].mxu0 %vm31_vm0, %v16_v10  ;;  %491 = vmatmul.mubr.msk.f32.gmra.mrb[10].mxu1 %vm31_vm0, %v16_v10 }
  0x19   :  { %180 = vmatprep.mubr.f32.mxu0 %v503_v3  ;;  %341 = vmatprep.mubr.f32.mxu1 %v503_v3 }
  0x1c   :  { %476 = vmatmul.mubr.msk.f32.gmra.mrb[12].mxu0 %vm31_vm0, %v17_v11  ;;  %492 = vmatmul.mubr.msk.f32.gmra.mrb[12].mxu1 %vm31_vm0, %v17_v11 }
  0x1d   :  { %186 = vmatprep.mubr.f32.mxu0 %v503_v3  ;;  %347 = vmatprep.mubr.f32.mxu1 %v503_v3 }
  0x20   :  { %477 = vmatmul.mubr.msk.f32.gmra.mrb[14].mxu0 %vm31_vm0, %v18_v12  ;;  %493 = vmatmul.mubr.msk.f32.gmra.mrb[14].mxu1 %vm31_vm0, %v18_v12 }
  0x21   :  { %192 = vmatprep.mubr.f32.mxu0 %v503_v3  ;;  %353 = vmatprep.mubr.f32.mxu1 %v503_v3 }
  0x24   :  { %478 = vmatmul.mubr.msk.f32.gmra.mrb[16].mxu0 %vm31_vm0, %v19_v13  ;;  %494 = vmatmul.mubr.msk.f32.gmra.mrb[16].mxu1 %vm31_vm0, %v19_v13 }
  0x25   :  { %198 = vmatprep.mubr.f32.mxu0 %v503_v3  ;;  %359 = vmatprep.mubr.f32.mxu1 %v503_v3 }
  0x28   :  { %479 = vmatmul.mubr.msk.f32.gmra.mrb[18].mxu0 %vm31_vm0, %v20_v14  ;;  %495 = vmatmul.mubr.msk.f32.gmra.mrb[18].mxu1 %vm31_vm0, %v20_v14 }
  0x29   :  { %204 = vmatprep.mubr.f32.mxu0 %v503_v3  ;;  %365 = vmatprep.mubr.f32.mxu1 %v503_v3 }
  0x2c   :  { %480 = vmatmul.mubr.msk.f32.gmra.mrb[20].mxu0 %vm31_vm0, %v21_v15  ;;  %496 = vmatmul.mubr.msk.f32.gmra.mrb[20].mxu1 %vm31_vm0, %v21_v15 }
  0x2d   :  { %210 = vmatprep.mubr.f32.mxu0 %v503_v3  ;;  %371 = vmatprep.mubr.f32.mxu1 %v503_v3 }
  0x30   :  { %481 = vmatmul.mubr.msk.f32.gmra.mrb[22].mxu0 %vm31_vm0, %v22_v16  ;;  %497 = vmatmul.mubr.msk.f32.gmra.mrb[22].mxu1 %vm31_vm0, %v22_v16 }
  0x31   :  { %216 = vmatprep.mubr.f32.mxu0 %v503_v3  ;;  %377 = vmatprep.mubr.f32.mxu1 %v503_v3 }
  0x34   :  { %482 = vmatmul.mubr.msk.f32.gmra.mrb[24].mxu0 %vm31_vm0, %v23_v17  ;;  %498 = vmatmul.mubr.msk.f32.gmra.mrb[24].mxu1 %vm31_vm0, %v23_v17 }
  0x35   :  { %222 = vmatprep.mubr.f32.mxu0 %v503_v3  ;;  %383 = vmatprep.mubr.f32.mxu1 %v503_v3 }
  0x38   :  { %483 = vmatmul.mubr.msk.f32.gmra.mrb[26].mxu0 %vm31_vm0, %v24_v18  ;;  %499 = vmatmul.mubr.msk.f32.gmra.mrb[26].mxu1 %vm31_vm0, %v24_v18 }
  0x39   :  { %228 = vmatprep.mubr.f32.mxu0 %v503_v3  ;;  %389 = vmatprep.mubr.f32.mxu1 %v503_v3 }
  0x3c   :  { %484 = vmatmul.mubr.msk.f32.gmra.mrb[28].mxu0 %vm31_vm0, %v25_v19  ;;  %500 = vmatmul.mubr.msk.f32.gmra.mrb[28].mxu1 %vm31_vm0, %v25_v19 }
  0x3d   :  { %234 = vmatprep.mubr.f32.mxu0 %v503_v3  ;;  %395 = vmatprep.mubr.f32.mxu1 %v503_v3 }
  0x40   :  { %485 = vmatmul.mubr.msk.f32.gmra.mrb[30].mxu0 %vm31_vm0, %v26_v20  ;;  %501 = vmatmul.mubr.msk.f32.gmra.mrb[30].mxu1 %vm31_vm0, %v26_v20 }
  0xd7   :  { %v146_v21 = vpop.f32.mrb[0].mxu0  ;;  %v307_v22 = vpop.f32.mrb[0].mxu1 }
  0xd8   :  { %402 = vst [vmem:[%s837_s2] sm:$0xff] %v146_v21  ;;  %404 = vst [vmem:[%s837_s2 + $0x10] sm:$0xff] %v307_v22  ;;  %v148_v23 = vpop.f32.mrb[1].mxu0  ;;  %v309_v24 = vpop.f32.mrb[1].mxu1 }
  0xd9   :  { %403 = vst [vmem:[%s837_s2 + $0x8] sm:$0xff] %v148_v23  ;;  %405 = vst [vmem:[%s837_s2 + $0x18] sm:$0xff] %v309_v24 }
  0xdb   :  { %v152_v25 = vpop.f32.mrb[2].mxu0  ;;  %v313_v26 = vpop.f32.mrb[2].mxu1 }
  0xdc   :  { %406 = vst [vmem:[%s837_s2 + $0x20] sm:$0xff] %v152_v25  ;;  %408 = vst [vmem:[%s837_s2 + $0x30] sm:$0xff] %v313_v26  ;;  %v154_v27 = vpop.f32.mrb[3].mxu0  ;;  %v315_v28 = vpop.f32.mrb[3].mxu1 }
  0xdd   :  { %407 = vst [vmem:[%s837_s2 + $0x28] sm:$0xff] %v154_v27  ;;  %409 = vst [vmem:[%s837_s2 + $0x38] sm:$0xff] %v315_v28 }
  0xdf   :  { %v158_v29 = vpop.f32.mrb[4].mxu0  ;;  %v319_v30 = vpop.f32.mrb[4].mxu1 }
  0xe0   :  { %410 = vst [vmem:[%s837_s2 + $0x40] sm:$0xff] %v158_v29  ;;  %412 = vst [vmem:[%s837_s2 + $0x50] sm:$0xff] %v319_v30  ;;  %v160_v31 = vpop.f32.mrb[5].mxu0  ;;  %v321_v32 = vpop.f32.mrb[5].mxu1 }
  0xe1   :  { %411 = vst [vmem:[%s837_s2 + $0x48] sm:$0xff] %v160_v31  ;;  %413 = vst [vmem:[%s837_s2 + $0x58] sm:$0xff] %v321_v32 }
  0xe3   :  { %v164_v33 = vpop.f32.mrb[6].mxu0  ;;  %v325_v34 = vpop.f32.mrb[6].mxu1 }
  0xe4   :  { %414 = vst [vmem:[%s837_s2 + $0x60] sm:$0xff] %v164_v33  ;;  %416 = vst [vmem:[%s837_s2 + $0x70] sm:$0xff] %v325_v34  ;;  %v166_v35 = vpop.f32.mrb[7].mxu0  ;;  %v327_v36 = vpop.f32.mrb[7].mxu1 }
  0xe5   :  { %415 = vst [vmem:[%s837_s2 + $0x68] sm:$0xff] %v166_v35  ;;  %417 = vst [vmem:[%s837_s2 + $0x78] sm:$0xff] %v327_v36 }
  0xe7   :  { %v170_v37 = vpop.f32.mrb[8].mxu0  ;;  %v331_v38 = vpop.f32.mrb[8].mxu1 }
  0xe8   :  { %418 = vst [vmem:[%s837_s2 + $0x80] sm:$0xff] %v170_v37  ;;  %420 = vst [vmem:[%s837_s2 + $0x90] sm:$0xff] %v331_v38  ;;  %v172_v39 = vpop.f32.mrb[9].mxu0  ;;  %v333_v40 = vpop.f32.mrb[9].mxu1 }
  0xe9   :  { %419 = vst [vmem:[%s837_s2 + $0x88] sm:$0xff] %v172_v39  ;;  %421 = vst [vmem:[%s837_s2 + $0x98] sm:$0xff] %v333_v40 }
  0xeb   :  { %v176_v41 = vpop.f32.mrb[10].mxu0  ;;  %v337_v42 = vpop.f32.mrb[10].mxu1 }
  0xec   :  { %422 = vst [vmem:[%s837_s2 + $0xa0] sm:$0xff] %v176_v41  ;;  %424 = vst [vmem:[%s837_s2 + $0xb0] sm:$0xff] %v337_v42  ;;  %v178_v43 = vpop.f32.mrb[11].mxu0  ;;  %v339_v44 = vpop.f32.mrb[11].mxu1 }
  0xed   :  { %423 = vst [vmem:[%s837_s2 + $0xa8] sm:$0xff] %v178_v43  ;;  %425 = vst [vmem:[%s837_s2 + $0xb8] sm:$0xff] %v339_v44 }
  0xef   :  { %v182_v45 = vpop.f32.mrb[12].mxu0  ;;  %v343_v46 = vpop.f32.mrb[12].mxu1 }
  0xf0   :  { %426 = vst [vmem:[%s837_s2 + $0xc0] sm:$0xff] %v182_v45  ;;  %428 = vst [vmem:[%s837_s2 + $0xd0] sm:$0xff] %v343_v46  ;;  %v184_v47 = vpop.f32.mrb[13].mxu0  ;;  %v345_v48 = vpop.f32.mrb[13].mxu1 }
  0xf1   :  { %427 = vst [vmem:[%s837_s2 + $0xc8] sm:$0xff] %v184_v47  ;;  %429 = vst [vmem:[%s837_s2 + $0xd8] sm:$0xff] %v345_v48 }
  0xf3   :  { %v188_v49 = vpop.f32.mrb[14].mxu0  ;;  %v349_v50 = vpop.f32.mrb[14].mxu1 }
  0xf4   :  { %430 = vst [vmem:[%s837_s2 + $0xe0] sm:$0xff] %v188_v49  ;;  %432 = vst [vmem:[%s837_s2 + $0xf0] sm:$0xff] %v349_v50  ;;  %v190_v51 = vpop.f32.mrb[15].mxu0  ;;  %v351_v52 = vpop.f32.mrb[15].mxu1 }
  0xf5   :  { %431 = vst [vmem:[%s837_s2 + $0xe8] sm:$0xff] %v190_v51  ;;  %433 = vst [vmem:[%s837_s2 + $0xf8] sm:$0xff] %v351_v52 }
  0xf7   :  { %v194_v53 = vpop.f32.mrb[16].mxu0  ;;  %v355_v54 = vpop.f32.mrb[16].mxu1 }
  0xf8   :  { %434 = vst [vmem:[%s837_s2 + $0x100] sm:$0xff] %v194_v53  ;;  %436 = vst [vmem:[%s837_s2 + $0x110] sm:$0xff] %v355_v54  ;;  %v196_v55 = vpop.f32.mrb[17].mxu0  ;;  %v357_v56 = vpop.f32.mrb[17].mxu1 }
  0xf9   :  { %435 = vst [vmem:[%s837_s2 + $0x108] sm:$0xff] %v196_v55  ;;  %437 = vst [vmem:[%s837_s2 + $0x118] sm:$0xff] %v357_v56 }
  0xfb   :  { %v200_v57 = vpop.f32.mrb[18].mxu0  ;;  %v361_v58 = vpop.f32.mrb[18].mxu1 }
  0xfc   :  { %438 = vst [vmem:[%s837_s2 + $0x120] sm:$0xff] %v200_v57  ;;  %440 = vst [vmem:[%s837_s2 + $0x130] sm:$0xff] %v361_v58  ;;  %v202_v59 = vpop.f32.mrb[19].mxu0  ;;  %v363_v60 = vpop.f32.mrb[19].mxu1 }
  0xfd   :  { %439 = vst [vmem:[%s837_s2 + $0x128] sm:$0xff] %v202_v59  ;;  %441 = vst [vmem:[%s837_s2 + $0x138] sm:$0xff] %v363_v60 }
  0xff   :  { %v206_v61 = vpop.f32.mrb[20].mxu0  ;;  %v367_v62 = vpop.f32.mrb[20].mxu1 }
 0x100   :  { %442 = vst [vmem:[%s837_s2 + $0x140] sm:$0xff] %v206_v61  ;;  %444 = vst [vmem:[%s837_s2 + $0x150] sm:$0xff] %v367_v62  ;;  %v208_v63 = vpop.f32.mrb[21].mxu0  ;;  %v369_v0 = vpop.f32.mrb[21].mxu1 }
 0x101   :  { %443 = vst [vmem:[%s837_s2 + $0x148] sm:$0xff] %v208_v63  ;;  %445 = vst [vmem:[%s837_s2 + $0x158] sm:$0xff] %v369_v0 }
 0x103   :  { %v212_v1 = vpop.f32.mrb[22].mxu0  ;;  %v373_v2 = vpop.f32.mrb[22].mxu1 }
 0x104   :  { %446 = vst [vmem:[%s837_s2 + $0x160] sm:$0xff] %v212_v1  ;;  %448 = vst [vmem:[%s837_s2 + $0x170] sm:$0xff] %v373_v2  ;;  %v214_v3 = vpop.f32.mrb[23].mxu0  ;;  %v375_v4 = vpop.f32.mrb[23].mxu1 }
 0x105   :  { %447 = vst [vmem:[%s837_s2 + $0x168] sm:$0xff] %v214_v3  ;;  %449 = vst [vmem:[%s837_s2 + $0x178] sm:$0xff] %v375_v4 }
 0x107   :  { %v218_v5 = vpop.f32.mrb[24].mxu0  ;;  %v379_v6 = vpop.f32.mrb[24].mxu1 }
 0x108   :  { %450 = vst [vmem:[%s837_s2 + $0x180] sm:$0xff] %v218_v5  ;;  %452 = vst [vmem:[%s837_s2 + $0x190] sm:$0xff] %v379_v6  ;;  %v220_v7 = vpop.f32.mrb[25].mxu0  ;;  %v381_v8 = vpop.f32.mrb[25].mxu1 }
 0x109   :  { %451 = vst [vmem:[%s837_s2 + $0x188] sm:$0xff] %v220_v7  ;;  %453 = vst [vmem:[%s837_s2 + $0x198] sm:$0xff] %v381_v8 }
 0x10b   :  { %v224_v9 = vpop.f32.mrb[26].mxu0  ;;  %v385_v10 = vpop.f32.mrb[26].mxu1 }
 0x10c   :  { %454 = vst [vmem:[%s837_s2 + $0x1a0] sm:$0xff] %v224_v9  ;;  %456 = vst [vmem:[%s837_s2 + $0x1b0] sm:$0xff] %v385_v10  ;;  %v226_v11 = vpop.f32.mrb[27].mxu0  ;;  %v387_v12 = vpop.f32.mrb[27].mxu1 }
 0x10d   :  { %455 = vst [vmem:[%s837_s2 + $0x1a8] sm:$0xff] %v226_v11  ;;  %457 = vst [vmem:[%s837_s2 + $0x1b8] sm:$0xff] %v387_v12 }
 0x10f   :  { %v230_v13 = vpop.f32.mrb[28].mxu0  ;;  %v391_v14 = vpop.f32.mrb[28].mxu1 }
 0x110   :  { %458 = vst [vmem:[%s837_s2 + $0x1c0] sm:$0xff] %v230_v13  ;;  %460 = vst [vmem:[%s837_s2 + $0x1d0] sm:$0xff] %v391_v14  ;;  %v232_v15 = vpop.f32.mrb[29].mxu0  ;;  %v393_v16 = vpop.f32.mrb[29].mxu1 }
 0x111   :  { %459 = vst [vmem:[%s837_s2 + $0x1c8] sm:$0xff] %v232_v15  ;;  %461 = vst [vmem:[%s837_s2 + $0x1d8] sm:$0xff] %v393_v16 }
 0x113   :  { %v236_v17 = vpop.f32.mrb[30].mxu0  ;;  %v397_v18 = vpop.f32.mrb[30].mxu1 }
 0x114   :  { %462 = vst [vmem:[%s837_s2 + $0x1e0] sm:$0xff] %v236_v17  ;;  %464 = vst [vmem:[%s837_s2 + $0x1f0] sm:$0xff] %v397_v18  ;;  %v238_v19 = vpop.f32.mrb[31].mxu0  ;;  %v399_v20 = vpop.f32.mrb[31].mxu1 }
 0x115   :  { %463 = vst [vmem:[%s837_s2 + $0x1e8] sm:$0xff] %v238_v19  ;;  %465 = vst [vmem:[%s837_s2 + $0x1f8] sm:$0xff] %v399_v20 }

// kernel: decoder_block_forward.3
= control target key start
LH: loop header
LB: loop body
LE: loop exit
PB: predicated region body
PF: predicated region fallthrough
CT: control target
= control target key end

     0   :  { %v17504_v0 = vmov 0.0|0.0   ;;  %v11210_v4 = vmov 0.0   ;;  %s17498_s3 = inlined_call_operand.vmem [shape: f32[1152,128], index: 3, kind: input, shape index: {}]   ;;  %s17499_s0 = inlined_call_operand.vmem [shape: f32[2,16,16,128], index: 0, kind: input, shape index: {}]   ;;  %s17500_s2 = inlined_call_operand.vmem [shape: f32[8,128], index: 2, kind: input, shape index: {}]   ;;  %s17501_s1 = inlined_call_operand.vmem [shape: f32[2,16,16,128], index: 1, kind: input, shape index: {}]   ;;  %s17502_s4 = inlined_call_operand.vmem [shape: f32[1152,128], index: 4, kind: input, shape index: {}]   ;;  %s17503_s5 = inlined_call_operand.vmem [shape: f32[2,16,16,128], index: 5, kind: output, shape index: {}]  }
   0x1   :  { %9930 = vmatprep.subr.bf16.mxu0 %v17504_v0  ;;  %v11245_v1 = vld [vmem:[%s17498_s3] sm:$0xff]  ;;  %v11250_v2 = vld [vmem:[%s17498_s3 + $0x8] sm:$0xff]  ;;  %v11255_v3 = vld [vmem:[%s17498_s3 + $0x10] sm:$0xff]  ;;  %26 = vst [vmem:[#allocation2] sm:$0xff] %v11210_v4 }
   0x2   :  { %27 = vst [vmem:[#allocation2 + $0x8] sm:$0xff] %v11210_v4  ;;  %28 = vst [vmem:[#allocation2 + $0x10] sm:$0x3] %v11210_v4  ;;  %v9931_v5 = vpack.c.bf16 %v11250_v2, %v11245_v1  ;;  %v2573_v6 = vld [vmem:[%s17498_s3 + $0x18] sm:$0xff]  ;;  %v2574_v8 = vld [vmem:[%s17498_s3 + $0x20] sm:$0xff] }
   0x3   :  { %29 = vst [vmem:[#allocation2 + $0x1b0] sm:$0xff] %v11210_v4  ;;  %30 = vst [vmem:[#allocation2 + $0x1b8] sm:$0xff] %v11210_v4  ;;  %v9934_v7 = vpack.c.bf16 %v2573_v6, %v11255_v3  ;;  %v2575_v9 = vld [vmem:[%s17498_s3 + $0x28] sm:$0xff]  ;;  %v2576_v11 = vld [vmem:[%s17498_s3 + $0x30] sm:$0xff] }
   0x4   :  { %31 = vst [vmem:[#allocation2 + $0x1c0] sm:$0x3] %v11210_v4  ;;  %33 = vst [vmem:[#allocation2 + $0x198] sm:$0xff] %v11210_v4  ;;  %9932 = vmatpush1.bf16.msra.mxu0 %v9931_v5  ;;  %v9937_v10 = vpack.c.bf16 %v2575_v9, %v2574_v8  ;;  %v2577_v12 = vld [vmem:[%s17498_s3 + $0x38] sm:$0xff]  ;;  %v2578_v15 = vld [vmem:[%s17498_s3 + $0x40] sm:$0xff] }
   0x5   :  { %34 = vst [vmem:[#allocation2 + $0x1a0] sm:$0xff] %v11210_v4  ;;  %35 = vst [vmem:[#allocation2 + $0x1a8] sm:$0x3] %v11210_v4  ;;  %9933 = vmatprep.subr.bf16.mxu0 %v17504_v0  ;;  %v9940_v14 = vpack.c.bf16 %v2577_v12, %v2576_v11  ;;  %v2579_v16 = vld [vmem:[%s17498_s3 + $0x48] sm:$0xff]  ;;  %v11371_v17 = vld [vmem:[%s17499_s0] sm:$0xff] }
   0x6   :  { %36 = vst [vmem:[#allocation2 + $0x348] sm:$0xff] %v11210_v4  ;;  %37 = vst [vmem:[#allocation2 + $0x350] sm:$0xff] %v11210_v4  ;;  %v11376_v18 = vld [vmem:[%s17499_s0 + $0x8] sm:$0xff]  ;;  %v11381_v19 = vld [vmem:[%s17499_s0 + $0x10] sm:$0xff]  ;;  %v9943_v21 = vpack.c.bf16 %v2579_v16, %v2578_v15 }
   0x7   :  { %38 = vst [vmem:[#allocation2 + $0x358] sm:$0x3] %v11210_v4  ;;  %40 = vst [vmem:[#allocation2 + $0x18] sm:$0x1] %v11210_v4  ;;  %v175_v20 = vadd.f32 %v11376_v18, %v11371_v17  ;;  %v11388_v22 = vld [vmem:[%s17499_s0 + $0x18] sm:$0xff]  ;;  %v2580_v23 = vld [vmem:[%s17498_s3 + $0x50] sm:$0xff] }
   0x8   :  { %41 = vst [vmem:[#allocation2 + $0x30] sm:$0x1] %v11210_v4  ;;  %42 = vst [vmem:[#allocation2 + $0x48] sm:$0x1] %v11210_v4  ;;  %9935 = vmatpush1.bf16.msra.mxu0 %v9934_v7  ;;  %v2581_v24 = vld [vmem:[%s17498_s3 + $0x58] sm:$0xff]  ;;  %v11401_v26 = vld [vmem:[%s17499_s0 + $0x20] sm:$0xff] }
   0x9   :  { %43 = vst [vmem:[#allocation2 + $0x60] sm:$0x1] %v11210_v4  ;;  %44 = vst [vmem:[#allocation2 + $0x78] sm:$0x1] %v11210_v4  ;;  %9936 = vmatprep.subr.bf16.mxu0 %v17504_v0  ;;  %v969_v13 = vld [vmem:[#allocation2 + $0x1] sm:$0xff]  ;;  %v176_v25 = vadd.f32 %v175_v20, %v11381_v19  ;;  %v9946_v28 = vpack.c.bf16 %v2581_v24, %v2580_v23  ;;  %v11420_v33 = vld [vmem:[%s17499_s0 + $0x30] sm:$0xff] }
   0xa   :  { %45 = vst [vmem:[#allocation2 + $0x90] sm:$0x1] %v11210_v4  ;;  %46 = vst [vmem:[#allocation2 + $0xa8] sm:$0x1] %v11210_v4  ;;  %2778 = vmatprep.mubr.f32.mxu0 %v969_v13  ;;  %v11407_v29 = vld [vmem:[%s17499_s0 + $0x28] sm:$0xff]  ;;  %v2582_v30 = vld [vmem:[%s17498_s3 + $0x60] sm:$0xff] }
   0xb   :  { %47 = vst [vmem:[#allocation2 + $0xc0] sm:$0x1] %v11210_v4  ;;  %48 = vst [vmem:[#allocation2 + $0xd8] sm:$0x1] %v11210_v4  ;;  %v177_v27 = vadd.f32 %v176_v25, %v11388_v22  ;;  %v2583_v31 = vld [vmem:[%s17498_s3 + $0x68] sm:$0xff]  ;;  %v11426_v36 = vld [vmem:[%s17499_s0 + $0x38] sm:$0xff] }
   0xc   :  { %49 = vst [vmem:[#allocation2 + $0xf0] sm:$0x1] %v11210_v4  ;;  %50 = vst [vmem:[#allocation2 + $0x108] sm:$0x1] %v11210_v4  ;;  %9938 = vmatpush1.bf16.msra.mxu0 %v9937_v10  ;;  %v9949_v35 = vpack.c.bf16 %v2583_v31, %v2582_v30  ;;  %v2584_v37 = vld [vmem:[%s17498_s3 + $0x70] sm:$0xff]  ;;  %v2585_v38 = vld [vmem:[%s17498_s3 + $0x78] sm:$0xff] }
   0xd   :  { %51 = vst [vmem:[#allocation2 + $0x120] sm:$0x1] %v11210_v4  ;;  %52 = vst [vmem:[#allocation2 + $0x138] sm:$0x1] %v11210_v4  ;;  %9939 = vmatprep.subr.bf16.mxu0 %v17504_v0  ;;  %v178_v32 = vadd.f32 %v177_v27, %v11401_v26  ;;  %v11439_v40 = vld [vmem:[%s17499_s0 + $0x40] sm:$0xff]  ;;  %v9952_v42 = vpack.c.bf16 %v2585_v38, %v2584_v37  ;;  %v11445_v43 = vld [vmem:[%s17499_s0 + $0x48] sm:$0xff] }
   0xe   :  { %53 = vst [vmem:[#allocation2 + $0x150] sm:$0x1] %v11210_v4  ;;  %54 = vst [vmem:[#allocation2 + $0x168] sm:$0x1] %v11210_v4  ;;  %v2586_v44 = vld [vmem:[%s17498_s3 + $0x80] sm:$0xff]  ;;  %v2587_v45 = vld [vmem:[%s17498_s3 + $0x88] sm:$0xff] }
   0xf   :  { %55 = vst [vmem:[#allocation2 + $0x180] sm:$0x1] %v11210_v4  ;;  %58 = vst [vmem:[#allocation2 + $0x1c8] sm:$0x1] %v11210_v4  ;;  %v179_v34 = vadd.f32 %v178_v32, %v11407_v29  ;;  %v11458_v47 = vld [vmem:[%s17499_s0 + $0x50] sm:$0xff]  ;;  %v9955_v49 = vpack.c.bf16 %v2587_v45, %v2586_v44  ;;  %v11464_v50 = vld [vmem:[%s17499_s0 + $0x58] sm:$0xff] }
  0x10   :  { %59 = vst [vmem:[#allocation2 + $0x1e0] sm:$0x1] %v11210_v4  ;;  %60 = vst [vmem:[#allocation2 + $0x1f8] sm:$0x1] %v11210_v4  ;;  %9941 = vmatpush1.bf16.msra.mxu0 %v9940_v14  ;;  %v2588_v51 = vld [vmem:[%s17498_s3 + $0x90] sm:$0xff]  ;;  %v2589_v52 = vld [vmem:[%s17498_s3 + $0x98] sm:$0xff] }
  0x11   :  { %61 = vst [vmem:[#allocation2 + $0x210] sm:$0x1] %v11210_v4  ;;  %62 = vst [vmem:[#allocation2 + $0x228] sm:$0x1] %v11210_v4  ;;  %9942 = vmatprep.subr.bf16.mxu0 %v17504_v0  ;;  %v180_v39 = vadd.f32 %v179_v34, %v11420_v33  ;;  %v11477_v54 = vld [vmem:[%s17499_s0 + $0x60] sm:$0xff]  ;;  %v9958_v56 = vpack.c.bf16 %v2589_v52, %v2588_v51  ;;  %v11483_v57 = vld [vmem:[%s17499_s0 + $0x68] sm:$0xff] }
  0x12   :  { %63 = vst [vmem:[#allocation2 + $0x240] sm:$0x1] %v11210_v4  ;;  %64 = vst [vmem:[#allocation2 + $0x258] sm:$0x1] %v11210_v4  ;;  %v2590_v58 = vld [vmem:[%s17498_s3 + $0xa0] sm:$0xff]  ;;  %v2591_v59 = vld [vmem:[%s17498_s3 + $0xa8] sm:$0xff] }
  0x13   :  { %65 = vst [vmem:[#allocation2 + $0x270] sm:$0x1] %v11210_v4  ;;  %66 = vst [vmem:[#allocation2 + $0x288] sm:$0x1] %v11210_v4  ;;  %v181_v41 = vadd.f32 %v180_v39, %v11426_v36  ;;  %v11496_v61 = vld [vmem:[%s17499_s0 + $0x70] sm:$0xff]  ;;  %v9961_v63 = vpack.c.bf16 %v2591_v59, %v2590_v58  ;;  %v11502_v1 = vld [vmem:[%s17499_s0 + $0x78] sm:$0xff] }
  0x14   :  { %67 = vst [vmem:[#allocation2 + $0x2a0] sm:$0x1] %v11210_v4  ;;  %68 = vst [vmem:[#allocation2 + $0x2b8] sm:$0x1] %v11210_v4  ;;  %9944 = vmatpush1.bf16.msra.mxu0 %v9943_v21  ;;  %v2592_v2 = vld [vmem:[%s17498_s3 + $0xb0] sm:$0xff]  ;;  %v2593_v3 = vld [vmem:[%s17498_s3 + $0xb8] sm:$0xff] }
  0x15   :  { %69 = vst [vmem:[#allocation2 + $0x2d0] sm:$0x1] %v11210_v4  ;;  %70 = vst [vmem:[#allocation2 + $0x2e8] sm:$0x1] %v11210_v4  ;;  %9945 = vmatprep.subr.bf16.mxu0 %v17504_v0  ;;  %v182_v46 = vadd.f32 %v181_v41, %v11439_v40  ;;  %v11515_v6 = vld [vmem:[%s17499_s0 + $0x80] sm:$0xff]  ;;  %v9964_v8 = vpack.c.bf16 %v2593_v3, %v2592_v2  ;;  %v11521_v9 = vld [vmem:[%s17499_s0 + $0x88] sm:$0xff] }
  0x16   :  { %71 = vst [vmem:[#allocation2 + $0x300] sm:$0x1] %v11210_v4  ;;  %72 = vst [vmem:[#allocation2 + $0x318] sm:$0x1] %v11210_v4  ;;  %v2594_v10 = vld [vmem:[%s17498_s3 + $0xc0] sm:$0xff]  ;;  %v2595_v11 = vld [vmem:[%s17498_s3 + $0xc8] sm:$0xff] }
  0x17   :  { %73 = vst [vmem:[#allocation2 + $0x330] sm:$0x1] %v11210_v4  ;;  %76 = vst [vmem:[#allocation2 + $0x29] sm:$0x1] %v11210_v4  ;;  %v183_v48 = vadd.f32 %v182_v46, %v11445_v43  ;;  %v11534_v13 = vld [vmem:[%s17499_s0 + $0x90] sm:$0xff]  ;;  %v9967_v15 = vpack.c.bf16 %v2595_v11, %v2594_v10  ;;  %v11540_v16 = vld [vmem:[%s17499_s0 + $0x98] sm:$0xff] }
  0x18   :  { %77 = vst [vmem:[#allocation2 + $0x41] sm:$0x1] %v11210_v4  ;;  %78 = vst [vmem:[#allocation2 + $0x59] sm:$0x1] %v11210_v4  ;;  %9947 = vmatpush1.bf16.msra.mxu0 %v9946_v28  ;;  %v2596_v20 = vld [vmem:[%s17498_s3 + $0xd0] sm:$0xff]  ;;  %v2597_v21 = vld [vmem:[%s17498_s3 + $0xd8] sm:$0xff] }
  0x19   :  { %79 = vst [vmem:[#allocation2 + $0x71] sm:$0x1] %v11210_v4  ;;  %80 = vst [vmem:[#allocation2 + $0x89] sm:$0x1] %v11210_v4  ;;  %9948 = vmatprep.subr.bf16.mxu0 %v17504_v0  ;;  %v184_v53 = vadd.f32 %v183_v48, %v11458_v47  ;;  %v11553_v24 = vld [vmem:[%s17499_s0 + $0xa0] sm:$0xff]  ;;  %v9970_v27 = vpack.c.bf16 %v2597_v21, %v2596_v20  ;;  %v11559_v28 = vld [vmem:[%s17499_s0 + $0xa8] sm:$0xff] }
  0x1a   :  { %81 = vst [vmem:[#allocation2 + $0xa1] sm:$0x1] %v11210_v4  ;;  %82 = vst [vmem:[#allocation2 + $0xb9] sm:$0x1] %v11210_v4  ;;  %v2598_v30 = vld [vmem:[%s17498_s3 + $0xe0] sm:$0xff]  ;;  %v2599_v31 = vld [vmem:[%s17498_s3 + $0xe8] sm:$0xff] }
  0x1b   :  { %83 = vst [vmem:[#allocation2 + $0xd1] sm:$0x1] %v11210_v4  ;;  %84 = vst [vmem:[#allocation2 + $0xe9] sm:$0x1] %v11210_v4  ;;  %v185_v55 = vadd.f32 %v184_v53, %v11464_v50  ;;  %v11572_v34 = vld [vmem:[%s17499_s0 + $0xb0] sm:$0xff]  ;;  %v9973_v37 = vpack.c.bf16 %v2599_v31, %v2598_v30  ;;  %v11578_v38 = vld [vmem:[%s17499_s0 + $0xb8] sm:$0xff] }
  0x1c   :  { %85 = vst [vmem:[#allocation2 + $0x101] sm:$0x1] %v11210_v4  ;;  %86 = vst [vmem:[#allocation2 + $0x119] sm:$0x1] %v11210_v4  ;;  %9950 = vmatpush1.bf16.msra.mxu0 %v9949_v35  ;;  %v2600_v39 = vld [vmem:[%s17498_s3 + $0xf0] sm:$0xff]  ;;  %v2601_v41 = vld [vmem:[%s17498_s3 + $0xf8] sm:$0xff] }
  0x1d   :  { %87 = vst [vmem:[#allocation2 + $0x131] sm:$0x1] %v11210_v4  ;;  %88 = vst [vmem:[#allocation2 + $0x149] sm:$0x1] %v11210_v4  ;;  %9951 = vmatprep.subr.bf16.mxu0 %v17504_v0  ;;  %v186_v60 = vadd.f32 %v185_v55, %v11477_v54  ;;  %v11591_v44 = vld [vmem:[%s17499_s0 + $0xc0] sm:$0xff]  ;;  %v9976_v46 = vpack.c.bf16 %v2601_v41, %v2600_v39  ;;  %v11597_v48 = vld [vmem:[%s17499_s0 + $0xc8] sm:$0xff] }
  0x1e   :  { %89 = vst [vmem:[#allocation2 + $0x161] sm:$0x1] %v11210_v4  ;;  %90 = vst [vmem:[#allocation2 + $0x179] sm:$0x1] %v11210_v4  ;;  %v2603_v51 = vld [vmem:[%s17498_s3 + $0x108] sm:$0xff]  ;;  %v11610_v53 = vld [vmem:[%s17499_s0 + $0xd0] sm:$0xff] }
  0x1f   :  { %91 = vst [vmem:[#allocation2 + $0x191] sm:$0x1] %v11210_v4  ;;  %94 = vst [vmem:[#allocation2 + $0x1d9] sm:$0x1] %v11210_v4  ;;  %v187_v62 = vadd.f32 %v186_v60, %v11483_v57  ;;  %v11616_v59 = vld [vmem:[%s17499_s0 + $0xd8] sm:$0xff]  ;;  %v970_v60 = vld [vmem:[#allocation2 + $0x9] sm:$0xff] }
  0x20   :  { %95 = vst [vmem:[#allocation2 + $0x1f1] sm:$0x1] %v11210_v4  ;;  %96 = vst [vmem:[#allocation2 + $0x209] sm:$0x1] %v11210_v4  ;;  %9953 = vmatpush1.bf16.msra.mxu0 %v9952_v42  ;;  %v11629_v3 = vld [vmem:[%s17499_s0 + $0xe8] sm:$0xff]  ;;  %v11643_v10 = vld [vmem:[%s17499_s0 + $0xf8] sm:$0xff] }
  0x21   :  { %97 = vst [vmem:[#allocation2 + $0x221] sm:$0x1] %v11210_v4  ;;  %98 = vst [vmem:[#allocation2 + $0x239] sm:$0x1] %v11210_v4  ;;  %9954 = vmatprep.subr.bf16.mxu0 %v17504_v0  ;;  %v188_v5 = vadd.f32 %v187_v62, %v11496_v61  ;;  %v11661_v20 = vld [vmem:[%s17499_s0 + $0x110] sm:$0xff]  ;;  %v11679_v31 = vld [vmem:[%s17499_s0 + $0x128] sm:$0xff] }
  0x22   :  { %99 = vst [vmem:[#allocation2 + $0x251] sm:$0x1] %v11210_v4  ;;  %100 = vst [vmem:[#allocation2 + $0x269] sm:$0x1] %v11210_v4  ;;  %v11691_v39 = vld [vmem:[%s17499_s0 + $0x138] sm:$0xff] }
  0x23   :  { %101 = vst [vmem:[#allocation2 + $0x281] sm:$0x1] %v11210_v4  ;;  %102 = vst [vmem:[#allocation2 + $0x299] sm:$0x1] %v11210_v4  ;;  %v189_v7 = vadd.f32 %v188_v5, %v11502_v1 }
  0x24   :  { %103 = vst [vmem:[#allocation2 + $0x2b1] sm:$0x1] %v11210_v4  ;;  %104 = vst [vmem:[#allocation2 + $0x2c9] sm:$0x1] %v11210_v4  ;;  %9956 = vmatpush1.bf16.msra.mxu0 %v9955_v49  ;;  %v2602_v49 = vld [vmem:[%s17498_s3 + $0x100] sm:$0xff] }
  0x25   :  { %105 = vst [vmem:[#allocation2 + $0x2e1] sm:$0x1] %v11210_v4  ;;  %106 = vst [vmem:[#allocation2 + $0x2f9] sm:$0x1] %v11210_v4  ;;  %9957 = vmatprep.subr.bf16.mxu0 %v17504_v0  ;;  %v190_v12 = vadd.f32 %v189_v7, %v11515_v6  ;;  %v9979_v58 = vpack.c.bf16 %v2603_v51, %v2602_v49  ;;  %v11636_v7 = vld [vmem:[%s17499_s0 + $0xf0] sm:$0xff] }
  0x26   :  { %107 = vst [vmem:[#allocation2 + $0x311] sm:$0x1] %v11210_v4  ;;  %108 = vst [vmem:[#allocation2 + $0x329] sm:$0x1] %v11210_v4  ;;  %v11709_v51 = vld [vmem:[%s17499_s0 + $0x150] sm:$0xff] }
  0x27   :  { %109 = vst [vmem:[#allocation2 + $0x341] sm:$0x1] %v11210_v4  ;;  %39 = vst [vmem:[#allocation2] sm:$0x1] %v11210_v4  ;;  %v191_v14 = vadd.f32 %v190_v12, %v11521_v9  ;;  %v11649_v12 = vld [vmem:[%s17499_s0 + $0x100] sm:$0xff] }
  0x28   :  { %56 = vst [vmem:[#allocation2 + $0x198] sm:$0x1] %v11210_v4  ;;  %57 = vst [vmem:[#allocation2 + $0x1b0] sm:$0x1] %v11210_v4  ;;  %9959 = vmatpush1.bf16.msra.mxu0 %v9958_v56 }
  0x29   :  { %74 = vst [vmem:[#allocation2 + $0x348] sm:$0x1] %v11210_v4  ;;  %75 = vst [vmem:[#allocation2 + $0x11] sm:$0x1] %v11210_v4  ;;  %9960 = vmatprep.subr.bf16.mxu0 %v17504_v0  ;;  %v192_v23 = vadd.f32 %v191_v14, %v11534_v13 }
  0x2a   :  { %92 = vst [vmem:[#allocation2 + $0x1a9] sm:$0x1] %v11210_v4  ;;  %93 = vst [vmem:[#allocation2 + $0x1c1] sm:$0x1] %v11210_v4 }
  0x2b   :  { %110 = vst [vmem:[#allocation2 + $0x359] sm:$0x1] %v11210_v4  ;;  %17698 = vst [vmem:[#allocation4_spill] sm:$0xff] %v11371_v17  ;;  %v193_v25 = vadd.f32 %v192_v23, %v11540_v16  ;;  %v11667_v23 = vld [vmem:[%s17499_s0 + $0x118] sm:$0xff] }
  0x2c   :  { %17699 = vst [vmem:[#allocation5_spill] sm:$0xff] %v11376_v18  ;;  %17700 = vst [vmem:[#allocation6_spill] sm:$0xff] %v11381_v19  ;;  %9962 = vmatpush1.bf16.msra.mxu0 %v9961_v63  ;;  %v11623_v63 = vld [vmem:[%s17499_s0 + $0xe0] sm:$0xff] }
  0x2d   :  { %17701 = vst [vmem:[#allocation7_spill] sm:$0xff] %v11388_v22  ;;  %17702 = vst [vmem:[#allocation8_spill] sm:$0xff] %v11401_v26  ;;  %9963 = vmatprep.subr.bf16.mxu0 %v17504_v0  ;;  %v194_v32 = vadd.f32 %v193_v25, %v11553_v24 }
  0x2e   :  { %17703 = vst [vmem:[#allocation9_spill] sm:$0xff] %v11407_v29  ;;  %v841_v56 = vld [vmem:[#allocation2] sm:$0xff] }
  0x2f   :  { %v195_v35 = vadd.f32 %v194_v32, %v11559_v28 }
  0x30   :  { %9965 = vmatpush1.bf16.msra.mxu0 %v9964_v8 }
  0x31   :  { %9966 = vmatprep.subr.bf16.mxu0 %v17504_v0  ;;  %v196_v42 = vadd.f32 %v195_v35, %v11572_v34  ;;  %v11685_v35 = vld [vmem:[%s17499_s0 + $0x130] sm:$0xff] }
  0x33   :  { %v197_v45 = vadd.f32 %v196_v42, %v11578_v38  ;;  %v11697_v42 = vld [vmem:[%s17499_s0 + $0x140] sm:$0xff] }
  0x34   :  { %9968 = vmatpush1.bf16.msra.mxu0 %v9967_v15 }
  0x35   :  { %9969 = vmatprep.subr.bf16.mxu0 %v17504_v0  ;;  %v198_v52 = vadd.f32 %v197_v45, %v11591_v44 }
  0x37   :  { %v199_v55 = vadd.f32 %v198_v52, %v11597_v48 }
  0x38   :  { %9971 = vmatpush1.bf16.msra.mxu0 %v9970_v27  ;;  %v11673_v27 = vld [vmem:[%s17499_s0 + $0x120] sm:$0xff] }
  0x39   :  { %9972 = vmatprep.subr.bf16.mxu0 %v17504_v0  ;;  %v200_v62 = vadd.f32 %v199_v55, %v11610_v53  ;;  %v11715_v55 = vld [vmem:[%s17499_s0 + $0x158] sm:$0xff] }
  0x3b   :  { %v201_v2 = vadd.f32 %v200_v62, %v11616_v59  ;;  %v11727_v62 = vld [vmem:[%s17499_s0 + $0x168] sm:$0xff] }
  0x3c   :  { %9974 = vmatpush1.bf16.msra.mxu0 %v9973_v37 }
  0x3d   :  { %9975 = vmatprep.subr.bf16.mxu0 %v17504_v0  ;;  %v202_v5 = vadd.f32 %v201_v2, %v11623_v63 }
  0x3f   :  { %v203_v8 = vadd.f32 %v202_v5, %v11629_v3  ;;  %v11733_v5 = vld [vmem:[%s17499_s0 + $0x170] sm:$0xff] }
  0x40   :  { %9977 = vmatpush1.bf16.msra.mxu0 %v9976_v46  ;;  %v11703_v46 = vld [vmem:[%s17499_s0 + $0x148] sm:$0xff] }
  0x41   :  { %9978 = vmatprep.subr.bf16.mxu0 %v17504_v0  ;;  %v204_v11 = vadd.f32 %v203_v8, %v11636_v7 }
  0x43   :  { %2779 = vmatmul.mubr.f32.vlgmr.msra.gmra.mrb[0].mxu0 %v841_v56  ;;  %v205_v14 = vadd.f32 %v204_v11, %v11643_v10  ;;  %v11739_v11 = vld [vmem:[%s17499_s0 + $0x178] sm:$0xff] }
  0x44   :  { %9980 = vmatpush1.bf16.msra.mxu0 %v9979_v58  ;;  %2783 = vmatprep.mubr.f32.mxu0 %v970_v60  ;;  %v11721_v58 = vld [vmem:[%s17499_s0 + $0x160] sm:$0xff] }
  0x45   :  { %9981 = vmatprep.subr.bf16.mxu0 %v17504_v0  ;;  %v206_v15 = vadd.f32 %v205_v14, %v11649_v12  ;;  %v11811_v0 = vld [vmem:[%s17499_s0 + $0x1d8] sm:$0xff] }
  0x46   :  { %17712 = vst [vmem:[#allocation18_spill] sm:$0xff] %v11811_v0 }
  0x47   :  { %2784 = vmatmul.mubr.f32.gmra.mrb[2].mxu0 %v11210_v4  ;;  %v11655_v4 = vld [vmem:[%s17499_s0 + $0x108] sm:$0xff] }
  0x48   :  { %v207_v21 = vadd.f32 %v206_v15, %v11655_v4  ;;  %v11745_v15 = vld [vmem:[%s17499_s0 + $0x180] sm:$0xff] }
  0x4a   :  { %v208_v25 = vadd.f32 %v207_v21, %v11661_v20 }
  0x4c   :  { %v209_v30 = vadd.f32 %v208_v25, %v11667_v23  ;;  %v11751_v25 = vld [vmem:[%s17499_s0 + $0x188] sm:$0xff] }
  0x4e   :  { %v210_v32 = vadd.f32 %v209_v30, %v11673_v27 }
  0x50   :  { %v211_v37 = vadd.f32 %v210_v32, %v11679_v31  ;;  %v11757_v32 = vld [vmem:[%s17499_s0 + $0x190] sm:$0xff] }
  0x52   :  { %v212_v41 = vadd.f32 %v211_v37, %v11685_v35 }
  0x54   :  { %v213_v45 = vadd.f32 %v212_v41, %v11691_v39  ;;  %v11763_v41 = vld [vmem:[%s17499_s0 + $0x198] sm:$0xff] }
  0x55   :  { %17704 = vst [vmem:[#allocation10_spill] sm:$0xff] %v11763_v41 }
  0x56   :  { %v214_v49 = vadd.f32 %v213_v45, %v11697_v42 }
  0x58   :  { %v215_v52 = vadd.f32 %v214_v49, %v11703_v46  ;;  %v11769_v49 = vld [vmem:[%s17499_s0 + $0x1a0] sm:$0xff] }
  0x59   :  { %17705 = vst [vmem:[#allocation11_spill] sm:$0xff] %v11769_v49 }
  0x5a   :  { %v216_v56 = vadd.f32 %v215_v52, %v11709_v51 }
  0x5c   :  { %v217_v60 = vadd.f32 %v216_v56, %v11715_v55  ;;  %v11775_v56 = vld [vmem:[%s17499_s0 + $0x1a8] sm:$0xff] }
  0x5d   :  { %17706 = vst [vmem:[#allocation12_spill] sm:$0xff] %v11775_v56 }
  0x5e   :  { %v218_v2 = vadd.f32 %v217_v60, %v11721_v58 }
  0x60   :  { %v219_v8 = vadd.f32 %v218_v2, %v11727_v62  ;;  %v11781_v2 = vld [vmem:[%s17499_s0 + $0x1b0] sm:$0xff] }
  0x61   :  { %17707 = vst [vmem:[#allocation13_spill] sm:$0xff] %v11781_v2 }
  0x62   :  { %v220_v14 = vadd.f32 %v219_v8, %v11733_v5 }
  0x64   :  { %v221_v21 = vadd.f32 %v220_v14, %v11739_v11  ;;  %v11787_v14 = vld [vmem:[%s17499_s0 + $0x1b8] sm:$0xff] }
  0x65   :  { %17708 = vst [vmem:[#allocation14_spill] sm:$0xff] %v11787_v14 }
  0x66   :  { %v222_v30 = vadd.f32 %v221_v21, %v11745_v15 }
  0x68   :  { %v223_v37 = vadd.f32 %v222_v30, %v11751_v25  ;;  %v11793_v30 = vld [vmem:[%s17499_s0 + $0x1c0] sm:$0xff] }
  0x69   :  { %17709 = vst [vmem:[#allocation15_spill] sm:$0xff] %v11793_v30 }
  0x6a   :  { %v224_v45 = vadd.f32 %v223_v37, %v11757_v32 }
  0x6c   :  { %v225_v52 = vadd.f32 %v224_v45, %v11763_v41  ;;  %v11799_v45 = vld [vmem:[%s17499_s0 + $0x1c8] sm:$0xff] }
  0x6d   :  { %17710 = vst [vmem:[#allocation16_spill] sm:$0xff] %v11799_v45 }
  0x6e   :  { %v226_v60 = vadd.f32 %v225_v52, %v11769_v49 }
  0x70   :  { %v227_v8 = vadd.f32 %v226_v60, %v11775_v56  ;;  %v11805_v60 = vld [vmem:[%s17499_s0 + $0x1d0] sm:$0xff] }
  0x71   :  { %17711 = vst [vmem:[#allocation17_spill] sm:$0xff] %v11805_v60 }
  0x72   :  { %v228_v21 = vadd.f32 %v227_v8, %v11781_v2 }
  0x74   :  { %v229_v37 = vadd.f32 %v228_v21, %v11787_v14 }
  0x76   :  { %v230_v52 = vadd.f32 %v229_v37, %v11793_v30  ;;  %v11818_v37 = vld [vmem:[%s17499_s0 + $0x1e0] sm:$0xff] }
  0x77   :  { %17713 = vst [vmem:[#allocation19_spill] sm:$0xff] %v11818_v37 }
  0x78   :  { %v231_v8 = vadd.f32 %v230_v52, %v11799_v45  ;;  %v11824_v52 = vld [vmem:[%s17499_s0 + $0x1e8] sm:$0xff] }
  0x79   :  { %17714 = vst [vmem:[#allocation20_spill] sm:$0xff] %v11824_v52 }
  0x7a   :  { %v232_v21 = vadd.f32 %v231_v8, %v11805_v60  ;;  %v11830_v8 = vld [vmem:[%s17499_s0 + $0x1f0] sm:$0xff] }
  0x7b   :  { %17715 = vst [vmem:[#allocation21_spill] sm:$0xff] %v11830_v8 }
  0x7c   :  { %v233_v14 = vadd.f32 %v232_v21, %v11811_v0  ;;  %v11836_v0 = vld [vmem:[%s17499_s0 + $0x1f8] sm:$0xff] }
  0x7d   :  { %17716 = vst [vmem:[#allocation22_spill] sm:$0xff] %v11836_v0 }
  0x7e   :  { %v234_v30 = vadd.f32 %v233_v14, %v11818_v37 }
  0x80   :  { %v235_v45 = vadd.f32 %v234_v30, %v11824_v52 }
  0x82   :  { %v236_v21 = vadd.f32 %v235_v45, %v11830_v8 }
  0x84   :  { %v237_v14 = vadd.f32 %v236_v21, %v11836_v0 }
  0x86   :  { %v238_v37 = vrot.slane %v237_v14, 4 }
  0x88   :  { %v239_v60 = vadd.f32 %v238_v37, %v237_v14 }
  0x8a   :  { %v240_v2 = vrot.slane %v239_v60, 2 }
  0x8c   :  { %v241_v56 = vadd.f32 %v240_v2, %v239_v60 }
  0x8e   :  { %v242_v49 = vrot.slane %v241_v56, 1 }
  0x90   :  { %v243_v30 = vadd.f32 %v242_v49, %v241_v56 }
  0x92   :  { %v11839_v52 = vmul.f32 0.001953125, %v243_v30 }
  0x94   :  { %v245_v41 = vsub.f32 %v11371_v17, %v11839_v52  ;;  %v246_v45 = vsub.f32 %v11376_v18, %v11839_v52  ;;  %v247_v8 = vsub.f32 %v11381_v19, %v11839_v52  ;;  %v248_v21 = vsub.f32 %v11388_v22, %v11839_v52 }
  0x95   :  { %v249_v2 = vsub.f32 %v11401_v26, %v11839_v52  ;;  %v250_v56 = vsub.f32 %v11407_v29, %v11839_v52  ;;  %v251_v30 = vsub.f32 %v11420_v33, %v11839_v52  ;;  %v252_v19 = vsub.f32 %v11426_v36, %v11839_v52 }
  0x96   :  { %v309_v0 = vmul.f32 %v245_v41, %v245_v41  ;;  %v310_v37 = vmul.f32 %v246_v45, %v246_v45  ;;  %v311_v49 = vmul.f32 %v247_v8, %v247_v8  ;;  %v312_v60 = vmul.f32 %v248_v21, %v248_v21 }
  0x97   :  { %v313_v18 = vmul.f32 %v249_v2, %v249_v2  ;;  %v314_v22 = vmul.f32 %v250_v56, %v250_v56  ;;  %v253_v45 = vsub.f32 %v11439_v40, %v11839_v52  ;;  %v315_v26 = vmul.f32 %v251_v30, %v251_v30 }
  0x98   :  { %v373_v14 = vadd.f32 %v310_v37, %v309_v0  ;;  %v254_v29 = vsub.f32 %v11445_v43, %v11839_v52  ;;  %v316_v21 = vmul.f32 %v252_v19, %v252_v19  ;;  %v255_v37 = vsub.f32 %v11458_v47, %v11839_v52 }
  0x99   :  { %v317_v2 = vmul.f32 %v253_v45, %v253_v45 }
  0x9a   :  { %v374_v17 = vadd.f32 %v373_v14, %v311_v49  ;;  %v256_v14 = vsub.f32 %v11464_v50, %v11839_v52  ;;  %v318_v56 = vmul.f32 %v254_v29, %v254_v29  ;;  %v319_v30 = vmul.f32 %v255_v37, %v255_v37 }
  0x9c   :  { %v375_v41 = vadd.f32 %v374_v17, %v312_v60  ;;  %v257_v60 = vsub.f32 %v11477_v54, %v11839_v52  ;;  %v320_v19 = vmul.f32 %v256_v14, %v256_v14 }
  0x9e   :  { %v376_v8 = vadd.f32 %v375_v41, %v313_v18  ;;  %v258_v41 = vsub.f32 %v11483_v57, %v11839_v52  ;;  %v321_v45 = vmul.f32 %v257_v60, %v257_v60 }
  0xa0   :  { %v377_v0 = vadd.f32 %v376_v8, %v314_v22  ;;  %v259_v8 = vsub.f32 %v11496_v61, %v11839_v52  ;;  %v322_v29 = vmul.f32 %v258_v41, %v258_v41 }
  0xa2   :  { %v378_v49 = vadd.f32 %v377_v0, %v315_v26  ;;  %v260_v0 = vsub.f32 %v11502_v1, %v11839_v52  ;;  %v323_v37 = vmul.f32 %v259_v8, %v259_v8 }
  0xa4   :  { %v379_v17 = vadd.f32 %v378_v49, %v316_v21  ;;  %v261_v49 = vsub.f32 %v11515_v6, %v11839_v52  ;;  %v324_v14 = vmul.f32 %v260_v0, %v260_v0 }
  0xa6   :  { %v380_v18 = vadd.f32 %v379_v17, %v317_v2  ;;  %v262_v17 = vsub.f32 %v11521_v9, %v11839_v52  ;;  %v325_v60 = vmul.f32 %v261_v49, %v261_v49 }
  0xa8   :  { %v381_v22 = vadd.f32 %v380_v18, %v318_v56  ;;  %v263_v18 = vsub.f32 %v11534_v13, %v11839_v52  ;;  %v326_v41 = vmul.f32 %v262_v17, %v262_v17 }
  0xaa   :  { %v382_v26 = vadd.f32 %v381_v22, %v319_v30  ;;  %v264_v22 = vsub.f32 %v11540_v16, %v11839_v52  ;;  %v327_v8 = vmul.f32 %v263_v18, %v263_v18 }
  0xac   :  { %v383_v21 = vadd.f32 %v382_v26, %v320_v19  ;;  %v265_v26 = vsub.f32 %v11553_v24, %v11839_v52  ;;  %v328_v0 = vmul.f32 %v264_v22, %v264_v22 }
  0xae   :  { %v384_v2 = vadd.f32 %v383_v21, %v321_v45  ;;  %v266_v21 = vsub.f32 %v11559_v28, %v11839_v52  ;;  %v329_v49 = vmul.f32 %v265_v26, %v265_v26 }
  0xb0   :  { %v385_v56 = vadd.f32 %v384_v2, %v322_v29  ;;  %v267_v2 = vsub.f32 %v11572_v34, %v11839_v52  ;;  %v330_v17 = vmul.f32 %v266_v21, %v266_v21 }
  0xb2   :  { %v386_v30 = vadd.f32 %v385_v56, %v323_v37  ;;  %v268_v56 = vsub.f32 %v11578_v38, %v11839_v52  ;;  %v331_v18 = vmul.f32 %v267_v2, %v267_v2 }
  0xb4   :  { %v387_v19 = vadd.f32 %v386_v30, %v324_v14  ;;  %v269_v30 = vsub.f32 %v11591_v44, %v11839_v52  ;;  %v332_v22 = vmul.f32 %v268_v56, %v268_v56 }
  0xb6   :  { %v388_v45 = vadd.f32 %v387_v19, %v325_v60  ;;  %v270_v19 = vsub.f32 %v11597_v48, %v11839_v52  ;;  %v333_v26 = vmul.f32 %v269_v30, %v269_v30 }
  0xb8   :  { %v389_v29 = vadd.f32 %v388_v45, %v326_v41  ;;  %v271_v45 = vsub.f32 %v11610_v53, %v11839_v52  ;;  %v334_v21 = vmul.f32 %v270_v19, %v270_v19 }
  0xba   :  { %v390_v37 = vadd.f32 %v389_v29, %v327_v8  ;;  %v272_v29 = vsub.f32 %v11616_v59, %v11839_v52  ;;  %v335_v2 = vmul.f32 %v271_v45, %v271_v45 }
  0xbc   :  { %v391_v14 = vadd.f32 %v390_v37, %v328_v0  ;;  %v273_v37 = vsub.f32 %v11623_v63, %v11839_v52  ;;  %v336_v56 = vmul.f32 %v272_v29, %v272_v29  ;;  %v2604_v29 = vld [vmem:[%s17498_s3 + $0x110] sm:$0xff] }
  0xbe   :  { %v392_v60 = vadd.f32 %v391_v14, %v329_v49  ;;  %v274_v14 = vsub.f32 %v11629_v3, %v11839_v52  ;;  %v337_v30 = vmul.f32 %v273_v37, %v273_v37 }
  0xc0   :  { %v393_v41 = vadd.f32 %v392_v60, %v330_v17  ;;  %v275_v60 = vsub.f32 %v11636_v7, %v11839_v52  ;;  %v338_v19 = vmul.f32 %v274_v14, %v274_v14  ;;  %v2605_v7 = vld [vmem:[%s17498_s3 + $0x118] sm:$0xff] }
  0xc1   :  { %v9982_v37 = vpack.c.bf16 %v2605_v7, %v2604_v29 }
  0xc2   :  { %v394_v8 = vadd.f32 %v393_v41, %v331_v18  ;;  %v276_v41 = vsub.f32 %v11643_v10, %v11839_v52  ;;  %v339_v45 = vmul.f32 %v275_v60, %v275_v60 }
  0xc3   :  { %9983 = vmatpush1.bf16.msra.mxu0 %v9982_v37  ;;  %v286_v37 = vsub.f32 %v11703_v46, %v11839_v52 }
  0xc4   :  { %v395_v0 = vadd.f32 %v394_v8, %v332_v22  ;;  %v277_v8 = vsub.f32 %v11649_v12, %v11839_v52 }
  0xc6   :  { %v396_v49 = vadd.f32 %v395_v0, %v333_v26  ;;  %v340_v0 = vmul.f32 %v276_v41, %v276_v41 }
  0xc8   :  { %v397_v17 = vadd.f32 %v396_v49, %v334_v21  ;;  %v278_v21 = vsub.f32 %v11655_v4, %v11839_v52  ;;  %v341_v49 = vmul.f32 %v277_v8, %v277_v8  ;;  %v283_v8 = vsub.f32 %v11685_v35, %v11839_v52  ;;  %v2607_v35 = vld [vmem:[%s17498_s3 + $0x128] sm:$0xff] }
  0xca   :  { %v398_v18 = vadd.f32 %v397_v17, %v335_v2  ;;  %v279_v2 = vsub.f32 %v11661_v20, %v11839_v52  ;;  %v280_v17 = vsub.f32 %v11667_v23, %v11839_v52  ;;  %v342_v60 = vmul.f32 %v278_v21, %v278_v21 }
  0xcb   :  { %v284_v23 = vsub.f32 %v11691_v39, %v11839_v52 }
  0xcc   :  { %v399_v22 = vadd.f32 %v398_v18, %v336_v56  ;;  %v17717_v56 = vmov 0.0|0.0   ;;  %v281_v18 = vsub.f32 %v11673_v27, %v11839_v52  ;;  %v285_v27 = vsub.f32 %v11697_v42, %v11839_v52 }
  0xcd   :  { %9984 = vmatprep.subr.bf16.mxu0 %v17717_v56 }
  0xce   :  { %v400_v26 = vadd.f32 %v399_v22, %v337_v30  ;;  %v343_v22 = vmul.f32 %v279_v2, %v279_v2  ;;  %v348_v2 = vmul.f32 %v284_v23, %v284_v23  ;;  %v349_v42 = vmul.f32 %v285_v27, %v285_v27 }
  0xcf   :  { %v294_v27 = vsub.f32 %v11751_v25, %v11839_v52 }
  0xd0   :  { %v401_v10 = vadd.f32 %v400_v26, %v338_v19  ;;  %v282_v19 = vsub.f32 %v11679_v31, %v11839_v52  ;;  %v344_v26 = vmul.f32 %v280_v17, %v280_v17  ;;  %v2606_v31 = vld [vmem:[%s17498_s3 + $0x120] sm:$0xff] }
  0xd2   :  { %v402_v14 = vadd.f32 %v401_v10, %v339_v45  ;;  %v345_v45 = vmul.f32 %v281_v18, %v281_v18  ;;  %v346_v7 = vmul.f32 %v282_v19, %v282_v19  ;;  %v290_v19 = vsub.f32 %v11727_v62, %v11839_v52  ;;  %v2608_v62 = vld [vmem:[%s17498_s3 + $0x130] sm:$0xff] }
  0xd4   :  { %v403_v30 = vadd.f32 %v402_v14, %v340_v0  ;;  %v347_v0 = vmul.f32 %v283_v8, %v283_v8  ;;  %v287_v14 = vsub.f32 %v11709_v51, %v11839_v52 }
  0xd6   :  { %v404_v41 = vadd.f32 %v403_v30, %v341_v49  ;;  %v9985_v49 = vpack.c.bf16 %v2607_v35, %v2606_v31  ;;  %v350_v30 = vmul.f32 %v286_v37, %v286_v37  ;;  %v351_v46 = vmul.f32 %v287_v14, %v287_v14  ;;  %v17718_v37 = vld [vmem:[#allocation10_spill] sm:$0xff]  ;;  %v17719_v14 = vld [vmem:[#allocation11_spill] sm:$0xff] }
  0xd7   :  { %v295_v31 = vsub.f32 %v11757_v32, %v11839_v52 }
  0xd8   :  { %v405_v20 = vadd.f32 %v404_v41, %v342_v60  ;;  %9986 = vmatpush1.bf16.msra.mxu0 %v9985_v49  ;;  %v288_v60 = vsub.f32 %v11715_v55, %v11839_v52  ;;  %v292_v55 = vsub.f32 %v11739_v11, %v11839_v52 }
  0xd9   :  { %9987 = vmatprep.subr.bf16.mxu0 %v17717_v56  ;;  %v359_v25 = vmul.f32 %v295_v31, %v295_v31 }
  0xda   :  { %v406_v29 = vadd.f32 %v405_v20, %v343_v22  ;;  %v289_v22 = vsub.f32 %v11721_v58, %v11839_v52  ;;  %v291_v20 = vsub.f32 %v11733_v5, %v11839_v52  ;;  %v293_v58 = vsub.f32 %v11745_v15, %v11839_v52  ;;  %v2609_v5 = vld [vmem:[%s17498_s3 + $0x138] sm:$0xff] }
  0xdc   :  { %v407_v21 = vadd.f32 %v406_v29, %v344_v26  ;;  %v352_v26 = vmul.f32 %v288_v60, %v288_v60  ;;  %v353_v8 = vmul.f32 %v289_v22, %v289_v22  ;;  %v354_v29 = vmul.f32 %v290_v19, %v290_v19  ;;  %v17720_v60 = vld [vmem:[#allocation12_spill] sm:$0xff]  ;;  %v17721_v22 = vld [vmem:[#allocation13_spill] sm:$0xff] }
  0xdd   :  { %v357_v15 = vmul.f32 %v293_v58, %v293_v58  ;;  %v2610_v58 = vld [vmem:[%s17498_s3 + $0x140] sm:$0xff] }
  0xde   :  { %v408_v10 = vadd.f32 %v407_v21, %v345_v45 }
  0xe0   :  { %v409_v39 = vadd.f32 %v408_v10, %v346_v7  ;;  %v355_v7 = vmul.f32 %v291_v20, %v291_v20  ;;  %v9988_v10 = vpack.c.bf16 %v2609_v5, %v2608_v62 }
  0xe2   :  { %v410_v17 = vadd.f32 %v409_v39, %v347_v0  ;;  %v356_v0 = vmul.f32 %v292_v55, %v292_v55  ;;  %9989 = vmatpush1.bf16.msra.mxu0 %v9988_v10  ;;  %v358_v39 = vmul.f32 %v294_v27, %v294_v27 }
  0xe3   :  { %9990 = vmatprep.subr.bf16.mxu0 %v17717_v56 }
  0xe4   :  { %v411_v18 = vadd.f32 %v410_v17, %v348_v2  ;;  %v296_v2 = vsub.f32 %v17718_v37, %v11839_v52 }
  0xe6   :  { %v412_v41 = vadd.f32 %v411_v18, %v349_v42  ;;  %v297_v42 = vsub.f32 %v17719_v14, %v11839_v52  ;;  %v360_v18 = vmul.f32 %v296_v2, %v296_v2 }
  0xe8   :  { %v413_v51 = vadd.f32 %v412_v41, %v350_v30  ;;  %v298_v30 = vsub.f32 %v17720_v60, %v11839_v52  ;;  %v361_v41 = vmul.f32 %v297_v42, %v297_v42 }
  0xea   :  { %v414_v45 = vadd.f32 %v413_v51, %v351_v46  ;;  %v299_v46 = vsub.f32 %v17721_v22, %v11839_v52  ;;  %v362_v20 = vmul.f32 %v298_v30, %v298_v30 }
  0xec   :  { %v415_v23 = vadd.f32 %v414_v45, %v352_v26  ;;  %v17722_v26 = vld [vmem:[#allocation14_spill] sm:$0xff]  ;;  %v17723_v45 = vld [vmem:[#allocation15_spill] sm:$0xff] }
  0xed   :  { %v300_v51 = vsub.f32 %v17722_v26, %v11839_v52  ;;  %v301_v55 = vsub.f32 %v17723_v45, %v11839_v52 }
  0xee   :  { %v416_v21 = vadd.f32 %v415_v23, %v353_v8 }
  0xef   :  { %v364_v5 = vmul.f32 %v300_v51, %v300_v51  ;;  %v365_v31 = vmul.f32 %v301_v55, %v301_v55  ;;  %v2612_v55 = vld [vmem:[%s17498_s3 + $0x150] sm:$0xff] }
  0xf0   :  { %v417_v11 = vadd.f32 %v416_v21, %v354_v29  ;;  %v363_v29 = vmul.f32 %v299_v46, %v299_v46  ;;  %v17724_v21 = vld [vmem:[#allocation16_spill] sm:$0xff] }
  0xf1   :  { %v302_v62 = vsub.f32 %v17724_v21, %v11839_v52 }
  0xf2   :  { %v418_v35 = vadd.f32 %v417_v11, %v355_v7  ;;  %v2611_v7 = vld [vmem:[%s17498_s3 + $0x148] sm:$0xff] }
  0xf3   :  { %v17725_v11 = vld [vmem:[#allocation17_spill] sm:$0xff]  ;;  %v366_v2 = vmul.f32 %v302_v62, %v302_v62 }
  0xf4   :  { %v419_v49 = vadd.f32 %v418_v35, %v356_v0  ;;  %v9991_v0 = vpack.c.bf16 %v2611_v7, %v2610_v58  ;;  %v303_v10 = vsub.f32 %v17725_v11, %v11839_v52  ;;  %v17726_v35 = vld [vmem:[#allocation18_spill] sm:$0xff] }
  0xf5   :  { %v304_v37 = vsub.f32 %v17726_v35, %v11839_v52 }
  0xf6   :  { %v420_v17 = vadd.f32 %v419_v49, %v357_v15  ;;  %9992 = vmatpush1.bf16.msra.mxu0 %v9991_v0  ;;  %v17727_v49 = vld [vmem:[#allocation19_spill] sm:$0xff]  ;;  %v367_v42 = vmul.f32 %v303_v10, %v303_v10 }
  0xf7   :  { %9993 = vmatprep.subr.bf16.mxu0 %v17717_v56  ;;  %v305_v14 = vsub.f32 %v17727_v49, %v11839_v52  ;;  %v368_v30 = vmul.f32 %v304_v37, %v304_v37  ;;  %v448_v49 = vlaneseq }
  0xf8   :  { %v421_v32 = vadd.f32 %v420_v17, %v358_v39  ;;  %v17728_v17 = vld [vmem:[#allocation20_spill] sm:$0xff] }
  0xf9   :  { %v306_v60 = vsub.f32 %v17728_v17, %v11839_v52  ;;  %v369_v46 = vmul.f32 %v305_v14, %v305_v14  ;;  %v449_v14 = vshrl.u32 %v448_v49, 7  ;;  %v2616_v17 = vld [vmem:[%s17498_s3 + $0x170] sm:$0xff]  ;;  %v653_v49 = vld [vmem:[%s17501_s1 + $0x28] sm:$0xff] }
  0xfa   :  { %v422_v19 = vadd.f32 %v421_v32, %v359_v25  ;;  %v17729_v32 = vld [vmem:[#allocation21_spill] sm:$0xff] }
  0xfb   :  { %v307_v22 = vsub.f32 %v17729_v32, %v11839_v52  ;;  %v370_v51 = vmul.f32 %v306_v60, %v306_v60  ;;  %v2617_v60 = vld [vmem:[%s17498_s3 + $0x178] sm:$0xff] }
  0xfc   :  { %v423_v8 = vadd.f32 %v422_v19, %v360_v18  ;;  %v17730_v19 = vld [vmem:[#allocation22_spill] sm:$0xff] }
  0xfd   :  { %v308_v26 = vsub.f32 %v17730_v19, %v11839_v52 }
  0xfe   :  { %v424_v23 = vadd.f32 %v423_v8, %v361_v41  ;;  %v371_v8 = vmul.f32 %v307_v22, %v307_v22  ;;  %v21_v22 = vld [vmem:[%s17500_s2 + $0x1] sm:$0x1] }
 0x100   :  { %v425_v27 = vadd.f32 %v424_v23, %v362_v20  ;;  %v372_v23 = vmul.f32 %v308_v26, %v308_v26  ;;  %v17732_v26 = vld [vmem:[#allocation4_spill] sm:$0xff] }
 0x102   :  { %v426_v15 = vadd.f32 %v425_v27, %v363_v29  ;;  %v2613_v29 = vld [vmem:[%s17498_s3 + $0x158] sm:$0xff] }
 0x103   :  { %v9994_v7 = vpack.c.bf16 %v2613_v29, %v2612_v55  ;;  %v17735_v29 = vld [vmem:[#allocation7_spill] sm:$0xff] }
 0x104   :  { %v427_v39 = vadd.f32 %v426_v15, %v364_v5  ;;  %v2615_v15 = vld [vmem:[%s17498_s3 + $0x168] sm:$0xff] }
 0x105   :  { %9995 = vmatpush1.bf16.msra.mxu0 %v9994_v7  ;;  %v17737_v7 = vld [vmem:[#allocation9_spill] sm:$0xff] }
 0x106   :  { %v428_v25 = vadd.f32 %v427_v39, %v365_v31  ;;  %9996 = vmatprep.subr.bf16.mxu0 %v17717_v56  ;;  %v2614_v31 = vld [vmem:[%s17498_s3 + $0x160] sm:$0xff] }
 0x107   :  { %v9997_v37 = vpack.c.bf16 %v2615_v15, %v2614_v31 }
 0x108   :  { %v429_v18 = vadd.f32 %v428_v25, %v366_v2  ;;  %v12014_v25 = vsub.s32 0, %v449_v14 }
 0x109   :  { %9998 = vmatpush1.bf16.msra.mxu0 %v9997_v37 }
 0x10a   :  { %v430_v41 = vadd.f32 %v429_v18, %v367_v42  ;;  %9999 = vmatprep.subr.bf16.mxu0 %v17717_v56  ;;  %v20_v42 = vld [vmem:[%s17500_s2] sm:$0x1]  ;;  %17731 = vst [vmem:[#allocation10_spill] sm:$0xff] %v12014_v25  ;;  %v10000_v18 = vpack.c.bf16 %v2617_v60, %v2616_v17 }
 0x10c   :  { %v431_v20 = vadd.f32 %v430_v41, %v368_v30 }
 0x10d   :  { %10001 = vmatpush1.bf16.msra.mxu0 %v10000_v18 }
 0x10e   :  { %v432_v45 = vadd.f32 %v431_v20, %v369_v46  ;;  %10002 = vmatprep.subr.bf16.mxu0 %v17717_v56  ;;  %v17733_v20 = vld [vmem:[#allocation5_spill] sm:$0xff] }
 0x110   :  { %v433_v58 = vadd.f32 %v432_v45, %v370_v51  ;;  %v17734_v45 = vld [vmem:[#allocation6_spill] sm:$0xff] }
 0x112   :  { %v434_v21 = vadd.f32 %v433_v58, %v371_v8  ;;  %v17736_v58 = vld [vmem:[#allocation8_spill] sm:$0xff] }
 0x114   :  { %v435_v62 = vadd.f32 %v434_v21, %v372_v23 }
 0x116   :  { %v436_v5 = vrot.slane %v435_v62, 4 }
 0x118   :  { %v437_v27 = vadd.f32 %v436_v5, %v435_v62 }
 0x11a   :  { %v438_v0 = vrot.slane %v437_v27, 2 }
 0x11c   :  { %v439_v11 = vadd.f32 %v438_v0, %v437_v27 }
 0x11e   :  { %v440_v10 = vrot.slane %v439_v11, 1 }
 0x120   :  { %v441_v35 = vadd.f32 %v440_v10, %v439_v11 }
 0x122   :  { %v442_v2 = vmul.f32 0.001953125, %v441_v35  ;;  %v651_v35 = vld [vmem:[%s17501_s1 + $0x18] sm:$0xff] }
 0x124   :  { %v443_v39 = vadd.f32 1e-05, %v442_v2  ;;  %v652_v2 = vld [vmem:[%s17501_s1 + $0x20] sm:$0xff] }
 0x126   :  { %11164 = vrsqrt.f32 %v443_v39 }
 0x130   :  { %v11165_v30 = vpop.eup %11164 }
 0x131   :  { %v445_v32 = vmul.f32 %v11165_v30, %v20_v42 }
 0x133   :  { %v446_v46 = vmul.f32 %v445_v32, %v11839_v52  ;;  %v12027_v41 = vrot.slane %v445_v32, %v12014_v25  ;;  %v654_v32 = vld [vmem:[%s17501_s1 + $0x30] sm:$0xff] }
 0x135   :  { %v447_v19 = vsub.f32 %v21_v22, %v446_v46  ;;  %v452_v51 = vmul.f32 %v12027_v41, %v17732_v26  ;;  %v453_v8 = vmul.f32 %v12027_v41, %v17733_v20  ;;  %v454_v55 = vmul.f32 %v12027_v41, %v17734_v45  ;;  %v655_v22 = vld [vmem:[%s17501_s1 + $0x38] sm:$0xff] }
 0x136   :  { %v455_v23 = vmul.f32 %v12027_v41, %v17735_v29  ;;  %v456_v52 = vmul.f32 %v12027_v41, %v17736_v58  ;;  %v457_v21 = vmul.f32 %v12027_v41, %v17737_v7  ;;  %v458_v62 = vmul.f32 %v12027_v41, %v11420_v33 }
 0x137   :  { %v12045_v5 = vrot.slane %v447_v19, %v12014_v25  ;;  %v459_v27 = vmul.f32 %v12027_v41, %v11426_v36  ;;  %v460_v0 = vmul.f32 %v12027_v41, %v11439_v40  ;;  %v461_v11 = vmul.f32 %v12027_v41, %v11445_v43  ;;  %v648_v40 = vld [vmem:[%s17501_s1] sm:$0xff] }
 0x138   :  { %v462_v10 = vmul.f32 %v12027_v41, %v11458_v47  ;;  %v463_v31 = vmul.f32 %v12027_v41, %v11464_v50  ;;  %v464_v33 = vmul.f32 %v12027_v41, %v11477_v54  ;;  %v465_v15 = vmul.f32 %v12027_v41, %v11483_v57  ;;  %v649_v47 = vld [vmem:[%s17501_s1 + $0x8] sm:$0xff]  ;;  %v650_v54 = vld [vmem:[%s17501_s1 + $0x10] sm:$0xff] }
 0x139   :  { %v520_v36 = vadd.f32 %v12045_v5, %v452_v51  ;;  %v521_v43 = vadd.f32 %v12045_v5, %v453_v8  ;;  %v522_v50 = vadd.f32 %v12045_v5, %v454_v55  ;;  %v523_v57 = vadd.f32 %v12045_v5, %v455_v23 }
 0x13a   :  { %v524_v37 = vadd.f32 %v12045_v5, %v456_v52  ;;  %v525_v39 = vadd.f32 %v12045_v5, %v457_v21  ;;  %v526_v14 = vadd.f32 %v12045_v5, %v458_v62  ;;  %v527_v42 = vadd.f32 %v12045_v5, %v459_v27  ;;  %v656_v21 = vld [vmem:[%s17501_s1 + $0x40] sm:$0xff] }
 0x13b   :  { %v584_v17 = vmax.f32 %v520_v36, 0.0  ;;  %v585_v60 = vmax.f32 %v521_v43, 0.0  ;;  %v586_v30 = vmax.f32 %v522_v50, 0.0  ;;  %v587_v18 = vmax.f32 %v523_v57, 0.0 }
 0x13c   :  { %v588_v46 = vmax.f32 %v524_v37, 0.0  ;;  %v589_v19 = vmax.f32 %v525_v39, 0.0  ;;  %v590_v26 = vmax.f32 %v526_v14, 0.0  ;;  %v591_v51 = vmax.f32 %v527_v42, 0.0  ;;  %v660_v37 = vld [vmem:[%s17501_s1 + $0x60] sm:$0xff] }
 0x13d   :  { %v712_v20 = vadd.f32 %v648_v40, %v584_v17  ;;  %v12093_v8 = vadd.f32 %v649_v47, %v585_v60  ;;  %v12095_v45 = vadd.f32 %v650_v54, %v586_v30  ;;  %v12097_v55 = vadd.f32 %v651_v35, %v587_v18  ;;  %v662_v17 = vld [vmem:[%s17501_s1 + $0x70] sm:$0xff]  ;;  %v663_v60 = vld [vmem:[%s17501_s1 + $0x78] sm:$0xff] }
 0x13e   :  { %v12099_v29 = vadd.f32 %v652_v2, %v588_v46  ;;  %v12101_v23 = vadd.f32 %v653_v49, %v589_v19  ;;  %v12103_v58 = vadd.f32 %v654_v32, %v590_v26  ;;  %v12105_v52 = vadd.f32 %v655_v22, %v591_v51 }
 0x13f   :  { %777 = vst [vmem:[#allocation2 + $0x19] sm:$0xff] %v712_v20  ;;  %2788 = vmatprep.mubr.f32.mxu0 %v712_v20  ;;  %778 = vst [vmem:[#allocation2 + $0x21] sm:$0xff] %v12093_v8  ;;  %v528_v7 = vadd.f32 %v12045_v5, %v460_v0  ;;  %v529_v62 = vadd.f32 %v12045_v5, %v461_v11  ;;  %v530_v27 = vadd.f32 %v12045_v5, %v462_v10  ;;  %v657_v0 = vld [vmem:[%s17501_s1 + $0x48] sm:$0xff]  ;;  %v658_v11 = vld [vmem:[%s17501_s1 + $0x50] sm:$0xff] }
 0x140   :  { %779 = vst [vmem:[#allocation2 + $0x31] sm:$0xff] %v12095_v45  ;;  %780 = vst [vmem:[#allocation2 + $0x39] sm:$0xff] %v12097_v55  ;;  %v531_v36 = vadd.f32 %v12045_v5, %v463_v31  ;;  %v659_v10 = vld [vmem:[%s17501_s1 + $0x58] sm:$0xff]  ;;  %v532_v31 = vadd.f32 %v12045_v5, %v464_v33  ;;  %v533_v40 = vadd.f32 %v12045_v5, %v465_v15  ;;  %v661_v33 = vld [vmem:[%s17501_s1 + $0x68] sm:$0xff] }
 0x141   :  { %781 = vst [vmem:[#allocation2 + $0x49] sm:$0xff] %v12099_v29  ;;  %782 = vst [vmem:[#allocation2 + $0x51] sm:$0xff] %v12101_v23  ;;  %v466_v43 = vmul.f32 %v12027_v41, %v11496_v61  ;;  %v467_v47 = vmul.f32 %v12027_v41, %v11502_v1  ;;  %v592_v50 = vmax.f32 %v528_v7, 0.0  ;;  %v593_v54 = vmax.f32 %v529_v62, 0.0 }
 0x142   :  { %783 = vst [vmem:[#allocation2 + $0x61] sm:$0xff] %v12103_v58  ;;  %784 = vst [vmem:[#allocation2 + $0x69] sm:$0xff] %v12105_v52  ;;  %v594_v57 = vmax.f32 %v530_v27, 0.0  ;;  %v595_v35 = vmax.f32 %v531_v36, 0.0  ;;  %v596_v2 = vmax.f32 %v532_v31, 0.0  ;;  %v597_v15 = vmax.f32 %v533_v40, 0.0 }
 0x143   :  { %v534_v39 = vadd.f32 %v12045_v5, %v466_v43  ;;  %v535_v61 = vadd.f32 %v12045_v5, %v467_v47  ;;  %v12144_v49 = vadd.f32 %v656_v21, %v592_v50  ;;  %v12146_v1 = vadd.f32 %v657_v0, %v593_v54  ;;  %v665_v27 = vld [vmem:[%s17501_s1 + $0x88] sm:$0xff]  ;;  %v666_v0 = vld [vmem:[%s17501_s1 + $0x90] sm:$0xff] }
 0x144   :  { %v12148_v14 = vadd.f32 %v658_v11, %v594_v57  ;;  %v12150_v42 = vadd.f32 %v659_v10, %v595_v35  ;;  %v12158_v30 = vadd.f32 %v660_v37, %v596_v2  ;;  %v12160_v18 = vadd.f32 %v661_v33, %v597_v15  ;;  %v667_v11 = vld [vmem:[%s17501_s1 + $0x98] sm:$0xff]  ;;  %v668_v57 = vld [vmem:[%s17501_s1 + $0xa0] sm:$0xff]  ;;  %v669_v35 = vld [vmem:[%s17501_s1 + $0xa8] sm:$0xff] }
 0x145   :  { %v598_v32 = vmax.f32 %v534_v39, 0.0  ;;  %v599_v22 = vmax.f32 %v535_v61, 0.0  ;;  %785 = vst [vmem:[#allocation2 + $0x79] sm:$0xff] %v12144_v49  ;;  %786 = vst [vmem:[#allocation2 + $0x81] sm:$0xff] %v12146_v1  ;;  %v468_v46 = vmul.f32 %v12027_v41, %v11515_v6  ;;  %v469_v19 = vmul.f32 %v12027_v41, %v11521_v9 }
 0x146   :  { %787 = vst [vmem:[#allocation2 + $0x91] sm:$0xff] %v12148_v14  ;;  %788 = vst [vmem:[#allocation2 + $0x99] sm:$0xff] %v12150_v42  ;;  %v470_v26 = vmul.f32 %v12027_v41, %v11534_v13  ;;  %v471_v51 = vmul.f32 %v12027_v41, %v11540_v16  ;;  %v843_v20 = vld [vmem:[#allocation2 + $0x18] sm:$0xff]  ;;  %v472_v6 = vmul.f32 %v12027_v41, %v11553_v24  ;;  %v664_v16 = vld [vmem:[%s17501_s1 + $0x80] sm:$0xff] }
 0x147   :  { %789 = vst [vmem:[#allocation2 + $0xa9] sm:$0xff] %v12158_v30  ;;  %790 = vst [vmem:[#allocation2 + $0xb1] sm:$0xff] %v12160_v18  ;;  %v12176_v7 = vadd.f32 %v662_v17, %v598_v32  ;;  %v12178_v21 = vadd.f32 %v663_v60, %v599_v22  ;;  %v473_v9 = vmul.f32 %v12027_v41, %v11559_v28  ;;  %2789 = vmatmul.mubr.f32.gmra.mrb[4].mxu0 %v843_v20  ;;  %v844_v28 = vld [vmem:[#allocation2 + $0x20] sm:$0xff]  ;;  %v670_v17 = vld [vmem:[%s17501_s1 + $0xb0] sm:$0xff] }
 0x148   :  { %v536_v13 = vadd.f32 %v12045_v5, %v468_v46  ;;  %v537_v62 = vadd.f32 %v12045_v5, %v469_v19  ;;  %v538_v36 = vadd.f32 %v12045_v5, %v470_v26  ;;  %v539_v24 = vadd.f32 %v12045_v5, %v471_v51  ;;  %2793 = vmatprep.mubr.f32.mxu0 %v12093_v8  ;;  %v671_v60 = vld [vmem:[%s17501_s1 + $0xb8] sm:$0xff]  ;;  %v845_v32 = vld [vmem:[#allocation2 + $0x30] sm:$0xff] }
 0x149   :  { %791 = vst [vmem:[#allocation2 + $0xc1] sm:$0xff] %v12176_v7  ;;  %792 = vst [vmem:[#allocation2 + $0xc9] sm:$0xff] %v12178_v21  ;;  %v540_v10 = vadd.f32 %v12045_v5, %v472_v6  ;;  %v541_v31 = vadd.f32 %v12045_v5, %v473_v9  ;;  %v474_v8 = vmul.f32 %v12027_v41, %v11572_v34  ;;  %v2618_v9 = vld [vmem:[%s17498_s3 + $0x180] sm:$0xff] }
 0x14a   :  { %v475_v40 = vmul.f32 %v12027_v41, %v11578_v38  ;;  %v600_v43 = vmax.f32 %v536_v13, 0.0  ;;  %v601_v47 = vmax.f32 %v537_v62, 0.0  ;;  %v602_v50 = vmax.f32 %v538_v36, 0.0  ;;  %v2619_v13 = vld [vmem:[%s17498_s3 + $0x188] sm:$0xff]  ;;  %v672_v62 = vld [vmem:[%s17501_s1 + $0xc0] sm:$0xff] }
 0x14b   :  { %v603_v54 = vmax.f32 %v539_v24, 0.0  ;;  %v604_v37 = vmax.f32 %v540_v10, 0.0  ;;  %v605_v33 = vmax.f32 %v541_v31, 0.0  ;;  %v542_v2 = vadd.f32 %v12045_v5, %v474_v8  ;;  %2794 = vmatmul.mubr.f32.gmra.mrb[6].mxu0 %v844_v28  ;;  %v673_v36 = vld [vmem:[%s17501_s1 + $0xc8] sm:$0xff]  ;;  %v674_v28 = vld [vmem:[%s17501_s1 + $0xd0] sm:$0xff] }
 0x14c   :  { %v543_v34 = vadd.f32 %v12045_v5, %v475_v40  ;;  %v12217_v38 = vadd.f32 %v664_v16, %v600_v43  ;;  %v12219_v15 = vadd.f32 %v665_v27, %v601_v47  ;;  %v12221_v39 = vadd.f32 %v666_v0, %v602_v50  ;;  %2798 = vmatprep.mubr.f32.mxu0 %v12095_v45  ;;  %v675_v0 = vld [vmem:[%s17501_s1 + $0xd8] sm:$0xff]  ;;  %v676_v50 = vld [vmem:[%s17501_s1 + $0xe0] sm:$0xff] }
 0x14d   :  { %v12223_v61 = vadd.f32 %v667_v11, %v603_v54  ;;  %v12232_v22 = vadd.f32 %v668_v57, %v604_v37  ;;  %v12234_v46 = vadd.f32 %v669_v35, %v605_v33  ;;  %v606_v19 = vmax.f32 %v542_v2, 0.0  ;;  %v677_v54 = vld [vmem:[%s17501_s1 + $0xe8] sm:$0xff]  ;;  %v2620_v33 = vld [vmem:[%s17498_s3 + $0x190] sm:$0xff]  ;;  %v2621_v2 = vld [vmem:[%s17498_s3 + $0x198] sm:$0xff] }
 0x14e   :  { %v607_v26 = vmax.f32 %v543_v34, 0.0  ;;  %793 = vst [vmem:[#allocation2 + $0xd9] sm:$0xff] %v12217_v38  ;;  %794 = vst [vmem:[#allocation2 + $0xe1] sm:$0xff] %v12219_v15  ;;  %v476_v51 = vmul.f32 %v12027_v41, %v11591_v44  ;;  %v477_v45 = vmul.f32 %v12027_v41, %v11597_v48  ;;  %v478_v20 = vmul.f32 %v12027_v41, %v11610_v53 }
 0x14f   :  { %795 = vst [vmem:[#allocation2 + $0xf1] sm:$0xff] %v12221_v39  ;;  %796 = vst [vmem:[#allocation2 + $0xf9] sm:$0xff] %v12223_v61  ;;  %v479_v6 = vmul.f32 %v12027_v41, %v11616_v59  ;;  %v12256_v44 = vadd.f32 %v670_v17, %v606_v19  ;;  %v480_v53 = vmul.f32 %v12027_v41, %v11623_v63  ;;  %2799 = vmatmul.mubr.f32.gmra.mrb[8].mxu0 %v845_v32  ;;  %v847_v19 = vld [vmem:[#allocation2 + $0x48] sm:$0xff] }
 0x150   :  { %797 = vst [vmem:[#allocation2 + $0x109] sm:$0xff] %v12232_v22  ;;  %798 = vst [vmem:[#allocation2 + $0x111] sm:$0xff] %v12234_v46  ;;  %v12258_v48 = vadd.f32 %v671_v60, %v607_v26  ;;  %v481_v59 = vmul.f32 %v12027_v41, %v11629_v3  ;;  %v544_v16 = vadd.f32 %v12045_v5, %v476_v51  ;;  %2803 = vmatprep.mubr.f32.mxu0 %v12097_v55  ;;  %v846_v3 = vld [vmem:[#allocation2 + $0x38] sm:$0xff] }
 0x151   :  { %v545_v27 = vadd.f32 %v12045_v5, %v477_v45  ;;  %v546_v24 = vadd.f32 %v12045_v5, %v478_v20  ;;  %v547_v63 = vadd.f32 %v12045_v5, %v479_v6  ;;  %799 = vst [vmem:[#allocation2 + $0x121] sm:$0xff] %v12256_v44  ;;  %v548_v11 = vadd.f32 %v12045_v5, %v480_v53  ;;  %v11170_v6 = vld [vmem:[%s17499_s0 + $0x110] sm:$0xff]  ;;  %v11171_v53 = vld [vmem:[%s17499_s0 + $0x118] sm:$0xff] }
 0x152   :  { %800 = vst [vmem:[#allocation2 + $0x129] sm:$0xff] %v12258_v48  ;;  %v549_v10 = vadd.f32 %v12045_v5, %v481_v59  ;;  %v10003_v31 = vpack.c.bf16 %v2619_v13, %v2618_v9  ;;  %v484_v55 = vmul.f32 %v12027_v41, %v11649_v12  ;;  %v608_v8 = vmax.f32 %v544_v16, 0.0  ;;  %v11172_v16 = vld [vmem:[%s17499_s0 + $0x120] sm:$0xff] }
 0x153   :  { %v609_v40 = vmax.f32 %v545_v27, 0.0  ;;  %v610_v43 = vmax.f32 %v546_v24, 0.0  ;;  %v611_v47 = vmax.f32 %v547_v63, 0.0  ;;  %v612_v57 = vmax.f32 %v548_v11, 0.0  ;;  %2804 = vmatmul.mubr.f32.gmra.mrb[10].mxu0 %v846_v3  ;;  %v11173_v24 = vld [vmem:[%s17499_s0 + $0x128] sm:$0xff]  ;;  %v11174_v3 = vld [vmem:[%s17499_s0 + $0x130] sm:$0xff] }
 0x154   :  { %v613_v35 = vmax.f32 %v549_v10, 0.0  ;;  %10004 = vmatpush1.bf16.msra.mxu0 %v10003_v31  ;;  %v552_v37 = vadd.f32 %v12045_v5, %v484_v55  ;;  %v485_v12 = vmul.f32 %v12027_v41, %v11655_v4  ;;  %v12302_v34 = vadd.f32 %v672_v62, %v608_v8  ;;  %v680_v4 = vld [vmem:[%s17501_s1 + $0x100] sm:$0xff]  ;;  %2808 = vmatprep.mubr.f32.mxu0 %v12099_v29  ;;  %v681_v29 = vld [vmem:[%s17501_s1 + $0x108] sm:$0xff]  ;;  %v682_v11 = vld [vmem:[%s17501_s1 + $0x110] sm:$0xff] }
 0x155   :  { %v12304_v17 = vadd.f32 %v673_v36, %v609_v40  ;;  %v12306_v60 = vadd.f32 %v674_v28, %v610_v43  ;;  %v12308_v32 = vadd.f32 %v675_v0, %v611_v47  ;;  %v12314_v26 = vadd.f32 %v676_v50, %v612_v57  ;;  %10005 = vmatprep.subr.bf16.mxu0 %v17717_v56  ;;  %v11175_v55 = vld [vmem:[%s17499_s0 + $0x138] sm:$0xff]  ;;  %v848_v40 = vld [vmem:[#allocation2 + $0x50] sm:$0xff]  ;;  %v684_v50 = vld [vmem:[%s17501_s1 + $0x120] sm:$0xff] }
 0x156   :  { %v12316_v51 = vadd.f32 %v677_v54, %v613_v35  ;;  %v616_v45 = vmax.f32 %v552_v37, 0.0  ;;  %v553_v20 = vadd.f32 %v12045_v5, %v485_v12  ;;  %801 = vst [vmem:[#allocation2 + $0x139] sm:$0xff] %v12302_v34  ;;  %v486_v9 = vmul.f32 %v11170_v6, %v12027_v41  ;;  %v683_v47 = vld [vmem:[%s17501_s1 + $0x118] sm:$0xff]  ;;  %v685_v12 = vld [vmem:[%s17501_s1 + $0x128] sm:$0xff] }
 0x157   :  { %802 = vst [vmem:[#allocation2 + $0x141] sm:$0xff] %v12304_v17  ;;  %803 = vst [vmem:[#allocation2 + $0x151] sm:$0xff] %v12306_v60  ;;  %v10006_v13 = vpack.c.bf16 %v2621_v2, %v2620_v33  ;;  %v487_v59 = vmul.f32 %v11171_v53, %v12027_v41  ;;  %v488_v62 = vmul.f32 %v11172_v16, %v12027_v41  ;;  %2809 = vmatmul.mubr.f32.gmra.mrb[12].mxu0 %v847_v19  ;;  %v686_v33 = vld [vmem:[%s17501_s1 + $0x130] sm:$0xff] }
 0x158   :  { %804 = vst [vmem:[#allocation2 + $0x159] sm:$0xff] %v12308_v32  ;;  %805 = vst [vmem:[#allocation2 + $0x169] sm:$0xff] %v12314_v26  ;;  %v12341_v27 = vadd.f32 %v680_v4, %v616_v45  ;;  %v617_v36 = vmax.f32 %v553_v20, 0.0  ;;  %v489_v63 = vmul.f32 %v11173_v24, %v12027_v41  ;;  %v490_v28 = vmul.f32 %v11174_v3, %v12027_v41  ;;  %v687_v45 = vld [vmem:[%s17501_s1 + $0x138] sm:$0xff]  ;;  %v11176_v20 = vld [vmem:[%s17499_s0 + $0x140] sm:$0xff] }
 0x159   :  { %806 = vst [vmem:[#allocation2 + $0x171] sm:$0xff] %v12316_v51  ;;  %v554_v0 = vadd.f32 %v12045_v5, %v486_v9  ;;  %v555_v10 = vadd.f32 %v12045_v5, %v487_v59  ;;  %v556_v31 = vadd.f32 %v12045_v5, %v488_v62  ;;  %v491_v8 = vmul.f32 %v11175_v55, %v12027_v41  ;;  %v849_v59 = vld [vmem:[#allocation2 + $0x60] sm:$0xff]  ;;  %v11177_v24 = vld [vmem:[%s17499_s0 + $0x148] sm:$0xff] }
 0x15a   :  { %2813 = vmatprep.mubr.f32.mxu0 %v12101_v23  ;;  %809 = vst [vmem:[#allocation2 + $0x1c9] sm:$0xff] %v12341_v27  ;;  %v12363_v43 = vadd.f32 %v681_v29, %v617_v36  ;;  %10007 = vmatpush1.bf16.msra.mxu0 %v10006_v13  ;;  %v557_v54 = vadd.f32 %v12045_v5, %v489_v63 }
 0x15b   :  { %v558_v57 = vadd.f32 %v12045_v5, %v490_v28  ;;  %v618_v35 = vmax.f32 %v554_v0, 0.0  ;;  %v619_v23 = vmax.f32 %v555_v10, 0.0  ;;  %v620_v37 = vmax.f32 %v556_v31, 0.0  ;;  %10008 = vmatprep.subr.bf16.mxu0 %v17717_v56  ;;  %2814 = vmatmul.mubr.f32.gmra.mrb[14].mxu0 %v848_v40  ;;  %v688_v28 = vld [vmem:[%s17501_s1 + $0x140] sm:$0xff]  ;;  %v2623_v10 = vld [vmem:[%s17498_s3 + $0x1a8] sm:$0xff]  ;;  %v11178_v31 = vld [vmem:[%s17499_s0 + $0x150] sm:$0xff] }
 0x15c   :  { %v559_v2 = vadd.f32 %v12045_v5, %v491_v8  ;;  %810 = vst [vmem:[#allocation2 + $0x1d1] sm:$0xff] %v12363_v43  ;;  %v621_v4 = vmax.f32 %v557_v54, 0.0  ;;  %v492_v29 = vmul.f32 %v11176_v20, %v12027_v41  ;;  %2818 = vmatprep.mubr.f32.mxu0 %v12103_v58  ;;  %v493_v63 = vmul.f32 %v11177_v24, %v12027_v41  ;;  %v850_v8 = vld [vmem:[#allocation2 + $0x68] sm:$0xff] }
 0x15d   :  { %v622_v19 = vmax.f32 %v558_v57, 0.0  ;;  %v12389_v6 = vadd.f32 %v682_v11, %v618_v35  ;;  %v12391_v9 = vadd.f32 %v683_v47, %v619_v23  ;;  %v12393_v13 = vadd.f32 %v684_v50, %v620_v37  ;;  %v2622_v11 = vld [vmem:[%s17498_s3 + $0x1a0] sm:$0xff]  ;;  %v689_v54 = vld [vmem:[%s17501_s1 + $0x148] sm:$0xff]  ;;  %v1249_v25 = vld [vmem:[#allocation2 + $0x138] sm:$0xff] }
 0x15e   :  { %v623_v53 = vmax.f32 %v559_v2, 0.0  ;;  %v12396_v16 = vadd.f32 %v685_v12, %v621_v4  ;;  %v560_v36 = vadd.f32 %v12045_v5, %v492_v29  ;;  %v561_v0 = vadd.f32 %v12045_v5, %v493_v63  ;;  %v851_v12 = vld [vmem:[#allocation2 + $0x78] sm:$0xff]  ;;  %v11181_v24 = vld [vmem:[%s17499_s0 + $0x168] sm:$0xff]  ;;  %v853_v63 = vld [vmem:[#allocation2 + $0x90] sm:$0xff] }
 0x15f   :  { %v12398_v62 = vadd.f32 %v686_v33, %v622_v19  ;;  %811 = vst [vmem:[#allocation2 + $0x1e1] sm:$0xff] %v12389_v6  ;;  %812 = vst [vmem:[#allocation2 + $0x1e9] sm:$0xff] %v12391_v9  ;;  %2819 = vmatmul.mubr.f32.gmra.mrb[16].mxu0 %v849_v59  ;;  %v494_v55 = vmul.f32 %v11178_v31, %v12027_v41  ;;  %v10009_v40 = vpack.c.bf16 %v2623_v10, %v2622_v11  ;;  %v690_v33 = vld [vmem:[%s17501_s1 + $0x150] sm:$0xff]  ;;  %v691_v29 = vld [vmem:[%s17501_s1 + $0x158] sm:$0xff] }
 0x160   :  { %813 = vst [vmem:[#allocation2 + $0x1f9] sm:$0xff] %v12393_v13  ;;  %v12408_v58 = vadd.f32 %v687_v45, %v623_v53  ;;  %814 = vst [vmem:[#allocation2 + $0x201] sm:$0xff] %v12396_v16  ;;  %v624_v3 = vmax.f32 %v560_v36, 0.0  ;;  %2823 = vmatprep.mubr.f32.mxu0 %v12105_v52  ;;  %v625_v50 = vmax.f32 %v561_v0, 0.0  ;;  %v11179_v52 = vld [vmem:[%s17499_s0 + $0x158] sm:$0xff]  ;;  %v11180_v45 = vld [vmem:[%s17499_s0 + $0x160] sm:$0xff] }
 0x161   :  { %815 = vst [vmem:[#allocation2 + $0x211] sm:$0xff] %v12398_v62  ;;  %v562_v57 = vadd.f32 %v12045_v5, %v494_v55  ;;  %10010 = vmatpush1.bf16.msra.mxu0 %v10009_v40  ;;  %v495_v37 = vmul.f32 %v11179_v52, %v12027_v41  ;;  %v496_v20 = vmul.f32 %v11180_v45, %v12027_v41  ;;  %v2624_v11 = vld [vmem:[%s17498_s3 + $0x1b0] sm:$0xff]  ;;  %v2625_v10 = vld [vmem:[%s17498_s3 + $0x1b8] sm:$0xff]  ;;  %v11184_v45 = vld [vmem:[%s17499_s0 + $0x180] sm:$0xff] }
 0x162   :  { %816 = vst [vmem:[#allocation2 + $0x219] sm:$0xff] %v12408_v58  ;;  %v12428_v47 = vadd.f32 %v688_v28, %v624_v3  ;;  %v12435_v35 = vadd.f32 %v689_v54, %v625_v50  ;;  %10011 = vmatprep.subr.bf16.mxu0 %v17717_v56  ;;  %v692_v3 = vld [vmem:[%s17501_s1 + $0x160] sm:$0xff]  ;;  %v11182_v31 = vld [vmem:[%s17499_s0 + $0x170] sm:$0xff]  ;;  %v10012_v40 = vpack.c.bf16 %v2625_v10, %v2624_v11  ;;  %v693_v50 = vld [vmem:[%s17501_s1 + $0x168] sm:$0xff] }
 0x163   :  { %2824 = vmatmul.mubr.f32.gmra.mrb[18].mxu0 %v850_v8  ;;  %v626_v23 = vmax.f32 %v562_v57, 0.0  ;;  %v563_v2 = vadd.f32 %v12045_v5, %v495_v37  ;;  %v564_v59 = vadd.f32 %v12045_v5, %v496_v20  ;;  %v498_v55 = vmul.f32 %v11182_v31, %v12027_v41  ;;  %v854_v8 = vld [vmem:[#allocation2 + $0x98] sm:$0xff]  ;;  %v855_v37 = vld [vmem:[#allocation2 + $0xa8] sm:$0xff]  ;;  %v2626_v11 = vld [vmem:[%s17498_s3 + $0x1c0] sm:$0xff] }
 0x164   :  { %817 = vst [vmem:[#allocation2 + $0x229] sm:$0xff] %v12428_v47  ;;  %2828 = vmatprep.mubr.f32.mxu0 %v12144_v49  ;;  %818 = vst [vmem:[#allocation2 + $0x231] sm:$0xff] %v12435_v35  ;;  %v852_v49 = vld [vmem:[#allocation2 + $0x80] sm:$0xff]  ;;  %v500_v20 = vmul.f32 %v11184_v45, %v12027_v41  ;;  %v2627_v10 = vld [vmem:[%s17498_s3 + $0x1c8] sm:$0xff] }
 0x165   :  { %v12448_v4 = vadd.f32 %v690_v33, %v626_v23  ;;  %v627_v19 = vmax.f32 %v563_v2, 0.0  ;;  %v628_v36 = vmax.f32 %v564_v59, 0.0  ;;  %v566_v57 = vadd.f32 %v12045_v5, %v498_v55  ;;  %10013 = vmatpush1.bf16.msra.mxu0 %v10012_v40  ;;  %v858_v55 = vld [vmem:[#allocation2 + $0xc8] sm:$0xff]  ;;  %v11188_v45 = vld [vmem:[%s17499_s0 + $0x1a0] sm:$0xff] }
 0x166   :  { %10014 = vmatprep.subr.bf16.mxu0 %v17717_v56  ;;  %v568_v59 = vadd.f32 %v12045_v5, %v500_v20  ;;  %v697_v40 = vld [vmem:[%s17501_s1 + $0x188] sm:$0xff]  ;;  %v504_v20 = vmul.f32 %v11188_v45, %v12027_v41  ;;  %v11192_v45 = vld [vmem:[%s17499_s0 + $0x1c0] sm:$0xff] }
 0x167   :  { %2829 = vmatmul.mubr.f32.gmra.mrb[20].mxu0 %v851_v12  ;;  %819 = vst [vmem:[#allocation2 + $0x241] sm:$0xff] %v12448_v4  ;;  %v12459_v53 = vadd.f32 %v691_v29, %v627_v19  ;;  %v12471_v28 = vadd.f32 %v692_v3, %v628_v36  ;;  %v630_v23 = vmax.f32 %v566_v57, 0.0  ;;  %v694_v12 = vld [vmem:[%s17501_s1 + $0x170] sm:$0xff] }
 0x168   :  { %2833 = vmatprep.mubr.f32.mxu0 %v12146_v1  ;;  %v497_v1 = vmul.f32 %v11181_v24, %v12027_v41  ;;  %v632_v36 = vmax.f32 %v568_v59, 0.0  ;;  %v11185_v24 = vld [vmem:[%s17499_s0 + $0x188] sm:$0xff]  ;;  %v572_v59 = vadd.f32 %v12045_v5, %v504_v20  ;;  %v508_v20 = vmul.f32 %v11192_v45, %v12027_v41  ;;  %v11196_v45 = vld [vmem:[%s17499_s0 + $0x1e0] sm:$0xff] }
 0x169   :  { %820 = vst [vmem:[#allocation2 + $0x249] sm:$0xff] %v12459_v53  ;;  %821 = vst [vmem:[#allocation2 + $0x259] sm:$0xff] %v12471_v28  ;;  %v12502_v33 = vadd.f32 %v694_v12, %v630_v23 }
 0x16a   :  { %v565_v0 = vadd.f32 %v12045_v5, %v497_v1  ;;  %v501_v1 = vmul.f32 %v11185_v24, %v12027_v41  ;;  %v11189_v24 = vld [vmem:[%s17499_s0 + $0x1a8] sm:$0xff] }
 0x16b   :  { %2834 = vmatmul.mubr.f32.gmra.mrb[22].mxu0 %v852_v49  ;;  %823 = vst [vmem:[#allocation2 + $0x271] sm:$0xff] %v12502_v33  ;;  %v695_v49 = vld [vmem:[%s17501_s1 + $0x178] sm:$0xff] }
 0x16c   :  { %2838 = vmatprep.mubr.f32.mxu0 %v12148_v14  ;;  %v629_v14 = vmax.f32 %v565_v0, 0.0  ;;  %v569_v0 = vadd.f32 %v12045_v5, %v501_v1  ;;  %v505_v1 = vmul.f32 %v11189_v24, %v12027_v41  ;;  %v11193_v24 = vld [vmem:[%s17499_s0 + $0x1c8] sm:$0xff] }
 0x16e   :  { %v12489_v54 = vadd.f32 %v693_v50, %v629_v14  ;;  %v11186_v14 = vld [vmem:[%s17499_s0 + $0x190] sm:$0xff] }
 0x16f   :  { %2839 = vmatmul.mubr.f32.gmra.mrb[24].mxu0 %v853_v63  ;;  %v696_v63 = vld [vmem:[%s17501_s1 + $0x180] sm:$0xff]  ;;  %v502_v31 = vmul.f32 %v11186_v14, %v12027_v41 }
 0x170   :  { %2843 = vmatprep.mubr.f32.mxu0 %v12150_v42  ;;  %822 = vst [vmem:[#allocation2 + $0x261] sm:$0xff] %v12489_v54  ;;  %v11183_v42 = vld [vmem:[%s17499_s0 + $0x178] sm:$0xff]  ;;  %v12526_v3 = vadd.f32 %v696_v63, %v632_v36  ;;  %v636_v36 = vmax.f32 %v572_v59, 0.0  ;;  %v576_v59 = vadd.f32 %v12045_v5, %v508_v20  ;;  %v512_v20 = vmul.f32 %v11196_v45, %v12027_v41  ;;  %v678_v45 = vld [vmem:[%s17501_s1 + $0xf0] sm:$0xff] }
 0x171   :  { %v499_v52 = vmul.f32 %v11183_v42, %v12027_v41  ;;  %v570_v57 = vadd.f32 %v12045_v5, %v502_v31  ;;  %v862_v31 = vld [vmem:[#allocation2 + $0xf8] sm:$0xff] }
 0x172   :  { %825 = vst [vmem:[#allocation2 + $0x289] sm:$0xff] %v12526_v3 }
 0x173   :  { %2844 = vmatmul.mubr.f32.gmra.mrb[26].mxu0 %v854_v8  ;;  %v567_v2 = vadd.f32 %v12045_v5, %v499_v52  ;;  %v10015_v8 = vpack.c.bf16 %v2627_v10, %v2626_v11  ;;  %v634_v23 = vmax.f32 %v570_v57, 0.0  ;;  %v859_v52 = vld [vmem:[#allocation2 + $0xd8] sm:$0xff]  ;;  %v2628_v11 = vld [vmem:[%s17498_s3 + $0x1d0] sm:$0xff] }
 0x174   :  { %2848 = vmatprep.mubr.f32.mxu0 %v12158_v30  ;;  %v856_v30 = vld [vmem:[#allocation2 + $0xb0] sm:$0xff]  ;;  %v2629_v10 = vld [vmem:[%s17498_s3 + $0x1d8] sm:$0xff] }
 0x175   :  { %v631_v19 = vmax.f32 %v567_v2, 0.0  ;;  %10016 = vmatpush1.bf16.msra.mxu0 %v10015_v8  ;;  %v701_v8 = vld [vmem:[%s17501_s1 + $0x1a8] sm:$0xff] }
 0x176   :  { %10017 = vmatprep.subr.bf16.mxu0 %v17717_v56 }
 0x177   :  { %2849 = vmatmul.mubr.f32.gmra.mrb[28].mxu0 %v855_v37  ;;  %v12514_v29 = vadd.f32 %v695_v49, %v631_v19  ;;  %v698_v37 = vld [vmem:[%s17501_s1 + $0x190] sm:$0xff] }
 0x178   :  { %2853 = vmatprep.mubr.f32.mxu0 %v12160_v18  ;;  %v857_v18 = vld [vmem:[#allocation2 + $0xc0] sm:$0xff]  ;;  %v12557_v12 = vadd.f32 %v698_v37, %v634_v23 }
 0x179   :  { %824 = vst [vmem:[#allocation2 + $0x279] sm:$0xff] %v12514_v29 }
 0x17a   :  { %827 = vst [vmem:[#allocation2 + $0x2a1] sm:$0xff] %v12557_v12 }
 0x17b   :  { %2854 = vmatmul.mubr.f32.gmra.mrb[30].mxu0 %v856_v30  ;;  %v699_v30 = vld [vmem:[%s17501_s1 + $0x198] sm:$0xff] }
 0x17c   :  { %2858 = vmatprep.mubr.f32.mxu0 %v12176_v7  ;;  %v633_v7 = vmax.f32 %v569_v0, 0.0  ;;  %v573_v0 = vadd.f32 %v12045_v5, %v505_v1  ;;  %v509_v1 = vmul.f32 %v11193_v24, %v12027_v41  ;;  %v11197_v24 = vld [vmem:[%s17499_s0 + $0x1e8] sm:$0xff] }
 0x17e   :  { %v12544_v50 = vadd.f32 %v697_v40, %v633_v7  ;;  %v11190_v7 = vld [vmem:[%s17499_s0 + $0x1b0] sm:$0xff] }
 0x17f   :  { %2859 = vmatmul.mubr.f32.gmra.mrb[32].mxu0 %v857_v18  ;;  %v700_v18 = vld [vmem:[%s17501_s1 + $0x1a0] sm:$0xff]  ;;  %v506_v14 = vmul.f32 %v11190_v7, %v12027_v41 }
 0x180   :  { %2863 = vmatprep.mubr.f32.mxu0 %v12178_v21  ;;  %826 = vst [vmem:[#allocation2 + $0x291] sm:$0xff] %v12544_v50  ;;  %v11187_v21 = vld [vmem:[%s17499_s0 + $0x198] sm:$0xff]  ;;  %v12581_v63 = vadd.f32 %v700_v18, %v636_v36  ;;  %v640_v36 = vmax.f32 %v576_v59, 0.0  ;;  %v580_v59 = vadd.f32 %v12045_v5, %v512_v20 }
 0x181   :  { %v503_v42 = vmul.f32 %v11187_v21, %v12027_v41  ;;  %v574_v57 = vadd.f32 %v12045_v5, %v506_v14  ;;  %v866_v14 = vld [vmem:[#allocation2 + $0x128] sm:$0xff] }
 0x182   :  { %829 = vst [vmem:[#allocation2 + $0x2b9] sm:$0xff] %v12581_v63 }
 0x183   :  { %2864 = vmatmul.mubr.f32.gmra.mrb[34].mxu0 %v858_v55  ;;  %v571_v2 = vadd.f32 %v12045_v5, %v503_v42  ;;  %v10018_v55 = vpack.c.bf16 %v2629_v10, %v2628_v11  ;;  %v638_v23 = vmax.f32 %v574_v57, 0.0  ;;  %v863_v42 = vld [vmem:[#allocation2 + $0x108] sm:$0xff]  ;;  %v2630_v11 = vld [vmem:[%s17498_s3 + $0x1e0] sm:$0xff] }
 0x184   :  { %2868 = vmatprep.mubr.f32.mxu0 %v12217_v38  ;;  %v860_v38 = vld [vmem:[#allocation2 + $0xe0] sm:$0xff]  ;;  %v2631_v10 = vld [vmem:[%s17498_s3 + $0x1e8] sm:$0xff] }
 0x185   :  { %v635_v19 = vmax.f32 %v571_v2, 0.0  ;;  %10019 = vmatpush1.bf16.msra.mxu0 %v10018_v55  ;;  %v705_v55 = vld [vmem:[%s17501_s1 + $0x1c8] sm:$0xff] }
 0x186   :  { %10020 = vmatprep.subr.bf16.mxu0 %v17717_v56 }
 0x187   :  { %2869 = vmatmul.mubr.f32.gmra.mrb[36].mxu0 %v859_v52  ;;  %v12569_v49 = vadd.f32 %v699_v30, %v635_v19  ;;  %v702_v52 = vld [vmem:[%s17501_s1 + $0x1b0] sm:$0xff] }
 0x188   :  { %2873 = vmatprep.mubr.f32.mxu0 %v12219_v15  ;;  %v861_v15 = vld [vmem:[#allocation2 + $0xf0] sm:$0xff]  ;;  %v12612_v37 = vadd.f32 %v702_v52, %v638_v23 }
 0x189   :  { %828 = vst [vmem:[#allocation2 + $0x2a9] sm:$0xff] %v12569_v49 }
 0x18a   :  { %831 = vst [vmem:[#allocation2 + $0x2d1] sm:$0xff] %v12612_v37 }
 0x18b   :  { %2874 = vmatmul.mubr.f32.gmra.mrb[38].mxu0 %v860_v38  ;;  %v703_v38 = vld [vmem:[%s17501_s1 + $0x1b8] sm:$0xff] }
 0x18c   :  { %2878 = vmatprep.mubr.f32.mxu0 %v12221_v39  ;;  %v637_v39 = vmax.f32 %v573_v0, 0.0  ;;  %v577_v0 = vadd.f32 %v12045_v5, %v509_v1  ;;  %v513_v1 = vmul.f32 %v11197_v24, %v12027_v41 }
 0x18e   :  { %v12599_v40 = vadd.f32 %v701_v8, %v637_v39  ;;  %v11194_v39 = vld [vmem:[%s17499_s0 + $0x1d0] sm:$0xff] }
 0x18f   :  { %2879 = vmatmul.mubr.f32.gmra.mrb[40].mxu0 %v861_v15  ;;  %v704_v15 = vld [vmem:[%s17501_s1 + $0x1c0] sm:$0xff]  ;;  %v510_v7 = vmul.f32 %v11194_v39, %v12027_v41 }
 0x190   :  { %2883 = vmatprep.mubr.f32.mxu0 %v12223_v61  ;;  %830 = vst [vmem:[#allocation2 + $0x2c1] sm:$0xff] %v12599_v40  ;;  %v11191_v61 = vld [vmem:[%s17499_s0 + $0x1b8] sm:$0xff]  ;;  %v12636_v18 = vadd.f32 %v704_v15, %v640_v36  ;;  %v644_v36 = vmax.f32 %v580_v59, 0.0 }
 0x191   :  { %v507_v21 = vmul.f32 %v11191_v61, %v12027_v41  ;;  %v578_v57 = vadd.f32 %v12045_v5, %v510_v7  ;;  %v709_v7 = vld [vmem:[%s17501_s1 + $0x1e8] sm:$0xff]  ;;  %v679_v59 = vld [vmem:[%s17501_s1 + $0xf8] sm:$0xff] }
 0x192   :  { %833 = vst [vmem:[#allocation2 + $0x2e9] sm:$0xff] %v12636_v18 }
 0x193   :  { %2884 = vmatmul.mubr.f32.gmra.mrb[42].mxu0 %v862_v31  ;;  %v575_v2 = vadd.f32 %v12045_v5, %v507_v21  ;;  %v10021_v31 = vpack.c.bf16 %v2631_v10, %v2630_v11  ;;  %v642_v23 = vmax.f32 %v578_v57, 0.0  ;;  %v867_v21 = vld [vmem:[#allocation2 + $0x138] sm:$0xff]  ;;  %v2632_v11 = vld [vmem:[%s17498_s3 + $0x1f0] sm:$0xff] }
 0x194   :  { %2888 = vmatprep.mubr.f32.mxu0 %v12232_v22  ;;  %v864_v22 = vld [vmem:[#allocation2 + $0x110] sm:$0xff]  ;;  %v2633_v10 = vld [vmem:[%s17498_s3 + $0x1f8] sm:$0xff] }
 0x195   :  { %v639_v19 = vmax.f32 %v575_v2, 0.0  ;;  %10022 = vmatpush1.bf16.msra.mxu0 %v10021_v31  ;;  %v10024_v39 = vpack.c.bf16 %v2633_v10, %v2632_v11  ;;  %v12710_v31 = vld [vmem:[#allocation2 + $0x168] sm:$0xff]  ;;  %v873_v57 = vld [vmem:[#allocation2 + $0x1b0] sm:$0xff]  ;;  %v1226_v11 = vld [vmem:[#allocation2 + $0x20] sm:$0xff] }
 0x196   :  { %10023 = vmatprep.subr.bf16.mxu0 %v17717_v56  ;;  %v2636_v10 = vld [vmem:[%s17498_s3 + $0x210] sm:$0xff] }
 0x197   :  { %2889 = vmatmul.mubr.f32.gmra.mrb[44].mxu0 %v863_v42  ;;  %v12624_v30 = vadd.f32 %v703_v38, %v639_v19  ;;  %v706_v42 = vld [vmem:[%s17501_s1 + $0x1d0] sm:$0xff] }
 0x198   :  { %2893 = vmatprep.mubr.f32.mxu0 %v12234_v46  ;;  %v865_v46 = vld [vmem:[#allocation2 + $0x120] sm:$0xff]  ;;  %v12667_v52 = vadd.f32 %v706_v42, %v642_v23 }
 0x199   :  { %832 = vst [vmem:[#allocation2 + $0x2d9] sm:$0xff] %v12624_v30  ;;  %10025 = vmatpush1.bf16.msra.mxu0 %v10024_v39  ;;  %v1002_v23 = vld [vmem:[#allocation2 + $0x1b9] sm:$0xff] }
 0x19a   :  { %835 = vst [vmem:[#allocation2 + $0x301] sm:$0xff] %v12667_v52  ;;  %10026 = vmatprep.subr.bf16.mxu0 %v17717_v56 }
 0x19b   :  { %2894 = vmatmul.mubr.f32.gmra.mrb[46].mxu0 %v864_v22  ;;  %v707_v22 = vld [vmem:[%s17501_s1 + $0x1d8] sm:$0xff] }
 0x19c   :  { %2898 = vmatprep.mubr.f32.mxu0 %v12256_v44  ;;  %v641_v44 = vmax.f32 %v577_v0, 0.0  ;;  %v581_v0 = vadd.f32 %v12045_v5, %v513_v1 }
 0x19e   :  { %v12654_v8 = vadd.f32 %v705_v55, %v641_v44  ;;  %v870_v44 = vld [vmem:[#allocation2 + $0x158] sm:$0xff] }
 0x19f   :  { %2899 = vmatmul.mubr.f32.gmra.mrb[48].mxu0 %v865_v46  ;;  %v708_v46 = vld [vmem:[%s17501_s1 + $0x1e0] sm:$0xff]  ;;  %v1001_v55 = vld [vmem:[#allocation2 + $0x1b1] sm:$0xff] }
 0x1a0   :  { %2903 = vmatprep.mubr.f32.mxu0 %v12258_v48  ;;  %834 = vst [vmem:[#allocation2 + $0x2f1] sm:$0xff] %v12654_v8  ;;  %v11195_v48 = vld [vmem:[%s17499_s0 + $0x1d8] sm:$0xff]  ;;  %v12691_v15 = vadd.f32 %v708_v46, %v644_v36  ;;  %v2635_v46 = vld [vmem:[%s17498_s3 + $0x208] sm:$0xff] }
 0x1a1   :  { %v511_v61 = vmul.f32 %v11195_v48, %v12027_v41  ;;  %v11198_v48 = vld [vmem:[#allocation2 + $0x8] sm:$0xff] }
 0x1a2   :  { %837 = vst [vmem:[#allocation2 + $0x319] sm:$0xff] %v12691_v15 }
 0x1a3   :  { %2904 = vmatmul.mubr.f32.gmra.mrb[50].mxu0 %v866_v14  ;;  %v579_v2 = vadd.f32 %v12045_v5, %v511_v61  ;;  %v12726_v61 = vld [vmem:[#allocation2 + $0x1e0] sm:$0xff] }
 0x1a4   :  { %2908 = vmatprep.mubr.f32.mxu0 %v12302_v34  ;;  %v868_v34 = vld [vmem:[#allocation2 + $0x140] sm:$0xff] }
 0x1a5   :  { %v643_v19 = vmax.f32 %v579_v2, 0.0 }
 0x1a7   :  { %2909 = vmatmul.mubr.f32.gmra.mrb[52].mxu0 %v867_v21  ;;  %v12679_v38 = vadd.f32 %v707_v22, %v643_v19  ;;  %v12730_v21 = vld [vmem:[#allocation2 + $0x1e8] sm:$0xff]  ;;  %v12822_v42 = vld [vmem:[#allocation2 + $0x2f0] sm:$0xff] }
 0x1a8   :  { %2913 = vmatprep.mubr.f32.mxu0 %v12304_v17  ;;  %v869_v17 = vld [vmem:[#allocation2 + $0x150] sm:$0xff] }
 0x1a9   :  { %836 = vst [vmem:[#allocation2 + $0x309] sm:$0xff] %v12679_v38 }
 0x1ab   :  { %2914 = vmatmul.mubr.f32.gmra.mrb[54].mxu0 %v868_v34 }
 0x1ac   :  { %2918 = vmatprep.mubr.f32.mxu0 %v12306_v60  ;;  %v645_v60 = vmax.f32 %v581_v0, 0.0 }
 0x1ae   :  { %v12705_v14 = vadd.f32 %v709_v7, %v645_v60  ;;  %v2637_v60 = vld [vmem:[%s17498_s3 + $0x218] sm:$0xff]  ;;  %v1227_v7 = vld [vmem:[#allocation2 + $0x30] sm:$0xff] }
 0x1af   :  { %2919 = vmatmul.mubr.f32.gmra.mrb[56].mxu0 %v869_v17  ;;  %v1225_v17 = vld [vmem:[#allocation2 + $0x18] sm:$0xff]  ;;  %v10030_v39 = vpack.c.bf16 %v2637_v60, %v2636_v10  ;;  %v1232_v60 = vld [vmem:[#allocation2 + $0x68] sm:$0xff] }
 0x1b0   :  { %2923 = vmatprep.mubr.f32.mxu0 %v12308_v32  ;;  %838 = vst [vmem:[#allocation2 + $0x321] sm:$0xff] %v12705_v14  ;;  %v12714_v32 = vld [vmem:[#allocation2 + $0x170] sm:$0xff]  ;;  %v12842_v36 = vld [vmem:[#allocation2 + $0x308] sm:$0xff] }
 0x1b3   :  { %2924 = vmatmul.mubr.f32.gmra.mrb[58].mxu0 %v870_v44  ;;  %v1098_v44 = vld [vmem:[#allocation2 + $0xa] sm:$0xff] }
 0x1b4   :  { %2928 = vmatprep.mubr.f32.mxu0 %v12314_v26  ;;  %v12718_v26 = vld [vmem:[#allocation2 + $0x1c8] sm:$0xff] }
 0x1b7   :  { %2929 = vmatmul.mubr.f32.gmra.mrb[60].mxu0 %v12710_v31  ;;  %v12850_v1 = vld [vmem:[#allocation2 + $0x320] sm:$0xff] }
 0x1b8   :  { %2933 = vmatprep.mubr.f32.mxu0 %v12316_v51  ;;  %v12722_v51 = vld [vmem:[#allocation2 + $0x1d0] sm:$0xff] }
 0x1bb   :  { %2934 = vmatmul.mubr.f32.gmra.mrb[62].mxu0 %v12714_v32 }
 0x1bc   :  { %2938 = vmatprep.mubr.f32.mxu0 %v1001_v55  ;;  %v2639_v55 = vld [vmem:[%s17498_s3 + $0x228] sm:$0xff] }
 0x1bf   :  { %2939 = vmatmul.mubr.f32.gmra.mrb[64].mxu0 %v873_v57  ;;  %v12872_v57 = vld [vmem:[#allocation2 + $0x1a] sm:$0xff] }
 0x1c0   :  { %2943 = vmatprep.mubr.f32.mxu0 %v1002_v23 }
 0x1c3   :  { %2944 = vmatmul.mubr.f32.gmra.mrb[66].mxu0 %v11198_v48  ;;  %v1228_v48 = vld [vmem:[#allocation2 + $0x38] sm:$0xff] }
 0x1c4   :  { %2948 = vmatprep.mubr.f32.mxu0 %v12341_v27  ;;  %v12734_v27 = vld [vmem:[#allocation2 + $0x1f8] sm:$0xff] }
 0x1c7   :  { %2949 = vmatmul.mubr.f32.gmra.mrb[68].mxu0 %v12718_v26 }
 0x1c8   :  { %2953 = vmatprep.mubr.f32.mxu0 %v12363_v43  ;;  %v12738_v43 = vld [vmem:[#allocation2 + $0x200] sm:$0xff] }
 0x1cb   :  { %2954 = vmatmul.mubr.f32.gmra.mrb[70].mxu0 %v12722_v51 }
 0x1cc   :  { %2958 = vmatprep.mubr.f32.mxu0 %v12389_v6  ;;  %v12742_v6 = vld [vmem:[#allocation2 + $0x210] sm:$0xff] }
 0x1cf   :  { %2959 = vmatmul.mubr.f32.gmra.mrb[72].mxu0 %v12726_v61 }
 0x1d0   :  { %2963 = vmatprep.mubr.f32.mxu0 %v12391_v9  ;;  %v12746_v9 = vld [vmem:[#allocation2 + $0x218] sm:$0xff] }
 0x1d3   :  { %2964 = vmatmul.mubr.f32.gmra.mrb[74].mxu0 %v12730_v21 }
 0x1d4   :  { %2968 = vmatprep.mubr.f32.mxu0 %v12393_v13  ;;  %v12750_v13 = vld [vmem:[#allocation2 + $0x228] sm:$0xff] }
 0x1d7   :  { %2969 = vmatmul.mubr.f32.gmra.mrb[76].mxu0 %v12734_v27 }
 0x1d8   :  { %2973 = vmatprep.mubr.f32.mxu0 %v12396_v16  ;;  %v12754_v16 = vld [vmem:[#allocation2 + $0x230] sm:$0xff] }
 0x1db   :  { %2974 = vmatmul.mubr.f32.gmra.mrb[78].mxu0 %v12738_v43 }
 0x1dc   :  { %2978 = vmatprep.mubr.f32.mxu0 %v12398_v62  ;;  %v12758_v62 = vld [vmem:[#allocation2 + $0x240] sm:$0xff] }
 0x1df   :  { %2979 = vmatmul.mubr.f32.gmra.mrb[80].mxu0 %v12742_v6 }
 0x1e0   :  { %2983 = vmatprep.mubr.f32.mxu0 %v12408_v58  ;;  %v12762_v58 = vld [vmem:[#allocation2 + $0x248] sm:$0xff] }
 0x1e3   :  { %2984 = vmatmul.mubr.f32.gmra.mrb[82].mxu0 %v12746_v9 }
 0x1e4   :  { %2988 = vmatprep.mubr.f32.mxu0 %v12428_v47  ;;  %v12766_v47 = vld [vmem:[#allocation2 + $0x258] sm:$0xff] }
 0x1e7   :  { %2989 = vmatmul.mubr.f32.gmra.mrb[84].mxu0 %v12750_v13 }
 0x1e8   :  { %2993 = vmatprep.mubr.f32.mxu0 %v12435_v35  ;;  %v12770_v35 = vld [vmem:[#allocation2 + $0x260] sm:$0xff] }
 0x1eb   :  { %2994 = vmatmul.mubr.f32.gmra.mrb[86].mxu0 %v12754_v16 }
 0x1ec   :  { %2998 = vmatprep.mubr.f32.mxu0 %v12448_v4  ;;  %v12774_v4 = vld [vmem:[#allocation2 + $0x270] sm:$0xff] }
 0x1ef   :  { %2999 = vmatmul.mubr.f32.gmra.mrb[88].mxu0 %v12758_v62 }
 0x1f0   :  { %3003 = vmatprep.mubr.f32.mxu0 %v12459_v53  ;;  %v12778_v53 = vld [vmem:[#allocation2 + $0x278] sm:$0xff] }
 0x1f3   :  { %3004 = vmatmul.mubr.f32.gmra.mrb[90].mxu0 %v12762_v58 }
 0x1f4   :  { %3008 = vmatprep.mubr.f32.mxu0 %v12471_v28  ;;  %v12782_v28 = vld [vmem:[#allocation2 + $0x288] sm:$0xff] }
 0x1f7   :  { %3009 = vmatmul.mubr.f32.gmra.mrb[92].mxu0 %v12766_v47 }
 0x1f8   :  { %3013 = vmatprep.mubr.f32.mxu0 %v12489_v54  ;;  %v12786_v54 = vld [vmem:[#allocation2 + $0x290] sm:$0xff] }
 0x1fb   :  { %3014 = vmatmul.mubr.f32.gmra.mrb[94].mxu0 %v12770_v35 }
 0x1fc   :  { %3018 = vmatprep.mubr.f32.mxu0 %v12502_v33  ;;  %v12790_v33 = vld [vmem:[#allocation2 + $0x2a0] sm:$0xff] }
 0x1ff   :  { %3019 = vmatmul.mubr.f32.gmra.mrb[96].mxu0 %v12774_v4 }
 0x200   :  { %3023 = vmatprep.mubr.f32.mxu0 %v12514_v29  ;;  %v12794_v29 = vld [vmem:[#allocation2 + $0x2a8] sm:$0xff] }
 0x203   :  { %3024 = vmatmul.mubr.f32.gmra.mrb[98].mxu0 %v12778_v53 }
 0x204   :  { %3028 = vmatprep.mubr.f32.mxu0 %v12526_v3  ;;  %v12798_v3 = vld [vmem:[#allocation2 + $0x2b8] sm:$0xff] }
 0x207   :  { %3029 = vmatmul.mubr.f32.gmra.mrb[100].mxu0 %v12782_v28 }
 0x208   :  { %3033 = vmatprep.mubr.f32.mxu0 %v12544_v50  ;;  %v12802_v50 = vld [vmem:[#allocation2 + $0x2c0] sm:$0xff] }
 0x20b   :  { %3034 = vmatmul.mubr.f32.gmra.mrb[102].mxu0 %v12786_v54 }
 0x20c   :  { %3038 = vmatprep.mubr.f32.mxu0 %v12557_v12  ;;  %v12806_v12 = vld [vmem:[#allocation2 + $0x2d0] sm:$0xff] }
 0x20f   :  { %3039 = vmatmul.mubr.f32.gmra.mrb[104].mxu0 %v12790_v33 }
 0x210   :  { %3043 = vmatprep.mubr.f32.mxu0 %v12569_v49  ;;  %v12810_v49 = vld [vmem:[#allocation2 + $0x2d8] sm:$0xff] }
 0x213   :  { %3044 = vmatmul.mubr.f32.gmra.mrb[106].mxu0 %v12794_v29 }
 0x214   :  { %3048 = vmatprep.mubr.f32.mxu0 %v12581_v63  ;;  %v12814_v63 = vld [vmem:[#allocation2 + $0x2e8] sm:$0xff] }
 0x217   :  { %3049 = vmatmul.mubr.f32.gmra.mrb[108].mxu0 %v12798_v3 }
 0x218   :  { %3053 = vmatprep.mubr.f32.mxu0 %v12599_v40  ;;  %v11199_v40 = vld [vmem:[%s17499_s0 + $0xf0] sm:$0xff] }
 0x21b   :  { %3054 = vmatmul.mubr.f32.gmra.mrb[110].mxu0 %v12802_v50 }
 0x21c   :  { %3058 = vmatprep.mubr.f32.mxu0 %v12612_v37  ;;  %v482_v37 = vmul.f32 %v11199_v40, %v12027_v41  ;;  %v2640_v40 = vld [vmem:[%s17498_s3 + $0x230] sm:$0xff] }
 0x21f   :  { %3059 = vmatmul.mubr.f32.gmra.mrb[112].mxu0 %v12806_v12 }
 0x220   :  { %3063 = vmatprep.mubr.f32.mxu0 %v12624_v30  ;;  %v550_v30 = vadd.f32 %v12045_v5, %v482_v37  ;;  %v2641_v37 = vld [vmem:[%s17498_s3 + $0x238] sm:$0xff] }
 0x222   :  { %v614_v2 = vmax.f32 %v550_v30, 0.0  ;;  %v12882_v30 = vld [vmem:[#allocation2 + $0x22] sm:$0xff] }
 0x223   :  { %3064 = vmatmul.mubr.f32.gmra.mrb[114].mxu0 %v12810_v49 }
 0x224   :  { %3068 = vmatprep.mubr.f32.mxu0 %v12636_v18  ;;  %v11200_v18 = vld [vmem:[%s17499_s0 + $0xf8] sm:$0xff]  ;;  %v742_v20 = vadd.f32 %v678_v45, %v614_v2  ;;  %v10036_v2 = vpack.c.bf16 %v2641_v37, %v2640_v40  ;;  %v2643_v45 = vld [vmem:[%s17498_s3 + $0x248] sm:$0xff] }
 0x225   :  { %v483_v19 = vmul.f32 %v11200_v18, %v12027_v41  ;;  %v1229_v18 = vld [vmem:[#allocation2 + $0x48] sm:$0xff] }
 0x226   :  { %807 = vst [vmem:[#allocation2 + $0x181] sm:$0xff] %v742_v20  ;;  %v12892_v20 = vld [vmem:[#allocation2 + $0x32] sm:$0xff]  ;;  %v12932_v40 = vld [vmem:[#allocation2 + $0x62] sm:$0xff] }
 0x227   :  { %3069 = vmatmul.mubr.f32.gmra.mrb[116].mxu0 %v12814_v63  ;;  %v551_v34 = vadd.f32 %v12045_v5, %v483_v19  ;;  %v2642_v19 = vld [vmem:[%s17498_s3 + $0x240] sm:$0xff] }
 0x228   :  { %3073 = vmatprep.mubr.f32.mxu0 %v12654_v8  ;;  %v12834_v8 = vld [vmem:[#allocation2 + $0x300] sm:$0xff] }
 0x229   :  { %v615_v22 = vmax.f32 %v551_v34, 0.0  ;;  %v10039_v34 = vpack.c.bf16 %v2643_v45, %v2642_v19  ;;  %v2653_v19 = vld [vmem:[%s17498_s3 + $0x298] sm:$0xff]  ;;  %v12942_v45 = vld [vmem:[#allocation2 + $0x6a] sm:$0xff] }
 0x22b   :  { %3074 = vmatmul.mubr.f32.gmra.mrb[118].mxu0 %v12822_v42  ;;  %v743_v24 = vadd.f32 %v679_v59, %v615_v22  ;;  %v1230_v22 = vld [vmem:[#allocation2 + $0x50] sm:$0xff] }
 0x22c   :  { %3078 = vmatprep.mubr.f32.mxu0 %v12667_v52  ;;  %v12846_v52 = vld [vmem:[#allocation2 + $0x318] sm:$0xff]  ;;  %v2644_v59 = vld [vmem:[%s17498_s3 + $0x250] sm:$0xff] }
 0x22d   :  { %808 = vst [vmem:[#allocation2 + $0x189] sm:$0xff] %v743_v24  ;;  %v2645_v24 = vld [vmem:[%s17498_s3 + $0x258] sm:$0xff] }
 0x22f   :  { %3079 = vmatmul.mubr.f32.gmra.mrb[120].mxu0 %v12834_v8 }
 0x230   :  { %3083 = vmatprep.mubr.f32.mxu0 %v12679_v38  ;;  %v2634_v38 = vld [vmem:[%s17498_s3 + $0x200] sm:$0xff] }
 0x231   :  { %v10027_v0 = vpack.c.bf16 %v2635_v46, %v2634_v38  ;;  %v10042_v38 = vpack.c.bf16 %v2645_v24, %v2644_v59  ;;  %v1231_v46 = vld [vmem:[#allocation2 + $0x60] sm:$0xff]  ;;  %v2655_v24 = vld [vmem:[%s17498_s3 + $0x2a8] sm:$0xff] }
 0x232   :  { %v2654_v59 = vld [vmem:[%s17498_s3 + $0x2a0] sm:$0xff] }
 0x233   :  { %3084 = vmatmul.mubr.f32.gmra.mrb[122].mxu0 %v12842_v36 }
 0x234   :  { %3088 = vmatprep.mubr.f32.mxu0 %v12691_v15  ;;  %v1097_v15 = vld [vmem:[#allocation2 + $0x2] sm:$0xff] }
 0x237   :  { %3089 = vmatmul.mubr.f32.gmra.mrb[124].mxu0 %v12846_v52 }
 0x238   :  { %3093 = vmatprep.mubr.f32.mxu0 %v12705_v14  ;;  %v2638_v14 = vld [vmem:[%s17498_s3 + $0x220] sm:$0xff] }
 0x239   :  { %v10033_v23 = vpack.c.bf16 %v2639_v55, %v2638_v14  ;;  %v1233_v55 = vld [vmem:[#allocation2 + $0x78] sm:$0xff] }
 0x23b   :  { %3094 = vmatmul.mubr.f32.gmra.mrb[126].mxu0 %v12850_v1 }
 0x23c   :  { %3163 = vmatprep.mubr.f32.mxu0 %v1225_v17  ;;  %v12902_v17 = vld [vmem:[#allocation2 + $0x3a] sm:$0xff] }
 0x23f   :  { %3164 = vmatmul.mubr.f32.vlgmr.msra.gmra.mrb[0].mxu0 %v1097_v15  ;;  %v2646_v15 = vld [vmem:[%s17498_s3 + $0x260] sm:$0xff] }
 0x240   :  { %10028 = vmatpush1.bf16.msra.mxu0 %v10027_v0  ;;  %3168 = vmatprep.mubr.f32.mxu0 %v1226_v11  ;;  %v2647_v0 = vld [vmem:[%s17498_s3 + $0x268] sm:$0xff] }
 0x241   :  { %10029 = vmatprep.subr.bf16.mxu0 %v17717_v56  ;;  %v12912_v11 = vld [vmem:[#allocation2 + $0x4a] sm:$0xff]  ;;  %v10045_v10 = vpack.c.bf16 %v2647_v0, %v2646_v15  ;;  %v1236_v15 = vld [vmem:[#allocation2 + $0x98] sm:$0xff]  ;;  %v12956_v0 = vld [vmem:[#allocation2 + $0x82] sm:$0xff] }
 0x243   :  { %3169 = vmatmul.mubr.f32.gmra.mrb[2].mxu0 %v1098_v44  ;;  %v2648_v44 = vld [vmem:[%s17498_s3 + $0x270] sm:$0xff] }
 0x244   :  { %3173 = vmatprep.mubr.f32.mxu0 %v1227_v7  ;;  %10031 = vmatpush1.bf16.msra.mxu0 %v10030_v39  ;;  %v2649_v39 = vld [vmem:[%s17498_s3 + $0x278] sm:$0xff] }
 0x245   :  { %10032 = vmatprep.subr.bf16.mxu0 %v17717_v56  ;;  %v12922_v7 = vld [vmem:[#allocation2 + $0x52] sm:$0xff]  ;;  %v10048_v14 = vpack.c.bf16 %v2649_v39, %v2648_v44 }
 0x246   :  { %v1238_v44 = vld [vmem:[#allocation2 + $0xb0] sm:$0xff] }
 0x247   :  { %3174 = vmatmul.mubr.f32.gmra.mrb[4].mxu0 %v12872_v57  ;;  %v2656_v39 = vld [vmem:[%s17498_s3 + $0x2b0] sm:$0xff] }
 0x248   :  { %3178 = vmatprep.mubr.f32.mxu0 %v1228_v48  ;;  %10034 = vmatpush1.bf16.msra.mxu0 %v10033_v23  ;;  %v2650_v23 = vld [vmem:[%s17498_s3 + $0x280] sm:$0xff]  ;;  %v2651_v48 = vld [vmem:[%s17498_s3 + $0x288] sm:$0xff] }
 0x249   :  { %10035 = vmatprep.subr.bf16.mxu0 %v17717_v56  ;;  %v10051_v37 = vpack.c.bf16 %v2651_v48, %v2650_v23  ;;  %v1239_v48 = vld [vmem:[#allocation2 + $0xc0] sm:$0xff] }
 0x24b   :  { %3179 = vmatmul.mubr.f32.gmra.mrb[6].mxu0 %v12882_v30 }
 0x24c   :  { %3183 = vmatprep.mubr.f32.mxu0 %v1229_v18  ;;  %10037 = vmatpush1.bf16.msra.mxu0 %v10036_v2  ;;  %v1234_v2 = vld [vmem:[#allocation2 + $0x80] sm:$0xff]  ;;  %v2652_v18 = vld [vmem:[%s17498_s3 + $0x290] sm:$0xff] }
 0x24d   :  { %10038 = vmatprep.subr.bf16.mxu0 %v17717_v56 }
 0x24f   :  { %3184 = vmatmul.mubr.f32.gmra.mrb[8].mxu0 %v12892_v20 }
 0x250   :  { %3188 = vmatprep.mubr.f32.mxu0 %v1230_v22  ;;  %10040 = vmatpush1.bf16.msra.mxu0 %v10039_v34  ;;  %v10054_v34 = vpack.c.bf16 %v2653_v19, %v2652_v18  ;;  %v1235_v22 = vld [vmem:[#allocation2 + $0x90] sm:$0xff]  ;;  %v1241_v19 = vld [vmem:[#allocation2 + $0xd8] sm:$0xff] }
 0x251   :  { %10041 = vmatprep.subr.bf16.mxu0 %v17717_v56  ;;  %v12976_v18 = vld [vmem:[#allocation2 + $0xb2] sm:$0xff] }
 0x253   :  { %3189 = vmatmul.mubr.f32.gmra.mrb[10].mxu0 %v12902_v17 }
 0x254   :  { %3193 = vmatprep.mubr.f32.mxu0 %v1231_v46  ;;  %10043 = vmatpush1.bf16.msra.mxu0 %v10042_v38  ;;  %v12952_v38 = vld [vmem:[#allocation2 + $0x7a] sm:$0xff]  ;;  %v10057_v46 = vpack.c.bf16 %v2655_v24, %v2654_v59  ;;  %v2659_v24 = vld [vmem:[%s17498_s3 + $0x2c8] sm:$0xff] }
 0x255   :  { %10044 = vmatprep.subr.bf16.mxu0 %v17717_v56  ;;  %v2658_v59 = vld [vmem:[%s17498_s3 + $0x2c0] sm:$0xff] }
 0x257   :  { %3194 = vmatmul.mubr.f32.gmra.mrb[12].mxu0 %v12912_v11 }
 0x258   :  { %3198 = vmatprep.mubr.f32.mxu0 %v1232_v60  ;;  %10046 = vmatpush1.bf16.msra.mxu0 %v10045_v10  ;;  %v1237_v10 = vld [vmem:[#allocation2 + $0xa8] sm:$0xff]  ;;  %v12960_v60 = vld [vmem:[#allocation2 + $0x92] sm:$0xff] }
 0x259   :  { %10047 = vmatprep.subr.bf16.mxu0 %v17717_v56 }
 0x25b   :  { %3199 = vmatmul.mubr.f32.gmra.mrb[14].mxu0 %v12922_v7 }
 0x25c   :  { %3203 = vmatprep.mubr.f32.mxu0 %v1233_v55  ;;  %10049 = vmatpush1.bf16.msra.mxu0 %v10048_v14  ;;  %v2657_v14 = vld [vmem:[%s17498_s3 + $0x2b8] sm:$0xff] }
 0x25d   :  { %10050 = vmatprep.subr.bf16.mxu0 %v17717_v56  ;;  %v12969_v55 = vld [vmem:[#allocation2 + $0x9a] sm:$0xff]  ;;  %v10060_v23 = vpack.c.bf16 %v2657_v14, %v2656_v39  ;;  %v12995_v14 = vld [vmem:[#allocation2 + $0xe2] sm:$0xff] }
 0x25e   :  { %v1244_v39 = vld [vmem:[#allocation2 + $0xf8] sm:$0xff] }
 0x25f   :  { %3204 = vmatmul.mubr.f32.gmra.mrb[16].mxu0 %v12932_v40 }
 0x260   :  { %3208 = vmatprep.mubr.f32.mxu0 %v1234_v2  ;;  %10052 = vmatpush1.bf16.msra.mxu0 %v10051_v37  ;;  %v12973_v37 = vld [vmem:[#allocation2 + $0xaa] sm:$0xff] }
 0x261   :  { %10053 = vmatprep.subr.bf16.mxu0 %v17717_v56  ;;  %v1240_v2 = vld [vmem:[#allocation2 + $0xc8] sm:$0xff] }
 0x263   :  { %3209 = vmatmul.mubr.f32.gmra.mrb[18].mxu0 %v12942_v45 }
 0x264   :  { %3213 = vmatprep.mubr.f32.mxu0 %v1235_v22  ;;  %10055 = vmatpush1.bf16.msra.mxu0 %v10054_v34  ;;  %v12979_v34 = vld [vmem:[#allocation2 + $0xc2] sm:$0xff] }
 0x265   :  { %10056 = vmatprep.subr.bf16.mxu0 %v17717_v56  ;;  %v1242_v22 = vld [vmem:[#allocation2 + $0xe0] sm:$0xff] }
 0x267   :  { %3214 = vmatmul.mubr.f32.gmra.mrb[20].mxu0 %v12952_v38 }
 0x268   :  { %3218 = vmatprep.mubr.f32.mxu0 %v1236_v15  ;;  %10058 = vmatpush1.bf16.msra.mxu0 %v10057_v46  ;;  %v12988_v46 = vld [vmem:[#allocation2 + $0xca] sm:$0xff]  ;;  %v10063_v15 = vpack.c.bf16 %v2659_v24, %v2658_v59  ;;  %v13007_v59 = vld [vmem:[#allocation2 + $0xfa] sm:$0xff] }
 0x269   :  { %10059 = vmatprep.subr.bf16.mxu0 %v17717_v56  ;;  %17738 = vst [vmem:[#allocation11_spill] sm:$0xff] %v13007_v59 }
 0x26b   :  { %3219 = vmatmul.mubr.f32.gmra.mrb[22].mxu0 %v12956_v0 }
 0x26c   :  { %3223 = vmatprep.mubr.f32.mxu0 %v1237_v10  ;;  %10061 = vmatpush1.bf16.msra.mxu0 %v10060_v23  ;;  %v1243_v10 = vld [vmem:[#allocation2 + $0xf0] sm:$0xff]  ;;  %v1245_v23 = vld [vmem:[#allocation2 + $0x108] sm:$0xff] }
 0x26d   :  { %10062 = vmatprep.subr.bf16.mxu0 %v17717_v56 }
 0x26f   :  { %3224 = vmatmul.mubr.f32.gmra.mrb[24].mxu0 %v12960_v60 }
 0x270   :  { %3228 = vmatprep.mubr.f32.mxu0 %v1238_v44  ;;  %10064 = vmatpush1.bf16.msra.mxu0 %v10063_v15  ;;  %v12992_v44 = vld [vmem:[#allocation2 + $0xda] sm:$0xff] }
 0x271   :  { %10065 = vmatprep.subr.bf16.mxu0 %v17717_v56  ;;  %v1247_v15 = vld [vmem:[#allocation2 + $0x120] sm:$0xff] }
 0x273   :  { %3229 = vmatmul.mubr.f32.gmra.mrb[26].mxu0 %v12969_v55 }
 0x274   :  { %3233 = vmatprep.mubr.f32.mxu0 %v1239_v48  ;;  %v12998_v48 = vld [vmem:[#allocation2 + $0xf2] sm:$0xff] }
 0x277   :  { %3234 = vmatmul.mubr.f32.gmra.mrb[28].mxu0 %v12973_v37 }
 0x278   :  { %3238 = vmatprep.mubr.f32.mxu0 %v1240_v2  ;;  %v1246_v2 = vld [vmem:[#allocation2 + $0x110] sm:$0xff] }
 0x27b   :  { %3239 = vmatmul.mubr.f32.gmra.mrb[30].mxu0 %v12976_v18 }
 0x27c   :  { %3243 = vmatprep.mubr.f32.mxu0 %v1241_v19  ;;  %v2660_v19 = vld [vmem:[%s17498_s3 + $0x2d0] sm:$0xff] }
 0x27f   :  { %3244 = vmatmul.mubr.f32.gmra.mrb[32].mxu0 %v12979_v34 }
 0x280   :  { %3248 = vmatprep.mubr.f32.mxu0 %v1242_v22  ;;  %v2661_v22 = vld [vmem:[%s17498_s3 + $0x2d8] sm:$0xff] }
 0x281   :  { %v10066_v24 = vpack.c.bf16 %v2661_v22, %v2660_v19  ;;  %v1250_v19 = vld [vmem:[#allocation2 + $0x140] sm:$0xff] }
 0x282   :  { %v2662_v22 = vld [vmem:[%s17498_s3 + $0x2e0] sm:$0xff] }
 0x283   :  { %3249 = vmatmul.mubr.f32.gmra.mrb[34].mxu0 %v12988_v46 }
 0x284   :  { %3253 = vmatprep.mubr.f32.mxu0 %v1243_v10  ;;  %10067 = vmatpush1.bf16.msra.mxu0 %v10066_v24  ;;  %v13011_v10 = vld [vmem:[#allocation2 + $0x10a] sm:$0xff] }
 0x285   :  { %10068 = vmatprep.subr.bf16.mxu0 %v17717_v56  ;;  %17739 = vst [vmem:[#allocation12_spill] sm:$0xff] %v13011_v10  ;;  %v2663_v24 = vld [vmem:[%s17498_s3 + $0x2e8] sm:$0xff] }
 0x287   :  { %3254 = vmatmul.mubr.f32.gmra.mrb[36].mxu0 %v12992_v44 }
 0x288   :  { %3258 = vmatprep.mubr.f32.mxu0 %v1244_v39  ;;  %v1248_v39 = vld [vmem:[#allocation2 + $0x128] sm:$0xff] }
 0x28b   :  { %3259 = vmatmul.mubr.f32.gmra.mrb[38].mxu0 %v12995_v14 }
 0x28c   :  { %3263 = vmatprep.mubr.f32.mxu0 %v1245_v23  ;;  %v13014_v23 = vld [vmem:[#allocation2 + $0x112] sm:$0xff] }
 0x28d   :  { %17740 = vst [vmem:[#allocation13_spill] sm:$0xff] %v13014_v23 }
 0x28f   :  { %3264 = vmatmul.mubr.f32.gmra.mrb[40].mxu0 %v12998_v48 }
 0x290   :  { %3268 = vmatprep.mubr.f32.mxu0 %v1246_v2  ;;  %v13017_v2 = vld [vmem:[#allocation2 + $0x122] sm:$0xff] }
 0x291   :  { %17741 = vst [vmem:[#allocation14_spill] sm:$0xff] %v13017_v2 }
 0x293   :  { %3269 = vmatmul.mubr.f32.gmra.mrb[42].mxu0 %v13007_v59 }
 0x294   :  { %3273 = vmatprep.mubr.f32.mxu0 %v1247_v15  ;;  %v13026_v15 = vld [vmem:[#allocation2 + $0x12a] sm:$0xff] }
 0x297   :  { %3274 = vmatmul.mubr.f32.gmra.mrb[44].mxu0 %v13011_v10  ;;  %v1251_v10 = vld [vmem:[#allocation2 + $0x150] sm:$0xff] }
 0x298   :  { %3278 = vmatprep.mubr.f32.mxu0 %v1248_v39  ;;  %v10069_v39 = vpack.c.bf16 %v2663_v24, %v2662_v22 }
 0x29a   :  { %10070 = vmatpush1.bf16.msra.mxu0 %v10069_v39 }
 0x29b   :  { %3279 = vmatmul.mubr.f32.gmra.mrb[46].mxu0 %v13014_v23  ;;  %10071 = vmatprep.subr.bf16.mxu0 %v17717_v56  ;;  %v11201_v23 = vld [vmem:[%s17499_s0 + $0x1f0] sm:$0xff] }
 0x29c   :  { %3283 = vmatprep.mubr.f32.mxu0 %v1249_v25  ;;  %v13030_v25 = vld [vmem:[#allocation2 + $0x13a] sm:$0xff]  ;;  %v514_v59 = vmul.f32 %v11201_v23, %v12027_v41  ;;  %v710_v23 = vld [vmem:[%s17501_s1 + $0x1f0] sm:$0xff] }
 0x29d   :  { %17742 = vst [vmem:[#allocation15_spill] sm:$0xff] %v13030_v25 }
 0x29e   :  { %v582_v22 = vadd.f32 %v12045_v5, %v514_v59 }
 0x29f   :  { %3284 = vmatmul.mubr.f32.gmra.mrb[48].mxu0 %v13017_v2  ;;  %v1252_v2 = vld [vmem:[#allocation2 + $0x158] sm:$0xff] }
 0x2a0   :  { %3288 = vmatprep.mubr.f32.mxu0 %v1250_v19  ;;  %v13037_v19 = vld [vmem:[#allocation2 + $0x142] sm:$0xff]  ;;  %v646_v24 = vmax.f32 %v582_v22, 0.0 }
 0x2a3   :  { %3289 = vmatmul.mubr.f32.gmra.mrb[50].mxu0 %v13026_v15 }
 0x2a4   :  { %3293 = vmatprep.mubr.f32.mxu0 %v1251_v10  ;;  %v11202_v10 = vld [vmem:[%s17499_s0 + $0x1f8] sm:$0xff] }
 0x2a5   :  { %v515_v39 = vmul.f32 %v11202_v10, %v12027_v41  ;;  %v2664_v41 = vld [vmem:[%s17498_s3 + $0x2f0] sm:$0xff]  ;;  %v2665_v10 = vld [vmem:[%s17498_s3 + $0x2f8] sm:$0xff] }
 0x2a7   :  { %3294 = vmatmul.mubr.f32.gmra.mrb[52].mxu0 %v13030_v25  ;;  %v13051_v25 = vadd.f32 %v710_v23, %v646_v24  ;;  %v583_v59 = vadd.f32 %v12045_v5, %v515_v39  ;;  %v13066_v5 = vld [vmem:[#allocation2 + $0x15a] sm:$0xff]  ;;  %v10072_v24 = vpack.c.bf16 %v2665_v10, %v2664_v41  ;;  %v13082_v10 = vld [vmem:[#allocation2 + $0x1ca] sm:$0xff] }
 0x2a8   :  { %3298 = vmatprep.mubr.f32.mxu0 %v1252_v2  ;;  %v13049_v2 = vld [vmem:[#allocation2 + $0x152] sm:$0xff]  ;;  %v1255_v23 = vld [vmem:[#allocation2 + $0x180] sm:$0xff] }
 0x2a9   :  { %17743 = vst [vmem:[#allocation16_spill] sm:$0xff] %v13051_v25  ;;  %839 = vst [vmem:[#allocation2 + $0x331] sm:$0xff] %v13051_v25  ;;  %v647_v22 = vmax.f32 %v583_v59, 0.0  ;;  %10073 = vmatpush1.bf16.msra.mxu0 %v10072_v24  ;;  %v13073_v59 = vld [vmem:[#allocation2 + $0x16a] sm:$0xff]  ;;  %v1130_v41 = vld [vmem:[#allocation2 + $0x1ba] sm:$0xff] }
 0x2aa   :  { %10074 = vmatprep.subr.bf16.mxu0 %v17717_v56  ;;  %v1256_v25 = vld [vmem:[#allocation2 + $0x188] sm:$0xff] }
 0x2ab   :  { %3299 = vmatmul.mubr.f32.gmra.mrb[54].mxu0 %v13037_v19  ;;  %v13196_v24 = vld [vmem:[#allocation2 + $0x322] sm:$0xff] }
 0x2ac   :  { %3303 = vmatprep.mubr.f32.mxu0 %v12710_v31  ;;  %v711_v31 = vld [vmem:[%s17501_s1 + $0x1f8] sm:$0xff] }
 0x2ad   :  { %v13068_v39 = vadd.f32 %v711_v31, %v647_v22  ;;  %v1129_v22 = vld [vmem:[#allocation2 + $0x1b2] sm:$0xff]  ;;  %v13193_v31 = vld [vmem:[#allocation2 + $0x31a] sm:$0xff] }
 0x2af   :  { %3304 = vmatmul.mubr.f32.gmra.mrb[56].mxu0 %v13049_v2  ;;  %17744 = vst [vmem:[#allocation17_spill] sm:$0xff] %v13068_v39  ;;  %840 = vst [vmem:[#allocation2 + $0x339] sm:$0xff] %v13068_v39 }
 0x2b0   :  { %3308 = vmatprep.mubr.f32.mxu0 %v12714_v32  ;;  %v13076_v32 = vld [vmem:[#allocation2 + $0x172] sm:$0xff] }
 0x2b3   :  { %3309 = vmatmul.mubr.f32.gmra.mrb[58].mxu0 %v13066_v5 }
 0x2b4   :  { %3313 = vmatprep.mubr.f32.mxu0 %v1255_v23  ;;  %v1353_v23 = vld [vmem:[#allocation2 + $0x19] sm:$0xff] }
 0x2b7   :  { %3314 = vmatmul.mubr.f32.gmra.mrb[60].mxu0 %v13073_v59 }
 0x2b8   :  { %3318 = vmatprep.mubr.f32.mxu0 %v1256_v25  ;;  %v13086_v25 = vld [vmem:[#allocation2 + $0x1d2] sm:$0xff] }
 0x2bb   :  { %3319 = vmatmul.mubr.f32.gmra.mrb[62].mxu0 %v13076_v32 }
 0x2bc   :  { %3323 = vmatprep.mubr.f32.mxu0 %v12718_v26  ;;  %v13090_v26 = vld [vmem:[#allocation2 + $0x1e2] sm:$0xff] }
 0x2bf   :  { %3324 = vmatmul.mubr.f32.gmra.mrb[64].mxu0 %v1129_v22 }
 0x2c0   :  { %3328 = vmatprep.mubr.f32.mxu0 %v12722_v51  ;;  %v13094_v51 = vld [vmem:[#allocation2 + $0x1ea] sm:$0xff] }
 0x2c3   :  { %3329 = vmatmul.mubr.f32.gmra.mrb[66].mxu0 %v1130_v41  ;;  %v2668_v41 = vld [vmem:[%s17498_s3 + $0x310] sm:$0xff] }
 0x2c4   :  { %3333 = vmatprep.mubr.f32.mxu0 %v12726_v61  ;;  %v13098_v61 = vld [vmem:[#allocation2 + $0x1fa] sm:$0xff] }
 0x2c7   :  { %3334 = vmatmul.mubr.f32.gmra.mrb[68].mxu0 %v13082_v10 }
 0x2c8   :  { %3338 = vmatprep.mubr.f32.mxu0 %v12730_v21  ;;  %v13102_v21 = vld [vmem:[#allocation2 + $0x202] sm:$0xff] }
 0x2cb   :  { %3339 = vmatmul.mubr.f32.gmra.mrb[70].mxu0 %v13086_v25 }
 0x2cc   :  { %3343 = vmatprep.mubr.f32.mxu0 %v12734_v27  ;;  %v13106_v27 = vld [vmem:[#allocation2 + $0x212] sm:$0xff] }
 0x2cf   :  { %3344 = vmatmul.mubr.f32.gmra.mrb[72].mxu0 %v13090_v26 }
 0x2d0   :  { %3348 = vmatprep.mubr.f32.mxu0 %v12738_v43  ;;  %v13110_v43 = vld [vmem:[#allocation2 + $0x21a] sm:$0xff] }
 0x2d3   :  { %3349 = vmatmul.mubr.f32.gmra.mrb[74].mxu0 %v13094_v51 }
 0x2d4   :  { %3353 = vmatprep.mubr.f32.mxu0 %v12742_v6  ;;  %v13114_v6 = vld [vmem:[#allocation2 + $0x22a] sm:$0xff] }
 0x2d7   :  { %3354 = vmatmul.mubr.f32.gmra.mrb[76].mxu0 %v13098_v61 }
 0x2d8   :  { %3358 = vmatprep.mubr.f32.mxu0 %v12746_v9  ;;  %v13118_v9 = vld [vmem:[#allocation2 + $0x232] sm:$0xff] }
 0x2db   :  { %3359 = vmatmul.mubr.f32.gmra.mrb[78].mxu0 %v13102_v21 }
 0x2dc   :  { %3363 = vmatprep.mubr.f32.mxu0 %v12750_v13  ;;  %v13122_v13 = vld [vmem:[#allocation2 + $0x242] sm:$0xff] }
 0x2df   :  { %3364 = vmatmul.mubr.f32.gmra.mrb[80].mxu0 %v13106_v27 }
 0x2e0   :  { %3368 = vmatprep.mubr.f32.mxu0 %v12754_v16  ;;  %v13126_v16 = vld [vmem:[#allocation2 + $0x24a] sm:$0xff] }
 0x2e3   :  { %3369 = vmatmul.mubr.f32.gmra.mrb[82].mxu0 %v13110_v43 }
 0x2e4   :  { %3373 = vmatprep.mubr.f32.mxu0 %v12758_v62  ;;  %v13130_v62 = vld [vmem:[#allocation2 + $0x25a] sm:$0xff] }
 0x2e7   :  { %3374 = vmatmul.mubr.f32.gmra.mrb[84].mxu0 %v13114_v6 }
 0x2e8   :  { %3378 = vmatprep.mubr.f32.mxu0 %v12762_v58  ;;  %v13134_v58 = vld [vmem:[#allocation2 + $0x262] sm:$0xff] }
 0x2eb   :  { %3379 = vmatmul.mubr.f32.gmra.mrb[86].mxu0 %v13118_v9 }
 0x2ec   :  { %3383 = vmatprep.mubr.f32.mxu0 %v12766_v47  ;;  %v13138_v47 = vld [vmem:[#allocation2 + $0x272] sm:$0xff] }
 0x2ef   :  { %3384 = vmatmul.mubr.f32.gmra.mrb[88].mxu0 %v13122_v13 }
 0x2f0   :  { %3388 = vmatprep.mubr.f32.mxu0 %v12770_v35  ;;  %v13142_v35 = vld [vmem:[#allocation2 + $0x27a] sm:$0xff] }
 0x2f3   :  { %3389 = vmatmul.mubr.f32.gmra.mrb[90].mxu0 %v13126_v16 }
 0x2f4   :  { %3393 = vmatprep.mubr.f32.mxu0 %v12774_v4  ;;  %v13146_v4 = vld [vmem:[#allocation2 + $0x28a] sm:$0xff] }
 0x2f7   :  { %3394 = vmatmul.mubr.f32.gmra.mrb[92].mxu0 %v13130_v62 }
 0x2f8   :  { %3398 = vmatprep.mubr.f32.mxu0 %v12778_v53  ;;  %v13150_v53 = vld [vmem:[#allocation2 + $0x292] sm:$0xff] }
 0x2fb   :  { %3399 = vmatmul.mubr.f32.gmra.mrb[94].mxu0 %v13134_v58 }
 0x2fc   :  { %3403 = vmatprep.mubr.f32.mxu0 %v12782_v28  ;;  %v13154_v28 = vld [vmem:[#allocation2 + $0x2a2] sm:$0xff] }
 0x2ff   :  { %3404 = vmatmul.mubr.f32.gmra.mrb[96].mxu0 %v13138_v47 }
 0x300   :  { %3408 = vmatprep.mubr.f32.mxu0 %v12786_v54  ;;  %v13158_v54 = vld [vmem:[#allocation2 + $0x2aa] sm:$0xff] }
 0x303   :  { %3409 = vmatmul.mubr.f32.gmra.mrb[98].mxu0 %v13142_v35 }
 0x304   :  { %3413 = vmatprep.mubr.f32.mxu0 %v12790_v33  ;;  %v13162_v33 = vld [vmem:[#allocation2 + $0x2ba] sm:$0xff] }
 0x307   :  { %3414 = vmatmul.mubr.f32.gmra.mrb[100].mxu0 %v13146_v4 }
 0x308   :  { %3418 = vmatprep.mubr.f32.mxu0 %v12794_v29  ;;  %v13166_v29 = vld [vmem:[#allocation2 + $0x2c2] sm:$0xff] }
 0x30b   :  { %3419 = vmatmul.mubr.f32.gmra.mrb[102].mxu0 %v13150_v53 }
 0x30c   :  { %3423 = vmatprep.mubr.f32.mxu0 %v12798_v3  ;;  %v13170_v3 = vld [vmem:[#allocation2 + $0x2d2] sm:$0xff] }
 0x30f   :  { %3424 = vmatmul.mubr.f32.gmra.mrb[104].mxu0 %v13154_v28 }
 0x310   :  { %3428 = vmatprep.mubr.f32.mxu0 %v12802_v50  ;;  %v13174_v50 = vld [vmem:[#allocation2 + $0x2da] sm:$0xff] }
 0x313   :  { %3429 = vmatmul.mubr.f32.gmra.mrb[106].mxu0 %v13158_v54 }
 0x314   :  { %3433 = vmatprep.mubr.f32.mxu0 %v12806_v12  ;;  %v13178_v12 = vld [vmem:[#allocation2 + $0x2ea] sm:$0xff] }
 0x317   :  { %3434 = vmatmul.mubr.f32.gmra.mrb[108].mxu0 %v13162_v33 }
 0x318   :  { %3438 = vmatprep.mubr.f32.mxu0 %v12810_v49  ;;  %v13182_v49 = vld [vmem:[#allocation2 + $0x2f2] sm:$0xff] }
 0x31b   :  { %3439 = vmatmul.mubr.f32.gmra.mrb[110].mxu0 %v13166_v29 }
 0x31c   :  { %3443 = vmatprep.mubr.f32.mxu0 %v12814_v63  ;;  %v13186_v63 = vld [vmem:[#allocation2 + $0x302] sm:$0xff] }
 0x31f   :  { %3444 = vmatmul.mubr.f32.gmra.mrb[112].mxu0 %v13170_v3 }
 0x320   :  { %3448 = vmatprep.mubr.f32.mxu0 %v12822_v42  ;;  %v13190_v42 = vld [vmem:[#allocation2 + $0x30a] sm:$0xff] }
 0x323   :  { %3449 = vmatmul.mubr.f32.gmra.mrb[114].mxu0 %v13174_v50 }
 0x324   :  { %3453 = vmatprep.mubr.f32.mxu0 %v12834_v8  ;;  %v1287_v8 = vld [vmem:[#allocation2 + $0x330] sm:$0xff] }
 0x327   :  { %3454 = vmatmul.mubr.f32.gmra.mrb[116].mxu0 %v13178_v12 }
 0x328   :  { %3458 = vmatprep.mubr.f32.mxu0 %v12842_v36  ;;  %v1288_v36 = vld [vmem:[#allocation2 + $0x338] sm:$0xff] }
 0x32b   :  { %3459 = vmatmul.mubr.f32.gmra.mrb[118].mxu0 %v13182_v49 }
 0x32c   :  { %3463 = vmatprep.mubr.f32.mxu0 %v12846_v52  ;;  %v2666_v52 = vld [vmem:[%s17498_s3 + $0x300] sm:$0xff] }
 0x32f   :  { %3464 = vmatmul.mubr.f32.gmra.mrb[120].mxu0 %v13186_v63 }
 0x330   :  { %3468 = vmatprep.mubr.f32.mxu0 %v12850_v1  ;;  %v2667_v1 = vld [vmem:[%s17498_s3 + $0x308] sm:$0xff] }
 0x331   :  { %v10075_v22 = vpack.c.bf16 %v2667_v1, %v2666_v52  ;;  %v2671_v52 = vld [vmem:[%s17498_s3 + $0x328] sm:$0xff]  ;;  %v13221_v1 = vld [vmem:[#allocation2 + $0x31] sm:$0xff] }
 0x333   :  { %3469 = vmatmul.mubr.f32.gmra.mrb[122].mxu0 %v13190_v42 }
 0x334   :  { %3473 = vmatprep.mubr.f32.mxu0 %v1287_v8  ;;  %v2669_v8 = vld [vmem:[%s17498_s3 + $0x318] sm:$0xff] }
 0x335   :  { %v10078_v39 = vpack.c.bf16 %v2669_v8, %v2668_v41  ;;  %v13232_v41 = vld [vmem:[#allocation2 + $0x39] sm:$0xff]  ;;  %v2675_v8 = vld [vmem:[%s17498_s3 + $0x348] sm:$0xff] }
 0x337   :  { %3474 = vmatmul.mubr.f32.gmra.mrb[124].mxu0 %v13193_v31 }
 0x338   :  { %3478 = vmatprep.mubr.f32.mxu0 %v1288_v36  ;;  %v1354_v36 = vld [vmem:[#allocation2 + $0x21] sm:$0xff] }
 0x33b   :  { %3479 = vmatmul.mubr.f32.gmra.mrb[126].mxu0 %v13196_v24 }
 0x33c   :  { %3548 = vmatprep.mubr.f32.mxu0 %v12872_v57  ;;  %v2670_v57 = vld [vmem:[%s17498_s3 + $0x320] sm:$0xff] }
 0x33f   :  { %3549 = vmatmul.mubr.f32.vlgmr.msra.gmra.mrb[0].mxu0 %v1353_v23  ;;  %v10081_v23 = vpack.c.bf16 %v2671_v52, %v2670_v57  ;;  %v2676_v57 = vld [vmem:[%s17498_s3 + $0x350] sm:$0xff]  ;;  %v2677_v52 = vld [vmem:[%s17498_s3 + $0x358] sm:$0xff] }
 0x340   :  { %10076 = vmatpush1.bf16.msra.mxu0 %v10075_v22  ;;  %3553 = vmatprep.mubr.f32.mxu0 %v12882_v30  ;;  %v2672_v30 = vld [vmem:[%s17498_s3 + $0x330] sm:$0xff]  ;;  %v2673_v22 = vld [vmem:[%s17498_s3 + $0x338] sm:$0xff] }
 0x341   :  { %10077 = vmatprep.subr.bf16.mxu0 %v17717_v56 }
 0x343   :  { %3554 = vmatmul.mubr.f32.gmra.mrb[2].mxu0 %v1354_v36  ;;  %v13243_v36 = vld [vmem:[#allocation2 + $0x49] sm:$0xff] }
 0x344   :  { %3558 = vmatprep.mubr.f32.mxu0 %v12892_v20  ;;  %10079 = vmatpush1.bf16.msra.mxu0 %v10078_v39  ;;  %v10084_v20 = vpack.c.bf16 %v2673_v22, %v2672_v30  ;;  %v2674_v39 = vld [vmem:[%s17498_s3 + $0x340] sm:$0xff]  ;;  %v2679_v22 = vld [vmem:[%s17498_s3 + $0x368] sm:$0xff] }
 0x345   :  { %10080 = vmatprep.subr.bf16.mxu0 %v17717_v56  ;;  %v2678_v30 = vld [vmem:[%s17498_s3 + $0x360] sm:$0xff] }
 0x347   :  { %3559 = vmatmul.mubr.f32.gmra.mrb[4].mxu0 %v13221_v1 }
 0x348   :  { %3563 = vmatprep.mubr.f32.mxu0 %v12902_v17  ;;  %10082 = vmatpush1.bf16.msra.mxu0 %v10081_v23  ;;  %v10087_v17 = vpack.c.bf16 %v2675_v8, %v2674_v39  ;;  %v13254_v23 = vld [vmem:[#allocation2 + $0x51] sm:$0xff] }
 0x349   :  { %10083 = vmatprep.subr.bf16.mxu0 %v17717_v56  ;;  %v2680_v39 = vld [vmem:[%s17498_s3 + $0x370] sm:$0xff]  ;;  %v2681_v8 = vld [vmem:[%s17498_s3 + $0x378] sm:$0xff] }
 0x34b   :  { %3564 = vmatmul.mubr.f32.gmra.mrb[6].mxu0 %v13232_v41 }
 0x34c   :  { %3568 = vmatprep.mubr.f32.mxu0 %v12912_v11  ;;  %10085 = vmatpush1.bf16.msra.mxu0 %v10084_v20  ;;  %v10090_v11 = vpack.c.bf16 %v2677_v52, %v2676_v57  ;;  %v13265_v20 = vld [vmem:[#allocation2 + $0x61] sm:$0xff] }
 0x34d   :  { %10086 = vmatprep.subr.bf16.mxu0 %v17717_v56  ;;  %v2682_v57 = vld [vmem:[%s17498_s3 + $0x380] sm:$0xff]  ;;  %v2683_v52 = vld [vmem:[%s17498_s3 + $0x388] sm:$0xff] }
 0x34f   :  { %3569 = vmatmul.mubr.f32.gmra.mrb[8].mxu0 %v13243_v36 }
 0x350   :  { %3573 = vmatprep.mubr.f32.mxu0 %v12922_v7  ;;  %10088 = vmatpush1.bf16.msra.mxu0 %v10087_v17  ;;  %v10093_v7 = vpack.c.bf16 %v2679_v22, %v2678_v30  ;;  %v13276_v17 = vld [vmem:[#allocation2 + $0x69] sm:$0xff]  ;;  %v2685_v22 = vld [vmem:[%s17498_s3 + $0x398] sm:$0xff] }
 0x351   :  { %10089 = vmatprep.subr.bf16.mxu0 %v17717_v56  ;;  %v2684_v30 = vld [vmem:[%s17498_s3 + $0x390] sm:$0xff] }
 0x353   :  { %3574 = vmatmul.mubr.f32.gmra.mrb[10].mxu0 %v13254_v23 }
 0x354   :  { %3578 = vmatprep.mubr.f32.mxu0 %v12932_v40  ;;  %10091 = vmatpush1.bf16.msra.mxu0 %v10090_v11  ;;  %v10096_v40 = vpack.c.bf16 %v2681_v8, %v2680_v39  ;;  %v13287_v11 = vld [vmem:[#allocation2 + $0x79] sm:$0xff]  ;;  %v2687_v8 = vld [vmem:[%s17498_s3 + $0x3a8] sm:$0xff] }
 0x355   :  { %10092 = vmatprep.subr.bf16.mxu0 %v17717_v56  ;;  %v2686_v39 = vld [vmem:[%s17498_s3 + $0x3a0] sm:$0xff] }
 0x357   :  { %3579 = vmatmul.mubr.f32.gmra.mrb[12].mxu0 %v13265_v20 }
 0x358   :  { %3583 = vmatprep.mubr.f32.mxu0 %v12942_v45  ;;  %10094 = vmatpush1.bf16.msra.mxu0 %v10093_v7  ;;  %v10099_v45 = vpack.c.bf16 %v2683_v52, %v2682_v57  ;;  %v13298_v7 = vld [vmem:[#allocation2 + $0x81] sm:$0xff]  ;;  %v13314_v57 = vld [vmem:[#allocation2 + $0x99] sm:$0xff]  ;;  %v2688_v52 = vld [vmem:[%s17498_s3 + $0x3b0] sm:$0xff] }
 0x359   :  { %10095 = vmatprep.subr.bf16.mxu0 %v17717_v56 }
 0x35b   :  { %3584 = vmatmul.mubr.f32.gmra.mrb[14].mxu0 %v13276_v17 }
 0x35c   :  { %3588 = vmatprep.mubr.f32.mxu0 %v12952_v38  ;;  %10097 = vmatpush1.bf16.msra.mxu0 %v10096_v40  ;;  %v10102_v38 = vpack.c.bf16 %v2685_v22, %v2684_v30  ;;  %v13309_v40 = vld [vmem:[#allocation2 + $0x91] sm:$0xff]  ;;  %v13338_v22 = vld [vmem:[#allocation2 + $0xc9] sm:$0xff] }
 0x35d   :  { %10098 = vmatprep.subr.bf16.mxu0 %v17717_v56 }
 0x35f   :  { %3589 = vmatmul.mubr.f32.gmra.mrb[16].mxu0 %v13287_v11 }
 0x360   :  { %3593 = vmatprep.mubr.f32.mxu0 %v12956_v0  ;;  %10100 = vmatpush1.bf16.msra.mxu0 %v10099_v45  ;;  %v10105_v0 = vpack.c.bf16 %v2687_v8, %v2686_v39  ;;  %v13329_v45 = vld [vmem:[#allocation2 + $0xb1] sm:$0xff] }
 0x361   :  { %10101 = vmatprep.subr.bf16.mxu0 %v17717_v56  ;;  %v17745_v8 = vld [vmem:[#allocation11_spill] sm:$0xff] }
 0x363   :  { %3594 = vmatmul.mubr.f32.gmra.mrb[18].mxu0 %v13298_v7 }
 0x364   :  { %3598 = vmatprep.mubr.f32.mxu0 %v12960_v60  ;;  %10103 = vmatpush1.bf16.msra.mxu0 %v10102_v38  ;;  %v13319_v60 = vld [vmem:[#allocation2 + $0xa9] sm:$0xff] }
 0x365   :  { %10104 = vmatprep.subr.bf16.mxu0 %v17717_v56  ;;  %v2691_v38 = vld [vmem:[%s17498_s3 + $0x3c8] sm:$0xff] }
 0x367   :  { %3599 = vmatmul.mubr.f32.gmra.mrb[20].mxu0 %v13309_v40 }
 0x368   :  { %3603 = vmatprep.mubr.f32.mxu0 %v12969_v55  ;;  %10106 = vmatpush1.bf16.msra.mxu0 %v10105_v0  ;;  %v2689_v55 = vld [vmem:[%s17498_s3 + $0x3b8] sm:$0xff] }
 0x369   :  { %10107 = vmatprep.subr.bf16.mxu0 %v17717_v56  ;;  %v10108_v30 = vpack.c.bf16 %v2689_v55, %v2688_v52  ;;  %v13361_v0 = vld [vmem:[#allocation2 + $0xf9] sm:$0xff]  ;;  %v13365_v52 = vld [vmem:[#allocation2 + $0x109] sm:$0xff] }
 0x36a   :  { %v2693_v55 = vld [vmem:[%s17498_s3 + $0x3d8] sm:$0xff] }
 0x36b   :  { %3604 = vmatmul.mubr.f32.gmra.mrb[22].mxu0 %v13314_v57 }
 0x36c   :  { %3608 = vmatprep.mubr.f32.mxu0 %v12973_v37  ;;  %10109 = vmatpush1.bf16.msra.mxu0 %v10108_v30  ;;  %v13334_v37 = vld [vmem:[#allocation2 + $0xc1] sm:$0xff] }
 0x36d   :  { %10110 = vmatprep.subr.bf16.mxu0 %v17717_v56  ;;  %v17747_v30 = vld [vmem:[#allocation13_spill] sm:$0xff] }
 0x36f   :  { %3609 = vmatmul.mubr.f32.gmra.mrb[24].mxu0 %v13319_v60 }
 0x370   :  { %3613 = vmatprep.mubr.f32.mxu0 %v12976_v18  ;;  %v13342_v18 = vld [vmem:[#allocation2 + $0xd9] sm:$0xff] }
 0x373   :  { %3614 = vmatmul.mubr.f32.gmra.mrb[26].mxu0 %v13329_v45 }
 0x374   :  { %3618 = vmatprep.mubr.f32.mxu0 %v12979_v34  ;;  %v2690_v34 = vld [vmem:[%s17498_s3 + $0x3c0] sm:$0xff] }
 0x375   :  { %v10111_v39 = vpack.c.bf16 %v2691_v38, %v2690_v34  ;;  %v13375_v34 = vld [vmem:[#allocation2 + $0x111] sm:$0xff] }
 0x377   :  { %3619 = vmatmul.mubr.f32.gmra.mrb[28].mxu0 %v13334_v37 }
 0x378   :  { %3623 = vmatprep.mubr.f32.mxu0 %v12988_v46  ;;  %v13352_v46 = vld [vmem:[#allocation2 + $0xe1] sm:$0xff]  ;;  %10112 = vmatpush1.bf16.msra.mxu0 %v10111_v39  ;;  %v17748_v39 = vld [vmem:[#allocation14_spill] sm:$0xff] }
 0x379   :  { %10113 = vmatprep.subr.bf16.mxu0 %v17717_v56 }
 0x37b   :  { %3624 = vmatmul.mubr.f32.gmra.mrb[30].mxu0 %v13338_v22 }
 0x37c   :  { %3628 = vmatprep.mubr.f32.mxu0 %v12992_v44  ;;  %v13357_v44 = vld [vmem:[#allocation2 + $0xf1] sm:$0xff] }
 0x37f   :  { %3629 = vmatmul.mubr.f32.gmra.mrb[32].mxu0 %v13342_v18 }
 0x380   :  { %3633 = vmatprep.mubr.f32.mxu0 %v12995_v14  ;;  %v17746_v14 = vld [vmem:[#allocation12_spill] sm:$0xff] }
 0x383   :  { %3634 = vmatmul.mubr.f32.gmra.mrb[34].mxu0 %v13352_v46 }
 0x384   :  { %3638 = vmatprep.mubr.f32.mxu0 %v12998_v48  ;;  %v2692_v48 = vld [vmem:[%s17498_s3 + $0x3d0] sm:$0xff] }
 0x385   :  { %v10114_v38 = vpack.c.bf16 %v2693_v55, %v2692_v48  ;;  %v2698_v48 = vld [vmem:[%s17498_s3 + $0x400] sm:$0xff]  ;;  %v2699_v55 = vld [vmem:[%s17498_s3 + $0x408] sm:$0xff] }
 0x387   :  { %3639 = vmatmul.mubr.f32.gmra.mrb[36].mxu0 %v13357_v44 }
 0x388   :  { %3643 = vmatprep.mubr.f32.mxu0 %v17745_v8  ;;  %10115 = vmatpush1.bf16.msra.mxu0 %v10114_v38  ;;  %v13380_v8 = vld [vmem:[#allocation2 + $0x121] sm:$0xff]  ;;  %v13394_v38 = vld [vmem:[#allocation2 + $0x139] sm:$0xff] }
 0x389   :  { %10116 = vmatprep.subr.bf16.mxu0 %v17717_v56  ;;  %17749 = vst [vmem:[#allocation18_spill] sm:$0xff] %v13380_v8  ;;  %17752 = vst [vmem:[#allocation20_spill] sm:$0xff] %v13394_v38 }
 0x38b   :  { %3644 = vmatmul.mubr.f32.gmra.mrb[38].mxu0 %v13361_v0 }
 0x38c   :  { %3648 = vmatprep.mubr.f32.mxu0 %v17746_v14  ;;  %v13384_v14 = vld [vmem:[#allocation2 + $0x129] sm:$0xff] }
 0x38d   :  { %17750 = vst [vmem:[#allocation19_spill] sm:$0xff] %v13384_v14 }
 0x38f   :  { %3649 = vmatmul.mubr.f32.gmra.mrb[40].mxu0 %v13365_v52 }
 0x390   :  { %3653 = vmatprep.mubr.f32.mxu0 %v17747_v30  ;;  %v17751_v30 = vld [vmem:[#allocation15_spill] sm:$0xff] }
 0x393   :  { %3654 = vmatmul.mubr.f32.gmra.mrb[42].mxu0 %v13375_v34 }
 0x394   :  { %3658 = vmatprep.mubr.f32.mxu0 %v17748_v39  ;;  %v10122_v39 = vpack.c.bf16 %v2699_v55, %v2698_v48  ;;  %v2701_v55 = vld [vmem:[%s17498_s3 + $0x418] sm:$0xff] }
 0x396   :  { %10123 = vmatprep.subr.bf16.mxu1 %v10122_v39 }
 0x397   :  { %3659 = vmatmul.mubr.f32.gmra.mrb[44].mxu0 %v13380_v8  ;;  %10125 = vmatpush3.bf16.msra.mxu1 %v10122_v39  ;;  %v2700_v8 = vld [vmem:[%s17498_s3 + $0x410] sm:$0xff]  ;;  %v2702_v39 = vld [vmem:[%s17498_s3 + $0x420] sm:$0xff] }
 0x398   :  { %3663 = vmatprep.mubr.f32.mxu0 %v13026_v15  ;;  %v2694_v15 = vld [vmem:[%s17498_s3 + $0x3e0] sm:$0xff] }
 0x39b   :  { %3664 = vmatmul.mubr.f32.gmra.mrb[46].mxu0 %v13384_v14  ;;  %v2695_v14 = vld [vmem:[%s17498_s3 + $0x3e8] sm:$0xff] }
 0x39c   :  { %3668 = vmatprep.mubr.f32.mxu0 %v17751_v30  ;;  %v13407_v30 = vld [vmem:[#allocation2 + $0x141] sm:$0xff]  ;;  %v10117_v48 = vpack.c.bf16 %v2695_v14, %v2694_v15  ;;  %v13420_v14 = vld [vmem:[#allocation2 + $0x151] sm:$0xff] }
 0x39e   :  { %10118 = vmatpush1.bf16.msra.mxu0 %v10117_v48  ;;  %v2705_v48 = vld [vmem:[%s17498_s3 + $0x438] sm:$0xff] }
 0x39f   :  { %3669 = vmatmul.mubr.f32.gmra.mrb[48].mxu0 %v13394_v38  ;;  %v10126_v38 = vpack.c.bf16 %v2701_v55, %v2700_v8  ;;  %10119 = vmatprep.subr.bf16.mxu0 %v17717_v56  ;;  %v2704_v8 = vld [vmem:[%s17498_s3 + $0x430] sm:$0xff]  ;;  %v2706_v55 = vld [vmem:[%s17498_s3 + $0x440] sm:$0xff] }
 0x3a0   :  { %3673 = vmatprep.mubr.f32.mxu0 %v13037_v19  ;;  %v2703_v19 = vld [vmem:[%s17498_s3 + $0x428] sm:$0xff] }
 0x3a1   :  { %10127 = vmatprep.subr.bf16.mxu1 %v10126_v38  ;;  %v10130_v15 = vpack.c.bf16 %v2703_v19, %v2702_v39  ;;  %v2707_v39 = vld [vmem:[%s17498_s3 + $0x448] sm:$0xff] }
 0x3a2   :  { %10129 = vmatpush3.bf16.msra.mxu1 %v10126_v38  ;;  %v10134_v38 = vpack.c.bf16 %v2705_v48, %v2704_v8  ;;  %v13441_v19 = vld [vmem:[#allocation2 + $0x169] sm:$0xff]  ;;  %v2697_v8 = vld [vmem:[%s17498_s3 + $0x3f8] sm:$0xff] }
 0x3a3   :  { %3674 = vmatmul.mubr.f32.gmra.mrb[50].mxu0 %v13407_v30  ;;  %10131 = vmatprep.subr.bf16.mxu1 %v10130_v15  ;;  %17754 = vst [vmem:[#allocation22_spill] sm:$0xff] %v13441_v19  ;;  %v2708_v48 = vld [vmem:[%s17498_s3 + $0x450] sm:$0xff] }
 0x3a4   :  { %3678 = vmatprep.mubr.f32.mxu0 %v13049_v2  ;;  %v13431_v2 = vld [vmem:[#allocation2 + $0x159] sm:$0xff] }
 0x3a5   :  { %17753 = vst [vmem:[#allocation21_spill] sm:$0xff] %v13431_v2 }
 0x3a6   :  { %10133 = vmatpush3.bf16.msra.mxu1 %v10130_v15  ;;  %v2696_v15 = vld [vmem:[%s17498_s3 + $0x3f0] sm:$0xff] }
 0x3a7   :  { %3679 = vmatmul.mubr.f32.gmra.mrb[52].mxu0 %v13420_v14  ;;  %10135 = vmatprep.subr.bf16.mxu1 %v10134_v38 }
 0x3a8   :  { %3683 = vmatprep.mubr.f32.mxu0 %v13066_v5  ;;  %v10138_v5 = vpack.c.bf16 %v2707_v39, %v2706_v55  ;;  %v2709_v55 = vld [vmem:[%s17498_s3 + $0x458] sm:$0xff]  ;;  %v13459_v39 = vld [vmem:[#allocation2 + $0x182] sm:$0xff] }
 0x3aa   :  { %10137 = vmatpush3.bf16.msra.mxu1 %v10134_v38  ;;  %v10120_v38 = vpack.c.bf16 %v2697_v8, %v2696_v15  ;;  %v13469_v15 = vld [vmem:[#allocation2 + $0x18a] sm:$0xff]  ;;  %v11203_v8 = vld [vmem:[#allocation2 + $0x181] sm:$0xff] }
 0x3ab   :  { %3684 = vmatmul.mubr.f32.gmra.mrb[54].mxu0 %v13431_v2  ;;  %10139 = vmatprep.subr.bf16.mxu1 %v10138_v5  ;;  %v2710_v2 = vld [vmem:[%s17498_s3 + $0x460] sm:$0xff] }
 0x3ac   :  { %3688 = vmatprep.mubr.f32.mxu0 %v13073_v59  ;;  %v13454_v59 = vld [vmem:[#allocation2 + $0x171] sm:$0xff]  ;;  %10121 = vmatpush1.bf16.msra.mxu0 %v10120_v38 }
 0x3ad   :  { %17755 = vst [vmem:[#allocation4_spill] sm:$0xff] %v13454_v59  ;;  %v2713_v38 = vld [vmem:[%s17498_s3 + $0x478] sm:$0xff] }
 0x3ae   :  { %10141 = vmatpush3.bf16.msra.mxu1 %v10138_v5 }
 0x3af   :  { %3689 = vmatmul.mubr.f32.gmra.mrb[56].mxu0 %v13441_v19  ;;  %v10142_v19 = vpack.c.bf16 %v2709_v55, %v2708_v48  ;;  %v2712_v48 = vld [vmem:[%s17498_s3 + $0x470] sm:$0xff] }
 0x3b0   :  { %3693 = vmatprep.mubr.f32.mxu0 %v13076_v32  ;;  %v2711_v32 = vld [vmem:[%s17498_s3 + $0x468] sm:$0xff]  ;;  %v10150_v55 = vpack.c.bf16 %v2713_v38, %v2712_v48  ;;  %v1869_v38 = vld [vmem:[#allocation2 + $0x52] sm:$0xff] }
 0x3b1   :  { %10143 = vmatprep.subr.bf16.mxu1 %v10142_v19  ;;  %v10146_v5 = vpack.c.bf16 %v2711_v32, %v2710_v2  ;;  %v1866_v2 = vld [vmem:[#allocation2 + $0x32] sm:$0xff]  ;;  %v1385_v32 = vld [vmem:[#allocation2 + $0x1c9] sm:$0xff]  ;;  %v13482_v48 = vld [vmem:[#allocation2 + $0x1e1] sm:$0xff] }
 0x3b2   :  { %10145 = vmatpush3.bf16.msra.mxu1 %v10142_v19  ;;  %v11204_v19 = vld [vmem:[#allocation2 + $0x189] sm:$0xff]  ;;  %9706 = vmatprep.mubr.f32.mxu1 %v1866_v2  ;;  %v13502_v2 = vld [vmem:[#allocation2 + $0x219] sm:$0xff] }
 0x3b3   :  { %3694 = vmatmul.mubr.f32.gmra.mrb[58].mxu0 %v13454_v59  ;;  %10147 = vmatprep.subr.bf16.mxu1 %v10146_v5  ;;  %v1386_v59 = vld [vmem:[#allocation2 + $0x1d1] sm:$0xff] }
 0x3b4   :  { %3698 = vmatprep.mubr.f32.mxu0 %v13459_v39 }
 0x3b6   :  { %10149 = vmatpush3.bf16.msra.mxu1 %v10146_v5  ;;  %v1868_v5 = vld [vmem:[#allocation2 + $0x4a] sm:$0xff] }
 0x3b7   :  { %3699 = vmatmul.mubr.f32.gmra.mrb[60].mxu0 %v11203_v8  ;;  %10151 = vmatprep.subr.bf16.mxu1 %v10150_v55  ;;  %v1867_v8 = vld [vmem:[#allocation2 + $0x3a] sm:$0xff] }
 0x3b8   :  { %3703 = vmatprep.mubr.f32.mxu0 %v13469_v15 }
 0x3ba   :  { %10153 = vmatpush3.bf16.msra.mxu1 %v10150_v55  ;;  %v1870_v55 = vld [vmem:[#allocation2 + $0x62] sm:$0xff] }
 0x3bb   :  { %3704 = vmatmul.mubr.f32.gmra.mrb[62].mxu0 %v11204_v19  ;;  %10154 = vmatprep.subr.bf16.mxu1 %v17717_v56  ;;  %v13498_v19 = vld [vmem:[#allocation2 + $0x211] sm:$0xff] }
 0x3bc   :  { %3708 = vmatprep.mubr.f32.mxu0 %v13082_v10  ;;  %v13486_v10 = vld [vmem:[#allocation2 + $0x1e9] sm:$0xff] }
 0x3bd   :  { %9707 = vmatmul.mubr.f32.vlgmr.msra.gmra.mrb[0].mxu1 %v1867_v8  ;;  %v13510_v8 = vld [vmem:[#allocation2 + $0x231] sm:$0xff] }
 0x3be   :  { %9709 = vmatprep.mubr.f32.mxu1 %v1868_v5  ;;  %v13514_v5 = vld [vmem:[#allocation2 + $0x241] sm:$0xff] }
 0x3bf   :  { %3709 = vmatmul.mubr.f32.gmra.mrb[64].mxu0 %v1385_v32  ;;  %v13506_v32 = vld [vmem:[#allocation2 + $0x229] sm:$0xff] }
 0x3c0   :  { %3713 = vmatprep.mubr.f32.mxu0 %v13086_v25  ;;  %v13490_v25 = vld [vmem:[#allocation2 + $0x1f9] sm:$0xff] }
 0x3c1   :  { %9710 = vmatmul.mubr.f32.gmra.mrb[2].mxu1 %v1869_v38  ;;  %v13518_v38 = vld [vmem:[#allocation2 + $0x249] sm:$0xff] }
 0x3c2   :  { %9712 = vmatprep.mubr.f32.mxu1 %v1870_v55  ;;  %v13522_v55 = vld [vmem:[#allocation2 + $0x259] sm:$0xff] }
 0x3c3   :  { %3714 = vmatmul.mubr.f32.gmra.mrb[66].mxu0 %v1386_v59  ;;  %v13494_v59 = vld [vmem:[#allocation2 + $0x201] sm:$0xff] }
 0x3c4   :  { %3718 = vmatprep.mubr.f32.mxu0 %v13090_v26  ;;  %v1871_v26 = vld [vmem:[#allocation2 + $0x6a] sm:$0xff] }
 0x3c5   :  { %9713 = vmatmul.mubr.f32.gmra.mrb[4].mxu1 %v1871_v26  ;;  %v13526_v26 = vld [vmem:[#allocation2 + $0x261] sm:$0xff] }
 0x3c7   :  { %3719 = vmatmul.mubr.f32.gmra.mrb[68].mxu0 %v13482_v48 }
 0x3c8   :  { %3723 = vmatprep.mubr.f32.mxu0 %v13094_v51  ;;  %v1872_v51 = vld [vmem:[#allocation2 + $0x7a] sm:$0xff] }
 0x3c9   :  { %9715 = vmatprep.mubr.f32.mxu1 %v1872_v51  ;;  %v13530_v51 = vld [vmem:[#allocation2 + $0x271] sm:$0xff] }
 0x3cb   :  { %3724 = vmatmul.mubr.f32.gmra.mrb[70].mxu0 %v13486_v10 }
 0x3cc   :  { %3728 = vmatprep.mubr.f32.mxu0 %v13098_v61  ;;  %v1873_v61 = vld [vmem:[#allocation2 + $0x82] sm:$0xff] }
 0x3cd   :  { %9716 = vmatmul.mubr.f32.gmra.mrb[6].mxu1 %v1873_v61  ;;  %v13534_v61 = vld [vmem:[#allocation2 + $0x279] sm:$0xff] }
 0x3cf   :  { %3729 = vmatmul.mubr.f32.gmra.mrb[72].mxu0 %v13490_v25 }
 0x3d0   :  { %3733 = vmatprep.mubr.f32.mxu0 %v13102_v21  ;;  %v1874_v21 = vld [vmem:[#allocation2 + $0x92] sm:$0xff] }
 0x3d1   :  { %9718 = vmatprep.mubr.f32.mxu1 %v1874_v21  ;;  %v13538_v21 = vld [vmem:[#allocation2 + $0x289] sm:$0xff] }
 0x3d3   :  { %3734 = vmatmul.mubr.f32.gmra.mrb[74].mxu0 %v13494_v59 }
 0x3d4   :  { %3738 = vmatprep.mubr.f32.mxu0 %v13106_v27  ;;  %v1875_v27 = vld [vmem:[#allocation2 + $0x9a] sm:$0xff] }
 0x3d5   :  { %9719 = vmatmul.mubr.f32.gmra.mrb[8].mxu1 %v1875_v27  ;;  %v13542_v27 = vld [vmem:[#allocation2 + $0x291] sm:$0xff] }
 0x3d7   :  { %3739 = vmatmul.mubr.f32.gmra.mrb[76].mxu0 %v13498_v19 }
 0x3d8   :  { %3743 = vmatprep.mubr.f32.mxu0 %v13110_v43  ;;  %v1876_v43 = vld [vmem:[#allocation2 + $0xaa] sm:$0xff] }
 0x3d9   :  { %9721 = vmatprep.mubr.f32.mxu1 %v1876_v43  ;;  %v13546_v43 = vld [vmem:[#allocation2 + $0x2a1] sm:$0xff] }
 0x3db   :  { %3744 = vmatmul.mubr.f32.gmra.mrb[78].mxu0 %v13502_v2 }
 0x3dc   :  { %3748 = vmatprep.mubr.f32.mxu0 %v13114_v6  ;;  %v1877_v6 = vld [vmem:[#allocation2 + $0xb2] sm:$0xff] }
 0x3dd   :  { %9722 = vmatmul.mubr.f32.gmra.mrb[10].mxu1 %v1877_v6  ;;  %v13550_v6 = vld [vmem:[#allocation2 + $0x2a9] sm:$0xff] }
 0x3df   :  { %3749 = vmatmul.mubr.f32.gmra.mrb[80].mxu0 %v13506_v32 }
 0x3e0   :  { %3753 = vmatprep.mubr.f32.mxu0 %v13118_v9  ;;  %v1878_v9 = vld [vmem:[#allocation2 + $0xc2] sm:$0xff] }
 0x3e1   :  { %9724 = vmatprep.mubr.f32.mxu1 %v1878_v9  ;;  %v13554_v9 = vld [vmem:[#allocation2 + $0x2b9] sm:$0xff] }
 0x3e3   :  { %3754 = vmatmul.mubr.f32.gmra.mrb[82].mxu0 %v13510_v8 }
 0x3e4   :  { %3758 = vmatprep.mubr.f32.mxu0 %v13122_v13  ;;  %v1879_v13 = vld [vmem:[#allocation2 + $0xca] sm:$0xff] }
 0x3e5   :  { %9725 = vmatmul.mubr.f32.gmra.mrb[12].mxu1 %v1879_v13  ;;  %v13558_v13 = vld [vmem:[#allocation2 + $0x2c1] sm:$0xff] }
 0x3e7   :  { %3759 = vmatmul.mubr.f32.gmra.mrb[84].mxu0 %v13514_v5 }
 0x3e8   :  { %3763 = vmatprep.mubr.f32.mxu0 %v13126_v16  ;;  %v1880_v16 = vld [vmem:[#allocation2 + $0xda] sm:$0xff] }
 0x3e9   :  { %9727 = vmatprep.mubr.f32.mxu1 %v1880_v16  ;;  %v13562_v16 = vld [vmem:[#allocation2 + $0x2d1] sm:$0xff] }
 0x3eb   :  { %3764 = vmatmul.mubr.f32.gmra.mrb[86].mxu0 %v13518_v38 }
 0x3ec   :  { %3768 = vmatprep.mubr.f32.mxu0 %v13130_v62  ;;  %v1881_v62 = vld [vmem:[#allocation2 + $0xe2] sm:$0xff] }
 0x3ed   :  { %9728 = vmatmul.mubr.f32.gmra.mrb[14].mxu1 %v1881_v62  ;;  %v13566_v62 = vld [vmem:[#allocation2 + $0x2d9] sm:$0xff] }
 0x3ef   :  { %3769 = vmatmul.mubr.f32.gmra.mrb[88].mxu0 %v13522_v55 }
 0x3f0   :  { %3773 = vmatprep.mubr.f32.mxu0 %v13134_v58  ;;  %v1882_v58 = vld [vmem:[#allocation2 + $0xf2] sm:$0xff] }
 0x3f1   :  { %9730 = vmatprep.mubr.f32.mxu1 %v1882_v58  ;;  %v13570_v58 = vld [vmem:[#allocation2 + $0x2e9] sm:$0xff] }
 0x3f3   :  { %3774 = vmatmul.mubr.f32.gmra.mrb[90].mxu0 %v13526_v26 }
 0x3f4   :  { %3778 = vmatprep.mubr.f32.mxu0 %v13138_v47  ;;  %v1883_v47 = vld [vmem:[#allocation2 + $0xfa] sm:$0xff] }
 0x3f5   :  { %9731 = vmatmul.mubr.f32.gmra.mrb[16].mxu1 %v1883_v47  ;;  %v13574_v47 = vld [vmem:[#allocation2 + $0x2f1] sm:$0xff] }
 0x3f7   :  { %3779 = vmatmul.mubr.f32.gmra.mrb[92].mxu0 %v13530_v51 }
 0x3f8   :  { %3783 = vmatprep.mubr.f32.mxu0 %v13142_v35  ;;  %v1884_v35 = vld [vmem:[#allocation2 + $0x10a] sm:$0xff] }
 0x3f9   :  { %9733 = vmatprep.mubr.f32.mxu1 %v1884_v35  ;;  %v13578_v35 = vld [vmem:[#allocation2 + $0x301] sm:$0xff] }
 0x3fb   :  { %3784 = vmatmul.mubr.f32.gmra.mrb[94].mxu0 %v13534_v61 }
 0x3fc   :  { %3788 = vmatprep.mubr.f32.mxu0 %v13146_v4  ;;  %v1885_v4 = vld [vmem:[#allocation2 + $0x112] sm:$0xff] }
 0x3fd   :  { %9734 = vmatmul.mubr.f32.gmra.mrb[18].mxu1 %v1885_v4  ;;  %v13583_v4 = vld [vmem:[#allocation2 + $0x309] sm:$0xff] }
 0x3ff   :  { %3789 = vmatmul.mubr.f32.gmra.mrb[96].mxu0 %v13538_v21 }
 0x400   :  { %3793 = vmatprep.mubr.f32.mxu0 %v13150_v53  ;;  %v1886_v53 = vld [vmem:[#allocation2 + $0x122] sm:$0xff] }
 0x401   :  { %9736 = vmatprep.mubr.f32.mxu1 %v1886_v53  ;;  %v13598_v53 = vld [vmem:[#allocation2 + $0x33a] sm:$0xff] }
 0x403   :  { %3794 = vmatmul.mubr.f32.gmra.mrb[98].mxu0 %v13542_v27 }
 0x404   :  { %3798 = vmatprep.mubr.f32.mxu0 %v13154_v28  ;;  %v1887_v28 = vld [vmem:[#allocation2 + $0x12a] sm:$0xff] }
 0x405   :  { %9737 = vmatmul.mubr.f32.gmra.mrb[20].mxu1 %v1887_v28  ;;  %v17757_v28 = vld [vmem:[#allocation17_spill] sm:$0xff] }
 0x407   :  { %3799 = vmatmul.mubr.f32.gmra.mrb[100].mxu0 %v13546_v43 }
 0x408   :  { %3803 = vmatprep.mubr.f32.mxu0 %v13158_v54  ;;  %v1888_v54 = vld [vmem:[#allocation2 + $0x13a] sm:$0xff] }
 0x409   :  { %9739 = vmatprep.mubr.f32.mxu1 %v1888_v54  ;;  %v1610_v54 = vld [vmem:[#allocation2 + $0x30] sm:$0xff] }
 0x40b   :  { %3804 = vmatmul.mubr.f32.gmra.mrb[102].mxu0 %v13550_v6 }
 0x40c   :  { %3808 = vmatprep.mubr.f32.mxu0 %v13162_v33  ;;  %v1889_v33 = vld [vmem:[#allocation2 + $0x142] sm:$0xff] }
 0x40d   :  { %9740 = vmatmul.mubr.f32.gmra.mrb[22].mxu1 %v1889_v33  ;;  %v1899_v33 = vld [vmem:[#allocation2 + $0x1ea] sm:$0xff] }
 0x40f   :  { %3809 = vmatmul.mubr.f32.gmra.mrb[104].mxu0 %v13554_v9 }
 0x410   :  { %3813 = vmatprep.mubr.f32.mxu0 %v13166_v29  ;;  %v1890_v29 = vld [vmem:[#allocation2 + $0x152] sm:$0xff] }
 0x411   :  { %9742 = vmatprep.mubr.f32.mxu1 %v1890_v29  ;;  %v1611_v29 = vld [vmem:[#allocation2 + $0x38] sm:$0xff] }
 0x413   :  { %3814 = vmatmul.mubr.f32.gmra.mrb[106].mxu0 %v13558_v13 }
 0x414   :  { %3818 = vmatprep.mubr.f32.mxu0 %v13170_v3  ;;  %v1891_v3 = vld [vmem:[#allocation2 + $0x15a] sm:$0xff] }
 0x415   :  { %9743 = vmatmul.mubr.f32.gmra.mrb[24].mxu1 %v1891_v3  ;;  %v1900_v3 = vld [vmem:[#allocation2 + $0x1fa] sm:$0xff] }
 0x417   :  { %3819 = vmatmul.mubr.f32.gmra.mrb[108].mxu0 %v13562_v16 }
 0x418   :  { %3823 = vmatprep.mubr.f32.mxu0 %v13174_v50  ;;  %v1892_v50 = vld [vmem:[#allocation2 + $0x16a] sm:$0xff] }
 0x419   :  { %9745 = vmatprep.mubr.f32.mxu1 %v1892_v50  ;;  %v1612_v50 = vld [vmem:[#allocation2 + $0x48] sm:$0xff] }
 0x41b   :  { %3824 = vmatmul.mubr.f32.gmra.mrb[110].mxu0 %v13566_v62 }
 0x41c   :  { %3828 = vmatprep.mubr.f32.mxu0 %v13178_v12  ;;  %v1893_v12 = vld [vmem:[#allocation2 + $0x172] sm:$0xff] }
 0x41d   :  { %9746 = vmatmul.mubr.f32.gmra.mrb[26].mxu1 %v1893_v12  ;;  %v1901_v12 = vld [vmem:[#allocation2 + $0x202] sm:$0xff] }
 0x41e   :  { %9748 = vmatprep.mubr.f32.mxu1 %v13459_v39  ;;  %v13594_v39 = vld [vmem:[#allocation2 + $0x332] sm:$0xff] }
 0x41f   :  { %3829 = vmatmul.mubr.f32.gmra.mrb[112].mxu0 %v13570_v58 }
 0x420   :  { %3833 = vmatprep.mubr.f32.mxu0 %v13182_v49  ;;  %v13588_v49 = vld [vmem:[#allocation2 + $0x319] sm:$0xff] }
 0x421   :  { %9749 = vmatmul.mubr.f32.gmra.mrb[28].mxu1 %v13469_v15  ;;  %v1897_v15 = vld [vmem:[#allocation2 + $0x1a2] sm:$0xff] }
 0x423   :  { %3834 = vmatmul.mubr.f32.gmra.mrb[114].mxu0 %v13574_v47 }
 0x424   :  { %3838 = vmatprep.mubr.f32.mxu0 %v13186_v63  ;;  %v13592_v63 = vld [vmem:[#allocation2 + $0x321] sm:$0xff] }
 0x427   :  { %3839 = vmatmul.mubr.f32.gmra.mrb[116].mxu0 %v13578_v35 }
 0x428   :  { %3843 = vmatprep.mubr.f32.mxu0 %v13190_v42  ;;  %v1896_v42 = vld [vmem:[#allocation2 + $0x19a] sm:$0xff] }
 0x429   :  { %9751 = vmatprep.mubr.f32.mxu1 %v1896_v42  ;;  %v1902_v42 = vld [vmem:[#allocation2 + $0x212] sm:$0xff] }
 0x42a   :  { %9752 = vmatmul.mubr.f32.gmra.mrb[30].mxu1 %v1897_v15  ;;  %v1614_v15 = vld [vmem:[#allocation2 + $0x60] sm:$0xff] }
 0x42b   :  { %3844 = vmatmul.mubr.f32.gmra.mrb[118].mxu0 %v13583_v4 }
 0x42c   :  { %3848 = vmatprep.mubr.f32.mxu0 %v13193_v31  ;;  %v17756_v31 = vld [vmem:[#allocation16_spill] sm:$0xff] }
 0x42f   :  { %3849 = vmatmul.mubr.f32.gmra.mrb[120].mxu0 %v13588_v49 }
 0x430   :  { %3853 = vmatprep.mubr.f32.mxu0 %v13196_v24  ;;  %v1898_v24 = vld [vmem:[#allocation2 + $0x1e2] sm:$0xff] }
 0x431   :  { %9754 = vmatprep.mubr.f32.mxu1 %v1898_v24  ;;  %v1906_v24 = vld [vmem:[#allocation2 + $0x242] sm:$0xff] }
 0x432   :  { %9755 = vmatmul.mubr.f32.gmra.mrb[32].mxu1 %v1899_v33  ;;  %v1908_v33 = vld [vmem:[#allocation2 + $0x25a] sm:$0xff] }
 0x433   :  { %3854 = vmatmul.mubr.f32.gmra.mrb[122].mxu0 %v13592_v63  ;;  %9757 = vmatprep.mubr.f32.mxu1 %v1900_v3  ;;  %v1910_v3 = vld [vmem:[#allocation2 + $0x272] sm:$0xff] }
 0x434   :  { %3858 = vmatprep.mubr.f32.mxu0 %v13594_v39 }
 0x436   :  { %9758 = vmatmul.mubr.f32.gmra.mrb[34].mxu1 %v1901_v12  ;;  %v1912_v12 = vld [vmem:[#allocation2 + $0x28a] sm:$0xff] }
 0x437   :  { %3859 = vmatmul.mubr.f32.gmra.mrb[124].mxu0 %v17756_v31  ;;  %9760 = vmatprep.mubr.f32.mxu1 %v1902_v42  ;;  %v1904_v31 = vld [vmem:[#allocation2 + $0x22a] sm:$0xff]  ;;  %v1914_v42 = vld [vmem:[#allocation2 + $0x2a2] sm:$0xff] }
 0x438   :  { %3863 = vmatprep.mubr.f32.mxu0 %v13598_v53 }
 0x43b   :  { %3864 = vmatmul.mubr.f32.gmra.mrb[126].mxu0 %v17757_v28  ;;  %v1616_v28 = vld [vmem:[#allocation2 + $0x78] sm:$0xff] }
 0x43c   :  { %3933 = vmatprep.mubr.f32.mxu0 %v13221_v1  ;;  %v1613_v1 = vld [vmem:[#allocation2 + $0x50] sm:$0xff] }
 0x43f   :  { %3934 = vmatmul.mubr.f32.vlgmr.msra.gmra.mrb[0].mxu0 %v1610_v54  ;;  %v1618_v54 = vld [vmem:[#allocation2 + $0x90] sm:$0xff] }
 0x440   :  { %3938 = vmatprep.mubr.f32.mxu0 %v13232_v41  ;;  %v1903_v41 = vld [vmem:[#allocation2 + $0x21a] sm:$0xff] }
 0x441   :  { %9761 = vmatmul.mubr.f32.gmra.mrb[36].mxu1 %v1903_v41  ;;  %v1916_v41 = vld [vmem:[#allocation2 + $0x2ba] sm:$0xff] }
 0x442   :  { %9763 = vmatprep.mubr.f32.mxu1 %v1904_v31  ;;  %v1918_v31 = vld [vmem:[#allocation2 + $0x2d2] sm:$0xff] }
 0x443   :  { %3939 = vmatmul.mubr.f32.gmra.mrb[2].mxu0 %v1611_v29  ;;  %v1620_v29 = vld [vmem:[#allocation2 + $0xa8] sm:$0xff] }
 0x444   :  { %3943 = vmatprep.mubr.f32.mxu0 %v13243_v36  ;;  %v1615_v36 = vld [vmem:[#allocation2 + $0x68] sm:$0xff] }
 0x447   :  { %3944 = vmatmul.mubr.f32.gmra.mrb[4].mxu0 %v1612_v50  ;;  %v1622_v50 = vld [vmem:[#allocation2 + $0xc0] sm:$0xff] }
 0x448   :  { %3948 = vmatprep.mubr.f32.mxu0 %v13254_v23  ;;  %v1905_v23 = vld [vmem:[#allocation2 + $0x232] sm:$0xff] }
 0x449   :  { %9764 = vmatmul.mubr.f32.gmra.mrb[38].mxu1 %v1905_v23  ;;  %v1630_v23 = vld [vmem:[#allocation2 + $0x120] sm:$0xff] }
 0x44a   :  { %9766 = vmatprep.mubr.f32.mxu1 %v1906_v24 }
 0x44b   :  { %3949 = vmatmul.mubr.f32.gmra.mrb[6].mxu0 %v1613_v1  ;;  %v1624_v1 = vld [vmem:[#allocation2 + $0xd8] sm:$0xff] }
 0x44c   :  { %3953 = vmatprep.mubr.f32.mxu0 %v13265_v20  ;;  %v1617_v20 = vld [vmem:[#allocation2 + $0x80] sm:$0xff] }
 0x44f   :  { %3954 = vmatmul.mubr.f32.gmra.mrb[8].mxu0 %v1614_v15  ;;  %v1626_v15 = vld [vmem:[#allocation2 + $0xf0] sm:$0xff] }
 0x450   :  { %3958 = vmatprep.mubr.f32.mxu0 %v13276_v17  ;;  %v1907_v17 = vld [vmem:[#allocation2 + $0x24a] sm:$0xff] }
 0x451   :  { %9767 = vmatmul.mubr.f32.gmra.mrb[40].mxu1 %v1907_v17  ;;  %v1920_v17 = vld [vmem:[#allocation2 + $0x2ea] sm:$0xff] }
 0x452   :  { %9769 = vmatprep.mubr.f32.mxu1 %v1908_v33  ;;  %v1921_v33 = vld [vmem:[#allocation2 + $0x2f2] sm:$0xff] }
 0x453   :  { %3959 = vmatmul.mubr.f32.gmra.mrb[10].mxu0 %v1615_v36  ;;  %v1628_v36 = vld [vmem:[#allocation2 + $0x108] sm:$0xff] }
 0x454   :  { %3963 = vmatprep.mubr.f32.mxu0 %v13287_v11  ;;  %v1619_v11 = vld [vmem:[#allocation2 + $0x98] sm:$0xff] }
 0x457   :  { %3964 = vmatmul.mubr.f32.gmra.mrb[12].mxu0 %v1616_v28  ;;  %v17758_v28 = vld [vmem:[#allocation18_spill] sm:$0xff] }
 0x458   :  { %3968 = vmatprep.mubr.f32.mxu0 %v13298_v7  ;;  %v1909_v7 = vld [vmem:[#allocation2 + $0x262] sm:$0xff] }
 0x459   :  { %9770 = vmatmul.mubr.f32.gmra.mrb[42].mxu1 %v1909_v7 }
 0x45a   :  { %9772 = vmatprep.mubr.f32.mxu1 %v1910_v3  ;;  %v1634_v3 = vld [vmem:[#allocation2 + $0x150] sm:$0xff] }
 0x45b   :  { %3969 = vmatmul.mubr.f32.gmra.mrb[14].mxu0 %v1617_v20  ;;  %v17759_v20 = vld [vmem:[#allocation19_spill] sm:$0xff] }
 0x45c   :  { %3973 = vmatprep.mubr.f32.mxu0 %v13309_v40  ;;  %v1621_v40 = vld [vmem:[#allocation2 + $0xb0] sm:$0xff] }
 0x45f   :  { %3974 = vmatmul.mubr.f32.gmra.mrb[16].mxu0 %v1618_v54 }
 0x460   :  { %3978 = vmatprep.mubr.f32.mxu0 %v13314_v57  ;;  %v1911_v57 = vld [vmem:[#allocation2 + $0x27a] sm:$0xff] }
 0x461   :  { %9773 = vmatmul.mubr.f32.gmra.mrb[44].mxu1 %v1911_v57  ;;  %v1923_v57 = vld [vmem:[#allocation2 + $0x30a] sm:$0xff] }
 0x462   :  { %9775 = vmatprep.mubr.f32.mxu1 %v1912_v12  ;;  %v1635_v12 = vld [vmem:[#allocation2 + $0x158] sm:$0xff] }
 0x463   :  { %3979 = vmatmul.mubr.f32.gmra.mrb[18].mxu0 %v1619_v11  ;;  %v1632_v11 = vld [vmem:[#allocation2 + $0x138] sm:$0xff] }
 0x464   :  { %3983 = vmatprep.mubr.f32.mxu0 %v13319_v60  ;;  %v1623_v60 = vld [vmem:[#allocation2 + $0xc8] sm:$0xff] }
 0x467   :  { %3984 = vmatmul.mubr.f32.gmra.mrb[20].mxu0 %v1620_v29  ;;  %v1633_v29 = vld [vmem:[#allocation2 + $0x140] sm:$0xff] }
 0x468   :  { %3988 = vmatprep.mubr.f32.mxu0 %v13329_v45  ;;  %v1913_v45 = vld [vmem:[#allocation2 + $0x292] sm:$0xff] }
 0x469   :  { %9776 = vmatmul.mubr.f32.gmra.mrb[46].mxu1 %v1913_v45  ;;  %v17762_v45 = vld [vmem:[#allocation22_spill] sm:$0xff] }
 0x46a   :  { %9778 = vmatprep.mubr.f32.mxu1 %v1914_v42  ;;  %v1924_v42 = vld [vmem:[#allocation2 + $0x31a] sm:$0xff] }
 0x46b   :  { %3989 = vmatmul.mubr.f32.gmra.mrb[22].mxu0 %v1621_v40 }
 0x46c   :  { %3993 = vmatprep.mubr.f32.mxu0 %v13334_v37  ;;  %v1625_v37 = vld [vmem:[#allocation2 + $0xe0] sm:$0xff] }
 0x46f   :  { %3994 = vmatmul.mubr.f32.gmra.mrb[24].mxu0 %v1622_v50  ;;  %v1922_v50 = vld [vmem:[#allocation2 + $0x302] sm:$0xff] }
 0x470   :  { %3998 = vmatprep.mubr.f32.mxu0 %v13338_v22  ;;  %v1915_v22 = vld [vmem:[#allocation2 + $0x2aa] sm:$0xff] }
 0x471   :  { %9779 = vmatmul.mubr.f32.gmra.mrb[48].mxu1 %v1915_v22  ;;  %v1637_v22 = vld [vmem:[#allocation2 + $0x170] sm:$0xff] }
 0x472   :  { %9781 = vmatprep.mubr.f32.mxu1 %v1916_v41 }
 0x473   :  { %3999 = vmatmul.mubr.f32.gmra.mrb[26].mxu0 %v1623_v60  ;;  %v17761_v60 = vld [vmem:[#allocation21_spill] sm:$0xff] }
 0x474   :  { %4003 = vmatprep.mubr.f32.mxu0 %v13342_v18  ;;  %v1627_v18 = vld [vmem:[#allocation2 + $0xf8] sm:$0xff] }
 0x477   :  { %4004 = vmatmul.mubr.f32.gmra.mrb[28].mxu0 %v1624_v1 }
 0x478   :  { %4008 = vmatprep.mubr.f32.mxu0 %v13352_v46  ;;  %v1917_v46 = vld [vmem:[#allocation2 + $0x2c2] sm:$0xff] }
 0x479   :  { %9782 = vmatmul.mubr.f32.gmra.mrb[50].mxu1 %v1917_v46  ;;  %v1638_v46 = vld [vmem:[#allocation2 + $0x180] sm:$0xff] }
 0x47a   :  { %9784 = vmatprep.mubr.f32.mxu1 %v1918_v31  ;;  %v1639_v31 = vld [vmem:[#allocation2 + $0x188] sm:$0xff] }
 0x47b   :  { %4009 = vmatmul.mubr.f32.gmra.mrb[30].mxu0 %v1625_v37  ;;  %v1636_v37 = vld [vmem:[#allocation2 + $0x168] sm:$0xff] }
 0x47c   :  { %4013 = vmatprep.mubr.f32.mxu0 %v13357_v44  ;;  %v1629_v44 = vld [vmem:[#allocation2 + $0x110] sm:$0xff] }
 0x47f   :  { %4014 = vmatmul.mubr.f32.gmra.mrb[32].mxu0 %v1626_v15  ;;  %v17763_v15 = vld [vmem:[#allocation4_spill] sm:$0xff] }
 0x480   :  { %4018 = vmatprep.mubr.f32.mxu0 %v13361_v0  ;;  %v1919_v0 = vld [vmem:[#allocation2 + $0x2da] sm:$0xff] }
 0x481   :  { %9785 = vmatmul.mubr.f32.gmra.mrb[52].mxu1 %v1919_v0  ;;  %v1640_v0 = vld [vmem:[#allocation2 + $0x198] sm:$0xff] }
 0x482   :  { %9787 = vmatprep.mubr.f32.mxu1 %v1920_v17  ;;  %v1929_v17 = vld [vmem:[#allocation2 + $0x352] sm:$0xff] }
 0x483   :  { %4019 = vmatmul.mubr.f32.gmra.mrb[34].mxu0 %v1627_v18  ;;  %v1766_v18 = vld [vmem:[#allocation2 + $0x181] sm:$0xff] }
 0x484   :  { %4023 = vmatprep.mubr.f32.mxu0 %v13365_v52  ;;  %v1631_v52 = vld [vmem:[#allocation2 + $0x128] sm:$0xff] }
 0x485   :  { %9788 = vmatmul.mubr.f32.gmra.mrb[54].mxu1 %v1921_v33  ;;  %v1642_v33 = vld [vmem:[#allocation2 + $0x1e0] sm:$0xff] }
 0x486   :  { %9790 = vmatprep.mubr.f32.mxu1 %v1922_v50 }
 0x487   :  { %4024 = vmatmul.mubr.f32.gmra.mrb[36].mxu0 %v1628_v36 }
 0x488   :  { %4028 = vmatprep.mubr.f32.mxu0 %v13375_v34  ;;  %v17760_v34 = vld [vmem:[#allocation20_spill] sm:$0xff] }
 0x489   :  { %9791 = vmatmul.mubr.f32.gmra.mrb[56].mxu1 %v1923_v57  ;;  %v1644_v57 = vld [vmem:[#allocation2 + $0x1f8] sm:$0xff] }
 0x48a   :  { %9793 = vmatprep.mubr.f32.mxu1 %v1924_v42  ;;  %v1649_v42 = vld [vmem:[#allocation2 + $0x230] sm:$0xff] }
 0x48b   :  { %4029 = vmatmul.mubr.f32.gmra.mrb[38].mxu0 %v1629_v44  ;;  %v1767_v44 = vld [vmem:[#allocation2 + $0x189] sm:$0xff] }
 0x48c   :  { %4033 = vmatprep.mubr.f32.mxu0 %v17758_v28  ;;  %v1768_v28 = vld [vmem:[#allocation2 + $0x199] sm:$0xff] }
 0x48f   :  { %4034 = vmatmul.mubr.f32.gmra.mrb[40].mxu0 %v1630_v23 }
 0x490   :  { %4038 = vmatprep.mubr.f32.mxu0 %v17759_v20  ;;  %v13625_v24 = vpop.f32.mrb[0].mxu1  ;;  %v1928_v20 = vld [vmem:[#allocation2 + $0x34a] sm:$0xff] }
 0x491   :  { %v13627_v54 = vpop.f32.mrb[1].mxu1 }
 0x493   :  { %4039 = vmatmul.mubr.f32.gmra.mrb[42].mxu0 %v1631_v52  ;;  %v1769_v52 = vld [vmem:[#allocation2 + $0x1a1] sm:$0xff] }
 0x494   :  { %4043 = vmatprep.mubr.f32.mxu0 %v17760_v34  ;;  %v13631_v7 = vpop.f32.mrb[2].mxu1 }
 0x495   :  { %v13633_v40 = vpop.f32.mrb[3].mxu1 }
 0x497   :  { %4044 = vmatmul.mubr.f32.gmra.mrb[44].mxu0 %v1632_v11  ;;  %v13657_v11 = vld [vmem:[#allocation2 + $0x8] sm:$0xff] }
 0x498   :  { %4048 = vmatprep.mubr.f32.mxu0 %v13407_v30  ;;  %v13637_v1 = vpop.f32.mrb[4].mxu1 }
 0x499   :  { %v13639_v30 = vpop.f32.mrb[5].mxu1 }
 0x49b   :  { %4049 = vmatmul.mubr.f32.gmra.mrb[46].mxu0 %v1633_v29  ;;  %v1643_v29 = vld [vmem:[#allocation2 + $0x1e8] sm:$0xff] }
 0x49c   :  { %4053 = vmatprep.mubr.f32.mxu0 %v13420_v14  ;;  %v1925_v14 = vld [vmem:[#allocation2 + $0x322] sm:$0xff] }
 0x49d   :  { %9794 = vmatmul.mubr.f32.gmra.mrb[58].mxu1 %v1925_v14 }
 0x49e   :  { %9796 = vmatprep.mubr.f32.mxu1 %v13594_v39 }
 0x49f   :  { %4054 = vmatmul.mubr.f32.gmra.mrb[48].mxu0 %v1634_v3 }
 0x4a0   :  { %4058 = vmatprep.mubr.f32.mxu0 %v17761_v60  ;;  %v13644_v41 = vpop.f32.mrb[6].mxu1  ;;  %v1645_v60 = vld [vmem:[#allocation2 + $0x200] sm:$0xff] }
 0x4a1   :  { %v13646_v36 = vpop.f32.mrb[7].mxu1  ;;  %9797 = vmatmul.mubr.f32.gmra.mrb[60].mxu1 %v13598_v53 }
 0x4a2   :  { %9799 = vmatprep.mubr.f32.mxu1 %v1928_v20  ;;  %v1659_v20 = vld [vmem:[#allocation2 + $0x2a8] sm:$0xff] }
 0x4a3   :  { %4059 = vmatmul.mubr.f32.gmra.mrb[50].mxu0 %v1635_v12 }
 0x4a4   :  { %4063 = vmatprep.mubr.f32.mxu0 %v17762_v45  ;;  %v1647_v45 = vld [vmem:[#allocation2 + $0x218] sm:$0xff] }
 0x4a5   :  { %9800 = vmatmul.mubr.f32.gmra.mrb[62].mxu1 %v1929_v17  ;;  %v1661_v17 = vld [vmem:[#allocation2 + $0x2c0] sm:$0xff] }
 0x4a7   :  { %4064 = vmatmul.mubr.f32.gmra.mrb[52].mxu0 %v1636_v37 }
 0x4a8   :  { %4068 = vmatprep.mubr.f32.mxu0 %v17763_v15  ;;  %v13649_v23 = vpop.f32.mrb[8].mxu1  ;;  %v1651_v15 = vld [vmem:[#allocation2 + $0x248] sm:$0xff] }
 0x4a9   :  { %v13651_v39 = vpop.f32.mrb[9].mxu1 }
 0x4ab   :  { %4069 = vmatmul.mubr.f32.gmra.mrb[54].mxu0 %v1637_v22 }
 0x4ac   :  { %4073 = vmatprep.mubr.f32.mxu0 %v1766_v18  ;;  %v1653_v18 = vld [vmem:[#allocation2 + $0x260] sm:$0xff] }
 0x4af   :  { %4074 = vmatmul.mubr.f32.gmra.mrb[56].mxu0 %v1638_v46 }
 0x4b0   :  { %4078 = vmatprep.mubr.f32.mxu0 %v1767_v44  ;;  %v13653_v53 = vpop.f32.mrb[10].mxu1  ;;  %v1655_v44 = vld [vmem:[#allocation2 + $0x278] sm:$0xff] }
 0x4b1   :  { %v13655_v34 = vpop.f32.mrb[11].mxu1 }
 0x4b3   :  { %4079 = vmatmul.mubr.f32.gmra.mrb[58].mxu0 %v1639_v31 }
 0x4b4   :  { %4083 = vmatprep.mubr.f32.mxu0 %v1768_v28  ;;  %v1657_v28 = vld [vmem:[#allocation2 + $0x290] sm:$0xff] }
 0x4b7   :  { %4084 = vmatmul.mubr.f32.gmra.mrb[60].mxu0 %v1640_v0 }
 0x4b8   :  { %4088 = vmatprep.mubr.f32.mxu0 %v1769_v52  ;;  %v13662_v3 = vpop.f32.mrb[12].mxu1 }
 0x4b9   :  { %v13664_v50 = vpop.f32.mrb[13].mxu1 }
 0x4bb   :  { %4089 = vmatmul.mubr.f32.gmra.mrb[62].mxu0 %v13657_v11 }
 0x4bc   :  { %4093 = vmatprep.mubr.f32.mxu0 %v13482_v48 }
 0x4bf   :  { %4094 = vmatmul.mubr.f32.gmra.mrb[64].mxu0 %v1642_v33 }
 0x4c0   :  { %4098 = vmatprep.mubr.f32.mxu0 %v13486_v10  ;;  %v13668_v12 = vpop.f32.mrb[14].mxu1  ;;  %v1646_v10 = vld [vmem:[#allocation2 + $0x210] sm:$0xff] }
 0x4c1   :  { %v13670_v48 = vpop.f32.mrb[15].mxu1 }
 0x4c3   :  { %4099 = vmatmul.mubr.f32.gmra.mrb[66].mxu0 %v1643_v29  ;;  %v1663_v29 = vld [vmem:[#allocation2 + $0x2d8] sm:$0xff] }
 0x4c4   :  { %4103 = vmatprep.mubr.f32.mxu0 %v13490_v25 }
 0x4c7   :  { %4104 = vmatmul.mubr.f32.gmra.mrb[68].mxu0 %v1644_v57 }
 0x4c8   :  { %4108 = vmatprep.mubr.f32.mxu0 %v13494_v59  ;;  %v13674_v37 = vpop.f32.mrb[16].mxu1  ;;  %v1648_v59 = vld [vmem:[#allocation2 + $0x228] sm:$0xff] }
 0x4c9   :  { %v13676_v25 = vpop.f32.mrb[17].mxu1 }
 0x4cb   :  { %4109 = vmatmul.mubr.f32.gmra.mrb[70].mxu0 %v1645_v60 }
 0x4cc   :  { %4113 = vmatprep.mubr.f32.mxu0 %v13498_v19 }
 0x4cf   :  { %4114 = vmatmul.mubr.f32.gmra.mrb[72].mxu0 %v1646_v10 }
 0x4d0   :  { %4118 = vmatprep.mubr.f32.mxu0 %v13502_v2  ;;  %v13680_v14 = vpop.f32.mrb[18].mxu1  ;;  %v1650_v2 = vld [vmem:[#allocation2 + $0x240] sm:$0xff] }
 0x4d1   :  { %v13682_v19 = vpop.f32.mrb[19].mxu1 }
 0x4d3   :  { %4119 = vmatmul.mubr.f32.gmra.mrb[74].mxu0 %v1647_v45  ;;  %v1664_v45 = vld [vmem:[#allocation2 + $0x2e8] sm:$0xff] }
 0x4d4   :  { %4123 = vmatprep.mubr.f32.mxu0 %v13506_v32 }
 0x4d7   :  { %4124 = vmatmul.mubr.f32.gmra.mrb[76].mxu0 %v1648_v59 }
 0x4d8   :  { %4128 = vmatprep.mubr.f32.mxu0 %v13510_v8  ;;  %v13686_v22 = vpop.f32.mrb[20].mxu1  ;;  %v1652_v8 = vld [vmem:[#allocation2 + $0x258] sm:$0xff] }
 0x4d9   :  { %v13688_v32 = vpop.f32.mrb[21].mxu1 }
 0x4db   :  { %4129 = vmatmul.mubr.f32.gmra.mrb[78].mxu0 %v1649_v42 }
 0x4dc   :  { %4133 = vmatprep.mubr.f32.mxu0 %v13514_v5 }
 0x4df   :  { %4134 = vmatmul.mubr.f32.gmra.mrb[80].mxu0 %v1650_v2 }
 0x4e0   :  { %4138 = vmatprep.mubr.f32.mxu0 %v13518_v38  ;;  %v13692_v46 = vpop.f32.mrb[22].mxu1  ;;  %v1654_v38 = vld [vmem:[#allocation2 + $0x270] sm:$0xff] }
 0x4e1   :  { %v13694_v5 = vpop.f32.mrb[23].mxu1 }
 0x4e3   :  { %4139 = vmatmul.mubr.f32.gmra.mrb[82].mxu0 %v1651_v15 }
 0x4e4   :  { %4143 = vmatprep.mubr.f32.mxu0 %v13522_v55 }
 0x4e7   :  { %4144 = vmatmul.mubr.f32.gmra.mrb[84].mxu0 %v1652_v8 }
 0x4e8   :  { %4148 = vmatprep.mubr.f32.mxu0 %v13526_v26  ;;  %v13698_v31 = vpop.f32.mrb[24].mxu1  ;;  %v1656_v26 = vld [vmem:[#allocation2 + $0x288] sm:$0xff] }
 0x4e9   :  { %v13700_v55 = vpop.f32.mrb[25].mxu1 }
 0x4eb   :  { %4149 = vmatmul.mubr.f32.gmra.mrb[86].mxu0 %v1653_v18 }
 0x4ec   :  { %4153 = vmatprep.mubr.f32.mxu0 %v13530_v51 }
 0x4ef   :  { %4154 = vmatmul.mubr.f32.gmra.mrb[88].mxu0 %v1654_v38 }
 0x4f0   :  { %4158 = vmatprep.mubr.f32.mxu0 %v13534_v61  ;;  %v13704_v0 = vpop.f32.mrb[26].mxu1  ;;  %v1658_v61 = vld [vmem:[#allocation2 + $0x2a0] sm:$0xff] }
 0x4f1   :  { %v13706_v51 = vpop.f32.mrb[27].mxu1 }
 0x4f3   :  { %4159 = vmatmul.mubr.f32.gmra.mrb[90].mxu0 %v1655_v44 }
 0x4f4   :  { %4163 = vmatprep.mubr.f32.mxu0 %v13538_v21  ;;  %v13710_v52 = vpop.f32.mrb[28].mxu1 }
 0x4f5   :  { %v13712_v21 = vpop.f32.mrb[29].mxu1 }
 0x4f7   :  { %4164 = vmatmul.mubr.f32.gmra.mrb[92].mxu0 %v1656_v26 }
 0x4f8   :  { %4168 = vmatprep.mubr.f32.mxu0 %v13542_v27  ;;  %v1660_v27 = vld [vmem:[#allocation2 + $0x2b8] sm:$0xff] }
 0x4fb   :  { %4169 = vmatmul.mubr.f32.gmra.mrb[94].mxu0 %v1657_v28 }
 0x4fc   :  { %4173 = vmatprep.mubr.f32.mxu0 %v13546_v43 }
 0x4fd   :  { %v13716_v33 = vpop.f32.mrb[30].mxu1 }
 0x4fe   :  { %v13718_v43 = vpop.f32.mrb[31].mxu1 }
 0x4ff   :  { %4174 = vmatmul.mubr.f32.gmra.mrb[96].mxu0 %v1658_v61 }
 0x500   :  { %4178 = vmatprep.mubr.f32.mxu0 %v13550_v6  ;;  %v1662_v6 = vld [vmem:[#allocation2 + $0x2d0] sm:$0xff] }
 0x503   :  { %4179 = vmatmul.mubr.f32.gmra.mrb[98].mxu0 %v1659_v20 }
 0x504   :  { %4183 = vmatprep.mubr.f32.mxu0 %v13554_v9 }
 0x505   :  { %v13722_v57 = vpop.f32.mrb[32].mxu1 }
 0x506   :  { %v13724_v60 = vpop.f32.mrb[33].mxu1 }
 0x507   :  { %4184 = vmatmul.mubr.f32.gmra.mrb[100].mxu0 %v1660_v27 }
 0x508   :  { %4188 = vmatprep.mubr.f32.mxu0 %v13558_v13 }
 0x509   :  { %v13734_v2 = vpop.f32.mrb[34].mxu1 }
 0x50a   :  { %v13736_v8 = vpop.f32.mrb[35].mxu1 }
 0x50b   :  { %4189 = vmatmul.mubr.f32.gmra.mrb[102].mxu0 %v1661_v17 }
 0x50c   :  { %4193 = vmatprep.mubr.f32.mxu0 %v13562_v16 }
 0x50f   :  { %4194 = vmatmul.mubr.f32.gmra.mrb[104].mxu0 %v1662_v6  ;;  %v1798_v6 = vld [vmem:[#allocation2 + $0x331] sm:$0xff] }
 0x510   :  { %4198 = vmatprep.mubr.f32.mxu0 %v13566_v62  ;;  %v1665_v62 = vld [vmem:[#allocation2 + $0x2f0] sm:$0xff] }
 0x512   :  { %v3935_v9 = vpop.f32.mrb[0].mxu0 }
 0x513   :  { %v13727_v13 = vadd.f32 %v13627_v54, %v3935_v9  ;;  %v3937_v10 = vpop.f32.mrb[1].mxu0  ;;  %4199 = vmatmul.mubr.f32.gmra.mrb[106].mxu0 %v1663_v29 }
 0x514   :  { %4203 = vmatprep.mubr.f32.mxu0 %v13570_v58  ;;  %v1666_v58 = vld [vmem:[#allocation2 + $0x300] sm:$0xff]  ;;  %v13746_v26 = vpop.f32.mrb[36].mxu1 }
 0x515   :  { %v13748_v61 = vpop.f32.mrb[37].mxu1 }
 0x516   :  { %v3940_v59 = vpop.f32.mrb[2].mxu0 }
 0x517   :  { %v13731_v16 = vadd.f32 %v13625_v24, %v3940_v59  ;;  %v3942_v42 = vpop.f32.mrb[3].mxu0  ;;  %4204 = vmatmul.mubr.f32.gmra.mrb[108].mxu0 %v1664_v45  ;;  %v1670_v45 = vld [vmem:[#allocation2 + $0x330] sm:$0xff] }
 0x518   :  { %4208 = vmatprep.mubr.f32.mxu0 %v13574_v47  ;;  %v1667_v47 = vld [vmem:[#allocation2 + $0x308] sm:$0xff] }
 0x51a   :  { %v3945_v15 = vpop.f32.mrb[4].mxu0 }
 0x51b   :  { %v13739_v54 = vadd.f32 %v13633_v40, %v3945_v15  ;;  %v3947_v18 = vpop.f32.mrb[5].mxu0  ;;  %4209 = vmatmul.mubr.f32.gmra.mrb[110].mxu0 %v1665_v62  ;;  %v1671_v62 = vld [vmem:[#allocation2 + $0x338] sm:$0xff]  ;;  %v1800_v15 = vld [vmem:[#allocation2 + $0x349] sm:$0xff] }
 0x51c   :  { %4213 = vmatprep.mubr.f32.mxu0 %v13578_v35  ;;  %v1668_v35 = vld [vmem:[#allocation2 + $0x318] sm:$0xff]  ;;  %v13758_v29 = vpop.f32.mrb[38].mxu1 }
 0x51e   :  { %v3950_v24 = vpop.f32.mrb[6].mxu0 }
 0x51f   :  { %v13743_v38 = vadd.f32 %v13631_v7, %v3950_v24  ;;  %v3952_v44 = vpop.f32.mrb[7].mxu0  ;;  %4214 = vmatmul.mubr.f32.gmra.mrb[112].mxu0 %v1666_v58 }
 0x520   :  { %4218 = vmatprep.mubr.f32.mxu0 %v13583_v4  ;;  %v1669_v4 = vld [vmem:[#allocation2 + $0x320] sm:$0xff] }
 0x521   :  { %17764 = vst [vmem:[#allocation5_spill] sm:$0xff] %v13743_v38 }
 0x522   :  { %v3955_v28 = vpop.f32.mrb[8].mxu0 }
 0x523   :  { %v13751_v40 = vadd.f32 %v13639_v30, %v3955_v28  ;;  %v3957_v20 = vpop.f32.mrb[9].mxu0  ;;  %4219 = vmatmul.mubr.f32.gmra.mrb[114].mxu0 %v1667_v47  ;;  %v13760_v30 = vpop.f32.mrb[39].mxu1  ;;  %v1672_v47 = vld [vmem:[#allocation2 + $0x348] sm:$0xff]  ;;  %v1801_v28 = vld [vmem:[#allocation2 + $0x351] sm:$0xff] }
 0x524   :  { %4223 = vmatprep.mubr.f32.mxu0 %v13588_v49  ;;  %v13768_v18 = vpop.f32.mrb[40].mxu1 }
 0x525   :  { %17765 = vst [vmem:[#allocation6_spill] sm:$0xff] %v13751_v40  ;;  %v13770_v24 = vpop.f32.mrb[41].mxu1 }
 0x526   :  { %v3960_v7 = vpop.f32.mrb[10].mxu0 }
 0x527   :  { %v13755_v27 = vadd.f32 %v13637_v1, %v3960_v7  ;;  %v3962_v17 = vpop.f32.mrb[11].mxu0  ;;  %4224 = vmatmul.mubr.f32.gmra.mrb[116].mxu0 %v1668_v35  ;;  %v1799_v1 = vld [vmem:[#allocation2 + $0x339] sm:$0xff] }
 0x528   :  { %4228 = vmatprep.mubr.f32.mxu0 %v13592_v63 }
 0x52a   :  { %v3965_v9 = vpop.f32.mrb[12].mxu0 }
 0x52b   :  { %v13763_v10 = vadd.f32 %v13646_v36, %v3965_v9  ;;  %v3967_v49 = vpop.f32.mrb[13].mxu0  ;;  %4229 = vmatmul.mubr.f32.gmra.mrb[118].mxu0 %v1669_v4 }
 0x52c   :  { %4233 = vmatprep.mubr.f32.mxu0 %v1798_v6  ;;  %v13778_v7 = vpop.f32.mrb[42].mxu1 }
 0x52d   :  { %v13780_v4 = vpop.f32.mrb[43].mxu1 }
 0x52e   :  { %v3970_v59 = vpop.f32.mrb[14].mxu0 }
 0x52f   :  { %v13766_v42 = vadd.f32 %v13644_v41, %v3970_v59  ;;  %v3972_v63 = vpop.f32.mrb[15].mxu0  ;;  %4234 = vmatmul.mubr.f32.gmra.mrb[120].mxu0 %v1670_v45 }
 0x530   :  { %4238 = vmatprep.mubr.f32.mxu0 %v1799_v1 }
 0x532   :  { %v3975_v58 = vpop.f32.mrb[16].mxu0 }
 0x533   :  { %v13773_v36 = vadd.f32 %v13651_v39, %v3975_v58  ;;  %v3977_v44 = vpop.f32.mrb[17].mxu0  ;;  %4239 = vmatmul.mubr.f32.gmra.mrb[122].mxu0 %v1671_v62 }
 0x534   :  { %4243 = vmatprep.mubr.f32.mxu0 %v1800_v15  ;;  %v13789_v45 = vpop.f32.mrb[44].mxu1 }
 0x535   :  { %v13791_v59 = vpop.f32.mrb[45].mxu1 }
 0x536   :  { %v3980_v41 = vpop.f32.mrb[18].mxu0 }
 0x537   :  { %v13776_v20 = vadd.f32 %v13649_v23, %v3980_v41  ;;  %v3982_v35 = vpop.f32.mrb[19].mxu0  ;;  %4244 = vmatmul.mubr.f32.gmra.mrb[124].mxu0 %v1672_v47 }
 0x538   :  { %4248 = vmatprep.mubr.f32.mxu0 %v1801_v28 }
 0x53a   :  { %v3985_v17 = vpop.f32.mrb[20].mxu0 }
 0x53b   :  { %v13783_v39 = vadd.f32 %v13655_v34, %v3985_v17  ;;  %v3987_v6 = vpop.f32.mrb[21].mxu0  ;;  %4249 = vmatmul.mubr.f32.gmra.mrb[126].mxu0 %v13657_v11 }
 0x53c   :  { %v13799_v11 = vpop.f32.mrb[46].mxu1 }
 0x53e   :  { %v3990_v9 = vpop.f32.mrb[22].mxu0 }
 0x53f   :  { %v13787_v49 = vadd.f32 %v13653_v53, %v3990_v9  ;;  %v3992_v23 = vpop.f32.mrb[23].mxu0  ;;  %v13801_v53 = vpop.f32.mrb[47].mxu1 }
 0x542   :  { %v3995_v1 = vpop.f32.mrb[24].mxu0 }
 0x543   :  { %v13794_v63 = vadd.f32 %v13664_v50, %v3995_v1  ;;  %v3997_v62 = vpop.f32.mrb[25].mxu0 }
 0x544   :  { %v13809_v17 = vpop.f32.mrb[48].mxu1 }
 0x546   :  { %v4000_v15 = vpop.f32.mrb[26].mxu0 }
 0x547   :  { %v13797_v34 = vadd.f32 %v13662_v3, %v4000_v15  ;;  %v4002_v58 = vpop.f32.mrb[27].mxu0  ;;  %v13811_v3 = vpop.f32.mrb[49].mxu1 }
 0x54a   :  { %v4005_v44 = vpop.f32.mrb[28].mxu0 }
 0x54b   :  { %v13804_v47 = vadd.f32 %v13670_v48, %v4005_v44  ;;  %v4007_v28 = vpop.f32.mrb[29].mxu0 }
 0x54c   :  { %v13819_v15 = vpop.f32.mrb[50].mxu1 }
 0x54d   :  { %17766 = vst [vmem:[#allocation7_spill] sm:$0xff] %v13819_v15 }
 0x54e   :  { %v4010_v41 = vpop.f32.mrb[30].mxu0 }
 0x54f   :  { %v13807_v35 = vadd.f32 %v13668_v12, %v4010_v41  ;;  %v4012_v50 = vpop.f32.mrb[31].mxu0  ;;  %v13821_v12 = vpop.f32.mrb[51].mxu1 }
 0x552   :  { %v4015_v6 = vpop.f32.mrb[32].mxu0 }
 0x553   :  { %v13814_v9 = vadd.f32 %v13676_v25, %v4015_v6  ;;  %v4017_v23 = vpop.f32.mrb[33].mxu0 }
 0x554   :  { %v13829_v6 = vpop.f32.mrb[52].mxu1 }
 0x555   :  { %17767 = vst [vmem:[#allocation8_spill] sm:$0xff] %v13829_v6 }
 0x556   :  { %v4020_v1 = vpop.f32.mrb[34].mxu0 }
 0x557   :  { %v13817_v62 = vadd.f32 %v13674_v37, %v4020_v1  ;;  %v4022_v48 = vpop.f32.mrb[35].mxu0  ;;  %v13831_v37 = vpop.f32.mrb[53].mxu1 }
 0x558   :  { %17768 = vst [vmem:[#allocation9_spill] sm:$0xff] %v13831_v37 }
 0x55a   :  { %v4025_v58 = vpop.f32.mrb[36].mxu0 }
 0x55b   :  { %v13824_v44 = vadd.f32 %v13682_v19, %v4025_v58  ;;  %v4027_v28 = vpop.f32.mrb[37].mxu0  ;;  %v13839_v58 = vpop.f32.mrb[54].mxu1 }
 0x55c   :  { %17769 = vst [vmem:[#allocation11_spill] sm:$0xff] %v13839_v58 }
 0x55e   :  { %v4030_v41 = vpop.f32.mrb[38].mxu0 }
 0x55f   :  { %v13827_v50 = vadd.f32 %v13680_v14, %v4030_v41  ;;  %v4032_v25 = vpop.f32.mrb[39].mxu0  ;;  %v13841_v14 = vpop.f32.mrb[55].mxu1 }
 0x560   :  { %17770 = vst [vmem:[#allocation12_spill] sm:$0xff] %v13841_v14 }
 0x562   :  { %v4035_v23 = vpop.f32.mrb[40].mxu0 }
 0x563   :  { %v13834_v1 = vadd.f32 %v13688_v32, %v4035_v23  ;;  %v4037_v48 = vpop.f32.mrb[41].mxu0  ;;  %v13849_v23 = vpop.f32.mrb[56].mxu1 }
 0x564   :  { %17771 = vst [vmem:[#allocation13_spill] sm:$0xff] %v13849_v23 }
 0x566   :  { %v4040_v56 = vpop.f32.mrb[42].mxu0 }
 0x567   :  { %v13837_v15 = vadd.f32 %v13686_v22, %v4040_v56  ;;  %v4042_v19 = vpop.f32.mrb[43].mxu0  ;;  %v13851_v56 = vpop.f32.mrb[57].mxu1 }
 0x568   :  { %17772 = vst [vmem:[#allocation14_spill] sm:$0xff] %v13851_v56 }
 0x56a   :  { %v4045_v28 = vpop.f32.mrb[44].mxu0 }
 0x56b   :  { %v13844_v41 = vadd.f32 %v13694_v5, %v4045_v28  ;;  %v4047_v25 = vpop.f32.mrb[45].mxu0 }
 0x56e   :  { %v4050_v6 = vpop.f32.mrb[46].mxu0 }
 0x56f   :  { %v13847_v37 = vadd.f32 %v13692_v46, %v4050_v6  ;;  %v4052_v32 = vpop.f32.mrb[47].mxu0 }
 0x570   :  { %v13859_v28 = vpop.f32.mrb[58].mxu1 }
 0x571   :  { %17773 = vst [vmem:[#allocation15_spill] sm:$0xff] %v13859_v28  ;;  %v13861_v46 = vpop.f32.mrb[59].mxu1 }
 0x572   :  { %v4055_v48 = vpop.f32.mrb[48].mxu0  ;;  %17774 = vst [vmem:[#allocation16_spill] sm:$0xff] %v13861_v46 }
 0x573   :  { %v13854_v22 = vadd.f32 %v13700_v55, %v4055_v48  ;;  %v4057_v19 = vpop.f32.mrb[49].mxu0 }
 0x574   :  { %v13869_v48 = vpop.f32.mrb[60].mxu1 }
 0x575   :  { %17775 = vst [vmem:[#allocation17_spill] sm:$0xff] %v13869_v48 }
 0x576   :  { %v4060_v58 = vpop.f32.mrb[50].mxu0 }
 0x577   :  { %v13857_v14 = vadd.f32 %v13698_v31, %v4060_v58  ;;  %v4062_v5 = vpop.f32.mrb[51].mxu0  ;;  %v13871_v31 = vpop.f32.mrb[61].mxu1 }
 0x578   :  { %17776 = vst [vmem:[#allocation18_spill] sm:$0xff] %v13871_v31 }
 0x57a   :  { %v4065_v25 = vpop.f32.mrb[52].mxu0 }
 0x57b   :  { %v13864_v6 = vadd.f32 %v13706_v51, %v4065_v25  ;;  %v4067_v32 = vpop.f32.mrb[53].mxu0  ;;  %v13879_v25 = vpop.f32.mrb[62].mxu1 }
 0x57c   :  { %17778 = vst [vmem:[#allocation20_spill] sm:$0xff] %v13879_v25 }
 0x57e   :  { %v4070_v23 = vpop.f32.mrb[54].mxu0 }
 0x57f   :  { %v13867_v56 = vadd.f32 %v13704_v0, %v4070_v23  ;;  %v4072_v55 = vpop.f32.mrb[55].mxu0  ;;  %v13881_v0 = vpop.f32.mrb[63].mxu1 }
 0x580   :  { %17779 = vst [vmem:[#allocation21_spill] sm:$0xff] %v13881_v0 }
 0x582   :  { %v4075_v19 = vpop.f32.mrb[56].mxu0 }
 0x583   :  { %v13874_v58 = vadd.f32 %v13712_v21, %v4075_v19  ;;  %v4077_v5 = vpop.f32.mrb[57].mxu0 }
 0x586   :  { %v4080_v28 = vpop.f32.mrb[58].mxu0 }
 0x587   :  { %v13877_v46 = vadd.f32 %v13710_v52, %v4080_v28  ;;  %v4082_v51 = vpop.f32.mrb[59].mxu0 }
 0x589   :  { %17777 = vst [vmem:[#allocation19_spill] sm:$0xff] %v13877_v46 }
 0x58a   :  { %v4085_v32 = vpop.f32.mrb[60].mxu0 }
 0x58b   :  { %v13884_v23 = vadd.f32 %v13718_v43, %v4085_v32  ;;  %v4087_v55 = vpop.f32.mrb[61].mxu0 }
 0x58d   :  { %17780 = vst [vmem:[#allocation22_spill] sm:$0xff] %v13884_v23 }
 0x58e   :  { %v4090_v48 = vpop.f32.mrb[62].mxu0 }
 0x58f   :  { %v13887_v31 = vadd.f32 %v13716_v33, %v4090_v48  ;;  %v4092_v21 = vpop.f32.mrb[63].mxu0  ;;  %v4639_v33 = vadd.f32 %v13731_v16, %v13727_v13 }
 0x591   :  { %17781 = vst [vmem:[#allocation4_spill] sm:$0xff] %v13887_v31  ;;  %v4640_v55 = vadd.f32 %v4639_v33, %v13739_v54 }
 0x592   :  { %v4095_v19 = vpop.f32.mrb[64].mxu0 }
 0x593   :  { %v13890_v5 = vadd.f32 %v13724_v60, %v4095_v19  ;;  %v4097_v52 = vpop.f32.mrb[65].mxu0  ;;  %v4641_v19 = vadd.f32 %v4640_v55, %v13743_v38 }
 0x596   :  { %v4100_v28 = vpop.f32.mrb[66].mxu0 }
 0x597   :  { %v13893_v51 = vadd.f32 %v13722_v57, %v4100_v28  ;;  %v4102_v25 = vpop.f32.mrb[67].mxu0 }
 0x598   :  { %v4642_v25 = vadd.f32 %v4641_v19, %v13751_v40 }
 0x599   :  { %17782 = vst [vmem:[#allocation23_spill] sm:$0xff] %v13893_v51 }
 0x59a   :  { %v4105_v0 = vpop.f32.mrb[68].mxu0 }
 0x59b   :  { %v13896_v43 = vadd.f32 %v13736_v8, %v4105_v0  ;;  %v4107_v32 = vpop.f32.mrb[69].mxu0  ;;  %v4643_v0 = vadd.f32 %v4642_v25, %v13755_v27 }
 0x59d   :  { %v4644_v32 = vadd.f32 %v4643_v0, %v13763_v10 }
 0x59e   :  { %v4110_v48 = vpop.f32.mrb[70].mxu0 }
 0x59f   :  { %v13902_v60 = vadd.f32 %v13734_v2, %v4110_v48  ;;  %v4112_v21 = vpop.f32.mrb[71].mxu0  ;;  %v4645_v48 = vadd.f32 %v4644_v32, %v13766_v42 }
 0x5a1   :  { %17783 = vst [vmem:[#allocation24_spill] sm:$0xff] %v13902_v60  ;;  %v4646_v55 = vadd.f32 %v4645_v48, %v13773_v36 }
 0x5a2   :  { %v4115_v57 = vpop.f32.mrb[72].mxu0 }
 0x5a3   :  { %v13907_v52 = vadd.f32 %v13748_v61, %v4115_v57  ;;  %v4117_v8 = vpop.f32.mrb[73].mxu0  ;;  %v4647_v57 = vadd.f32 %v4646_v55, %v13776_v20 }
 0x5a5   :  { %v4648_v25 = vadd.f32 %v4647_v57, %v13783_v39 }
 0x5a6   :  { %v4120_v28 = vpop.f32.mrb[74].mxu0 }
 0x5a7   :  { %v13912_v33 = vadd.f32 %v13746_v26, %v4120_v28  ;;  %v4122_v2 = vpop.f32.mrb[75].mxu0  ;;  %v4649_v28 = vadd.f32 %v4648_v25, %v13787_v49 }
 0x5a9   :  { %17784 = vst [vmem:[#allocation25_spill] sm:$0xff] %v13912_v33  ;;  %v4650_v32 = vadd.f32 %v4649_v28, %v13794_v63 }
 0x5aa   :  { %v4125_v21 = vpop.f32.mrb[76].mxu0 }
 0x5ab   :  { %v13917_v19 = vadd.f32 %v13760_v30, %v4125_v21  ;;  %v4127_v61 = vpop.f32.mrb[77].mxu0  ;;  %v4651_v21 = vadd.f32 %v4650_v32, %v13797_v34 }
 0x5ad   :  { %17785 = vst [vmem:[#allocation26_spill] sm:$0xff] %v13917_v19  ;;  %v4652_v55 = vadd.f32 %v4651_v21, %v13804_v47 }
 0x5ae   :  { %v4130_v8 = vpop.f32.mrb[78].mxu0 }
 0x5af   :  { %v13922_v0 = vadd.f32 %v13758_v29, %v4130_v8  ;;  %v4132_v26 = vpop.f32.mrb[79].mxu0  ;;  %v4653_v8 = vadd.f32 %v4652_v55, %v13807_v35 }
 0x5b1   :  { %17786 = vst [vmem:[#allocation27_spill] sm:$0xff] %v13922_v0  ;;  %v4654_v25 = vadd.f32 %v4653_v8, %v13814_v9 }
 0x5b2   :  { %v4135_v2 = vpop.f32.mrb[80].mxu0 }
 0x5b3   :  { %v13927_v48 = vadd.f32 %v13770_v24, %v4135_v2  ;;  %v4137_v30 = vpop.f32.mrb[81].mxu0  ;;  %v4655_v2 = vadd.f32 %v4654_v25, %v13817_v62 }
 0x5b5   :  { %17787 = vst [vmem:[#allocation28_spill] sm:$0xff] %v13927_v48  ;;  %v4656_v32 = vadd.f32 %v4655_v2, %v13824_v44 }
 0x5b6   :  { %v4140_v61 = vpop.f32.mrb[82].mxu0 }
 0x5b7   :  { %v13932_v57 = vadd.f32 %v13768_v18, %v4140_v61  ;;  %v4142_v29 = vpop.f32.mrb[83].mxu0  ;;  %v4657_v61 = vadd.f32 %v4656_v32, %v13827_v50 }
 0x5b9   :  { %17788 = vst [vmem:[#allocation29_spill] sm:$0xff] %v13932_v57  ;;  %v4658_v55 = vadd.f32 %v4657_v61, %v13834_v1 }
 0x5ba   :  { %v4145_v26 = vpop.f32.mrb[84].mxu0 }
 0x5bb   :  { %v13937_v28 = vadd.f32 %v13780_v4, %v4145_v26  ;;  %v4147_v24 = vpop.f32.mrb[85].mxu0  ;;  %v4659_v26 = vadd.f32 %v4658_v55, %v13837_v15 }
 0x5bd   :  { %17789 = vst [vmem:[#allocation30_spill] sm:$0xff] %v13937_v28  ;;  %v4660_v25 = vadd.f32 %v4659_v26, %v13844_v41 }
 0x5be   :  { %v4150_v30 = vpop.f32.mrb[86].mxu0 }
 0x5bf   :  { %v13942_v21 = vadd.f32 %v13778_v7, %v4150_v30  ;;  %v4152_v18 = vpop.f32.mrb[87].mxu0  ;;  %v4661_v30 = vadd.f32 %v4660_v25, %v13847_v37 }
 0x5c1   :  { %17790 = vst [vmem:[#allocation31_spill] sm:$0xff] %v13942_v21  ;;  %v4662_v32 = vadd.f32 %v4661_v30, %v13854_v22 }
 0x5c2   :  { %v4155_v29 = vpop.f32.mrb[88].mxu0 }
 0x5c3   :  { %v13947_v8 = vadd.f32 %v13791_v59, %v4155_v29  ;;  %v4157_v4 = vpop.f32.mrb[89].mxu0  ;;  %v4663_v29 = vadd.f32 %v4662_v32, %v13857_v14 }
 0x5c5   :  { %17791 = vst [vmem:[#allocation32_spill] sm:$0xff] %v13947_v8  ;;  %v4664_v55 = vadd.f32 %v4663_v29, %v13864_v6 }
 0x5c6   :  { %v4160_v24 = vpop.f32.mrb[90].mxu0 }
 0x5c7   :  { %v13952_v2 = vadd.f32 %v13789_v45, %v4160_v24  ;;  %v4162_v7 = vpop.f32.mrb[91].mxu0  ;;  %v4665_v24 = vadd.f32 %v4664_v55, %v13867_v56 }
 0x5c9   :  { %17792 = vst [vmem:[#allocation33_spill] sm:$0xff] %v13952_v2  ;;  %v4666_v25 = vadd.f32 %v4665_v24, %v13874_v58 }
 0x5ca   :  { %v4165_v18 = vpop.f32.mrb[92].mxu0 }
 0x5cb   :  { %v13957_v61 = vadd.f32 %v13801_v53, %v4165_v18  ;;  %v4167_v59 = vpop.f32.mrb[93].mxu0  ;;  %v4667_v18 = vadd.f32 %v4666_v25, %v13877_v46  ;;  %v17796_v46 = vld [vmem:[#allocation7_spill] sm:$0xff] }
 0x5cd   :  { %v4668_v32 = vadd.f32 %v4667_v18, %v13884_v23 }
 0x5ce   :  { %v4170_v4 = vpop.f32.mrb[94].mxu0 }
 0x5cf   :  { %v13962_v26 = vadd.f32 %v13799_v11, %v4170_v4  ;;  %v4172_v45 = vpop.f32.mrb[95].mxu0  ;;  %v4669_v4 = vadd.f32 %v4668_v32, %v13887_v31  ;;  %v17798_v31 = vld [vmem:[#allocation9_spill] sm:$0xff] }
 0x5d1   :  { %17793 = vst [vmem:[#allocation34_spill] sm:$0xff] %v13962_v26  ;;  %v4670_v55 = vadd.f32 %v4669_v4, %v13890_v5 }
 0x5d2   :  { %v4175_v7 = vpop.f32.mrb[96].mxu0 }
 0x5d3   :  { %v13967_v30 = vadd.f32 %v13811_v3, %v4175_v7  ;;  %v4177_v53 = vpop.f32.mrb[97].mxu0  ;;  %v4671_v7 = vadd.f32 %v4670_v55, %v13893_v51  ;;  %v17800_v51 = vld [vmem:[#allocation8_spill] sm:$0xff] }
 0x5d5   :  { %v4672_v25 = vadd.f32 %v4671_v7, %v13896_v43 }
 0x5d6   :  { %v4180_v59 = vpop.f32.mrb[98].mxu0 }
 0x5d7   :  { %v13972_v29 = vadd.f32 %v13809_v17, %v4180_v59  ;;  %v4182_v11 = vpop.f32.mrb[99].mxu0  ;;  %v4673_v59 = vadd.f32 %v4672_v25, %v13902_v60  ;;  %v17802_v60 = vld [vmem:[#allocation12_spill] sm:$0xff] }
 0x5d9   :  { %17794 = vst [vmem:[#allocation35_spill] sm:$0xff] %v13972_v29  ;;  %v4674_v32 = vadd.f32 %v4673_v59, %v13907_v52 }
 0x5da   :  { %v4185_v45 = vpop.f32.mrb[100].mxu0 }
 0x5db   :  { %v13977_v24 = vadd.f32 %v13821_v12, %v4185_v45  ;;  %v4187_v3 = vpop.f32.mrb[101].mxu0  ;;  %v4675_v45 = vadd.f32 %v4674_v32, %v13912_v33  ;;  %v17804_v33 = vld [vmem:[#allocation11_spill] sm:$0xff] }
 0x5dd   :  { %17795 = vst [vmem:[#allocation36_spill] sm:$0xff] %v13977_v24  ;;  %v4676_v55 = vadd.f32 %v4675_v45, %v13917_v19 }
 0x5de   :  { %v4190_v53 = vpop.f32.mrb[102].mxu0 }
 0x5df   :  { %v13982_v18 = vadd.f32 %v17796_v46, %v4190_v53  ;;  %v4192_v17 = vpop.f32.mrb[103].mxu0  ;;  %v4677_v53 = vadd.f32 %v4676_v55, %v13922_v0  ;;  %v17805_v0 = vld [vmem:[#allocation14_spill] sm:$0xff] }
 0x5e1   :  { %17797 = vst [vmem:[#allocation7_spill] sm:$0xff] %v13982_v18  ;;  %v4678_v25 = vadd.f32 %v4677_v53, %v13927_v48 }
 0x5e2   :  { %v4195_v11 = vpop.f32.mrb[104].mxu0 }
 0x5e3   :  { %v13987_v4 = vadd.f32 %v17798_v31, %v4195_v11  ;;  %v4197_v12 = vpop.f32.mrb[105].mxu0  ;;  %v4679_v11 = vadd.f32 %v4678_v25, %v13932_v57  ;;  %v17807_v57 = vld [vmem:[#allocation13_spill] sm:$0xff] }
 0x5e5   :  { %17799 = vst [vmem:[#allocation9_spill] sm:$0xff] %v13987_v4  ;;  %v4680_v32 = vadd.f32 %v4679_v11, %v13937_v28 }
 0x5e6   :  { %v4200_v3 = vpop.f32.mrb[106].mxu0 }
 0x5e7   :  { %v13992_v7 = vadd.f32 %v17800_v51, %v4200_v3  ;;  %v4202_v46 = vpop.f32.mrb[107].mxu0  ;;  %v4681_v3 = vadd.f32 %v4680_v32, %v13942_v21  ;;  %v17809_v21 = vld [vmem:[#allocation16_spill] sm:$0xff] }
 0x5e9   :  { %17801 = vst [vmem:[#allocation8_spill] sm:$0xff] %v13992_v7  ;;  %v4682_v55 = vadd.f32 %v4681_v3, %v13947_v8 }
 0x5ea   :  { %v4205_v17 = vpop.f32.mrb[108].mxu0 }
 0x5eb   :  { %v13997_v59 = vadd.f32 %v17802_v60, %v4205_v17  ;;  %v4207_v31 = vpop.f32.mrb[109].mxu0  ;;  %v4683_v17 = vadd.f32 %v4682_v55, %v13952_v2  ;;  %v17811_v2 = vld [vmem:[#allocation15_spill] sm:$0xff] }
 0x5ed   :  { %17803 = vst [vmem:[#allocation12_spill] sm:$0xff] %v13997_v59  ;;  %v4684_v25 = vadd.f32 %v4683_v17, %v13957_v61 }
 0x5ee   :  { %v4210_v12 = vpop.f32.mrb[110].mxu0 }
 0x5ef   :  { %v14002_v45 = vadd.f32 %v17804_v33, %v4210_v12  ;;  %v4212_v51 = vpop.f32.mrb[111].mxu0  ;;  %v4685_v12 = vadd.f32 %v4684_v25, %v13962_v26  ;;  %v17812_v26 = vld [vmem:[#allocation18_spill] sm:$0xff] }
 0x5f1   :  { %v4686_v32 = vadd.f32 %v4685_v12, %v13967_v30 }
 0x5f2   :  { %v4215_v46 = vpop.f32.mrb[112].mxu0 }
 0x5f3   :  { %v14007_v53 = vadd.f32 %v17805_v0, %v4215_v46  ;;  %v4217_v60 = vpop.f32.mrb[113].mxu0  ;;  %v4687_v46 = vadd.f32 %v4686_v32, %v13972_v29  ;;  %v17814_v29 = vld [vmem:[#allocation17_spill] sm:$0xff] }
 0x5f5   :  { %17806 = vst [vmem:[#allocation11_spill] sm:$0xff] %v14007_v53  ;;  %v4688_v55 = vadd.f32 %v4687_v46, %v13977_v24 }
 0x5f6   :  { %v4220_v31 = vpop.f32.mrb[114].mxu0 }
 0x5f7   :  { %v14012_v11 = vadd.f32 %v17807_v57, %v4220_v31  ;;  %v4222_v33 = vpop.f32.mrb[115].mxu0  ;;  %v4689_v31 = vadd.f32 %v4688_v55, %v13982_v18  ;;  %v17816_v18 = vld [vmem:[#allocation21_spill] sm:$0xff] }
 0x5f9   :  { %17808 = vst [vmem:[#allocation14_spill] sm:$0xff] %v14012_v11  ;;  %v4690_v25 = vadd.f32 %v4689_v31, %v13987_v4 }
 0x5fa   :  { %v4225_v51 = vpop.f32.mrb[116].mxu0 }
 0x5fb   :  { %v14017_v3 = vadd.f32 %v17809_v21, %v4225_v51  ;;  %v4227_v0 = vpop.f32.mrb[117].mxu0  ;;  %v4691_v51 = vadd.f32 %v4690_v25, %v13992_v7  ;;  %v17817_v7 = vld [vmem:[#allocation20_spill] sm:$0xff] }
 0x5fd   :  { %17810 = vst [vmem:[#allocation13_spill] sm:$0xff] %v14017_v3  ;;  %v4692_v32 = vadd.f32 %v4691_v51, %v13997_v59 }
 0x5fe   :  { %v4230_v60 = vpop.f32.mrb[118].mxu0 }
 0x5ff   :  { %v14022_v17 = vadd.f32 %v17811_v2, %v4230_v60  ;;  %v4232_v57 = vpop.f32.mrb[119].mxu0  ;;  %v4693_v60 = vadd.f32 %v4692_v32, %v14002_v45 }
 0x601   :  { %v4694_v55 = vadd.f32 %v4693_v60, %v14007_v53 }
 0x602   :  { %v4235_v33 = vpop.f32.mrb[120].mxu0 }
 0x603   :  { %v14027_v12 = vadd.f32 %v17812_v26, %v4235_v33  ;;  %v4237_v21 = vpop.f32.mrb[121].mxu0  ;;  %v4695_v33 = vadd.f32 %v4694_v55, %v14012_v11 }
 0x605   :  { %17813 = vst [vmem:[#allocation16_spill] sm:$0xff] %v14027_v12  ;;  %v4696_v25 = vadd.f32 %v4695_v33, %v14017_v3 }
 0x606   :  { %v4240_v0 = vpop.f32.mrb[122].mxu0 }
 0x607   :  { %v14032_v46 = vadd.f32 %v17814_v29, %v4240_v0  ;;  %v4242_v2 = vpop.f32.mrb[123].mxu0  ;;  %v4697_v0 = vadd.f32 %v4696_v25, %v14022_v17 }
 0x609   :  { %17815 = vst [vmem:[#allocation15_spill] sm:$0xff] %v14032_v46  ;;  %v4698_v32 = vadd.f32 %v4697_v0, %v14027_v12 }
 0x60a   :  { %v4245_v57 = vpop.f32.mrb[124].mxu0 }
 0x60b   :  { %v14037_v31 = vadd.f32 %v17816_v18, %v4245_v57  ;;  %v4247_v26 = vpop.f32.mrb[125].mxu0  ;;  %v4699_v2 = vadd.f32 %v4698_v32, %v14032_v46 }
 0x60d   :  { %v4700_v60 = vadd.f32 %v4699_v2, %v14037_v31 }
 0x60e   :  { %v4250_v21 = vpop.f32.mrb[126].mxu0 }
 0x60f   :  { %v14042_v51 = vadd.f32 %v17817_v7, %v4250_v21  ;;  %v4252_v29 = vpop.f32.mrb[127].mxu0 }
 0x611   :  { %v4701_v18 = vadd.f32 %v4700_v60, %v14042_v51 }
 0x613   :  { %v4702_v57 = vrot.slane %v4701_v18, 4 }
 0x615   :  { %v4703_v26 = vadd.f32 %v4702_v57, %v4701_v18 }
 0x617   :  { %v4704_v55 = vrot.slane %v4703_v26, 2 }
 0x619   :  { %v4705_v11 = vadd.f32 %v4704_v55, %v4703_v26 }
 0x61b   :  { %v4706_v53 = vrot.slane %v4705_v11, 1 }
 0x61d   :  { %v4707_v33 = vadd.f32 %v4706_v53, %v4705_v11 }
 0x61f   :  { %v14049_v3 = vmul.f32 0.001953125, %v4707_v33 }
 0x621   :  { %v4709_v7 = vsub.f32 %v13727_v13, %v14049_v3  ;;  %v4710_v21 = vsub.f32 %v13731_v16, %v14049_v3  ;;  %v4711_v25 = vsub.f32 %v13739_v54, %v14049_v3  ;;  %v4712_v32 = vsub.f32 %v13743_v38, %v14049_v3 }
 0x622   :  { %v4713_v2 = vsub.f32 %v13751_v40, %v14049_v3  ;;  %v4714_v60 = vsub.f32 %v13755_v27, %v14049_v3  ;;  %v4715_v26 = vsub.f32 %v13763_v10, %v14049_v3  ;;  %v4717_v40 = vsub.f32 %v13773_v36, %v14049_v3 }
 0x623   :  { %v4773_v29 = vmul.f32 %v4709_v7, %v4709_v7  ;;  %v4774_v0 = vmul.f32 %v4710_v21, %v4710_v21  ;;  %v4775_v53 = vmul.f32 %v4711_v25, %v4711_v25  ;;  %v4776_v18 = vmul.f32 %v4712_v32, %v4712_v32  ;;  %v6905_v32 = vld [vmem:[%s17502_s4 + $0x8] sm:$0xff] }
 0x624   :  { %v4777_v55 = vmul.f32 %v4713_v2, %v4713_v2  ;;  %v4716_v7 = vsub.f32 %v13766_v42, %v14049_v3  ;;  %v4778_v21 = vmul.f32 %v4714_v60, %v4714_v60  ;;  %v4779_v25 = vmul.f32 %v4715_v26, %v4715_v26 }
 0x625   :  { %v4837_v11 = vadd.f32 %v4774_v0, %v4773_v29  ;;  %v6904_v0 = vld [vmem:[%s17502_s4] sm:$0xff]  ;;  %v17818_v26 = vmov 0.0|0.0  }
 0x626   :  { %v10155_v2 = vpack.c.bf16 %v6905_v32, %v6904_v0 }
 0x627   :  { %v4838_v57 = vadd.f32 %v4837_v11, %v4775_v53  ;;  %v4718_v53 = vsub.f32 %v13776_v20, %v14049_v3  ;;  %v4780_v11 = vmul.f32 %v4716_v7, %v4716_v7  ;;  %v4720_v7 = vsub.f32 %v13787_v49, %v14049_v3 }
 0x628   :  { %10156 = vmatpush1.bf16.msra.mxu1 %v10155_v2  ;;  %v6908_v2 = vld [vmem:[%s17502_s4 + $0x20] sm:$0xff] }
 0x629   :  { %v4839_v33 = vadd.f32 %v4838_v57, %v4776_v18  ;;  %v4719_v18 = vsub.f32 %v13783_v39, %v14049_v3  ;;  %v4781_v57 = vmul.f32 %v4717_v40, %v4717_v40  ;;  %10157 = vmatprep.subr.bf16.mxu1 %v17818_v26  ;;  %v4721_v40 = vsub.f32 %v13794_v63, %v14049_v3 }
 0x62b   :  { %v4840_v38 = vadd.f32 %v4839_v33, %v4777_v55  ;;  %v6906_v55 = vld [vmem:[%s17502_s4 + $0x10] sm:$0xff]  ;;  %v6907_v33 = vld [vmem:[%s17502_s4 + $0x18] sm:$0xff]  ;;  %v4783_v0 = vmul.f32 %v4719_v18, %v4719_v18  ;;  %v4723_v18 = vsub.f32 %v13804_v47, %v14049_v3 }
 0x62d   :  { %v4841_v29 = vadd.f32 %v4840_v38, %v4778_v21  ;;  %v10158_v21 = vpack.c.bf16 %v6907_v33, %v6906_v55  ;;  %v4785_v55 = vmul.f32 %v4721_v40, %v4721_v40  ;;  %v4725_v40 = vsub.f32 %v13814_v9, %v14049_v3 }
 0x62f   :  { %v4842_v60 = vadd.f32 %v4841_v29, %v4779_v25  ;;  %v4782_v25 = vmul.f32 %v4718_v53, %v4718_v53  ;;  %10159 = vmatpush1.bf16.msra.mxu1 %v10158_v21  ;;  %v4722_v53 = vsub.f32 %v13797_v34, %v14049_v3  ;;  %v6910_v21 = vld [vmem:[%s17502_s4 + $0x30] sm:$0xff] }
 0x630   :  { %10160 = vmatprep.subr.bf16.mxu1 %v17818_v26 }
 0x631   :  { %v4843_v38 = vadd.f32 %v4842_v60, %v4780_v11  ;;  %v6909_v11 = vld [vmem:[%s17502_s4 + $0x28] sm:$0xff] }
 0x632   :  { %v10161_v60 = vpack.c.bf16 %v6909_v11, %v6908_v2  ;;  %v4787_v2 = vmul.f32 %v4723_v18, %v4723_v18  ;;  %v4727_v18 = vsub.f32 %v13824_v44, %v14049_v3 }
 0x633   :  { %v4844_v29 = vadd.f32 %v4843_v38, %v4781_v57  ;;  %v4784_v57 = vmul.f32 %v4720_v7, %v4720_v7  ;;  %v4724_v7 = vsub.f32 %v13807_v35, %v14049_v3 }
 0x634   :  { %10162 = vmatpush1.bf16.msra.mxu1 %v10161_v60  ;;  %v6912_v60 = vld [vmem:[%s17502_s4 + $0x40] sm:$0xff] }
 0x635   :  { %v4845_v32 = vadd.f32 %v4844_v29, %v4782_v25  ;;  %10163 = vmatprep.subr.bf16.mxu1 %v17818_v26  ;;  %v6911_v25 = vld [vmem:[%s17502_s4 + $0x38] sm:$0xff] }
 0x636   :  { %v10164_v29 = vpack.c.bf16 %v6911_v25, %v6910_v21  ;;  %v4789_v21 = vmul.f32 %v4725_v40, %v4725_v40  ;;  %v4729_v40 = vsub.f32 %v13834_v1, %v14049_v3 }
 0x637   :  { %v4846_v38 = vadd.f32 %v4845_v32, %v4783_v0  ;;  %v4786_v0 = vmul.f32 %v4722_v53, %v4722_v53  ;;  %v4726_v53 = vsub.f32 %v13817_v62, %v14049_v3 }
 0x638   :  { %10165 = vmatpush1.bf16.msra.mxu1 %v10164_v29  ;;  %v6914_v29 = vld [vmem:[%s17502_s4 + $0x50] sm:$0xff] }
 0x639   :  { %v4847_v33 = vadd.f32 %v4846_v38, %v4784_v57  ;;  %10166 = vmatprep.subr.bf16.mxu1 %v17818_v26  ;;  %v6913_v57 = vld [vmem:[%s17502_s4 + $0x48] sm:$0xff] }
 0x63a   :  { %v10167_v38 = vpack.c.bf16 %v6913_v57, %v6912_v60  ;;  %v4791_v60 = vmul.f32 %v4727_v18, %v4727_v18  ;;  %v4731_v18 = vsub.f32 %v13844_v41, %v14049_v3 }
 0x63b   :  { %v4848_v32 = vadd.f32 %v4847_v33, %v4785_v55  ;;  %v4788_v55 = vmul.f32 %v4724_v7, %v4724_v7  ;;  %v4728_v7 = vsub.f32 %v13827_v50, %v14049_v3 }
 0x63c   :  { %10168 = vmatpush1.bf16.msra.mxu1 %v10167_v38  ;;  %v6916_v38 = vld [vmem:[%s17502_s4 + $0x60] sm:$0xff] }
 0x63d   :  { %v4849_v11 = vadd.f32 %v4848_v32, %v4786_v0  ;;  %10169 = vmatprep.subr.bf16.mxu1 %v17818_v26  ;;  %v6915_v0 = vld [vmem:[%s17502_s4 + $0x58] sm:$0xff] }
 0x63e   :  { %v10170_v32 = vpack.c.bf16 %v6915_v0, %v6914_v29  ;;  %v4793_v29 = vmul.f32 %v4729_v40, %v4729_v40  ;;  %v4733_v40 = vsub.f32 %v13854_v22, %v14049_v3 }
 0x63f   :  { %v4850_v33 = vadd.f32 %v4849_v11, %v4787_v2  ;;  %v4790_v2 = vmul.f32 %v4726_v53, %v4726_v53  ;;  %v4730_v53 = vsub.f32 %v13837_v15, %v14049_v3 }
 0x640   :  { %10171 = vmatpush1.bf16.msra.mxu1 %v10170_v32  ;;  %v6918_v32 = vld [vmem:[%s17502_s4 + $0x70] sm:$0xff] }
 0x641   :  { %v4851_v25 = vadd.f32 %v4850_v33, %v4788_v55  ;;  %10172 = vmatprep.subr.bf16.mxu1 %v17818_v26  ;;  %v6917_v55 = vld [vmem:[%s17502_s4 + $0x68] sm:$0xff] }
 0x642   :  { %v10173_v33 = vpack.c.bf16 %v6917_v55, %v6916_v38  ;;  %v4795_v38 = vmul.f32 %v4731_v18, %v4731_v18  ;;  %v4735_v18 = vsub.f32 %v13864_v6, %v14049_v3 }
 0x643   :  { %v4852_v11 = vadd.f32 %v4851_v25, %v4789_v21  ;;  %v4792_v21 = vmul.f32 %v4728_v7, %v4728_v7  ;;  %v4732_v7 = vsub.f32 %v13847_v37, %v14049_v3 }
 0x644   :  { %10174 = vmatpush1.bf16.msra.mxu1 %v10173_v33  ;;  %v6920_v33 = vld [vmem:[%s17502_s4 + $0x80] sm:$0xff] }
 0x645   :  { %v4853_v57 = vadd.f32 %v4852_v11, %v4790_v2  ;;  %10175 = vmatprep.subr.bf16.mxu1 %v17818_v26  ;;  %v6919_v2 = vld [vmem:[%s17502_s4 + $0x78] sm:$0xff] }
 0x646   :  { %v10176_v11 = vpack.c.bf16 %v6919_v2, %v6918_v32  ;;  %v4797_v32 = vmul.f32 %v4733_v40, %v4733_v40  ;;  %v4737_v40 = vsub.f32 %v13874_v58, %v14049_v3 }
 0x647   :  { %v4854_v25 = vadd.f32 %v4853_v57, %v4791_v60  ;;  %v4794_v60 = vmul.f32 %v4730_v53, %v4730_v53  ;;  %v4734_v53 = vsub.f32 %v13857_v14, %v14049_v3 }
 0x648   :  { %10177 = vmatpush1.bf16.msra.mxu1 %v10176_v11  ;;  %v6922_v11 = vld [vmem:[%s17502_s4 + $0x90] sm:$0xff] }
 0x649   :  { %v4855_v0 = vadd.f32 %v4854_v25, %v4792_v21  ;;  %10178 = vmatprep.subr.bf16.mxu1 %v17818_v26  ;;  %v6921_v21 = vld [vmem:[%s17502_s4 + $0x88] sm:$0xff] }
 0x64a   :  { %v10179_v25 = vpack.c.bf16 %v6921_v21, %v6920_v33  ;;  %v4799_v33 = vmul.f32 %v4735_v18, %v4735_v18  ;;  %v4739_v18 = vsub.f32 %v13884_v23, %v14049_v3  ;;  %v6928_v23 = vld [vmem:[%s17502_s4 + $0xc0] sm:$0xff] }
 0x64b   :  { %v4856_v57 = vadd.f32 %v4855_v0, %v4793_v29  ;;  %v4796_v29 = vmul.f32 %v4732_v7, %v4732_v7  ;;  %v4736_v7 = vsub.f32 %v13867_v56, %v14049_v3 }
 0x64c   :  { %10180 = vmatpush1.bf16.msra.mxu1 %v10179_v25  ;;  %v6924_v25 = vld [vmem:[%s17502_s4 + $0xa0] sm:$0xff] }
 0x64d   :  { %v4857_v55 = vadd.f32 %v4856_v57, %v4794_v60  ;;  %10181 = vmatprep.subr.bf16.mxu1 %v17818_v26  ;;  %v6923_v60 = vld [vmem:[%s17502_s4 + $0x98] sm:$0xff] }
 0x64e   :  { %v10182_v57 = vpack.c.bf16 %v6923_v60, %v6922_v11  ;;  %v4801_v60 = vmul.f32 %v4737_v40, %v4737_v40  ;;  %v7033_v40 = vld [vmem:[%s17502_s4 + $0x408] sm:$0xff] }
 0x64f   :  { %v4858_v0 = vadd.f32 %v4857_v55, %v4795_v38  ;;  %v4798_v38 = vmul.f32 %v4734_v53, %v4734_v53  ;;  %v17819_v53 = vld [vmem:[#allocation19_spill] sm:$0xff] }
 0x650   :  { %10183 = vmatpush1.bf16.msra.mxu1 %v10182_v57 }
 0x651   :  { %v4859_v2 = vadd.f32 %v4858_v0, %v4796_v29  ;;  %10184 = vmatprep.subr.bf16.mxu1 %v17818_v26  ;;  %v6925_v29 = vld [vmem:[%s17502_s4 + $0xa8] sm:$0xff] }
 0x652   :  { %v10185_v0 = vpack.c.bf16 %v6925_v29, %v6924_v25 }
 0x653   :  { %v4860_v55 = vadd.f32 %v4859_v2, %v4797_v32  ;;  %v4738_v32 = vsub.f32 %v17819_v53, %v14049_v3  ;;  %v4800_v2 = vmul.f32 %v4736_v7, %v4736_v7  ;;  %v7032_v7 = vld [vmem:[%s17502_s4 + $0x400] sm:$0xff] }
 0x654   :  { %10186 = vmatpush1.bf16.msra.mxu1 %v10185_v0 }
 0x655   :  { %v4861_v21 = vadd.f32 %v4860_v55, %v4798_v38  ;;  %10187 = vmatprep.subr.bf16.mxu1 %v17818_v26  ;;  %v6926_v38 = vld [vmem:[%s17502_s4 + $0xb0] sm:$0xff]  ;;  %v6927_v55 = vld [vmem:[%s17502_s4 + $0xb8] sm:$0xff]  ;;  %v4802_v29 = vmul.f32 %v4738_v32, %v4738_v32 }
 0x656   :  { %v10188_v25 = vpack.c.bf16 %v6927_v55, %v6926_v38  ;;  %v4803_v38 = vmul.f32 %v4739_v18, %v4739_v18  ;;  %v7034_v18 = vld [vmem:[%s17502_s4 + $0x410] sm:$0xff] }
 0x657   :  { %v4862_v11 = vadd.f32 %v4861_v21, %v4799_v33  ;;  %v17820_v33 = vld [vmem:[#allocation4_spill] sm:$0xff] }
 0x658   :  { %v4740_v21 = vsub.f32 %v17820_v33, %v14049_v3  ;;  %10189 = vmatpush1.bf16.msra.mxu1 %v10188_v25  ;;  %v6929_v33 = vld [vmem:[%s17502_s4 + $0xc8] sm:$0xff] }
 0x659   :  { %v4863_v57 = vadd.f32 %v4862_v11, %v4800_v2  ;;  %v14204_v2 = vpack.c.bf16 %v7033_v40, %v7032_v7  ;;  %v4741_v11 = vsub.f32 %v13890_v5, %v14049_v3  ;;  %10190 = vmatprep.subr.bf16.mxu1 %v17818_v26  ;;  %v10191_v32 = vpack.c.bf16 %v6929_v33, %v6928_v23 }
 0x65a   :  { %v4804_v7 = vmul.f32 %v4740_v21, %v4740_v21  ;;  %v4743_v23 = vsub.f32 %v13896_v43, %v14049_v3 }
 0x65b   :  { %v4864_v0 = vadd.f32 %v4863_v57, %v4801_v60  ;;  %17821 = vst [vmem:[#allocation18_spill] sm:$0xff] %v14204_v2  ;;  %10347 = vmatprep.subr.bf16.mxu0 %v14204_v2  ;;  %v7035_v60 = vld [vmem:[%s17502_s4 + $0x418] sm:$0xff]  ;;  %v4805_v33 = vmul.f32 %v4741_v11, %v4741_v11  ;;  %v7036_v11 = vld [vmem:[%s17502_s4 + $0x420] sm:$0xff] }
 0x65c   :  { %10349 = vmatpush3.bf16.msra.mxu0 %v14204_v2  ;;  %v17822_v57 = vld [vmem:[#allocation23_spill] sm:$0xff]  ;;  %10192 = vmatpush1.bf16.msra.mxu1 %v10191_v32  ;;  %v6930_v2 = vld [vmem:[%s17502_s4 + $0xd0] sm:$0xff] }
 0x65d   :  { %v4865_v55 = vadd.f32 %v4864_v0, %v4802_v29  ;;  %v4742_v25 = vsub.f32 %v17822_v57, %v14049_v3  ;;  %v14225_v29 = vpack.c.bf16 %v7035_v60, %v7034_v18  ;;  %10193 = vmatprep.subr.bf16.mxu1 %v17818_v26  ;;  %v6931_v57 = vld [vmem:[%s17502_s4 + $0xd8] sm:$0xff] }
 0x65e   :  { %v10194_v21 = vpack.c.bf16 %v6931_v57, %v6930_v2  ;;  %v4745_v2 = vsub.f32 %v13907_v52, %v14049_v3  ;;  %v4807_v57 = vmul.f32 %v4743_v23, %v4743_v23  ;;  %v7038_v23 = vld [vmem:[%s17502_s4 + $0x430] sm:$0xff] }
 0x65f   :  { %v4866_v40 = vadd.f32 %v4865_v55, %v4803_v38  ;;  %17823 = vst [vmem:[#allocation17_spill] sm:$0xff] %v14225_v29  ;;  %10351 = vmatprep.subr.bf16.mxu0 %v14225_v29  ;;  %v7037_v38 = vld [vmem:[%s17502_s4 + $0x428] sm:$0xff]  ;;  %v17824_v55 = vld [vmem:[#allocation24_spill] sm:$0xff]  ;;  %v4806_v18 = vmul.f32 %v4742_v25, %v4742_v25 }
 0x660   :  { %10353 = vmatpush3.bf16.msra.mxu0 %v14225_v29  ;;  %v4744_v32 = vsub.f32 %v17824_v55, %v14049_v3  ;;  %10195 = vmatpush1.bf16.msra.mxu1 %v10194_v21  ;;  %v6932_v29 = vld [vmem:[%s17502_s4 + $0xe0] sm:$0xff]  ;;  %v6933_v55 = vld [vmem:[%s17502_s4 + $0xe8] sm:$0xff] }
 0x661   :  { %v4867_v0 = vadd.f32 %v4866_v40, %v4804_v7  ;;  %v14246_v7 = vpack.c.bf16 %v7037_v38, %v7036_v11  ;;  %10196 = vmatprep.subr.bf16.mxu1 %v17818_v26  ;;  %v10197_v25 = vpack.c.bf16 %v6933_v55, %v6932_v29  ;;  %v4747_v29 = vsub.f32 %v13917_v19, %v14049_v3  ;;  %v5304_v19 = vld [vmem:[#allocation2 + $0x1] sm:$0xff] }
 0x662   :  { %v4808_v11 = vmul.f32 %v4744_v32, %v4744_v32  ;;  %v4809_v55 = vmul.f32 %v4745_v2, %v4745_v2  ;;  %v6935_v32 = vld [vmem:[%s17502_s4 + $0xf8] sm:$0xff]  ;;  %v7040_v2 = vld [vmem:[%s17502_s4 + $0x440] sm:$0xff]  ;;  %7112 = vmatprep.mubr.f32.mxu1 %v5304_v19 }
 0x663   :  { %v4868_v60 = vadd.f32 %v4867_v0, %v4805_v33  ;;  %17825 = vst [vmem:[#allocation21_spill] sm:$0xff] %v14246_v7  ;;  %10355 = vmatprep.subr.bf16.mxu0 %v14246_v7  ;;  %v7039_v33 = vld [vmem:[%s17502_s4 + $0x438] sm:$0xff]  ;;  %v17826_v0 = vld [vmem:[#allocation25_spill] sm:$0xff]  ;;  %v7044_v19 = vld [vmem:[%s17502_s4 + $0x460] sm:$0xff] }
 0x664   :  { %10357 = vmatpush3.bf16.msra.mxu0 %v14246_v7  ;;  %v4746_v21 = vsub.f32 %v17826_v0, %v14049_v3  ;;  %10198 = vmatpush1.bf16.msra.mxu1 %v10197_v25  ;;  %v6934_v7 = vld [vmem:[%s17502_s4 + $0xf0] sm:$0xff]  ;;  %v17828_v25 = vld [vmem:[#allocation27_spill] sm:$0xff] }
 0x665   :  { %v4869_v40 = vadd.f32 %v4868_v60, %v4806_v18  ;;  %v14267_v18 = vpack.c.bf16 %v7039_v33, %v7038_v23  ;;  %10199 = vmatprep.subr.bf16.mxu1 %v17818_v26  ;;  %v4748_v23 = vsub.f32 %v17828_v25, %v14049_v3  ;;  %v5305_v25 = vld [vmem:[#allocation2 + $0x9] sm:$0xff] }
 0x666   :  { %v4810_v33 = vmul.f32 %v4746_v21, %v4746_v21  ;;  %v7042_v21 = vld [vmem:[%s17502_s4 + $0x450] sm:$0xff] }
 0x667   :  { %v4870_v38 = vadd.f32 %v4869_v40, %v4807_v57  ;;  %17827 = vst [vmem:[#allocation20_spill] sm:$0xff] %v14267_v18  ;;  %10359 = vmatprep.subr.bf16.mxu0 %v14267_v18  ;;  %v10200_v57 = vpack.c.bf16 %v6935_v32, %v6934_v7  ;;  %v7041_v40 = vld [vmem:[%s17502_s4 + $0x448] sm:$0xff]  ;;  %v4811_v7 = vmul.f32 %v4747_v29, %v4747_v29 }
 0x668   :  { %10361 = vmatpush3.bf16.msra.mxu0 %v14267_v18  ;;  %v4749_v18 = vsub.f32 %v13927_v48, %v14049_v3  ;;  %v17830_v29 = vld [vmem:[#allocation29_spill] sm:$0xff] }
 0x669   :  { %v4871_v60 = vadd.f32 %v4870_v38, %v4808_v11  ;;  %v14288_v38 = vpack.c.bf16 %v7041_v40, %v7040_v2  ;;  %10201 = vmatpush1.bf16.msra.mxu1 %v10200_v57  ;;  %v4750_v57 = vsub.f32 %v17830_v29, %v14049_v3  ;;  %v4812_v2 = vmul.f32 %v4748_v23, %v4748_v23  ;;  %v7045_v23 = vld [vmem:[%s17502_s4 + $0x468] sm:$0xff] }
 0x66a   :  { %10202 = vmatprep.subr.bf16.mxu1 %v17818_v26 }
 0x66b   :  { %v4872_v11 = vadd.f32 %v4871_v60, %v4809_v55  ;;  %17829 = vst [vmem:[#allocation19_spill] sm:$0xff] %v14288_v38  ;;  %10363 = vmatprep.subr.bf16.mxu0 %v14288_v38  ;;  %v7043_v55 = vld [vmem:[%s17502_s4 + $0x458] sm:$0xff]  ;;  %v5176_v60 = vld [vmem:[#allocation2] sm:$0xff] }
 0x66c   :  { %10365 = vmatpush3.bf16.msra.mxu0 %v14288_v38  ;;  %7113 = vmatmul.mubr.f32.vlgmr.msra.gmra.mrb[64].mxu1 %v5176_v60  ;;  %v4813_v38 = vmul.f32 %v4749_v18, %v4749_v18  ;;  %v11206_v60 = vld [vmem:[#allocation2 + $0x8] sm:$0xff] }
 0x66d   :  { %v4873_v32 = vadd.f32 %v4872_v11, %v4810_v33  ;;  %v14303_v33 = vpack.c.bf16 %v7043_v55, %v7042_v21  ;;  %v4751_v11 = vsub.f32 %v13937_v28, %v14049_v3  ;;  %7117 = vmatprep.mubr.f32.mxu1 %v5305_v25  ;;  %v4814_v21 = vmul.f32 %v4750_v57, %v4750_v57  ;;  %v7046_v25 = vld [vmem:[%s17502_s4 + $0x470] sm:$0xff] }
 0x66e   :  { %v14317_v55 = vpack.c.bf16 %v7045_v23, %v7044_v19  ;;  %v4753_v57 = vsub.f32 %v13947_v8, %v14049_v3  ;;  %v7047_v23 = vld [vmem:[%s17502_s4 + $0x478] sm:$0xff] }
 0x66f   :  { %v4874_v40 = vadd.f32 %v4873_v32, %v4811_v7  ;;  %17831 = vst [vmem:[#allocation25_spill] sm:$0xff] %v14303_v33  ;;  %10367 = vmatprep.subr.bf16.mxu0 %v14303_v33  ;;  %v17832_v7 = vld [vmem:[#allocation31_spill] sm:$0xff]  ;;  %v14341_v8 = vpack.c.bf16 %v7047_v23, %v7046_v25  ;;  %v17836_v25 = vld [vmem:[#allocation34_spill] sm:$0xff] }
 0x670   :  { %10369 = vmatpush3.bf16.msra.mxu0 %v14303_v33  ;;  %v4752_v32 = vsub.f32 %v17832_v7, %v14049_v3  ;;  %17833 = vst [vmem:[#allocation37_spill] sm:$0xff] %v14317_v55  ;;  %7118 = vmatmul.mubr.f32.gmra.mrb[66].mxu1 %v11206_v60  ;;  %v6938_v60 = vld [vmem:[%s17502_s4 + $0x110] sm:$0xff]  ;;  %v6939_v33 = vld [vmem:[%s17502_s4 + $0x118] sm:$0xff]  ;;  %v4755_v7 = vsub.f32 %v13957_v61, %v14049_v3 }
 0x671   :  { %v4875_v48 = vadd.f32 %v4874_v40, %v4812_v2  ;;  %v6936_v2 = vld [vmem:[%s17502_s4 + $0x100] sm:$0xff]  ;;  %v6937_v40 = vld [vmem:[%s17502_s4 + $0x108] sm:$0xff]  ;;  %10371 = vmatprep.subr.bf16.mxu0 %v14317_v55  ;;  %17834 = vst [vmem:[#allocation38_spill] sm:$0xff] %v14341_v8  ;;  %v4817_v28 = vmul.f32 %v4753_v57, %v4753_v57  ;;  %v4756_v23 = vsub.f32 %v17836_v25, %v14049_v3 }
 0x672   :  { %v10203_v19 = vpack.c.bf16 %v6937_v40, %v6936_v2  ;;  %v10206_v40 = vpack.c.bf16 %v6939_v33, %v6938_v60  ;;  %v4757_v33 = vsub.f32 %v13967_v30, %v14049_v3 }
 0x673   :  { %v4876_v18 = vadd.f32 %v4875_v48, %v4813_v38  ;;  %v4815_v48 = vmul.f32 %v4751_v11, %v4751_v11  ;;  %v17835_v11 = vld [vmem:[#allocation33_spill] sm:$0xff]  ;;  %v4820_v57 = vmul.f32 %v4756_v23, %v4756_v23 }
 0x674   :  { %10373 = vmatpush3.bf16.msra.mxu0 %v14317_v55  ;;  %10204 = vmatpush1.bf16.msra.mxu1 %v10203_v19 }
 0x675   :  { %v4877_v38 = vadd.f32 %v4876_v18, %v4814_v21  ;;  %v4754_v21 = vsub.f32 %v17835_v11, %v14049_v3  ;;  %v4816_v18 = vmul.f32 %v4752_v32, %v4752_v32  ;;  %10375 = vmatprep.subr.bf16.mxu0 %v14341_v8  ;;  %10205 = vmatprep.subr.bf16.mxu1 %v17818_v26 }
 0x676   :  { %v4819_v32 = vmul.f32 %v4755_v7, %v4755_v7  ;;  %v6940_v7 = vld [vmem:[%s17502_s4 + $0x120] sm:$0xff] }
 0x677   :  { %v4878_v2 = vadd.f32 %v4877_v38, %v4815_v48  ;;  %v4818_v55 = vmul.f32 %v4754_v21, %v4754_v21  ;;  %v17837_v38 = vld [vmem:[#allocation35_spill] sm:$0xff] }
 0x678   :  { %10377 = vmatpush3.bf16.msra.mxu0 %v14341_v8  ;;  %10207 = vmatpush1.bf16.msra.mxu1 %v10206_v40  ;;  %v4758_v19 = vsub.f32 %v17837_v38, %v14049_v3 }
 0x679   :  { %v4879_v29 = vadd.f32 %v4878_v2, %v4816_v18  ;;  %10208 = vmatprep.subr.bf16.mxu1 %v17818_v26  ;;  %v4759_v18 = vsub.f32 %v13977_v24, %v14049_v3  ;;  %v4821_v2 = vmul.f32 %v4757_v33, %v4757_v33  ;;  %v4764_v24 = vsub.f32 %v14002_v45, %v14049_v3 }
 0x67a   :  { %v4822_v21 = vmul.f32 %v4758_v19, %v4758_v19 }
 0x67b   :  { %v4880_v11 = vadd.f32 %v4879_v29, %v4817_v28  ;;  %v17838_v28 = vld [vmem:[#allocation7_spill] sm:$0xff]  ;;  %v4823_v23 = vmul.f32 %v4759_v18, %v4759_v18 }
 0x67c   :  { %v4760_v29 = vsub.f32 %v17838_v28, %v14049_v3 }
 0x67d   :  { %v4881_v48 = vadd.f32 %v4880_v11, %v4818_v55  ;;  %v6941_v55 = vld [vmem:[%s17502_s4 + $0x128] sm:$0xff]  ;;  %v4761_v11 = vsub.f32 %v13987_v4, %v14049_v3 }
 0x67e   :  { %v10209_v33 = vpack.c.bf16 %v6941_v55, %v6940_v7 }
 0x67f   :  { %v4882_v60 = vadd.f32 %v4881_v48, %v4819_v32  ;;  %v17839_v48 = vld [vmem:[#allocation8_spill] sm:$0xff] }
 0x680   :  { %10210 = vmatpush1.bf16.msra.mxu1 %v10209_v33 }
 0x681   :  { %v4883_v8 = vadd.f32 %v4882_v60, %v4820_v57  ;;  %v4762_v57 = vsub.f32 %v17839_v48, %v14049_v3  ;;  %v4824_v60 = vmul.f32 %v4760_v29, %v4760_v29  ;;  %10211 = vmatprep.subr.bf16.mxu1 %v17818_v26  ;;  %v17841_v29 = vld [vmem:[#allocation14_spill] sm:$0xff]  ;;  %v17842_v48 = vld [vmem:[#allocation13_spill] sm:$0xff] }
 0x683   :  { %v4884_v40 = vadd.f32 %v4883_v8, %v4821_v2  ;;  %v4763_v8 = vsub.f32 %v13997_v59, %v14049_v3  ;;  %v4825_v2 = vmul.f32 %v4761_v11, %v4761_v11  ;;  %v4826_v4 = vmul.f32 %v4762_v57, %v4762_v57 }
 0x684   :  { %v4767_v59 = vsub.f32 %v17842_v48, %v14049_v3 }
 0x685   :  { %v4885_v32 = vadd.f32 %v4884_v40, %v4822_v21  ;;  %v17840_v21 = vld [vmem:[#allocation11_spill] sm:$0xff]  ;;  %v4827_v7 = vmul.f32 %v4763_v8, %v4763_v8  ;;  %v6942_v8 = vld [vmem:[%s17502_s4 + $0x130] sm:$0xff] }
 0x686   :  { %v4765_v40 = vsub.f32 %v17840_v21, %v14049_v3 }
 0x687   :  { %v4886_v19 = vadd.f32 %v4885_v32, %v4823_v23  ;;  %v4766_v23 = vsub.f32 %v17841_v29, %v14049_v3  ;;  %v4828_v32 = vmul.f32 %v4764_v24, %v4764_v24  ;;  %v4769_v24 = vsub.f32 %v14027_v12, %v14049_v3 }
 0x688   :  { %v4829_v11 = vmul.f32 %v4765_v40, %v4765_v40 }
 0x689   :  { %v4887_v28 = vadd.f32 %v4886_v19, %v4824_v60  ;;  %v4768_v19 = vsub.f32 %v14022_v17, %v14049_v3  ;;  %v4830_v57 = vmul.f32 %v4766_v23, %v4766_v23 }
 0x68b   :  { %v4888_v18 = vadd.f32 %v4887_v28, %v4825_v2  ;;  %v4831_v2 = vmul.f32 %v4767_v59, %v4767_v59 }
 0x68d   :  { %v4889_v55 = vadd.f32 %v4888_v18, %v4826_v4  ;;  %v6943_v4 = vld [vmem:[%s17502_s4 + $0x138] sm:$0xff] }
 0x68e   :  { %v10212_v40 = vpack.c.bf16 %v6943_v4, %v6942_v8 }
 0x68f   :  { %v4890_v33 = vadd.f32 %v4889_v55, %v4827_v7  ;;  %v4770_v7 = vsub.f32 %v14032_v46, %v14049_v3  ;;  %v4832_v55 = vmul.f32 %v4768_v19, %v4768_v19 }
 0x690   :  { %10213 = vmatpush1.bf16.msra.mxu1 %v10212_v40 }
 0x691   :  { %v4891_v60 = vadd.f32 %v4890_v33, %v4828_v32  ;;  %10214 = vmatprep.subr.bf16.mxu1 %v17818_v26  ;;  %v4771_v32 = vsub.f32 %v14037_v31, %v14049_v3  ;;  %v4833_v33 = vmul.f32 %v4769_v24, %v4769_v24  ;;  %v4834_v12 = vmul.f32 %v4770_v7, %v4770_v7  ;;  %v6945_v24 = vld [vmem:[%s17502_s4 + $0x148] sm:$0xff] }
 0x693   :  { %v4892_v28 = vadd.f32 %v4891_v60, %v4829_v11  ;;  %v4772_v60 = vsub.f32 %v14042_v51, %v14049_v3 }
 0x695   :  { %v4893_v18 = vadd.f32 %v4892_v28, %v4830_v57  ;;  %v4835_v57 = vmul.f32 %v4771_v32, %v4771_v32  ;;  %v4836_v8 = vmul.f32 %v4772_v60, %v4772_v60  ;;  %v6947_v60 = vld [vmem:[%s17502_s4 + $0x158] sm:$0xff] }
 0x697   :  { %v4894_v23 = vadd.f32 %v4893_v18, %v4831_v2  ;;  %v6944_v2 = vld [vmem:[%s17502_s4 + $0x140] sm:$0xff] }
 0x698   :  { %v10215_v40 = vpack.c.bf16 %v6945_v24, %v6944_v2 }
 0x699   :  { %v4895_v11 = vadd.f32 %v4894_v23, %v4832_v55 }
 0x69a   :  { %10216 = vmatpush1.bf16.msra.mxu1 %v10215_v40 }
 0x69b   :  { %v4896_v59 = vadd.f32 %v4895_v11, %v4833_v33  ;;  %10217 = vmatprep.subr.bf16.mxu1 %v17818_v26  ;;  %v6946_v11 = vld [vmem:[%s17502_s4 + $0x150] sm:$0xff] }
 0x69d   :  { %v4897_v28 = vadd.f32 %v4896_v59, %v4834_v12  ;;  %v22_v59 = vld [vmem:[%s17500_s2 + $0x2] sm:$0x1] }
 0x69f   :  { %v4898_v4 = vadd.f32 %v4897_v28, %v4835_v57 }
 0x6a1   :  { %v4899_v46 = vadd.f32 %v4898_v4, %v4836_v8  ;;  %v23_v8 = vld [vmem:[%s17500_s2 + $0x3] sm:$0x1] }
 0x6a3   :  { %v4900_v19 = vrot.slane %v4899_v46, 4 }
 0x6a5   :  { %v4901_v18 = vadd.f32 %v4900_v19, %v4899_v46  ;;  %v10218_v46 = vpack.c.bf16 %v6947_v60, %v6946_v11  ;;  %v17843_v19 = vld [vmem:[#allocation10_spill] sm:$0xff] }
 0x6a7   :  { %v4902_v55 = vrot.slane %v4901_v18, 2  ;;  %10219 = vmatpush1.bf16.msra.mxu1 %v10218_v46 }
 0x6a8   :  { %10220 = vmatprep.subr.bf16.mxu1 %v17818_v26  ;;  %v17862_v26 = vld [vmem:[#allocation36_spill] sm:$0xff] }
 0x6a9   :  { %v4903_v7 = vadd.f32 %v4902_v55, %v4901_v18 }
 0x6ab   :  { %v4904_v12 = vrot.slane %v4903_v7, 1 }
 0x6ad   :  { %v4905_v23 = vadd.f32 %v4904_v12, %v4903_v7 }
 0x6af   :  { %v4906_v32 = vmul.f32 0.001953125, %v4905_v23  ;;  %v17845_v23 = vld [vmem:[#allocation6_spill] sm:$0xff] }
 0x6b1   :  { %v4907_v33 = vadd.f32 1e-05, %v4906_v32 }
 0x6b3   :  { %11166 = vrsqrt.f32 %v4907_v33 }
 0x6bd   :  { %v11167_v57 = vpop.eup %11166 }
 0x6be   :  { %v4909_v28 = vmul.f32 %v11167_v57, %v22_v59  ;;  %v17846_v59 = vld [vmem:[#allocation22_spill] sm:$0xff]  ;;  %v17847_v57 = vld [vmem:[#allocation4_spill] sm:$0xff] }
 0x6c0   :  { %v4910_v4 = vmul.f32 %v4909_v28, %v14049_v3  ;;  %v14421_v2 = vrot.slane %v4909_v28, %v17843_v19  ;;  %v17844_v3 = vld [vmem:[#allocation5_spill] sm:$0xff]  ;;  %v17848_v28 = vld [vmem:[#allocation23_spill] sm:$0xff] }
 0x6c2   :  { %v4911_v24 = vsub.f32 %v23_v8, %v4910_v4  ;;  %v4979_v18 = vmul.f32 %v14421_v2, %v14042_v51  ;;  %v14427_v40 = vmul.f32 %v14421_v2, %v13727_v13  ;;  %v14431_v55 = vmul.f32 %v14421_v2, %v13731_v16  ;;  %v17849_v8 = vld [vmem:[#allocation24_spill] sm:$0xff] }
 0x6c3   :  { %v14435_v7 = vmul.f32 %v14421_v2, %v13739_v54  ;;  %v14439_v12 = vmul.f32 %v14421_v2, %v17844_v3  ;;  %v14443_v32 = vmul.f32 %v14421_v2, %v17845_v23  ;;  %v14447_v13 = vmul.f32 %v14421_v2, %v13755_v27  ;;  %v17851_v23 = vld [vmem:[#allocation27_spill] sm:$0xff] }
 0x6c4   :  { %v14450_v51 = vrot.slane %v4911_v24, %v17843_v19  ;;  %v14454_v16 = vmul.f32 %v14421_v2, %v13763_v10  ;;  %v14458_v54 = vmul.f32 %v14421_v2, %v13766_v42  ;;  %v14462_v33 = vmul.f32 %v14421_v2, %v13773_v36  ;;  %v17857_v19 = vld [vmem:[#allocation33_spill] sm:$0xff] }
 0x6c5   :  { %v14466_v11 = vmul.f32 %v14421_v2, %v13776_v20  ;;  %v14470_v27 = vmul.f32 %v14421_v2, %v13783_v39  ;;  %v14474_v10 = vmul.f32 %v14421_v2, %v13787_v49  ;;  %v14478_v42 = vmul.f32 %v14421_v2, %v13794_v63 }
 0x6c6   :  { %v5047_v60 = vadd.f32 %v14450_v51, %v4979_v18  ;;  %v14483_v36 = vmul.f32 %v14421_v2, %v13797_v34  ;;  %v14487_v20 = vmul.f32 %v14421_v2, %v13804_v47  ;;  %v14491_v39 = vmul.f32 %v14421_v2, %v13807_v35  ;;  %v17850_v18 = vld [vmem:[#allocation26_spill] sm:$0xff] }
 0x6c7   :  { %v14495_v49 = vmul.f32 %v14421_v2, %v13814_v9  ;;  %v14499_v63 = vmul.f32 %v14421_v2, %v13817_v62  ;;  %v14503_v34 = vmul.f32 %v14421_v2, %v13824_v44  ;;  %v14507_v47 = vmul.f32 %v14421_v2, %v13827_v50 }
 0x6c8   :  { %v5111_v46 = vmax.f32 %v5047_v60, 0.0  ;;  %v14511_v35 = vmul.f32 %v14421_v2, %v13834_v1  ;;  %v14515_v9 = vmul.f32 %v14421_v2, %v13837_v15  ;;  %v14519_v62 = vmul.f32 %v14421_v2, %v13844_v41  ;;  %v17852_v60 = vld [vmem:[#allocation28_spill] sm:$0xff] }
 0x6c9   :  { %v14523_v44 = vmul.f32 %v14421_v2, %v13847_v37  ;;  %v14527_v50 = vmul.f32 %v14421_v2, %v13854_v22  ;;  %v14531_v1 = vmul.f32 %v14421_v2, %v13857_v14  ;;  %v14535_v15 = vmul.f32 %v14421_v2, %v13864_v6 }
 0x6ca   :  { %v14539_v41 = vmul.f32 %v14421_v2, %v13867_v56  ;;  %v14543_v37 = vmul.f32 %v14421_v2, %v13874_v58  ;;  %v14547_v22 = vmul.f32 %v14421_v2, %v17819_v53  ;;  %v14551_v14 = vmul.f32 %v14421_v2, %v17846_v59  ;;  %5175 = vst [vmem:[#allocation2 + $0x339] sm:$0xff] %v5111_v46  ;;  %v17853_v59 = vld [vmem:[#allocation29_spill] sm:$0xff] }
 0x6cb   :  { %v14555_v6 = vmul.f32 %v14421_v2, %v17847_v57  ;;  %v14559_v56 = vmul.f32 %v14421_v2, %v13890_v5  ;;  %v14563_v58 = vmul.f32 %v14421_v2, %v17848_v28  ;;  %v14567_v53 = vmul.f32 %v14421_v2, %v13896_v43  ;;  %v17854_v57 = vld [vmem:[#allocation30_spill] sm:$0xff]  ;;  %v17855_v28 = vld [vmem:[#allocation31_spill] sm:$0xff] }
 0x6cc   :  { %v14571_v4 = vmul.f32 %v14421_v2, %v17849_v8  ;;  %v14575_v24 = vmul.f32 %v14421_v2, %v13907_v52  ;;  %v14579_v5 = vmul.f32 %v14421_v2, %v17826_v0  ;;  %v14583_v3 = vmul.f32 %v14421_v2, %v17850_v18  ;;  %v17856_v18 = vld [vmem:[#allocation32_spill] sm:$0xff] }
 0x6cd   :  { %v14587_v43 = vmul.f32 %v14421_v2, %v17851_v23  ;;  %v14591_v46 = vmul.f32 %v14421_v2, %v17852_v60  ;;  %v14595_v52 = vmul.f32 %v14421_v2, %v17853_v59  ;;  %v14599_v0 = vmul.f32 %v14421_v2, %v17854_v57 }
 0x6ce   :  { %v14603_v8 = vmul.f32 %v14421_v2, %v17855_v28  ;;  %v14607_v23 = vmul.f32 %v14421_v2, %v17856_v18  ;;  %v14611_v60 = vmul.f32 %v14421_v2, %v17857_v19  ;;  %v14615_v59 = vmul.f32 %v14421_v2, %v13957_v61 }
 0x6cf   :  { %v14619_v57 = vmul.f32 %v14421_v2, %v17836_v25  ;;  %v14623_v28 = vmul.f32 %v14421_v2, %v13967_v30  ;;  %v14627_v18 = vmul.f32 %v14421_v2, %v17837_v38  ;;  %v14631_v19 = vmul.f32 %v14421_v2, %v17862_v26 }
 0x6d0   :  { %17858 = vst [vmem:[#allocation34_spill] sm:$0xff] %v14611_v60  ;;  %17859 = vst [vmem:[#allocation35_spill] sm:$0xff] %v14615_v59  ;;  %v17863_v60 = vld [vmem:[#allocation7_spill] sm:$0xff]  ;;  %v17864_v59 = vld [vmem:[#allocation9_spill] sm:$0xff]  ;;  %v14651_v26 = vmul.f32 %v14421_v2, %v14002_v45 }
 0x6d1   :  { %17860 = vst [vmem:[#allocation11_spill] sm:$0xff] %v14619_v57  ;;  %17861 = vst [vmem:[#allocation14_spill] sm:$0xff] %v14623_v28  ;;  %v14635_v61 = vmul.f32 %v14421_v2, %v17863_v60  ;;  %v14639_v25 = vmul.f32 %v14421_v2, %v17864_v59  ;;  %v17865_v57 = vld [vmem:[#allocation8_spill] sm:$0xff]  ;;  %v14655_v60 = vmul.f32 %v14421_v2, %v17840_v21 }
 0x6d2   :  { %v14643_v30 = vmul.f32 %v14421_v2, %v17865_v57  ;;  %v17866_v28 = vld [vmem:[#allocation12_spill] sm:$0xff]  ;;  %17868 = vst [vmem:[#allocation5_spill] sm:$0xff] %v14651_v26  ;;  %v14659_v59 = vmul.f32 %v14421_v2, %v17841_v29  ;;  %v14663_v57 = vmul.f32 %v14421_v2, %v17842_v48  ;;  %v17870_v26 = vld [vmem:[#allocation15_spill] sm:$0xff]  ;;  %v14679_v29 = vmul.f32 %v14421_v2, %v14037_v31 }
 0x6d3   :  { %v14647_v38 = vmul.f32 %v14421_v2, %v17866_v28  ;;  %v14667_v28 = vmul.f32 %v14421_v2, %v14022_v17  ;;  %v14675_v21 = vmul.f32 %v14421_v2, %v17870_v26  ;;  %v14683_v48 = vadd.f32 %v14450_v51, %v14427_v40 }
 0x6d4   :  { %v14687_v17 = vadd.f32 %v14450_v51, %v14431_v55  ;;  %v14695_v26 = vadd.f32 %v14450_v51, %v14439_v12  ;;  %v14699_v31 = vadd.f32 %v14450_v51, %v14443_v32  ;;  %v14707_v40 = vadd.f32 %v14450_v51, %v14454_v16 }
 0x6d5   :  { %17867 = vst [vmem:[#allocation13_spill] sm:$0xff] %v14647_v38  ;;  %v17869_v38 = vld [vmem:[#allocation16_spill] sm:$0xff]  ;;  %v14711_v55 = vadd.f32 %v14450_v51, %v14458_v54  ;;  %v14719_v12 = vadd.f32 %v14450_v51, %v14466_v11  ;;  %v14723_v32 = vadd.f32 %v14450_v51, %v14470_v27  ;;  %v14731_v16 = vadd.f32 %v14450_v51, %v14478_v42 }
 0x6d6   :  { %v14671_v45 = vmul.f32 %v14421_v2, %v17869_v38  ;;  %v14691_v38 = vadd.f32 %v14450_v51, %v14435_v7  ;;  %v14703_v2 = vadd.f32 %v14450_v51, %v14447_v13  ;;  %v14715_v7 = vadd.f32 %v14450_v51, %v14462_v33 }
 0x6d7   :  { %v14727_v13 = vadd.f32 %v14450_v51, %v14474_v10  ;;  %v14735_v54 = vadd.f32 %v14450_v51, %v14483_v36  ;;  %v14739_v33 = vadd.f32 %v14450_v51, %v14487_v20  ;;  %v14743_v11 = vadd.f32 %v14450_v51, %v14491_v39 }
 0x6d8   :  { %v14747_v27 = vadd.f32 %v14450_v51, %v14495_v49  ;;  %v14751_v10 = vadd.f32 %v14450_v51, %v14499_v63  ;;  %v14755_v42 = vadd.f32 %v14450_v51, %v14503_v34  ;;  %v14759_v36 = vadd.f32 %v14450_v51, %v14507_v47 }
 0x6d9   :  { %v14763_v20 = vadd.f32 %v14450_v51, %v14511_v35  ;;  %v14767_v39 = vadd.f32 %v14450_v51, %v14515_v9  ;;  %v14771_v49 = vadd.f32 %v14450_v51, %v14519_v62  ;;  %v14775_v63 = vadd.f32 %v14450_v51, %v14523_v44 }
 0x6da   :  { %v14779_v34 = vadd.f32 %v14450_v51, %v14527_v50  ;;  %v14783_v47 = vadd.f32 %v14450_v51, %v14531_v1  ;;  %v14787_v35 = vadd.f32 %v14450_v51, %v14535_v15  ;;  %v14791_v9 = vadd.f32 %v14450_v51, %v14539_v41 }
 0x6db   :  { %v14795_v62 = vadd.f32 %v14450_v51, %v14543_v37  ;;  %v14799_v44 = vadd.f32 %v14450_v51, %v14547_v22  ;;  %v14803_v50 = vadd.f32 %v14450_v51, %v14551_v14  ;;  %v14807_v1 = vadd.f32 %v14450_v51, %v14555_v6 }
 0x6dc   :  { %v14811_v15 = vadd.f32 %v14450_v51, %v14559_v56  ;;  %v14815_v41 = vadd.f32 %v14450_v51, %v14563_v58  ;;  %v14819_v37 = vadd.f32 %v14450_v51, %v14567_v53  ;;  %v14823_v22 = vadd.f32 %v14450_v51, %v14571_v4 }
 0x6dd   :  { %v14827_v14 = vadd.f32 %v14450_v51, %v14575_v24  ;;  %v14831_v6 = vadd.f32 %v14450_v51, %v14579_v5  ;;  %v14835_v56 = vadd.f32 %v14450_v51, %v14583_v3  ;;  %v14839_v58 = vadd.f32 %v14450_v51, %v14587_v43  ;;  %v17876_v43 = vld [vmem:[#allocation34_spill] sm:$0xff] }
 0x6de   :  { %v14843_v53 = vadd.f32 %v14450_v51, %v14591_v46  ;;  %v14847_v4 = vadd.f32 %v14450_v51, %v14595_v52  ;;  %v14851_v24 = vadd.f32 %v14450_v51, %v14599_v0  ;;  %v14855_v5 = vadd.f32 %v14450_v51, %v14603_v8 }
 0x6df   :  { %v14859_v3 = vadd.f32 %v14450_v51, %v14607_v23  ;;  %v14863_v46 = vadd.f32 %v14450_v51, %v17876_v43  ;;  %v14879_v23 = vadd.f32 %v14450_v51, %v14627_v18  ;;  %v14883_v43 = vadd.f32 %v14450_v51, %v14631_v19 }
 0x6e0   :  { %17871 = vst [vmem:[#allocation6_spill] sm:$0xff] %v14843_v53  ;;  %17872 = vst [vmem:[#allocation22_spill] sm:$0xff] %v14847_v4  ;;  %v17878_v53 = vld [vmem:[#allocation35_spill] sm:$0xff] }
 0x6e1   :  { %17873 = vst [vmem:[#allocation4_spill] sm:$0xff] %v14851_v24  ;;  %17874 = vst [vmem:[#allocation23_spill] sm:$0xff] %v14855_v5  ;;  %v14867_v52 = vadd.f32 %v14450_v51, %v17878_v53  ;;  %v17879_v4 = vld [vmem:[#allocation11_spill] sm:$0xff]  ;;  %v17880_v24 = vld [vmem:[#allocation14_spill] sm:$0xff]  ;;  %v14887_v53 = vadd.f32 %v14450_v51, %v14635_v61  ;;  %v14907_v61 = vadd.f32 %v14450_v51, %v14655_v60 }
 0x6e2   :  { %17875 = vst [vmem:[#allocation24_spill] sm:$0xff] %v14859_v3  ;;  %17877 = vst [vmem:[#allocation26_spill] sm:$0xff] %v14863_v46  ;;  %v14871_v0 = vadd.f32 %v14450_v51, %v17879_v4  ;;  %v14875_v8 = vadd.f32 %v14450_v51, %v17880_v24  ;;  %v14891_v4 = vadd.f32 %v14450_v51, %v14639_v25 }
 0x6e3   :  { %17882 = vst [vmem:[#allocation28_spill] sm:$0xff] %v14879_v23  ;;  %v14895_v24 = vadd.f32 %v14450_v51, %v14643_v30  ;;  %v17884_v23 = vld [vmem:[#allocation5_spill] sm:$0xff]  ;;  %v14911_v25 = vadd.f32 %v14450_v51, %v14659_v59  ;;  %v14915_v30 = vadd.f32 %v14450_v51, %v14663_v57  ;;  %v14927_v60 = vadd.f32 %v14450_v51, %v14675_v21 }
 0x6e4   :  { %17881 = vst [vmem:[#allocation27_spill] sm:$0xff] %v14875_v8  ;;  %v17883_v8 = vld [vmem:[#allocation13_spill] sm:$0xff]  ;;  %v14903_v19 = vadd.f32 %v14450_v51, %v17884_v23  ;;  %v14923_v23 = vadd.f32 %v14450_v51, %v14671_v45  ;;  %v14931_v59 = vadd.f32 %v14450_v51, %v14679_v29  ;;  %v17609_v57 = vmax.f32 %v14687_v17, 0.0 }
 0x6e5   :  { %v14899_v18 = vadd.f32 %v14450_v51, %v17883_v8  ;;  %17885 = vst [vmem:[#allocation29_spill] sm:$0xff] %v14911_v25  ;;  %17886 = vst [vmem:[#allocation30_spill] sm:$0xff] %v14915_v30  ;;  %v14919_v8 = vadd.f32 %v14450_v51, %v14667_v28  ;;  %v5048_v25 = vmax.f32 %v14683_v48, 0.0  ;;  %v17607_v30 = vmax.f32 %v14691_v38, 0.0 }
 0x6e6   :  { %17888 = vst [vmem:[#allocation32_spill] sm:$0xff] %v14923_v23  ;;  %17889 = vst [vmem:[#allocation33_spill] sm:$0xff] %v14927_v60  ;;  %v17610_v45 = vmax.f32 %v14703_v2, 0.0  ;;  %v17611_v23 = vmax.f32 %v14707_v40, 0.0  ;;  %v17612_v60 = vmax.f32 %v14715_v7, 0.0  ;;  %v17613_v51 = vmax.f32 %v14719_v12, 0.0 }
 0x6e7   :  { %17887 = vst [vmem:[#allocation31_spill] sm:$0xff] %v14919_v8  ;;  %v17608_v8 = vmax.f32 %v14699_v31, 0.0  ;;  %5112 = vst [vmem:[#allocation2 + $0x19] sm:$0xff] %v5048_v25  ;;  %7122 = vmatprep.mubr.f32.mxu1 %v5048_v25  ;;  %v17890_v21 = vmax.f32 %v14695_v26, 0.0  ;;  %v17614_v25 = vmax.f32 %v14735_v54, 0.0  ;;  %v17615_v29 = vmax.f32 %v14739_v33, 0.0 }
 0x6e8   :  { %5113 = vst [vmem:[#allocation2 + $0x21] sm:$0xff] %v17609_v57  ;;  %5114 = vst [vmem:[#allocation2 + $0x31] sm:$0xff] %v17607_v30  ;;  %v17616_v48 = vmax.f32 %v14743_v11, 0.0  ;;  %v17891_v30 = vmax.f32 %v14711_v55, 0.0  ;;  %v17619_v57 = vmax.f32 %v14775_v63, 0.0  ;;  %v17622_v28 = vmax.f32 %v14811_v15, 0.0 }
 0x6e9   :  { %5115 = vst [vmem:[#allocation2 + $0x39] sm:$0xff] %v17890_v21  ;;  %5116 = vst [vmem:[#allocation2 + $0x49] sm:$0xff] %v17608_v8  ;;  %v17620_v21 = vmax.f32 %v14751_v10, 0.0  ;;  %v17618_v8 = vmax.f32 %v14771_v49, 0.0 }
 0x6ea   :  { %5117 = vst [vmem:[#allocation2 + $0x51] sm:$0xff] %v17610_v45  ;;  %5118 = vst [vmem:[#allocation2 + $0x61] sm:$0xff] %v17611_v23  ;;  %v17892_v45 = vmax.f32 %v14723_v32, 0.0  ;;  %v17893_v23 = vmax.f32 %v14727_v13, 0.0 }
 0x6eb   :  { %5119 = vst [vmem:[#allocation2 + $0x69] sm:$0xff] %v17891_v30  ;;  %5120 = vst [vmem:[#allocation2 + $0x79] sm:$0xff] %v17612_v60  ;;  %v17894_v30 = vmax.f32 %v14731_v16, 0.0  ;;  %v17617_v60 = vmax.f32 %v14767_v39, 0.0 }
 0x6ec   :  { %5121 = vst [vmem:[#allocation2 + $0x81] sm:$0xff] %v17613_v51  ;;  %5122 = vst [vmem:[#allocation2 + $0x91] sm:$0xff] %v17892_v45  ;;  %v17621_v45 = vmax.f32 %v14783_v47, 0.0  ;;  %v5079_v51 = vmax.f32 %v14807_v1, 0.0  ;;  %v17908_v1 = vld [vmem:[#allocation4_spill] sm:$0xff] }
 0x6ed   :  { %5123 = vst [vmem:[#allocation2 + $0x99] sm:$0xff] %v17893_v23  ;;  %5124 = vst [vmem:[#allocation2 + $0xa9] sm:$0xff] %v17894_v30  ;;  %v17895_v23 = vmax.f32 %v14747_v27, 0.0  ;;  %v5078_v30 = vmax.f32 %v14803_v50, 0.0  ;;  %v17904_v50 = vld [vmem:[#allocation6_spill] sm:$0xff] }
 0x6ee   :  { %5125 = vst [vmem:[#allocation2 + $0xb1] sm:$0xff] %v17614_v25  ;;  %5126 = vst [vmem:[#allocation2 + $0xc1] sm:$0xff] %v17615_v29  ;;  %v17896_v25 = vmax.f32 %v14755_v42, 0.0  ;;  %v17897_v29 = vmax.f32 %v14759_v36, 0.0 }
 0x6ef   :  { %5127 = vst [vmem:[#allocation2 + $0xc9] sm:$0xff] %v17616_v48  ;;  %5128 = vst [vmem:[#allocation2 + $0xd9] sm:$0xff] %v17895_v23  ;;  %v17898_v48 = vmax.f32 %v14763_v20, 0.0  ;;  %v17623_v23 = vmax.f32 %v14799_v44, 0.0 }
 0x6f0   :  { %5129 = vst [vmem:[#allocation2 + $0xe1] sm:$0xff] %v17620_v21  ;;  %5130 = vst [vmem:[#allocation2 + $0xf1] sm:$0xff] %v17896_v25  ;;  %v17913_v25 = vmax.f32 %v14687_v17, 0.0  ;;  %v17918_v17 = vmax.f32 %v17904_v50, 0.0 }
 0x6f1   :  { %5131 = vst [vmem:[#allocation2 + $0xf9] sm:$0xff] %v17897_v29  ;;  %5132 = vst [vmem:[#allocation2 + $0x109] sm:$0xff] %v17898_v48  ;;  %v17899_v29 = vmax.f32 %v14779_v34, 0.0  ;;  %v5100_v48 = vmax.f32 %v14891_v4, 0.0  ;;  %v5102_v4 = vmax.f32 %v14899_v18, 0.0 }
 0x6f2   :  { %5133 = vst [vmem:[#allocation2 + $0x111] sm:$0xff] %v17617_v60  ;;  %5134 = vst [vmem:[#allocation2 + $0x121] sm:$0xff] %v17618_v8  ;;  %v17900_v60 = vmax.f32 %v14787_v35, 0.0  ;;  %v17901_v8 = vmax.f32 %v14791_v9, 0.0 }
 0x6f3   :  { %5135 = vst [vmem:[#allocation2 + $0x129] sm:$0xff] %v17619_v57  ;;  %5136 = vst [vmem:[#allocation2 + $0x139] sm:$0xff] %v17899_v29  ;;  %v17902_v57 = vmax.f32 %v14795_v62, 0.0  ;;  %v15026_v29 = vld [vmem:[#allocation2 + $0x18] sm:$0xff] }
 0x6f4   :  { %5137 = vst [vmem:[#allocation2 + $0x141] sm:$0xff] %v17621_v45  ;;  %5138 = vst [vmem:[#allocation2 + $0x151] sm:$0xff] %v17900_v60  ;;  %7123 = vmatmul.mubr.f32.gmra.mrb[68].mxu1 %v15026_v29  ;;  %v15039_v60 = vld [vmem:[#allocation2 + $0x3a] sm:$0xff] }
 0x6f5   :  { %5139 = vst [vmem:[#allocation2 + $0x159] sm:$0xff] %v17901_v8  ;;  %5140 = vst [vmem:[#allocation2 + $0x169] sm:$0xff] %v17902_v57  ;;  %v15036_v8 = vld [vmem:[#allocation2 + $0x32] sm:$0xff]  ;;  %7127 = vmatprep.mubr.f32.mxu1 %v17913_v25  ;;  %v15069_v25 = vld [vmem:[#allocation2 + $0x4a] sm:$0xff] }
 0x6f6   :  { %17903 = vst [vmem:[#allocation36_spill] sm:$0xff] %v15026_v29  ;;  %5141 = vst [vmem:[#allocation2 + $0x171] sm:$0xff] %v17623_v23  ;;  %v17907_v57 = vld [vmem:[#allocation22_spill] sm:$0xff]  ;;  %v17912_v23 = vmax.f32 %v14827_v14, 0.0  ;;  %9834 = vmatprep.mubr.f32.mxu0 %v15036_v8  ;;  %v17914_v45 = vld [vmem:[#allocation27_spill] sm:$0xff] }
 0x6f7   :  { %5142 = vst [vmem:[#allocation2 + $0x181] sm:$0xff] %v5078_v30  ;;  %5143 = vst [vmem:[#allocation2 + $0x189] sm:$0xff] %v5079_v51  ;;  %v17909_v30 = vmax.f32 %v14815_v41, 0.0  ;;  %v17910_v51 = vmax.f32 %v14819_v37, 0.0  ;;  %9835 = vmatmul.mubr.f32.vlgmr.msra.gmra.mrb[128].mxu0 %v15039_v60  ;;  %v6948_v29 = vld [vmem:[%s17502_s4 + $0x160] sm:$0xff] }
 0x6f8   :  { %5144 = vst [vmem:[#allocation2 + $0x1c9] sm:$0xff] %v17622_v28  ;;  %17905 = vst [vmem:[#allocation7_spill] sm:$0xff] %v15036_v8  ;;  %v17911_v28 = vmax.f32 %v14823_v22, 0.0  ;;  %v17924_v8 = vmax.f32 %v14859_v3, 0.0  ;;  %9837 = vmatprep.mubr.f32.mxu0 %v15069_v25  ;;  %v17929_v3 = vmax.f32 %v17914_v45, 0.0 }
 0x6f9   :  { %17906 = vst [vmem:[#allocation9_spill] sm:$0xff] %v15039_v60  ;;  %5145 = vst [vmem:[#allocation2 + $0x1d1] sm:$0xff] %v17909_v30  ;;  %v17920_v30 = vld [vmem:[#allocation28_spill] sm:$0xff]  ;;  %v17923_v60 = vmax.f32 %v14855_v5, 0.0  ;;  %v17931_v5 = vld [vmem:[#allocation30_spill] sm:$0xff] }
 0x6fa   :  { %5146 = vst [vmem:[#allocation2 + $0x1e1] sm:$0xff] %v17910_v51  ;;  %5147 = vst [vmem:[#allocation2 + $0x1e9] sm:$0xff] %v17911_v28  ;;  %v17915_v51 = vmax.f32 %v14831_v6, 0.0  ;;  %v17916_v28 = vmax.f32 %v14835_v56, 0.0  ;;  %v5097_v21 = vmax.f32 %v17920_v30, 0.0  ;;  %v15087_v30 = vld [vmem:[#allocation2 + $0x20] sm:$0xff] }
 0x6fb   :  { %5148 = vst [vmem:[#allocation2 + $0x1f9] sm:$0xff] %v17912_v23  ;;  %v17917_v23 = vmax.f32 %v14839_v58, 0.0  ;;  %5152 = vst [vmem:[#allocation2 + $0x229] sm:$0xff] %v17918_v17  ;;  %v17922_v17 = vmax.f32 %v17908_v1, 0.0  ;;  %7128 = vmatmul.mubr.f32.gmra.mrb[70].mxu1 %v15087_v30  ;;  %v17932_v1 = vld [vmem:[#allocation31_spill] sm:$0xff] }
 0x6fc   :  { %5149 = vst [vmem:[#allocation2 + $0x201] sm:$0xff] %v17915_v51  ;;  %5150 = vst [vmem:[#allocation2 + $0x211] sm:$0xff] %v17916_v28  ;;  %v5098_v51 = vmax.f32 %v14883_v43, 0.0  ;;  %v5099_v28 = vmax.f32 %v14887_v53, 0.0  ;;  %v6949_v43 = vld [vmem:[%s17502_s4 + $0x168] sm:$0xff]  ;;  %v5101_v53 = vmax.f32 %v14895_v24, 0.0 }
 0x6fd   :  { %5151 = vst [vmem:[#allocation2 + $0x219] sm:$0xff] %v17917_v23  ;;  %17919 = vst [vmem:[#allocation8_spill] sm:$0xff] %v15069_v25  ;;  %v17921_v23 = vmax.f32 %v17907_v57, 0.0  ;;  %v17928_v25 = vmax.f32 %v14871_v0, 0.0  ;;  %v17930_v24 = vld [vmem:[#allocation29_spill] sm:$0xff]  ;;  %v17933_v57 = vld [vmem:[#allocation32_spill] sm:$0xff] }
 0x6fe   :  { %5154 = vst [vmem:[#allocation2 + $0x241] sm:$0xff] %v17922_v17  ;;  %5155 = vst [vmem:[#allocation2 + $0x249] sm:$0xff] %v17923_v60  ;;  %v5104_v17 = vmax.f32 %v14907_v61, 0.0  ;;  %v17926_v60 = vmax.f32 %v14863_v46, 0.0  ;;  %v5105_v18 = vmax.f32 %v17930_v24, 0.0  ;;  %v5107_v61 = vmax.f32 %v17932_v1, 0.0 }
 0x6ff   :  { %5153 = vst [vmem:[#allocation2 + $0x231] sm:$0xff] %v17921_v23  ;;  %5156 = vst [vmem:[#allocation2 + $0x259] sm:$0xff] %v17924_v8  ;;  %v5103_v23 = vmax.f32 %v14903_v19, 0.0  ;;  %v17927_v8 = vmax.f32 %v14867_v52, 0.0  ;;  %v5106_v19 = vmax.f32 %v17931_v5, 0.0  ;;  %v5108_v46 = vmax.f32 %v17933_v57, 0.0 }
 0x700   :  { %17925 = vst [vmem:[#allocation12_spill] sm:$0xff] %v15087_v30  ;;  %5157 = vst [vmem:[#allocation2 + $0x261] sm:$0xff] %v17926_v60  ;;  %v15109_v60 = vld [vmem:[#allocation2 + $0x52] sm:$0xff]  ;;  %v5110_v30 = vmax.f32 %v14931_v59, 0.0  ;;  %v15116_v5 = vld [vmem:[#allocation2 + $0x62] sm:$0xff] }
 0x701   :  { %5158 = vst [vmem:[#allocation2 + $0x271] sm:$0xff] %v17927_v8  ;;  %5159 = vst [vmem:[#allocation2 + $0x279] sm:$0xff] %v17928_v25  ;;  %v17934_v25 = vmax.f32 %v14691_v38, 0.0  ;;  %9838 = vmatmul.mubr.f32.gmra.mrb[130].mxu0 %v15109_v60  ;;  %v6951_v38 = vld [vmem:[%s17502_s4 + $0x178] sm:$0xff]  ;;  %v15125_v59 = vld [vmem:[#allocation2 + $0x30] sm:$0xff] }
 0x702   :  { %5160 = vst [vmem:[#allocation2 + $0x289] sm:$0xff] %v17929_v3  ;;  %5161 = vst [vmem:[#allocation2 + $0x291] sm:$0xff] %v5097_v21  ;;  %v17935_v3 = vld [vmem:[#allocation33_spill] sm:$0xff]  ;;  %v10221_v21 = vpack.c.bf16 %v6949_v43, %v6948_v29  ;;  %9840 = vmatprep.mubr.f32.mxu0 %v15116_v5  ;;  %v17936_v29 = vmax.f32 %v14695_v26, 0.0  ;;  %v15143_v26 = vld [vmem:[#allocation2 + $0x38] sm:$0xff] }
 0x703   :  { %5162 = vst [vmem:[#allocation2 + $0x2a1] sm:$0xff] %v5098_v51  ;;  %5163 = vst [vmem:[#allocation2 + $0x2a9] sm:$0xff] %v5099_v28  ;;  %7132 = vmatprep.mubr.f32.mxu1 %v17934_v25  ;;  %v5109_v8 = vmax.f32 %v17935_v3, 0.0  ;;  %v15128_v1 = vld [vmem:[#allocation2 + $0x6a] sm:$0xff]  ;;  %v15133_v51 = vld [vmem:[#allocation2 + $0x7a] sm:$0xff]  ;;  %v17940_v25 = vmax.f32 %v14707_v40, 0.0 }
 0x704   :  { %5164 = vst [vmem:[#allocation2 + $0x2b9] sm:$0xff] %v5100_v48  ;;  %5165 = vst [vmem:[#allocation2 + $0x2c1] sm:$0xff] %v5101_v53  ;;  %v6950_v48 = vld [vmem:[%s17502_s4 + $0x170] sm:$0xff]  ;;  %7133 = vmatmul.mubr.f32.gmra.mrb[72].mxu1 %v15125_v59  ;;  %v6952_v28 = vld [vmem:[%s17502_s4 + $0x180] sm:$0xff]  ;;  %v17938_v53 = vmax.f32 %v14699_v31, 0.0 }
 0x705   :  { %5166 = vst [vmem:[#allocation2 + $0x2d1] sm:$0xff] %v5102_v4  ;;  %5167 = vst [vmem:[#allocation2 + $0x2d9] sm:$0xff] %v5103_v23  ;;  %7137 = vmatprep.mubr.f32.mxu1 %v17936_v29  ;;  %10222 = vmatpush1.bf16.msra.mxu1 %v10221_v21  ;;  %v10224_v57 = vpack.c.bf16 %v6951_v38, %v6950_v48  ;;  %v15146_v43 = vld [vmem:[#allocation2 + $0x82] sm:$0xff]  ;;  %v15151_v23 = vld [vmem:[#allocation2 + $0x92] sm:$0xff]  ;;  %v17941_v21 = vmax.f32 %v14711_v55, 0.0  ;;  %v17942_v29 = vmax.f32 %v14715_v7, 0.0 }
 0x706   :  { %5168 = vst [vmem:[#allocation2 + $0x2e9] sm:$0xff] %v5104_v17  ;;  %5169 = vst [vmem:[#allocation2 + $0x2f1] sm:$0xff] %v5105_v18  ;;  %9841 = vmatmul.mubr.f32.gmra.mrb[132].mxu0 %v15128_v1  ;;  %v15155_v17 = vld [vmem:[#allocation2 + $0x48] sm:$0xff]  ;;  %v15158_v24 = vld [vmem:[#allocation2 + $0x9a] sm:$0xff]  ;;  %v17939_v18 = vmax.f32 %v14703_v2, 0.0 }
 0x707   :  { %5170 = vst [vmem:[#allocation2 + $0x301] sm:$0xff] %v5106_v19  ;;  %5171 = vst [vmem:[#allocation2 + $0x309] sm:$0xff] %v5107_v61  ;;  %9843 = vmatprep.mubr.f32.mxu0 %v15133_v51  ;;  %v6210_v31 = vld [vmem:[#allocation2 + $0xaa] sm:$0xff]  ;;  %v6211_v61 = vld [vmem:[#allocation2 + $0xb2] sm:$0xff] }
 0x708   :  { %5172 = vst [vmem:[#allocation2 + $0x319] sm:$0xff] %v5108_v46  ;;  %5173 = vst [vmem:[#allocation2 + $0x321] sm:$0xff] %v5109_v8  ;;  %v17937_v46 = vmov 0.0|0.0   ;;  %7138 = vmatmul.mubr.f32.gmra.mrb[74].mxu1 %v15143_v26  ;;  %v15164_v19 = vld [vmem:[#allocation2 + $0x50] sm:$0xff]  ;;  %v6212_v3 = vld [vmem:[#allocation2 + $0xc2] sm:$0xff] }
 0x709   :  { %5174 = vst [vmem:[#allocation2 + $0x331] sm:$0xff] %v5110_v30  ;;  %10223 = vmatprep.subr.bf16.mxu1 %v17937_v46  ;;  %v6953_v30 = vld [vmem:[%s17502_s4 + $0x188] sm:$0xff]  ;;  %7142 = vmatprep.mubr.f32.mxu1 %v17938_v53  ;;  %v15169_v2 = vld [vmem:[#allocation2 + $0x60] sm:$0xff]  ;;  %v15182_v55 = vld [vmem:[#allocation2 + $0x78] sm:$0xff] }
 0x70a   :  { %10225 = vmatpush1.bf16.msra.mxu1 %v10224_v57  ;;  %v10227_v4 = vpack.c.bf16 %v6953_v30, %v6952_v28  ;;  %9844 = vmatmul.mubr.f32.gmra.mrb[134].mxu0 %v15146_v43  ;;  %v6213_v8 = vld [vmem:[#allocation2 + $0xca] sm:$0xff]  ;;  %v6214_v48 = vld [vmem:[#allocation2 + $0xda] sm:$0xff]  ;;  %v6215_v40 = vld [vmem:[#allocation2 + $0xe2] sm:$0xff] }
 0x70b   :  { %10226 = vmatprep.subr.bf16.mxu1 %v17937_v46  ;;  %9846 = vmatprep.mubr.f32.mxu0 %v15151_v23  ;;  %v15174_v38 = vld [vmem:[#allocation2 + $0x68] sm:$0xff]  ;;  %v6216_v57 = vld [vmem:[#allocation2 + $0xf2] sm:$0xff]  ;;  %v6956_v7 = vld [vmem:[%s17502_s4 + $0x1a0] sm:$0xff] }
 0x70c   :  { %7143 = vmatmul.mubr.f32.gmra.mrb[76].mxu1 %v15155_v17  ;;  %v6954_v28 = vld [vmem:[%s17502_s4 + $0x190] sm:$0xff]  ;;  %v6955_v30 = vld [vmem:[%s17502_s4 + $0x198] sm:$0xff] }
 0x70d   :  { %7147 = vmatprep.mubr.f32.mxu1 %v17939_v18  ;;  %v10230_v53 = vpack.c.bf16 %v6955_v30, %v6954_v28  ;;  %v17943_v18 = vmax.f32 %v14719_v12, 0.0  ;;  %v6220_v12 = vld [vmem:[#allocation2 + $0x122] sm:$0xff]  ;;  %v6222_v30 = vld [vmem:[#allocation2 + $0x13a] sm:$0xff] }
 0x70e   :  { %10228 = vmatpush1.bf16.msra.mxu1 %v10227_v4  ;;  %9847 = vmatmul.mubr.f32.gmra.mrb[136].mxu0 %v15158_v24  ;;  %v6217_v4 = vld [vmem:[#allocation2 + $0xfa] sm:$0xff] }
 0x70f   :  { %10229 = vmatprep.subr.bf16.mxu1 %v17937_v46  ;;  %9849 = vmatprep.mubr.f32.mxu0 %v6210_v31  ;;  %v6957_v31 = vld [vmem:[%s17502_s4 + $0x1a8] sm:$0xff] }
 0x710   :  { %7148 = vmatmul.mubr.f32.gmra.mrb[78].mxu1 %v15164_v19 }
 0x711   :  { %7152 = vmatprep.mubr.f32.mxu1 %v17940_v25  ;;  %v10233_v25 = vpack.c.bf16 %v6957_v31, %v6956_v7  ;;  %v6223_v7 = vld [vmem:[#allocation2 + $0x142] sm:$0xff]  ;;  %v6225_v31 = vld [vmem:[#allocation2 + $0x15a] sm:$0xff] }
 0x712   :  { %9850 = vmatmul.mubr.f32.gmra.mrb[138].mxu0 %v6211_v61  ;;  %v6218_v61 = vld [vmem:[#allocation2 + $0x10a] sm:$0xff]  ;;  %10231 = vmatpush1.bf16.msra.mxu1 %v10230_v53  ;;  %v15214_v53 = vld [vmem:[#allocation2 + $0x98] sm:$0xff] }
 0x713   :  { %9852 = vmatprep.mubr.f32.mxu0 %v6212_v3  ;;  %v15196_v3 = vld [vmem:[#allocation2 + $0x80] sm:$0xff]  ;;  %10232 = vmatprep.subr.bf16.mxu1 %v17937_v46 }
 0x714   :  { %7153 = vmatmul.mubr.f32.gmra.mrb[80].mxu1 %v15169_v2 }
 0x715   :  { %7157 = vmatprep.mubr.f32.mxu1 %v17941_v21  ;;  %v17944_v21 = vmax.f32 %v14723_v32, 0.0  ;;  %v6221_v32 = vld [vmem:[#allocation2 + $0x12a] sm:$0xff] }
 0x716   :  { %9853 = vmatmul.mubr.f32.gmra.mrb[140].mxu0 %v6213_v8  ;;  %v6219_v8 = vld [vmem:[#allocation2 + $0x112] sm:$0xff]  ;;  %10234 = vmatpush1.bf16.msra.mxu1 %v10233_v25  ;;  %v6226_v25 = vld [vmem:[#allocation2 + $0x16a] sm:$0xff] }
 0x717   :  { %9855 = vmatprep.mubr.f32.mxu0 %v6214_v48  ;;  %v15202_v48 = vld [vmem:[#allocation2 + $0x90] sm:$0xff]  ;;  %10235 = vmatprep.subr.bf16.mxu1 %v17937_v46 }
 0x718   :  { %7158 = vmatmul.mubr.f32.gmra.mrb[82].mxu1 %v15174_v38 }
 0x719   :  { %7162 = vmatprep.mubr.f32.mxu1 %v17942_v29  ;;  %v6959_v29 = vld [vmem:[%s17502_s4 + $0x1b8] sm:$0xff] }
 0x71a   :  { %9856 = vmatmul.mubr.f32.gmra.mrb[142].mxu0 %v6215_v40  ;;  %v6958_v40 = vld [vmem:[%s17502_s4 + $0x1b0] sm:$0xff] }
 0x71b   :  { %9858 = vmatprep.mubr.f32.mxu0 %v6216_v57  ;;  %v17945_v57 = vmax.f32 %v14727_v13, 0.0  ;;  %v10236_v28 = vpack.c.bf16 %v6959_v29, %v6958_v40  ;;  %v15220_v13 = vld [vmem:[#allocation2 + $0xa8] sm:$0xff]  ;;  %v15230_v40 = vld [vmem:[#allocation2 + $0xc0] sm:$0xff] }
 0x71c   :  { %7163 = vmatmul.mubr.f32.gmra.mrb[84].mxu1 %v15182_v55  ;;  %v6960_v29 = vld [vmem:[%s17502_s4 + $0x1c0] sm:$0xff] }
 0x71d   :  { %7167 = vmatprep.mubr.f32.mxu1 %v17943_v18  ;;  %10237 = vmatpush1.bf16.msra.mxu1 %v10236_v28  ;;  %v6224_v18 = vld [vmem:[#allocation2 + $0x152] sm:$0xff] }
 0x71e   :  { %9859 = vmatmul.mubr.f32.gmra.mrb[144].mxu0 %v6217_v4  ;;  %10238 = vmatprep.subr.bf16.mxu1 %v17937_v46  ;;  %v17946_v4 = vmax.f32 %v14731_v16, 0.0  ;;  %v6227_v16 = vld [vmem:[#allocation2 + $0x172] sm:$0xff] }
 0x71f   :  { %9861 = vmatprep.mubr.f32.mxu0 %v6218_v61  ;;  %v17947_v61 = vmax.f32 %v14735_v54, 0.0  ;;  %v6230_v54 = vld [vmem:[#allocation2 + $0x19a] sm:$0xff] }
 0x720   :  { %7168 = vmatmul.mubr.f32.gmra.mrb[86].mxu1 %v15196_v3 }
 0x721   :  { %7172 = vmatprep.mubr.f32.mxu1 %v17944_v21  ;;  %v17948_v21 = vmax.f32 %v14739_v33, 0.0  ;;  %v17949_v33 = vmax.f32 %v14743_v11, 0.0  ;;  %v6233_v11 = vld [vmem:[#allocation2 + $0x1ea] sm:$0xff] }
 0x722   :  { %9862 = vmatmul.mubr.f32.gmra.mrb[146].mxu0 %v6219_v8  ;;  %v15225_v8 = vld [vmem:[#allocation2 + $0xb0] sm:$0xff] }
 0x723   :  { %9864 = vmatprep.mubr.f32.mxu0 %v6220_v12  ;;  %v6228_v12 = vld [vmem:[#allocation2 + $0x182] sm:$0xff] }
 0x724   :  { %7173 = vmatmul.mubr.f32.gmra.mrb[88].mxu1 %v15202_v48 }
 0x725   :  { %7177 = vmatprep.mubr.f32.mxu1 %v17945_v57  ;;  %v6229_v57 = vld [vmem:[#allocation2 + $0x18a] sm:$0xff] }
 0x726   :  { %9865 = vmatmul.mubr.f32.gmra.mrb[148].mxu0 %v6221_v32  ;;  %v6961_v32 = vld [vmem:[%s17502_s4 + $0x1c8] sm:$0xff] }
 0x727   :  { %9867 = vmatprep.mubr.f32.mxu0 %v6222_v30  ;;  %v10239_v28 = vpack.c.bf16 %v6961_v32, %v6960_v29  ;;  %v15241_v30 = vld [vmem:[#allocation2 + $0xc8] sm:$0xff]  ;;  %v6963_v29 = vld [vmem:[%s17502_s4 + $0x1d8] sm:$0xff] }
 0x728   :  { %7178 = vmatmul.mubr.f32.gmra.mrb[90].mxu1 %v15214_v53  ;;  %v6237_v32 = vld [vmem:[#allocation2 + $0x21a] sm:$0xff] }
 0x729   :  { %7182 = vmatprep.mubr.f32.mxu1 %v17946_v4  ;;  %10240 = vmatpush1.bf16.msra.mxu1 %v10239_v28  ;;  %v17950_v4 = vmax.f32 %v14747_v27, 0.0  ;;  %v6235_v27 = vld [vmem:[#allocation2 + $0x202] sm:$0xff]  ;;  %v15268_v28 = vld [vmem:[#allocation2 + $0xf8] sm:$0xff] }
 0x72a   :  { %9868 = vmatmul.mubr.f32.gmra.mrb[150].mxu0 %v6223_v7  ;;  %v6231_v7 = vld [vmem:[#allocation2 + $0x1a2] sm:$0xff]  ;;  %10241 = vmatprep.subr.bf16.mxu1 %v17937_v46 }
 0x72b   :  { %9870 = vmatprep.mubr.f32.mxu0 %v6224_v18  ;;  %v6232_v18 = vld [vmem:[#allocation2 + $0x1e2] sm:$0xff] }
 0x72c   :  { %7183 = vmatmul.mubr.f32.gmra.mrb[92].mxu1 %v15220_v13 }
 0x72d   :  { %7187 = vmatprep.mubr.f32.mxu1 %v17947_v61  ;;  %v17951_v61 = vmax.f32 %v14751_v10, 0.0  ;;  %v6962_v10 = vld [vmem:[%s17502_s4 + $0x1d0] sm:$0xff] }
 0x72e   :  { %9871 = vmatmul.mubr.f32.gmra.mrb[152].mxu0 %v6225_v31  ;;  %v15247_v31 = vld [vmem:[#allocation2 + $0xd8] sm:$0xff] }
 0x72f   :  { %9873 = vmatprep.mubr.f32.mxu0 %v6226_v25  ;;  %v6234_v25 = vld [vmem:[#allocation2 + $0x1fa] sm:$0xff] }
 0x730   :  { %7188 = vmatmul.mubr.f32.gmra.mrb[94].mxu1 %v15225_v8 }
 0x731   :  { %7192 = vmatprep.mubr.f32.mxu1 %v17948_v21  ;;  %v17952_v21 = vmax.f32 %v14755_v42, 0.0  ;;  %v10242_v42 = vpack.c.bf16 %v6963_v29, %v6962_v10  ;;  %v15284_v10 = vld [vmem:[#allocation2 + $0x120] sm:$0xff]  ;;  %v17957_v29 = vmax.f32 %v14775_v63, 0.0  ;;  %v17958_v63 = vmax.f32 %v14779_v34, 0.0 }
 0x732   :  { %9874 = vmatmul.mubr.f32.gmra.mrb[154].mxu0 %v6227_v16  ;;  %v15252_v16 = vld [vmem:[#allocation2 + $0xe0] sm:$0xff] }
 0x733   :  { %9876 = vmatprep.mubr.f32.mxu0 %v6228_v12  ;;  %v6236_v12 = vld [vmem:[#allocation2 + $0x212] sm:$0xff]  ;;  %10243 = vmatpush1.bf16.msra.mxu1 %v10242_v42  ;;  %v6251_v34 = vld [vmem:[#allocation2 + $0x2c2] sm:$0xff] }
 0x734   :  { %7193 = vmatmul.mubr.f32.gmra.mrb[96].mxu1 %v15230_v40  ;;  %10244 = vmatprep.subr.bf16.mxu1 %v17937_v46 }
 0x735   :  { %7197 = vmatprep.mubr.f32.mxu1 %v17949_v33  ;;  %v6238_v33 = vld [vmem:[#allocation2 + $0x22a] sm:$0xff] }
 0x736   :  { %9877 = vmatmul.mubr.f32.gmra.mrb[156].mxu0 %v6229_v57  ;;  %v17953_v57 = vmax.f32 %v14759_v36, 0.0  ;;  %v15274_v36 = vld [vmem:[#allocation2 + $0x108] sm:$0xff] }
 0x737   :  { %9879 = vmatprep.mubr.f32.mxu0 %v6230_v54  ;;  %v15257_v54 = vld [vmem:[#allocation2 + $0xf0] sm:$0xff] }
 0x738   :  { %7198 = vmatmul.mubr.f32.gmra.mrb[98].mxu1 %v15241_v30 }
 0x739   :  { %7202 = vmatprep.mubr.f32.mxu1 %v17950_v4  ;;  %v17954_v4 = vmax.f32 %v14763_v20, 0.0  ;;  %v6243_v20 = vld [vmem:[#allocation2 + $0x262] sm:$0xff] }
 0x73a   :  { %9880 = vmatmul.mubr.f32.gmra.mrb[158].mxu0 %v6231_v7  ;;  %v6239_v7 = vld [vmem:[#allocation2 + $0x232] sm:$0xff] }
 0x73b   :  { %9882 = vmatprep.mubr.f32.mxu0 %v6232_v18  ;;  %v6240_v18 = vld [vmem:[#allocation2 + $0x242] sm:$0xff] }
 0x73c   :  { %7203 = vmatmul.mubr.f32.gmra.mrb[100].mxu1 %v15247_v31 }
 0x73d   :  { %7207 = vmatprep.mubr.f32.mxu1 %v17951_v61  ;;  %v17955_v61 = vmax.f32 %v14767_v39, 0.0  ;;  %v6245_v39 = vld [vmem:[#allocation2 + $0x27a] sm:$0xff] }
 0x73e   :  { %9883 = vmatmul.mubr.f32.gmra.mrb[160].mxu0 %v6233_v11  ;;  %v6241_v11 = vld [vmem:[#allocation2 + $0x24a] sm:$0xff] }
 0x73f   :  { %9885 = vmatprep.mubr.f32.mxu0 %v6234_v25  ;;  %v6242_v25 = vld [vmem:[#allocation2 + $0x25a] sm:$0xff] }
 0x740   :  { %7208 = vmatmul.mubr.f32.gmra.mrb[102].mxu1 %v15252_v16 }
 0x741   :  { %7212 = vmatprep.mubr.f32.mxu1 %v17952_v21  ;;  %v17956_v21 = vmax.f32 %v14771_v49, 0.0  ;;  %v6965_v49 = vld [vmem:[%s17502_s4 + $0x1e8] sm:$0xff] }
 0x742   :  { %9886 = vmatmul.mubr.f32.gmra.mrb[162].mxu0 %v6235_v27  ;;  %v15279_v27 = vld [vmem:[#allocation2 + $0x110] sm:$0xff] }
 0x743   :  { %9888 = vmatprep.mubr.f32.mxu0 %v6236_v12  ;;  %v6244_v12 = vld [vmem:[#allocation2 + $0x272] sm:$0xff] }
 0x744   :  { %7213 = vmatmul.mubr.f32.gmra.mrb[104].mxu1 %v15257_v54 }
 0x745   :  { %7217 = vmatprep.mubr.f32.mxu1 %v17953_v57  ;;  %v6246_v57 = vld [vmem:[#allocation2 + $0x28a] sm:$0xff] }
 0x746   :  { %9889 = vmatmul.mubr.f32.gmra.mrb[164].mxu0 %v6237_v32  ;;  %v6964_v32 = vld [vmem:[%s17502_s4 + $0x1e0] sm:$0xff] }
 0x747   :  { %9891 = vmatprep.mubr.f32.mxu0 %v6238_v33  ;;  %v10245_v42 = vpack.c.bf16 %v6965_v49, %v6964_v32  ;;  %v15295_v33 = vld [vmem:[#allocation2 + $0x128] sm:$0xff]  ;;  %v6966_v32 = vld [vmem:[%s17502_s4 + $0x1f0] sm:$0xff] }
 0x748   :  { %7218 = vmatmul.mubr.f32.gmra.mrb[106].mxu1 %v15268_v28  ;;  %v6254_v49 = vld [vmem:[#allocation2 + $0x2ea] sm:$0xff] }
 0x749   :  { %7222 = vmatprep.mubr.f32.mxu1 %v17954_v4  ;;  %10246 = vmatpush1.bf16.msra.mxu1 %v10245_v42  ;;  %v6248_v4 = vld [vmem:[#allocation2 + $0x2a2] sm:$0xff]  ;;  %v15322_v42 = vld [vmem:[#allocation2 + $0x158] sm:$0xff] }
 0x74a   :  { %9892 = vmatmul.mubr.f32.gmra.mrb[166].mxu0 %v6239_v7  ;;  %v6247_v7 = vld [vmem:[#allocation2 + $0x292] sm:$0xff]  ;;  %10247 = vmatprep.subr.bf16.mxu1 %v17937_v46 }
 0x74b   :  { %9894 = vmatprep.mubr.f32.mxu0 %v6240_v18  ;;  %v15301_v18 = vld [vmem:[#allocation2 + $0x138] sm:$0xff] }
 0x74c   :  { %7223 = vmatmul.mubr.f32.gmra.mrb[108].mxu1 %v15274_v36 }
 0x74d   :  { %7227 = vmatprep.mubr.f32.mxu1 %v17955_v61  ;;  %v17959_v61 = vmax.f32 %v14783_v47, 0.0  ;;  %v6253_v47 = vld [vmem:[#allocation2 + $0x2da] sm:$0xff] }
 0x74e   :  { %9895 = vmatmul.mubr.f32.gmra.mrb[168].mxu0 %v6241_v11  ;;  %v6249_v11 = vld [vmem:[#allocation2 + $0x2aa] sm:$0xff] }
 0x74f   :  { %9897 = vmatprep.mubr.f32.mxu0 %v6242_v25  ;;  %v6250_v25 = vld [vmem:[#allocation2 + $0x2ba] sm:$0xff] }
 0x750   :  { %7228 = vmatmul.mubr.f32.gmra.mrb[110].mxu1 %v15279_v27 }
 0x751   :  { %7232 = vmatprep.mubr.f32.mxu1 %v17956_v21  ;;  %v17960_v21 = vmax.f32 %v14787_v35, 0.0  ;;  %v6967_v35 = vld [vmem:[%s17502_s4 + $0x1f8] sm:$0xff] }
 0x752   :  { %9898 = vmatmul.mubr.f32.gmra.mrb[170].mxu0 %v6243_v20  ;;  %v15306_v20 = vld [vmem:[#allocation2 + $0x140] sm:$0xff] }
 0x753   :  { %9900 = vmatprep.mubr.f32.mxu0 %v6244_v12  ;;  %v6252_v12 = vld [vmem:[#allocation2 + $0x2d2] sm:$0xff] }
 0x754   :  { %7233 = vmatmul.mubr.f32.gmra.mrb[112].mxu1 %v15284_v10 }
 0x755   :  { %7237 = vmatprep.mubr.f32.mxu1 %v17957_v29  ;;  %v17961_v29 = vmax.f32 %v14791_v9, 0.0  ;;  %v17962_v9 = vmax.f32 %v14795_v62, 0.0  ;;  %v5337_v62 = vld [vmem:[#allocation2 + $0x1b9] sm:$0xff] }
 0x756   :  { %9901 = vmatmul.mubr.f32.gmra.mrb[172].mxu0 %v6245_v39  ;;  %v15311_v39 = vld [vmem:[#allocation2 + $0x150] sm:$0xff] }
 0x757   :  { %9903 = vmatprep.mubr.f32.mxu0 %v6246_v57  ;;  %v10248_v57 = vpack.c.bf16 %v6967_v35, %v6966_v32  ;;  %v15348_v32 = vld [vmem:[#allocation2 + $0x1e0] sm:$0xff]  ;;  %v15353_v35 = vld [vmem:[#allocation2 + $0x1e8] sm:$0xff] }
 0x758   :  { %7238 = vmatmul.mubr.f32.gmra.mrb[114].mxu1 %v15295_v33 }
 0x759   :  { %7242 = vmatprep.mubr.f32.mxu1 %v17958_v63  ;;  %10249 = vmatpush1.bf16.msra.mxu1 %v10248_v57  ;;  %v15328_v63 = vld [vmem:[#allocation2 + $0x168] sm:$0xff]  ;;  %v15363_v57 = vld [vmem:[#allocation2 + $0x200] sm:$0xff] }
 0x75a   :  { %9904 = vmatmul.mubr.f32.gmra.mrb[174].mxu0 %v6247_v7  ;;  %v6255_v7 = vld [vmem:[#allocation2 + $0x2f2] sm:$0xff]  ;;  %10250 = vmatprep.subr.bf16.mxu1 %v17937_v46 }
 0x75b   :  { %9906 = vmatprep.mubr.f32.mxu0 %v6248_v4  ;;  %v17963_v4 = vmax.f32 %v14799_v44, 0.0  ;;  %v17965_v44 = vmax.f32 %v14815_v41, 0.0  ;;  %v17968_v41 = vmax.f32 %v14827_v14, 0.0  ;;  %v17971_v14 = vmax.f32 %v14839_v58, 0.0  ;;  %v17975_v58 = vld [vmem:[#allocation4_spill] sm:$0xff] }
 0x75c   :  { %7243 = vmatmul.mubr.f32.gmra.mrb[116].mxu1 %v15301_v18 }
 0x75d   :  { %7247 = vmatprep.mubr.f32.mxu1 %v17959_v61  ;;  %v15333_v61 = vld [vmem:[#allocation2 + $0x170] sm:$0xff] }
 0x75e   :  { %9907 = vmatmul.mubr.f32.gmra.mrb[176].mxu0 %v6249_v11  ;;  %v5336_v11 = vld [vmem:[#allocation2 + $0x1b1] sm:$0xff] }
 0x75f   :  { %9909 = vmatprep.mubr.f32.mxu0 %v6250_v25  ;;  %v5208_v25 = vld [vmem:[#allocation2 + $0x1b0] sm:$0xff] }
 0x760   :  { %7248 = vmatmul.mubr.f32.gmra.mrb[118].mxu1 %v15306_v20 }
 0x761   :  { %7252 = vmatprep.mubr.f32.mxu1 %v17960_v21  ;;  %v17964_v21 = vmax.f32 %v14811_v15, 0.0  ;;  %v17967_v15 = vmax.f32 %v14823_v22, 0.0  ;;  %v17970_v22 = vmax.f32 %v14835_v56, 0.0  ;;  %v17973_v56 = vld [vmem:[#allocation22_spill] sm:$0xff] }
 0x762   :  { %9910 = vmatmul.mubr.f32.gmra.mrb[178].mxu0 %v6251_v34  ;;  %v11207_v34 = vld [vmem:[#allocation2 + $0x8] sm:$0xff] }
 0x763   :  { %9912 = vmatprep.mubr.f32.mxu0 %v6252_v12  ;;  %v15338_v12 = vld [vmem:[#allocation2 + $0x1c8] sm:$0xff] }
 0x764   :  { %7253 = vmatmul.mubr.f32.gmra.mrb[120].mxu1 %v15311_v39 }
 0x765   :  { %7257 = vmatprep.mubr.f32.mxu1 %v17961_v29  ;;  %v17966_v29 = vmax.f32 %v14819_v37, 0.0  ;;  %v17969_v37 = vmax.f32 %v14831_v6, 0.0  ;;  %v17972_v6 = vmax.f32 %v17904_v50, 0.0  ;;  %v17977_v50 = vld [vmem:[#allocation23_spill] sm:$0xff] }
 0x766   :  { %9913 = vmatmul.mubr.f32.gmra.mrb[180].mxu0 %v6253_v47  ;;  %v15343_v47 = vld [vmem:[#allocation2 + $0x1d0] sm:$0xff] }
 0x767   :  { %9915 = vmatprep.mubr.f32.mxu0 %v6254_v49  ;;  %v15358_v49 = vld [vmem:[#allocation2 + $0x1f8] sm:$0xff] }
 0x768   :  { %7258 = vmatmul.mubr.f32.gmra.mrb[122].mxu1 %v15322_v42 }
 0x769   :  { %7262 = vmatprep.mubr.f32.mxu1 %v17962_v9  ;;  %v15373_v9 = vld [vmem:[#allocation2 + $0x218] sm:$0xff] }
 0x76a   :  { %9916 = vmatmul.mubr.f32.gmra.mrb[182].mxu0 %v6255_v7  ;;  %v15368_v7 = vld [vmem:[#allocation2 + $0x210] sm:$0xff] }
 0x76c   :  { %7263 = vmatmul.mubr.f32.gmra.mrb[124].mxu1 %v15328_v63 }
 0x76d   :  { %7267 = vmatprep.mubr.f32.mxu1 %v17963_v4  ;;  %v15378_v4 = vld [vmem:[#allocation2 + $0x228] sm:$0xff] }
 0x770   :  { %7268 = vmatmul.mubr.f32.gmra.mrb[126].mxu1 %v15333_v61 }
 0x771   :  { %7272 = vmatprep.mubr.f32.mxu1 %v5336_v11  ;;  %v17974_v11 = vmax.f32 %v17973_v56, 0.0  ;;  %v15408_v56 = vld [vmem:[#allocation2 + $0x270] sm:$0xff] }
 0x774   :  { %7273 = vmatmul.mubr.f32.gmra.mrb[128].mxu1 %v5208_v25  ;;  %v15383_v25 = vld [vmem:[#allocation2 + $0x230] sm:$0xff] }
 0x775   :  { %7277 = vmatprep.mubr.f32.mxu1 %v5337_v62  ;;  %v17976_v62 = vmax.f32 %v17975_v58, 0.0  ;;  %v15413_v58 = vld [vmem:[#allocation2 + $0x278] sm:$0xff] }
 0x778   :  { %7278 = vmatmul.mubr.f32.gmra.mrb[130].mxu1 %v11207_v34  ;;  %v15388_v34 = vld [vmem:[#allocation2 + $0x240] sm:$0xff] }
 0x779   :  { %7282 = vmatprep.mubr.f32.mxu1 %v17964_v21  ;;  %v17978_v21 = vmax.f32 %v17977_v50, 0.0  ;;  %v15418_v50 = vld [vmem:[#allocation2 + $0x288] sm:$0xff] }
 0x77a   :  { %17986 = vst [vmem:[#allocation16_spill] sm:$0xff] %v15418_v50 }
 0x77c   :  { %7283 = vmatmul.mubr.f32.gmra.mrb[132].mxu1 %v15338_v12 }
 0x77d   :  { %7287 = vmatprep.mubr.f32.mxu1 %v17965_v44  ;;  %v15393_v44 = vld [vmem:[#allocation2 + $0x248] sm:$0xff] }
 0x780   :  { %7288 = vmatmul.mubr.f32.gmra.mrb[134].mxu1 %v15343_v47 }
 0x781   :  { %7292 = vmatprep.mubr.f32.mxu1 %v17966_v29  ;;  %v17979_v29 = vld [vmem:[#allocation24_spill] sm:$0xff] }
 0x784   :  { %7293 = vmatmul.mubr.f32.gmra.mrb[136].mxu1 %v15348_v32 }
 0x785   :  { %7297 = vmatprep.mubr.f32.mxu1 %v17967_v15  ;;  %v17980_v15 = vmax.f32 %v17979_v29, 0.0  ;;  %v5356_v29 = vld [vmem:[#allocation2 + $0x2a1] sm:$0xff] }
 0x788   :  { %7298 = vmatmul.mubr.f32.gmra.mrb[138].mxu1 %v15353_v35 }
 0x789   :  { %7302 = vmatprep.mubr.f32.mxu1 %v17968_v41  ;;  %v15398_v41 = vld [vmem:[#allocation2 + $0x258] sm:$0xff] }
 0x78c   :  { %7303 = vmatmul.mubr.f32.gmra.mrb[140].mxu1 %v15358_v49 }
 0x78d   :  { %7307 = vmatprep.mubr.f32.mxu1 %v17969_v37  ;;  %v17981_v37 = vld [vmem:[#allocation26_spill] sm:$0xff] }
 0x790   :  { %7308 = vmatmul.mubr.f32.gmra.mrb[142].mxu1 %v15363_v57 }
 0x791   :  { %7312 = vmatprep.mubr.f32.mxu1 %v17970_v22  ;;  %v17982_v22 = vmax.f32 %v17981_v37, 0.0  ;;  %v5358_v37 = vld [vmem:[#allocation2 + $0x2b9] sm:$0xff] }
 0x794   :  { %7313 = vmatmul.mubr.f32.gmra.mrb[144].mxu1 %v15368_v7 }
 0x795   :  { %7317 = vmatprep.mubr.f32.mxu1 %v17971_v14  ;;  %v15403_v14 = vld [vmem:[#allocation2 + $0x260] sm:$0xff] }
 0x798   :  { %7318 = vmatmul.mubr.f32.gmra.mrb[146].mxu1 %v15373_v9 }
 0x799   :  { %7322 = vmatprep.mubr.f32.mxu1 %v17972_v6  ;;  %v17983_v6 = vmax.f32 %v14867_v52, 0.0  ;;  %v5355_v52 = vld [vmem:[#allocation2 + $0x291] sm:$0xff] }
 0x79c   :  { %7323 = vmatmul.mubr.f32.gmra.mrb[148].mxu1 %v15378_v4 }
 0x79d   :  { %7327 = vmatprep.mubr.f32.mxu1 %v17974_v11  ;;  %v17984_v11 = vmax.f32 %v14871_v0, 0.0  ;;  %v15424_v0 = vld [vmem:[#allocation2 + $0x2a0] sm:$0xff] }
 0x79e   :  { %17988 = vst [vmem:[#allocation34_spill] sm:$0xff] %v15424_v0 }
 0x7a0   :  { %7328 = vmatmul.mubr.f32.gmra.mrb[150].mxu1 %v15383_v25 }
 0x7a1   :  { %7332 = vmatprep.mubr.f32.mxu1 %v17976_v62  ;;  %v17985_v62 = vmax.f32 %v17914_v45, 0.0  ;;  %v15427_v45 = vld [vmem:[#allocation2 + $0x2a8] sm:$0xff] }
 0x7a2   :  { %17989 = vst [vmem:[#allocation35_spill] sm:$0xff] %v15427_v45 }
 0x7a4   :  { %7333 = vmatmul.mubr.f32.gmra.mrb[152].mxu1 %v15388_v34 }
 0x7a5   :  { %7337 = vmatprep.mubr.f32.mxu1 %v17978_v21  ;;  %v15421_v21 = vld [vmem:[#allocation2 + $0x290] sm:$0xff] }
 0x7a6   :  { %17987 = vst [vmem:[#allocation15_spill] sm:$0xff] %v15421_v21 }
 0x7a8   :  { %7338 = vmatmul.mubr.f32.gmra.mrb[154].mxu1 %v15393_v44 }
 0x7a9   :  { %7342 = vmatprep.mubr.f32.mxu1 %v17980_v15  ;;  %v5357_v15 = vld [vmem:[#allocation2 + $0x2a9] sm:$0xff] }
 0x7ac   :  { %7343 = vmatmul.mubr.f32.gmra.mrb[156].mxu1 %v15398_v41 }
 0x7ad   :  { %7347 = vmatprep.mubr.f32.mxu1 %v17982_v22  ;;  %v15430_v22 = vld [vmem:[#allocation2 + $0x2b8] sm:$0xff] }
 0x7ae   :  { %17990 = vst [vmem:[#allocation11_spill] sm:$0xff] %v15430_v22 }
 0x7b0   :  { %7348 = vmatmul.mubr.f32.gmra.mrb[158].mxu1 %v15403_v14 }
 0x7b1   :  { %7352 = vmatprep.mubr.f32.mxu1 %v17983_v6  ;;  %v5359_v6 = vld [vmem:[#allocation2 + $0x2c1] sm:$0xff] }
 0x7b4   :  { %7353 = vmatmul.mubr.f32.gmra.mrb[160].mxu1 %v15408_v56 }
 0x7b5   :  { %7357 = vmatprep.mubr.f32.mxu1 %v17984_v11  ;;  %v15433_v11 = vld [vmem:[#allocation2 + $0x2c0] sm:$0xff] }
 0x7b6   :  { %17991 = vst [vmem:[#allocation14_spill] sm:$0xff] %v15433_v11 }
 0x7b8   :  { %7358 = vmatmul.mubr.f32.gmra.mrb[162].mxu1 %v15413_v58 }
 0x7b9   :  { %7362 = vmatprep.mubr.f32.mxu1 %v17985_v62  ;;  %v5360_v62 = vld [vmem:[#allocation2 + $0x2d1] sm:$0xff] }
 0x7bc   :  { %7363 = vmatmul.mubr.f32.gmra.mrb[164].mxu1 %v15418_v50 }
 0x7bd   :  { %7367 = vmatprep.mubr.f32.mxu1 %v5355_v52 }
 0x7c0   :  { %7368 = vmatmul.mubr.f32.gmra.mrb[166].mxu1 %v15421_v21 }
 0x7c1   :  { %7372 = vmatprep.mubr.f32.mxu1 %v5356_v29 }
 0x7c4   :  { %7373 = vmatmul.mubr.f32.gmra.mrb[168].mxu1 %v15424_v0 }
 0x7c5   :  { %7377 = vmatprep.mubr.f32.mxu1 %v5357_v15  ;;  %v15440_v15 = vld [vmem:[#allocation2 + $0x2d0] sm:$0xff] }
 0x7c6   :  { %17994 = vst [vmem:[#allocation6_spill] sm:$0xff] %v15440_v15 }
 0x7c8   :  { %7378 = vmatmul.mubr.f32.gmra.mrb[170].mxu1 %v15427_v45 }
 0x7c9   :  { %7382 = vmatprep.mubr.f32.mxu1 %v5358_v37  ;;  %v5361_v37 = vld [vmem:[#allocation2 + $0x2d9] sm:$0xff] }
 0x7ca   :  { %v15436_v52 = vpop.f32.mrb[128].mxu0 }
 0x7cb   :  { %17992 = vst [vmem:[#allocation13_spill] sm:$0xff] %v15436_v52  ;;  %v15438_v29 = vpop.f32.mrb[129].mxu0  ;;  %v15454_v52 = vld [vmem:[#allocation2 + $0x2e8] sm:$0xff] }
 0x7cc   :  { %7383 = vmatmul.mubr.f32.gmra.mrb[172].mxu1 %v15430_v22  ;;  %17993 = vst [vmem:[#allocation5_spill] sm:$0xff] %v15438_v29  ;;  %18000 = vst [vmem:[#allocation32_spill] sm:$0xff] %v15454_v52  ;;  %v5363_v29 = vld [vmem:[#allocation2 + $0x2f1] sm:$0xff] }
 0x7cd   :  { %7387 = vmatprep.mubr.f32.mxu1 %v5359_v6  ;;  %v15447_v6 = vld [vmem:[#allocation2 + $0x2d8] sm:$0xff] }
 0x7ce   :  { %17997 = vst [vmem:[#allocation29_spill] sm:$0xff] %v15447_v6 }
 0x7d0   :  { %7388 = vmatmul.mubr.f32.gmra.mrb[174].mxu1 %v15433_v11  ;;  %v5362_v11 = vld [vmem:[#allocation2 + $0x2e9] sm:$0xff] }
 0x7d1   :  { %7392 = vmatprep.mubr.f32.mxu1 %v5360_v62 }
 0x7d4   :  { %7393 = vmatmul.mubr.f32.gmra.mrb[176].mxu1 %v15440_v15  ;;  %v15443_v45 = vpop.f32.mrb[130].mxu0 }
 0x7d5   :  { %17995 = vst [vmem:[#allocation27_spill] sm:$0xff] %v15443_v45  ;;  %7397 = vmatprep.mubr.f32.mxu1 %v5361_v37  ;;  %v15445_v22 = vpop.f32.mrb[131].mxu0  ;;  %v15461_v45 = vld [vmem:[#allocation2 + $0x2f0] sm:$0xff] }
 0x7d6   :  { %17996 = vst [vmem:[#allocation28_spill] sm:$0xff] %v15445_v22  ;;  %18003 = vst [vmem:[#allocation4_spill] sm:$0xff] %v15461_v45  ;;  %v5364_v22 = vld [vmem:[#allocation2 + $0x301] sm:$0xff] }
 0x7d8   :  { %7398 = vmatmul.mubr.f32.gmra.mrb[178].mxu1 %v15447_v6 }
 0x7d9   :  { %v15450_v0 = vpop.f32.mrb[132].mxu0  ;;  %7402 = vmatprep.mubr.f32.mxu1 %v5362_v11 }
 0x7da   :  { %17998 = vst [vmem:[#allocation30_spill] sm:$0xff] %v15450_v0  ;;  %v15452_v62 = vpop.f32.mrb[133].mxu0  ;;  %v15468_v0 = vld [vmem:[#allocation2 + $0x300] sm:$0xff] }
 0x7db   :  { %17999 = vst [vmem:[#allocation31_spill] sm:$0xff] %v15452_v62  ;;  %18006 = vst [vmem:[#allocation26_spill] sm:$0xff] %v15468_v0  ;;  %v5365_v62 = vld [vmem:[#allocation2 + $0x309] sm:$0xff] }
 0x7dc   :  { %7403 = vmatmul.mubr.f32.gmra.mrb[180].mxu1 %v15454_v52 }
 0x7dd   :  { %v15457_v15 = vpop.f32.mrb[134].mxu0  ;;  %7407 = vmatprep.mubr.f32.mxu1 %v5363_v29 }
 0x7de   :  { %18001 = vst [vmem:[#allocation33_spill] sm:$0xff] %v15457_v15  ;;  %v15459_v37 = vpop.f32.mrb[135].mxu0  ;;  %v15475_v15 = vld [vmem:[#allocation2 + $0x308] sm:$0xff] }
 0x7df   :  { %18002 = vst [vmem:[#allocation22_spill] sm:$0xff] %v15459_v37  ;;  %18009 = vst [vmem:[#allocation41_spill] sm:$0xff] %v15475_v15  ;;  %v5366_v37 = vld [vmem:[#allocation2 + $0x319] sm:$0xff] }
 0x7e0   :  { %7408 = vmatmul.mubr.f32.gmra.mrb[182].mxu1 %v15461_v45 }
 0x7e1   :  { %v15464_v6 = vpop.f32.mrb[136].mxu0  ;;  %7412 = vmatprep.mubr.f32.mxu1 %v5364_v22 }
 0x7e2   :  { %18004 = vst [vmem:[#allocation23_spill] sm:$0xff] %v15464_v6  ;;  %v15466_v11 = vpop.f32.mrb[137].mxu0  ;;  %v15482_v6 = vld [vmem:[#allocation2 + $0x318] sm:$0xff] }
 0x7e3   :  { %18005 = vst [vmem:[#allocation24_spill] sm:$0xff] %v15466_v11  ;;  %18012 = vst [vmem:[#allocation44_spill] sm:$0xff] %v15482_v6  ;;  %v5367_v11 = vld [vmem:[#allocation2 + $0x321] sm:$0xff] }
 0x7e4   :  { %7413 = vmatmul.mubr.f32.gmra.mrb[184].mxu1 %v15468_v0 }
 0x7e5   :  { %v15471_v52 = vpop.f32.mrb[138].mxu0  ;;  %7417 = vmatprep.mubr.f32.mxu1 %v5365_v62 }
 0x7e6   :  { %18007 = vst [vmem:[#allocation39_spill] sm:$0xff] %v15471_v52  ;;  %v15473_v29 = vpop.f32.mrb[139].mxu0  ;;  %v6968_v52 = vld [vmem:[%s17502_s4 + $0x200] sm:$0xff] }
 0x7e7   :  { %18008 = vst [vmem:[#allocation40_spill] sm:$0xff] %v15473_v29  ;;  %v18017_v29 = vld [vmem:[#allocation36_spill] sm:$0xff] }
 0x7e8   :  { %7418 = vmatmul.mubr.f32.gmra.mrb[186].mxu1 %v15475_v15  ;;  %v6971_v15 = vld [vmem:[%s17502_s4 + $0x218] sm:$0xff] }
 0x7e9   :  { %v15478_v45 = vpop.f32.mrb[140].mxu0  ;;  %7422 = vmatprep.mubr.f32.mxu1 %v5366_v37  ;;  %v6969_v37 = vld [vmem:[%s17502_s4 + $0x208] sm:$0xff] }
 0x7ea   :  { %18010 = vst [vmem:[#allocation42_spill] sm:$0xff] %v15478_v45  ;;  %v15480_v22 = vpop.f32.mrb[141].mxu0  ;;  %v15495_v45 = vld [vmem:[#allocation2 + $0x320] sm:$0xff] }
 0x7eb   :  { %18011 = vst [vmem:[#allocation43_spill] sm:$0xff] %v15480_v22  ;;  %18015 = vst [vmem:[#allocation47_spill] sm:$0xff] %v15495_v45 }
 0x7ec   :  { %7423 = vmatmul.mubr.f32.gmra.mrb[188].mxu1 %v15482_v6 }
 0x7ed   :  { %v15485_v0 = vpop.f32.mrb[142].mxu0  ;;  %7427 = vmatprep.mubr.f32.mxu1 %v5367_v11  ;;  %v10251_v11 = vpack.c.bf16 %v6969_v37, %v6968_v52  ;;  %v6972_v52 = vld [vmem:[%s17502_s4 + $0x220] sm:$0xff]  ;;  %v6973_v37 = vld [vmem:[%s17502_s4 + $0x228] sm:$0xff] }
 0x7ee   :  { %18013 = vst [vmem:[#allocation45_spill] sm:$0xff] %v15485_v0  ;;  %v15487_v62 = vpop.f32.mrb[143].mxu0  ;;  %v5432_v0 = vld [vmem:[#allocation2 + $0x2] sm:$0xff] }
 0x7ef   :  { %18014 = vst [vmem:[#allocation46_spill] sm:$0xff] %v15487_v62  ;;  %v6970_v62 = vld [vmem:[%s17502_s4 + $0x210] sm:$0xff] }
 0x7f0   :  { %7428 = vmatmul.mubr.f32.gmra.mrb[190].mxu1 %v15495_v45  ;;  %v18020_v45 = vld [vmem:[#allocation12_spill] sm:$0xff] }
 0x7f1   :  { %v15498_v22 = vpop.f32.mrb[144].mxu0  ;;  %7497 = vmatprep.mubr.f32.mxu1 %v18017_v29  ;;  %v10254_v29 = vpack.c.bf16 %v6971_v15, %v6970_v62  ;;  %v6974_v62 = vld [vmem:[%s17502_s4 + $0x230] sm:$0xff] }
 0x7f2   :  { %18016 = vst [vmem:[#allocation48_spill] sm:$0xff] %v15498_v22  ;;  %v15501_v6 = vpop.f32.mrb[145].mxu0  ;;  %v5433_v22 = vld [vmem:[#allocation2 + $0xa] sm:$0xff] }
 0x7f3   :  { %18018 = vst [vmem:[#allocation36_spill] sm:$0xff] %v15501_v6  ;;  %v5825_v6 = vld [vmem:[#allocation2 + $0x82] sm:$0xff] }
 0x7f4   :  { %7498 = vmatmul.mubr.f32.vlgmr.msra.gmra.mrb[64].mxu1 %v5432_v0 }
 0x7f5   :  { %v15509_v21 = vpop.f32.mrb[146].mxu0  ;;  %10252 = vmatpush1.bf16.msra.mxu1 %v10251_v11  ;;  %7502 = vmatprep.mubr.f32.mxu1 %v18020_v45  ;;  %v10257_v45 = vpack.c.bf16 %v6973_v37, %v6972_v52  ;;  %v6975_v11 = vld [vmem:[%s17502_s4 + $0x238] sm:$0xff]  ;;  %v6976_v52 = vld [vmem:[%s17502_s4 + $0x240] sm:$0xff]  ;;  %v6977_v37 = vld [vmem:[%s17502_s4 + $0x248] sm:$0xff] }
 0x7f6   :  { %18019 = vst [vmem:[#allocation49_spill] sm:$0xff] %v15509_v21  ;;  %v15512_v50 = vpop.f32.mrb[147].mxu0  ;;  %10253 = vmatprep.subr.bf16.mxu1 %v17937_v46  ;;  %v15533_v21 = vld [vmem:[#allocation2 + $0x1a] sm:$0xff] }
 0x7f7   :  { %18021 = vst [vmem:[#allocation12_spill] sm:$0xff] %v15512_v50  ;;  %v5824_v50 = vld [vmem:[#allocation2 + $0x7a] sm:$0xff] }
 0x7f8   :  { %7503 = vmatmul.mubr.f32.gmra.mrb[66].mxu1 %v5433_v22 }
 0x7f9   :  { %v15521_v0 = vpop.f32.mrb[148].mxu0  ;;  %7507 = vmatprep.mubr.f32.mxu1 %v15125_v59  ;;  %10255 = vmatpush1.bf16.msra.mxu1 %v10254_v29  ;;  %v10260_v59 = vpack.c.bf16 %v6975_v11, %v6974_v62  ;;  %v6978_v62 = vld [vmem:[%s17502_s4 + $0x250] sm:$0xff]  ;;  %v6979_v11 = vld [vmem:[%s17502_s4 + $0x258] sm:$0xff] }
 0x7fa   :  { %18022 = vst [vmem:[#allocation50_spill] sm:$0xff] %v15521_v0  ;;  %v15524_v15 = vpop.f32.mrb[149].mxu0  ;;  %10256 = vmatprep.subr.bf16.mxu1 %v17937_v46  ;;  %v15548_v0 = vld [vmem:[#allocation2 + $0x22] sm:$0xff] }
 0x7fb   :  { %18023 = vst [vmem:[#allocation51_spill] sm:$0xff] %v15524_v15 }
 0x7fc   :  { %7508 = vmatmul.mubr.f32.gmra.mrb[68].mxu1 %v15533_v21 }
 0x7fd   :  { %v15536_v22 = vpop.f32.mrb[150].mxu0  ;;  %7512 = vmatprep.mubr.f32.mxu1 %v15143_v26  ;;  %10258 = vmatpush1.bf16.msra.mxu1 %v10257_v45  ;;  %v10263_v26 = vpack.c.bf16 %v6977_v37, %v6976_v52  ;;  %v6980_v52 = vld [vmem:[%s17502_s4 + $0x260] sm:$0xff]  ;;  %v6981_v37 = vld [vmem:[%s17502_s4 + $0x268] sm:$0xff] }
 0x7fe   :  { %18024 = vst [vmem:[#allocation52_spill] sm:$0xff] %v15536_v22  ;;  %v15539_v29 = vpop.f32.mrb[151].mxu0  ;;  %10259 = vmatprep.subr.bf16.mxu1 %v17937_v46 }
 0x7ff   :  { %18025 = vst [vmem:[#allocation53_spill] sm:$0xff] %v15539_v29  ;;  %v18028_v29 = vld [vmem:[#allocation7_spill] sm:$0xff] }
 0x800   :  { %7513 = vmatmul.mubr.f32.gmra.mrb[70].mxu1 %v15548_v0 }
 0x801   :  { %v15551_v22 = vpop.f32.mrb[152].mxu0  ;;  %7517 = vmatprep.mubr.f32.mxu1 %v15155_v17  ;;  %10261 = vmatpush1.bf16.msra.mxu1 %v10260_v59  ;;  %v10266_v17 = vpack.c.bf16 %v6979_v11, %v6978_v62  ;;  %v6982_v62 = vld [vmem:[%s17502_s4 + $0x270] sm:$0xff]  ;;  %v6983_v11 = vld [vmem:[%s17502_s4 + $0x278] sm:$0xff] }
 0x802   :  { %18026 = vst [vmem:[#allocation54_spill] sm:$0xff] %v15551_v22  ;;  %v15554_v45 = vpop.f32.mrb[153].mxu0  ;;  %10262 = vmatprep.subr.bf16.mxu1 %v17937_v46  ;;  %v18031_v22 = vld [vmem:[#allocation9_spill] sm:$0xff] }
 0x803   :  { %18027 = vst [vmem:[#allocation55_spill] sm:$0xff] %v15554_v45  ;;  %v5823_v45 = vld [vmem:[#allocation2 + $0x6a] sm:$0xff] }
 0x804   :  { %7518 = vmatmul.mubr.f32.gmra.mrb[72].mxu1 %v18028_v29 }
 0x805   :  { %v15564_v15 = vpop.f32.mrb[154].mxu0  ;;  %7522 = vmatprep.mubr.f32.mxu1 %v15164_v19  ;;  %10264 = vmatpush1.bf16.msra.mxu1 %v10263_v26  ;;  %v10269_v19 = vpack.c.bf16 %v6981_v37, %v6980_v52  ;;  %v6984_v52 = vld [vmem:[%s17502_s4 + $0x280] sm:$0xff]  ;;  %v6985_v37 = vld [vmem:[%s17502_s4 + $0x288] sm:$0xff] }
 0x806   :  { %18029 = vst [vmem:[#allocation7_spill] sm:$0xff] %v15564_v15  ;;  %v15567_v59 = vpop.f32.mrb[155].mxu0  ;;  %10265 = vmatprep.subr.bf16.mxu1 %v17937_v46  ;;  %v18034_v15 = vld [vmem:[#allocation8_spill] sm:$0xff] }
 0x807   :  { %18030 = vst [vmem:[#allocation56_spill] sm:$0xff] %v15567_v59  ;;  %v5822_v59 = vld [vmem:[#allocation2 + $0x62] sm:$0xff] }
 0x808   :  { %7523 = vmatmul.mubr.f32.gmra.mrb[74].mxu1 %v18031_v22 }
 0x809   :  { %v15577_v29 = vpop.f32.mrb[156].mxu0  ;;  %7527 = vmatprep.mubr.f32.mxu1 %v15169_v2  ;;  %10267 = vmatpush1.bf16.msra.mxu1 %v10266_v17  ;;  %v10272_v2 = vpack.c.bf16 %v6983_v11, %v6982_v62  ;;  %v6986_v62 = vld [vmem:[%s17502_s4 + $0x290] sm:$0xff]  ;;  %v6987_v11 = vld [vmem:[%s17502_s4 + $0x298] sm:$0xff] }
 0x80a   :  { %18032 = vst [vmem:[#allocation9_spill] sm:$0xff] %v15577_v29  ;;  %v15580_v26 = vpop.f32.mrb[157].mxu0  ;;  %10268 = vmatprep.subr.bf16.mxu1 %v17937_v46  ;;  %v5818_v29 = vld [vmem:[#allocation2 + $0x32] sm:$0xff] }
 0x80b   :  { %18033 = vst [vmem:[#allocation57_spill] sm:$0xff] %v15580_v26  ;;  %v5821_v26 = vld [vmem:[#allocation2 + $0x52] sm:$0xff] }
 0x80c   :  { %7528 = vmatmul.mubr.f32.gmra.mrb[76].mxu1 %v18034_v15 }
 0x80d   :  { %7532 = vmatprep.mubr.f32.mxu1 %v15174_v38  ;;  %v15591_v22 = vpop.f32.mrb[158].mxu0  ;;  %10270 = vmatpush1.bf16.msra.mxu1 %v10269_v19  ;;  %v10275_v38 = vpack.c.bf16 %v6985_v37, %v6984_v52  ;;  %v6988_v52 = vld [vmem:[%s17502_s4 + $0x2a0] sm:$0xff]  ;;  %v6989_v37 = vld [vmem:[%s17502_s4 + $0x2a8] sm:$0xff] }
 0x80e   :  { %18035 = vst [vmem:[#allocation8_spill] sm:$0xff] %v15591_v22  ;;  %v15593_v17 = vpop.f32.mrb[159].mxu0  ;;  %10271 = vmatprep.subr.bf16.mxu1 %v17937_v46  ;;  %v5688_v22 = vld [vmem:[#allocation2 + $0x19] sm:$0xff] }
 0x80f   :  { %18036 = vst [vmem:[#allocation58_spill] sm:$0xff] %v15593_v17 }
 0x810   :  { %7533 = vmatmul.mubr.f32.gmra.mrb[78].mxu1 %v15109_v60 }
 0x811   :  { %v15603_v15 = vpop.f32.mrb[160].mxu0  ;;  %7537 = vmatprep.mubr.f32.mxu1 %v15182_v55  ;;  %10273 = vmatpush1.bf16.msra.mxu1 %v10272_v2  ;;  %v10278_v55 = vpack.c.bf16 %v6987_v11, %v6986_v62 }
 0x812   :  { %18037 = vst [vmem:[#allocation59_spill] sm:$0xff] %v15603_v15  ;;  %v15606_v19 = vpop.f32.mrb[161].mxu0  ;;  %10274 = vmatprep.subr.bf16.mxu1 %v17937_v46  ;;  %v15907_v15 = vld [vmem:[#allocation2 + $0x322] sm:$0xff] }
 0x813   :  { %18038 = vst [vmem:[#allocation60_spill] sm:$0xff] %v15606_v19  ;;  %v7002_v19 = vld [vmem:[%s17502_s4 + $0x310] sm:$0xff] }
 0x814   :  { %7538 = vmatmul.mubr.f32.gmra.mrb[80].mxu1 %v15116_v5 }
 0x815   :  { %v15616_v60 = vpop.f32.mrb[162].mxu0  ;;  %7542 = vmatprep.mubr.f32.mxu1 %v15196_v3  ;;  %10276 = vmatpush1.bf16.msra.mxu1 %v10275_v38  ;;  %v10281_v3 = vpack.c.bf16 %v6989_v37, %v6988_v52  ;;  %v15667_v37 = vld [vmem:[#allocation2 + $0xaa] sm:$0xff] }
 0x816   :  { %18039 = vst [vmem:[#allocation61_spill] sm:$0xff] %v15616_v60  ;;  %v15619_v2 = vpop.f32.mrb[163].mxu0  ;;  %10277 = vmatprep.subr.bf16.mxu1 %v17937_v46  ;;  %v15895_v60 = vld [vmem:[#allocation2 + $0x30a] sm:$0xff] }
 0x817   :  { %18040 = vst [vmem:[#allocation62_spill] sm:$0xff] %v15619_v2  ;;  %v15898_v2 = vld [vmem:[#allocation2 + $0x31a] sm:$0xff] }
 0x818   :  { %7543 = vmatmul.mubr.f32.gmra.mrb[82].mxu1 %v15128_v1 }
 0x819   :  { %v15629_v5 = vpop.f32.mrb[164].mxu0  ;;  %7547 = vmatprep.mubr.f32.mxu1 %v15202_v48  ;;  %10279 = vmatpush1.bf16.msra.mxu1 %v10278_v55 }
 0x81a   :  { %18041 = vst [vmem:[#allocation63_spill] sm:$0xff] %v15629_v5  ;;  %v15632_v38 = vpop.f32.mrb[165].mxu0  ;;  %10280 = vmatprep.subr.bf16.mxu1 %v17937_v46  ;;  %v15887_v5 = vld [vmem:[#allocation2 + $0x2f2] sm:$0xff] }
 0x81b   :  { %18042 = vst [vmem:[#allocation64_spill] sm:$0xff] %v15632_v38  ;;  %v15891_v38 = vld [vmem:[#allocation2 + $0x302] sm:$0xff] }
 0x81c   :  { %7548 = vmatmul.mubr.f32.gmra.mrb[84].mxu1 %v15133_v51  ;;  %v6990_v51 = vld [vmem:[%s17502_s4 + $0x2b0] sm:$0xff] }
 0x81d   :  { %v15636_v62 = vpop.f32.mrb[166].mxu0  ;;  %7552 = vmatprep.mubr.f32.mxu1 %v15214_v53  ;;  %10282 = vmatpush1.bf16.msra.mxu1 %v10281_v3  ;;  %v6991_v53 = vld [vmem:[%s17502_s4 + $0x2b8] sm:$0xff] }
 0x81e   :  { %18043 = vst [vmem:[#allocation65_spill] sm:$0xff] %v15636_v62  ;;  %v15639_v11 = vpop.f32.mrb[167].mxu0  ;;  %10283 = vmatprep.subr.bf16.mxu1 %v17937_v46  ;;  %v15879_v62 = vld [vmem:[#allocation2 + $0x2da] sm:$0xff] }
 0x81f   :  { %18044 = vst [vmem:[#allocation66_spill] sm:$0xff] %v15639_v11  ;;  %v15883_v11 = vld [vmem:[#allocation2 + $0x2ea] sm:$0xff] }
 0x820   :  { %7553 = vmatmul.mubr.f32.gmra.mrb[86].mxu1 %v15146_v43  ;;  %v10284_v43 = vpack.c.bf16 %v6991_v53, %v6990_v51  ;;  %v15675_v51 = vld [vmem:[#allocation2 + $0xb2] sm:$0xff]  ;;  %v15683_v53 = vld [vmem:[#allocation2 + $0xc2] sm:$0xff] }
 0x821   :  { %v15643_v1 = vpop.f32.mrb[168].mxu0  ;;  %7557 = vmatprep.mubr.f32.mxu1 %v15220_v13 }
 0x822   :  { %18045 = vst [vmem:[#allocation67_spill] sm:$0xff] %v15643_v1  ;;  %v15646_v48 = vpop.f32.mrb[169].mxu0  ;;  %10285 = vmatpush1.bf16.msra.mxu1 %v10284_v43  ;;  %v6993_v43 = vld [vmem:[%s17502_s4 + $0x2c8] sm:$0xff] }
 0x823   :  { %18046 = vst [vmem:[#allocation68_spill] sm:$0xff] %v15646_v48  ;;  %10286 = vmatprep.subr.bf16.mxu1 %v17937_v46  ;;  %v15871_v1 = vld [vmem:[#allocation2 + $0x2c2] sm:$0xff]  ;;  %v15875_v48 = vld [vmem:[#allocation2 + $0x2d2] sm:$0xff] }
 0x824   :  { %7558 = vmatmul.mubr.f32.gmra.mrb[88].mxu1 %v15151_v23 }
 0x825   :  { %v15655_v55 = vpop.f32.mrb[170].mxu0  ;;  %7562 = vmatprep.mubr.f32.mxu1 %v15225_v8 }
 0x826   :  { %18047 = vst [vmem:[#allocation69_spill] sm:$0xff] %v15655_v55  ;;  %v15658_v52 = vpop.f32.mrb[171].mxu0  ;;  %v15863_v55 = vld [vmem:[#allocation2 + $0x2aa] sm:$0xff] }
 0x827   :  { %18048 = vst [vmem:[#allocation70_spill] sm:$0xff] %v15658_v52  ;;  %v15867_v52 = vld [vmem:[#allocation2 + $0x2ba] sm:$0xff] }
 0x828   :  { %7563 = vmatmul.mubr.f32.gmra.mrb[90].mxu1 %v15158_v24 }
 0x829   :  { %v15662_v23 = vpop.f32.mrb[172].mxu0  ;;  %7567 = vmatprep.mubr.f32.mxu1 %v15230_v40 }
 0x82a   :  { %18049 = vst [vmem:[#allocation71_spill] sm:$0xff] %v15662_v23  ;;  %v15665_v13 = vpop.f32.mrb[173].mxu0 }
 0x82b   :  { %18050 = vst [vmem:[#allocation72_spill] sm:$0xff] %v15665_v13  ;;  %v15706_v13 = vld [vmem:[#allocation2 + $0xda] sm:$0xff] }
 0x82c   :  { %7568 = vmatmul.mubr.f32.gmra.mrb[92].mxu1 %v15667_v37 }
 0x82d   :  { %v15670_v3 = vpop.f32.mrb[174].mxu0  ;;  %7572 = vmatprep.mubr.f32.mxu1 %v15241_v30  ;;  %v6992_v30 = vld [vmem:[%s17502_s4 + $0x2c0] sm:$0xff] }
 0x82e   :  { %18051 = vst [vmem:[#allocation73_spill] sm:$0xff] %v15670_v3  ;;  %v15673_v8 = vpop.f32.mrb[175].mxu0 }
 0x82f   :  { %18052 = vst [vmem:[#allocation74_spill] sm:$0xff] %v15673_v8 }
 0x830   :  { %7573 = vmatmul.mubr.f32.gmra.mrb[94].mxu1 %v15675_v51 }
 0x831   :  { %v15678_v24 = vpop.f32.mrb[176].mxu0  ;;  %7577 = vmatprep.mubr.f32.mxu1 %v15247_v31 }
 0x832   :  { %18053 = vst [vmem:[#allocation75_spill] sm:$0xff] %v15678_v24  ;;  %v15681_v40 = vpop.f32.mrb[177].mxu0  ;;  %v10287_v24 = vpack.c.bf16 %v6993_v43, %v6992_v30  ;;  %v15718_v43 = vld [vmem:[#allocation2 + $0xf2] sm:$0xff] }
 0x833   :  { %18054 = vst [vmem:[#allocation76_spill] sm:$0xff] %v15681_v40  ;;  %v15697_v40 = vld [vmem:[#allocation2 + $0xca] sm:$0xff] }
 0x834   :  { %7578 = vmatmul.mubr.f32.gmra.mrb[96].mxu1 %v15683_v53 }
 0x835   :  { %v15692_v3 = vpop.f32.mrb[178].mxu0  ;;  %7582 = vmatprep.mubr.f32.mxu1 %v15252_v16  ;;  %10288 = vmatpush1.bf16.msra.mxu1 %v10287_v24  ;;  %v15714_v24 = vld [vmem:[#allocation2 + $0xe2] sm:$0xff] }
 0x836   :  { %18055 = vst [vmem:[#allocation77_spill] sm:$0xff] %v15692_v3  ;;  %v15695_v31 = vpop.f32.mrb[179].mxu0  ;;  %10289 = vmatprep.subr.bf16.mxu1 %v17937_v46  ;;  %v15781_v3 = vld [vmem:[#allocation2 + $0x172] sm:$0xff] }
 0x837   :  { %18056 = vst [vmem:[#allocation78_spill] sm:$0xff] %v15695_v31  ;;  %v15859_v31 = vld [vmem:[#allocation2 + $0x2a2] sm:$0xff] }
 0x838   :  { %7583 = vmatmul.mubr.f32.gmra.mrb[98].mxu1 %v15697_v40 }
 0x839   :  { %v15701_v8 = vpop.f32.mrb[180].mxu0  ;;  %7587 = vmatprep.mubr.f32.mxu1 %v15257_v54  ;;  %v6994_v54 = vld [vmem:[%s17502_s4 + $0x2d0] sm:$0xff] }
 0x83a   :  { %18057 = vst [vmem:[#allocation79_spill] sm:$0xff] %v15701_v8  ;;  %v15704_v23 = vpop.f32.mrb[181].mxu0  ;;  %v15737_v8 = vld [vmem:[#allocation2 + $0x112] sm:$0xff] }
 0x83b   :  { %18058 = vst [vmem:[#allocation80_spill] sm:$0xff] %v15704_v23  ;;  %v5591_v23 = vld [vmem:[#allocation2 + $0x188] sm:$0xff] }
 0x83c   :  { %7588 = vmatmul.mubr.f32.gmra.mrb[100].mxu1 %v15706_v13 }
 0x83d   :  { %v15709_v16 = vpop.f32.mrb[182].mxu0  ;;  %7592 = vmatprep.mubr.f32.mxu1 %v15268_v28  ;;  %v6995_v28 = vld [vmem:[%s17502_s4 + $0x2d8] sm:$0xff] }
 0x83e   :  { %18059 = vst [vmem:[#allocation81_spill] sm:$0xff] %v15709_v16  ;;  %v15712_v30 = vpop.f32.mrb[183].mxu0  ;;  %v10290_v16 = vpack.c.bf16 %v6995_v28, %v6994_v54  ;;  %v15751_v54 = vld [vmem:[#allocation2 + $0x12a] sm:$0xff]  ;;  %v15760_v28 = vld [vmem:[#allocation2 + $0x142] sm:$0xff] }
 0x83f   :  { %18060 = vst [vmem:[#allocation82_spill] sm:$0xff] %v15712_v30  ;;  %v15728_v30 = vld [vmem:[#allocation2 + $0xfa] sm:$0xff] }
 0x840   :  { %7593 = vmatmul.mubr.f32.gmra.mrb[102].mxu1 %v15714_v24 }
 0x841   :  { %7597 = vmatprep.mubr.f32.mxu1 %v15274_v36  ;;  %10291 = vmatpush1.bf16.msra.mxu1 %v10290_v16  ;;  %v15733_v36 = vld [vmem:[#allocation2 + $0x10a] sm:$0xff] }
 0x842   :  { %10292 = vmatprep.subr.bf16.mxu1 %v17937_v46  ;;  %v6997_v16 = vld [vmem:[%s17502_s4 + $0x2e8] sm:$0xff] }
 0x844   :  { %7598 = vmatmul.mubr.f32.gmra.mrb[104].mxu1 %v15718_v43 }
 0x845   :  { %7602 = vmatprep.mubr.f32.mxu1 %v15279_v27  ;;  %v15741_v27 = vld [vmem:[#allocation2 + $0x122] sm:$0xff] }
 0x848   :  { %7603 = vmatmul.mubr.f32.gmra.mrb[106].mxu1 %v15728_v30 }
 0x849   :  { %7607 = vmatprep.mubr.f32.mxu1 %v15284_v10  ;;  %v6996_v10 = vld [vmem:[%s17502_s4 + $0x2e0] sm:$0xff] }
 0x84c   :  { %7608 = vmatmul.mubr.f32.gmra.mrb[108].mxu1 %v15733_v36 }
 0x84d   :  { %7612 = vmatprep.mubr.f32.mxu1 %v15295_v33  ;;  %v10293_v33 = vpack.c.bf16 %v6997_v16, %v6996_v10  ;;  %v6999_v10 = vld [vmem:[%s17502_s4 + $0x2f8] sm:$0xff] }
 0x84e   :  { %v15774_v16 = vld [vmem:[#allocation2 + $0x15a] sm:$0xff] }
 0x84f   :  { %10294 = vmatpush1.bf16.msra.mxu1 %v10293_v33  ;;  %v15778_v33 = vld [vmem:[#allocation2 + $0x16a] sm:$0xff] }
 0x850   :  { %7613 = vmatmul.mubr.f32.gmra.mrb[110].mxu1 %v15737_v8  ;;  %10295 = vmatprep.subr.bf16.mxu1 %v17937_v46 }
 0x851   :  { %7617 = vmatprep.mubr.f32.mxu1 %v15301_v18  ;;  %v15756_v18 = vld [vmem:[#allocation2 + $0x13a] sm:$0xff] }
 0x854   :  { %7618 = vmatmul.mubr.f32.gmra.mrb[112].mxu1 %v15741_v27 }
 0x855   :  { %7622 = vmatprep.mubr.f32.mxu1 %v15306_v20  ;;  %v15764_v20 = vld [vmem:[#allocation2 + $0x152] sm:$0xff] }
 0x858   :  { %7623 = vmatmul.mubr.f32.gmra.mrb[114].mxu1 %v15751_v54 }
 0x859   :  { %7627 = vmatprep.mubr.f32.mxu1 %v15311_v39  ;;  %v6998_v39 = vld [vmem:[%s17502_s4 + $0x2f0] sm:$0xff] }
 0x85c   :  { %7628 = vmatmul.mubr.f32.gmra.mrb[116].mxu1 %v15756_v18 }
 0x85d   :  { %7632 = vmatprep.mubr.f32.mxu1 %v15322_v42  ;;  %v10296_v42 = vpack.c.bf16 %v6999_v10, %v6998_v39  ;;  %v5465_v39 = vld [vmem:[#allocation2 + $0x1ba] sm:$0xff]  ;;  %v15787_v10 = vld [vmem:[#allocation2 + $0x1ca] sm:$0xff] }
 0x85f   :  { %10297 = vmatpush1.bf16.msra.mxu1 %v10296_v42  ;;  %v15843_v42 = vld [vmem:[#allocation2 + $0x272] sm:$0xff] }
 0x860   :  { %7633 = vmatmul.mubr.f32.gmra.mrb[118].mxu1 %v15760_v28  ;;  %10298 = vmatprep.subr.bf16.mxu1 %v17937_v46 }
 0x861   :  { %7637 = vmatprep.mubr.f32.mxu1 %v15328_v63  ;;  %v5590_v63 = vld [vmem:[#allocation2 + $0x180] sm:$0xff] }
 0x864   :  { %7638 = vmatmul.mubr.f32.gmra.mrb[120].mxu1 %v15764_v20 }
 0x865   :  { %7642 = vmatprep.mubr.f32.mxu1 %v15333_v61  ;;  %v5464_v61 = vld [vmem:[#allocation2 + $0x1b2] sm:$0xff] }
 0x868   :  { %7643 = vmatmul.mubr.f32.gmra.mrb[122].mxu1 %v15774_v16 }
 0x869   :  { %7647 = vmatprep.mubr.f32.mxu1 %v5590_v63  ;;  %v15847_v63 = vld [vmem:[#allocation2 + $0x27a] sm:$0xff] }
 0x86c   :  { %7648 = vmatmul.mubr.f32.gmra.mrb[124].mxu1 %v15778_v33 }
 0x86d   :  { %7652 = vmatprep.mubr.f32.mxu1 %v5591_v23  ;;  %v15791_v23 = vld [vmem:[#allocation2 + $0x1d2] sm:$0xff] }
 0x870   :  { %7653 = vmatmul.mubr.f32.gmra.mrb[126].mxu1 %v15781_v3 }
 0x871   :  { %7657 = vmatprep.mubr.f32.mxu1 %v15338_v12  ;;  %v15795_v12 = vld [vmem:[#allocation2 + $0x1e2] sm:$0xff] }
 0x874   :  { %7658 = vmatmul.mubr.f32.gmra.mrb[128].mxu1 %v5464_v61  ;;  %v15851_v61 = vld [vmem:[#allocation2 + $0x28a] sm:$0xff] }
 0x875   :  { %7662 = vmatprep.mubr.f32.mxu1 %v15343_v47  ;;  %v15799_v47 = vld [vmem:[#allocation2 + $0x1ea] sm:$0xff] }
 0x878   :  { %7663 = vmatmul.mubr.f32.gmra.mrb[130].mxu1 %v5465_v39  ;;  %v15855_v39 = vld [vmem:[#allocation2 + $0x292] sm:$0xff] }
 0x879   :  { %7667 = vmatprep.mubr.f32.mxu1 %v15348_v32  ;;  %v15803_v32 = vld [vmem:[#allocation2 + $0x1fa] sm:$0xff] }
 0x87c   :  { %7668 = vmatmul.mubr.f32.gmra.mrb[132].mxu1 %v15787_v10 }
 0x87d   :  { %7672 = vmatprep.mubr.f32.mxu1 %v15353_v35  ;;  %v15807_v35 = vld [vmem:[#allocation2 + $0x202] sm:$0xff] }
 0x880   :  { %7673 = vmatmul.mubr.f32.gmra.mrb[134].mxu1 %v15791_v23 }
 0x881   :  { %7677 = vmatprep.mubr.f32.mxu1 %v15358_v49  ;;  %v15811_v49 = vld [vmem:[#allocation2 + $0x212] sm:$0xff] }
 0x884   :  { %7678 = vmatmul.mubr.f32.gmra.mrb[136].mxu1 %v15795_v12 }
 0x885   :  { %7682 = vmatprep.mubr.f32.mxu1 %v15363_v57  ;;  %v15815_v57 = vld [vmem:[#allocation2 + $0x21a] sm:$0xff] }
 0x888   :  { %7683 = vmatmul.mubr.f32.gmra.mrb[138].mxu1 %v15799_v47 }
 0x889   :  { %7687 = vmatprep.mubr.f32.mxu1 %v15368_v7  ;;  %v15819_v7 = vld [vmem:[#allocation2 + $0x22a] sm:$0xff] }
 0x88c   :  { %7688 = vmatmul.mubr.f32.gmra.mrb[140].mxu1 %v15803_v32 }
 0x88d   :  { %7692 = vmatprep.mubr.f32.mxu1 %v15373_v9  ;;  %v15823_v9 = vld [vmem:[#allocation2 + $0x232] sm:$0xff] }
 0x890   :  { %7693 = vmatmul.mubr.f32.gmra.mrb[142].mxu1 %v15807_v35 }
 0x891   :  { %7697 = vmatprep.mubr.f32.mxu1 %v15378_v4  ;;  %v15827_v4 = vld [vmem:[#allocation2 + $0x242] sm:$0xff] }
 0x894   :  { %7698 = vmatmul.mubr.f32.gmra.mrb[144].mxu1 %v15811_v49 }
 0x895   :  { %7702 = vmatprep.mubr.f32.mxu1 %v15383_v25  ;;  %v15831_v25 = vld [vmem:[#allocation2 + $0x24a] sm:$0xff] }
 0x898   :  { %7703 = vmatmul.mubr.f32.gmra.mrb[146].mxu1 %v15815_v57 }
 0x899   :  { %7707 = vmatprep.mubr.f32.mxu1 %v15388_v34  ;;  %v15835_v34 = vld [vmem:[#allocation2 + $0x25a] sm:$0xff] }
 0x89c   :  { %7708 = vmatmul.mubr.f32.gmra.mrb[148].mxu1 %v15819_v7 }
 0x89d   :  { %7712 = vmatprep.mubr.f32.mxu1 %v15393_v44  ;;  %v15839_v44 = vld [vmem:[#allocation2 + $0x262] sm:$0xff] }
 0x8a0   :  { %7713 = vmatmul.mubr.f32.gmra.mrb[150].mxu1 %v15823_v9 }
 0x8a1   :  { %7717 = vmatprep.mubr.f32.mxu1 %v15398_v41  ;;  %v18061_v41 = vld [vmem:[#allocation16_spill] sm:$0xff] }
 0x8a4   :  { %7718 = vmatmul.mubr.f32.gmra.mrb[152].mxu1 %v15827_v4 }
 0x8a5   :  { %7722 = vmatprep.mubr.f32.mxu1 %v15403_v14  ;;  %v18062_v14 = vld [vmem:[#allocation15_spill] sm:$0xff] }
 0x8a8   :  { %7723 = vmatmul.mubr.f32.gmra.mrb[154].mxu1 %v15831_v25 }
 0x8a9   :  { %7727 = vmatprep.mubr.f32.mxu1 %v15408_v56  ;;  %v18063_v56 = vld [vmem:[#allocation34_spill] sm:$0xff] }
 0x8ac   :  { %7728 = vmatmul.mubr.f32.gmra.mrb[156].mxu1 %v15835_v34 }
 0x8ad   :  { %7732 = vmatprep.mubr.f32.mxu1 %v15413_v58  ;;  %v18064_v58 = vld [vmem:[#allocation35_spill] sm:$0xff] }
 0x8b0   :  { %7733 = vmatmul.mubr.f32.gmra.mrb[158].mxu1 %v15839_v44 }
 0x8b1   :  { %7737 = vmatprep.mubr.f32.mxu1 %v18061_v41  ;;  %v18065_v41 = vld [vmem:[#allocation11_spill] sm:$0xff] }
 0x8b4   :  { %7738 = vmatmul.mubr.f32.gmra.mrb[160].mxu1 %v15843_v42 }
 0x8b5   :  { %7742 = vmatprep.mubr.f32.mxu1 %v18062_v14  ;;  %v18066_v14 = vld [vmem:[#allocation14_spill] sm:$0xff] }
 0x8b8   :  { %7743 = vmatmul.mubr.f32.gmra.mrb[162].mxu1 %v15847_v63 }
 0x8b9   :  { %7747 = vmatprep.mubr.f32.mxu1 %v18063_v56  ;;  %v18067_v56 = vld [vmem:[#allocation6_spill] sm:$0xff] }
 0x8bc   :  { %7748 = vmatmul.mubr.f32.gmra.mrb[164].mxu1 %v15851_v61 }
 0x8bd   :  { %7752 = vmatprep.mubr.f32.mxu1 %v18064_v58  ;;  %v18068_v58 = vld [vmem:[#allocation29_spill] sm:$0xff] }
 0x8c0   :  { %7753 = vmatmul.mubr.f32.gmra.mrb[166].mxu1 %v15855_v39 }
 0x8c1   :  { %7757 = vmatprep.mubr.f32.mxu1 %v18065_v41  ;;  %v18069_v41 = vld [vmem:[#allocation32_spill] sm:$0xff] }
 0x8c4   :  { %7758 = vmatmul.mubr.f32.gmra.mrb[168].mxu1 %v15859_v31 }
 0x8c5   :  { %7762 = vmatprep.mubr.f32.mxu1 %v18066_v14  ;;  %v18070_v14 = vld [vmem:[#allocation4_spill] sm:$0xff] }
 0x8c8   :  { %7763 = vmatmul.mubr.f32.gmra.mrb[170].mxu1 %v15863_v55 }
 0x8c9   :  { %7767 = vmatprep.mubr.f32.mxu1 %v18067_v56  ;;  %v18071_v56 = vld [vmem:[#allocation26_spill] sm:$0xff] }
 0x8cc   :  { %7768 = vmatmul.mubr.f32.gmra.mrb[172].mxu1 %v15867_v52 }
 0x8cd   :  { %7772 = vmatprep.mubr.f32.mxu1 %v18068_v58  ;;  %v18072_v58 = vld [vmem:[#allocation41_spill] sm:$0xff] }
 0x8d0   :  { %7773 = vmatmul.mubr.f32.gmra.mrb[174].mxu1 %v15871_v1 }
 0x8d1   :  { %7777 = vmatprep.mubr.f32.mxu1 %v18069_v41  ;;  %v18073_v41 = vld [vmem:[#allocation44_spill] sm:$0xff] }
 0x8d4   :  { %7778 = vmatmul.mubr.f32.gmra.mrb[176].mxu1 %v15875_v48 }
 0x8d5   :  { %7782 = vmatprep.mubr.f32.mxu1 %v18070_v14  ;;  %v18074_v14 = vld [vmem:[#allocation47_spill] sm:$0xff] }
 0x8d8   :  { %7783 = vmatmul.mubr.f32.gmra.mrb[178].mxu1 %v15879_v62 }
 0x8d9   :  { %7787 = vmatprep.mubr.f32.mxu1 %v18071_v56  ;;  %v5622_v56 = vld [vmem:[#allocation2 + $0x330] sm:$0xff] }
 0x8dc   :  { %7788 = vmatmul.mubr.f32.gmra.mrb[180].mxu1 %v15883_v11 }
 0x8dd   :  { %7792 = vmatprep.mubr.f32.mxu1 %v18072_v58  ;;  %v5623_v58 = vld [vmem:[#allocation2 + $0x338] sm:$0xff] }
 0x8e0   :  { %7793 = vmatmul.mubr.f32.gmra.mrb[182].mxu1 %v15887_v5 }
 0x8e1   :  { %7797 = vmatprep.mubr.f32.mxu1 %v18073_v41  ;;  %v7000_v41 = vld [vmem:[%s17502_s4 + $0x300] sm:$0xff] }
 0x8e4   :  { %7798 = vmatmul.mubr.f32.gmra.mrb[184].mxu1 %v15891_v38 }
 0x8e5   :  { %7802 = vmatprep.mubr.f32.mxu1 %v18074_v14  ;;  %v7001_v14 = vld [vmem:[%s17502_s4 + $0x308] sm:$0xff] }
 0x8e8   :  { %7803 = vmatmul.mubr.f32.gmra.mrb[186].mxu1 %v15895_v60 }
 0x8e9   :  { %7807 = vmatprep.mubr.f32.mxu1 %v5622_v56  ;;  %v10299_v56 = vpack.c.bf16 %v7001_v14, %v7000_v41  ;;  %v7005_v41 = vld [vmem:[%s17502_s4 + $0x328] sm:$0xff] }
 0x8ea   :  { %v5689_v14 = vld [vmem:[#allocation2 + $0x21] sm:$0xff] }
 0x8ec   :  { %7808 = vmatmul.mubr.f32.gmra.mrb[188].mxu1 %v15898_v2 }
 0x8ed   :  { %7812 = vmatprep.mubr.f32.mxu1 %v5623_v58  ;;  %v7003_v58 = vld [vmem:[%s17502_s4 + $0x318] sm:$0xff] }
 0x8ee   :  { %v10302_v17 = vpack.c.bf16 %v7003_v58, %v7002_v19  ;;  %v7007_v19 = vld [vmem:[%s17502_s4 + $0x338] sm:$0xff] }
 0x8ef   :  { %v5819_v58 = vld [vmem:[#allocation2 + $0x3a] sm:$0xff] }
 0x8f0   :  { %7813 = vmatmul.mubr.f32.gmra.mrb[190].mxu1 %v15907_v15 }
 0x8f1   :  { %7882 = vmatprep.mubr.f32.mxu1 %v15533_v21  ;;  %v7004_v21 = vld [vmem:[%s17502_s4 + $0x320] sm:$0xff] }
 0x8f4   :  { %7883 = vmatmul.mubr.f32.vlgmr.msra.gmra.mrb[64].mxu1 %v5688_v22  ;;  %v10305_v22 = vpack.c.bf16 %v7005_v41, %v7004_v21  ;;  %v7009_v21 = vld [vmem:[%s17502_s4 + $0x348] sm:$0xff]  ;;  %v15942_v41 = vld [vmem:[#allocation2 + $0x39] sm:$0xff] }
 0x8f5   :  { %10300 = vmatpush1.bf16.msra.mxu1 %v10299_v56  ;;  %7887 = vmatprep.mubr.f32.mxu1 %v15548_v0  ;;  %v7006_v0 = vld [vmem:[%s17502_s4 + $0x330] sm:$0xff] }
 0x8f6   :  { %10301 = vmatprep.subr.bf16.mxu1 %v17937_v46  ;;  %v15932_v56 = vld [vmem:[#allocation2 + $0x31] sm:$0xff] }
 0x8f8   :  { %7888 = vmatmul.mubr.f32.gmra.mrb[66].mxu1 %v5689_v14  ;;  %v5820_v14 = vld [vmem:[#allocation2 + $0x4a] sm:$0xff] }
 0x8f9   :  { %7892 = vmatprep.mubr.f32.mxu1 %v5818_v29  ;;  %10303 = vmatpush1.bf16.msra.mxu1 %v10302_v17  ;;  %v10308_v29 = vpack.c.bf16 %v7007_v19, %v7006_v0  ;;  %v7008_v17 = vld [vmem:[%s17502_s4 + $0x340] sm:$0xff]  ;;  %v7011_v0 = vld [vmem:[%s17502_s4 + $0x358] sm:$0xff]  ;;  %v15952_v19 = vld [vmem:[#allocation2 + $0x49] sm:$0xff] }
 0x8fa   :  { %10304 = vmatprep.subr.bf16.mxu1 %v17937_v46 }
 0x8fc   :  { %7893 = vmatmul.mubr.f32.gmra.mrb[68].mxu1 %v15932_v56 }
 0x8fd   :  { %7897 = vmatprep.mubr.f32.mxu1 %v5819_v58  ;;  %10306 = vmatpush1.bf16.msra.mxu1 %v10305_v22  ;;  %v10311_v58 = vpack.c.bf16 %v7009_v21, %v7008_v17  ;;  %v7010_v22 = vld [vmem:[%s17502_s4 + $0x350] sm:$0xff]  ;;  %v7013_v17 = vld [vmem:[%s17502_s4 + $0x368] sm:$0xff] }
 0x8fe   :  { %10307 = vmatprep.subr.bf16.mxu1 %v17937_v46  ;;  %v15962_v21 = vld [vmem:[#allocation2 + $0x51] sm:$0xff] }
 0x900   :  { %7898 = vmatmul.mubr.f32.gmra.mrb[70].mxu1 %v15942_v41 }
 0x901   :  { %7902 = vmatprep.mubr.f32.mxu1 %v5820_v14  ;;  %10309 = vmatpush1.bf16.msra.mxu1 %v10308_v29  ;;  %v10314_v14 = vpack.c.bf16 %v7011_v0, %v7010_v22  ;;  %v7012_v29 = vld [vmem:[%s17502_s4 + $0x360] sm:$0xff]  ;;  %v7015_v22 = vld [vmem:[%s17502_s4 + $0x378] sm:$0xff] }
 0x902   :  { %10310 = vmatprep.subr.bf16.mxu1 %v17937_v46  ;;  %v15972_v0 = vld [vmem:[#allocation2 + $0x61] sm:$0xff] }
 0x904   :  { %7903 = vmatmul.mubr.f32.gmra.mrb[72].mxu1 %v15952_v19 }
 0x905   :  { %7907 = vmatprep.mubr.f32.mxu1 %v5821_v26  ;;  %10312 = vmatpush1.bf16.msra.mxu1 %v10311_v58  ;;  %v10317_v26 = vpack.c.bf16 %v7013_v17, %v7012_v29  ;;  %v7014_v58 = vld [vmem:[%s17502_s4 + $0x370] sm:$0xff]  ;;  %v7017_v29 = vld [vmem:[%s17502_s4 + $0x388] sm:$0xff] }
 0x906   :  { %10313 = vmatprep.subr.bf16.mxu1 %v17937_v46  ;;  %v15982_v17 = vld [vmem:[#allocation2 + $0x69] sm:$0xff] }
 0x907   :  { %18075 = vst [vmem:[#allocation16_spill] sm:$0xff] %v15982_v17 }
 0x908   :  { %7908 = vmatmul.mubr.f32.gmra.mrb[74].mxu1 %v15962_v21 }
 0x909   :  { %7912 = vmatprep.mubr.f32.mxu1 %v5822_v59  ;;  %10315 = vmatpush1.bf16.msra.mxu1 %v10314_v14  ;;  %v10320_v59 = vpack.c.bf16 %v7015_v22, %v7014_v58  ;;  %v7016_v14 = vld [vmem:[%s17502_s4 + $0x380] sm:$0xff]  ;;  %v7019_v58 = vld [vmem:[%s17502_s4 + $0x398] sm:$0xff] }
 0x90a   :  { %10316 = vmatprep.subr.bf16.mxu1 %v17937_v46  ;;  %v15992_v22 = vld [vmem:[#allocation2 + $0x79] sm:$0xff] }
 0x90c   :  { %7913 = vmatmul.mubr.f32.gmra.mrb[76].mxu1 %v15972_v0 }
 0x90d   :  { %7917 = vmatprep.mubr.f32.mxu1 %v5823_v45  ;;  %10318 = vmatpush1.bf16.msra.mxu1 %v10317_v26  ;;  %v10323_v45 = vpack.c.bf16 %v7017_v29, %v7016_v14  ;;  %v7018_v26 = vld [vmem:[%s17502_s4 + $0x390] sm:$0xff]  ;;  %v7021_v14 = vld [vmem:[%s17502_s4 + $0x3a8] sm:$0xff] }
 0x90e   :  { %10319 = vmatprep.subr.bf16.mxu1 %v17937_v46  ;;  %v16002_v29 = vld [vmem:[#allocation2 + $0x81] sm:$0xff] }
 0x910   :  { %7918 = vmatmul.mubr.f32.gmra.mrb[78].mxu1 %v15982_v17  ;;  %v5826_v17 = vld [vmem:[#allocation2 + $0x92] sm:$0xff] }
 0x911   :  { %7922 = vmatprep.mubr.f32.mxu1 %v5824_v50  ;;  %10321 = vmatpush1.bf16.msra.mxu1 %v10320_v59  ;;  %v10326_v50 = vpack.c.bf16 %v7019_v58, %v7018_v26  ;;  %v7020_v59 = vld [vmem:[%s17502_s4 + $0x3a0] sm:$0xff] }
 0x912   :  { %10322 = vmatprep.subr.bf16.mxu1 %v17937_v46  ;;  %v5827_v26 = vld [vmem:[#allocation2 + $0x9a] sm:$0xff] }
 0x913   :  { %v16010_v58 = vld [vmem:[#allocation2 + $0x99] sm:$0xff] }
 0x914   :  { %7923 = vmatmul.mubr.f32.gmra.mrb[80].mxu1 %v15992_v22 }
 0x915   :  { %7927 = vmatprep.mubr.f32.mxu1 %v5825_v6  ;;  %10324 = vmatpush1.bf16.msra.mxu1 %v10323_v45  ;;  %v10329_v6 = vpack.c.bf16 %v7021_v14, %v7020_v59  ;;  %v16006_v45 = vld [vmem:[#allocation2 + $0x91] sm:$0xff] }
 0x916   :  { %10325 = vmatprep.subr.bf16.mxu1 %v17937_v46  ;;  %v7023_v59 = vld [vmem:[%s17502_s4 + $0x3b8] sm:$0xff] }
 0x918   :  { %7928 = vmatmul.mubr.f32.gmra.mrb[82].mxu1 %v16002_v29 }
 0x919   :  { %7932 = vmatprep.mubr.f32.mxu1 %v5826_v17  ;;  %10327 = vmatpush1.bf16.msra.mxu1 %v10326_v50  ;;  %v16014_v17 = vld [vmem:[#allocation2 + $0xa9] sm:$0xff] }
 0x91a   :  { %10328 = vmatprep.subr.bf16.mxu1 %v17937_v46  ;;  %v7022_v50 = vld [vmem:[%s17502_s4 + $0x3b0] sm:$0xff] }
 0x91b   :  { %v10332_v14 = vpack.c.bf16 %v7023_v59, %v7022_v50  ;;  %v7025_v50 = vld [vmem:[%s17502_s4 + $0x3c8] sm:$0xff] }
 0x91c   :  { %7933 = vmatmul.mubr.f32.gmra.mrb[84].mxu1 %v16006_v45  ;;  %v16047_v59 = vld [vmem:[#allocation2 + $0xe1] sm:$0xff] }
 0x91d   :  { %7937 = vmatprep.mubr.f32.mxu1 %v5827_v26  ;;  %10330 = vmatpush1.bf16.msra.mxu1 %v10329_v6  ;;  %v16024_v6 = vld [vmem:[#allocation2 + $0xb1] sm:$0xff]  ;;  %v16033_v26 = vld [vmem:[#allocation2 + $0xc9] sm:$0xff] }
 0x91e   :  { %10331 = vmatprep.subr.bf16.mxu1 %v17937_v46 }
 0x920   :  { %7938 = vmatmul.mubr.f32.gmra.mrb[86].mxu1 %v16010_v58 }
 0x921   :  { %7942 = vmatprep.mubr.f32.mxu1 %v15667_v37  ;;  %10333 = vmatpush1.bf16.msra.mxu1 %v10332_v14  ;;  %v16029_v37 = vld [vmem:[#allocation2 + $0xc1] sm:$0xff]  ;;  %v16056_v14 = vld [vmem:[#allocation2 + $0xf9] sm:$0xff] }
 0x922   :  { %10334 = vmatprep.subr.bf16.mxu1 %v17937_v46 }
 0x924   :  { %7943 = vmatmul.mubr.f32.gmra.mrb[88].mxu1 %v16014_v17 }
 0x925   :  { %7947 = vmatprep.mubr.f32.mxu1 %v15675_v51  ;;  %v16037_v51 = vld [vmem:[#allocation2 + $0xd9] sm:$0xff] }
 0x928   :  { %7948 = vmatmul.mubr.f32.gmra.mrb[90].mxu1 %v16024_v6 }
 0x929   :  { %7952 = vmatprep.mubr.f32.mxu1 %v15683_v53  ;;  %v7024_v53 = vld [vmem:[%s17502_s4 + $0x3c0] sm:$0xff] }
 0x92c   :  { %7953 = vmatmul.mubr.f32.gmra.mrb[92].mxu1 %v16029_v37 }
 0x92d   :  { %7957 = vmatprep.mubr.f32.mxu1 %v15697_v40  ;;  %v10335_v40 = vpack.c.bf16 %v7025_v50, %v7024_v53  ;;  %v7027_v53 = vld [vmem:[%s17502_s4 + $0x3d8] sm:$0xff] }
 0x92e   :  { %v16070_v50 = vld [vmem:[#allocation2 + $0x111] sm:$0xff] }
 0x92f   :  { %10336 = vmatpush1.bf16.msra.mxu1 %v10335_v40  ;;  %v16079_v40 = vld [vmem:[#allocation2 + $0x129] sm:$0xff] }
 0x930   :  { %7958 = vmatmul.mubr.f32.gmra.mrb[94].mxu1 %v16033_v26  ;;  %10337 = vmatprep.subr.bf16.mxu1 %v17937_v46 }
 0x931   :  { %7962 = vmatprep.mubr.f32.mxu1 %v15706_v13  ;;  %v16052_v13 = vld [vmem:[#allocation2 + $0xf1] sm:$0xff] }
 0x934   :  { %7963 = vmatmul.mubr.f32.gmra.mrb[96].mxu1 %v16037_v51 }
 0x935   :  { %7967 = vmatprep.mubr.f32.mxu1 %v15714_v24  ;;  %v16060_v24 = vld [vmem:[#allocation2 + $0x109] sm:$0xff] }
 0x938   :  { %7968 = vmatmul.mubr.f32.gmra.mrb[98].mxu1 %v16047_v59 }
 0x939   :  { %7972 = vmatprep.mubr.f32.mxu1 %v15718_v43  ;;  %v7026_v43 = vld [vmem:[%s17502_s4 + $0x3d0] sm:$0xff] }
 0x93c   :  { %7973 = vmatmul.mubr.f32.gmra.mrb[100].mxu1 %v16052_v13 }
 0x93d   :  { %7977 = vmatprep.mubr.f32.mxu1 %v15728_v30  ;;  %v10338_v30 = vpack.c.bf16 %v7027_v53, %v7026_v43  ;;  %v7029_v43 = vld [vmem:[%s17502_s4 + $0x3e8] sm:$0xff] }
 0x93e   :  { %v16093_v53 = vld [vmem:[#allocation2 + $0x141] sm:$0xff] }
 0x93f   :  { %10339 = vmatpush1.bf16.msra.mxu1 %v10338_v30  ;;  %v16102_v30 = vld [vmem:[#allocation2 + $0x159] sm:$0xff] }
 0x940   :  { %7978 = vmatmul.mubr.f32.gmra.mrb[102].mxu1 %v16056_v14  ;;  %10340 = vmatprep.subr.bf16.mxu1 %v17937_v46  ;;  %18076 = vst [vmem:[#allocation15_spill] sm:$0xff] %v16102_v30 }
 0x941   :  { %7982 = vmatprep.mubr.f32.mxu1 %v15733_v36  ;;  %v16075_v36 = vld [vmem:[#allocation2 + $0x121] sm:$0xff] }
 0x944   :  { %7983 = vmatmul.mubr.f32.gmra.mrb[104].mxu1 %v16060_v24 }
 0x945   :  { %7987 = vmatprep.mubr.f32.mxu1 %v15737_v8  ;;  %v16083_v8 = vld [vmem:[#allocation2 + $0x139] sm:$0xff] }
 0x948   :  { %7988 = vmatmul.mubr.f32.gmra.mrb[106].mxu1 %v16070_v50 }
 0x949   :  { %7992 = vmatprep.mubr.f32.mxu1 %v15741_v27  ;;  %v7028_v27 = vld [vmem:[%s17502_s4 + $0x3e0] sm:$0xff] }
 0x94c   :  { %7993 = vmatmul.mubr.f32.gmra.mrb[108].mxu1 %v16075_v36 }
 0x94d   :  { %7997 = vmatprep.mubr.f32.mxu1 %v15751_v54  ;;  %v10341_v54 = vpack.c.bf16 %v7029_v43, %v7028_v27  ;;  %v16116_v27 = vld [vmem:[#allocation2 + $0x171] sm:$0xff] }
 0x94e   :  { %v18078_v43 = vld [vmem:[#allocation18_spill] sm:$0xff] }
 0x94f   :  { %10342 = vmatpush1.bf16.msra.mxu1 %v10341_v54  ;;  %v16120_v54 = vld [vmem:[#allocation2 + $0x181] sm:$0xff] }
 0x950   :  { %7998 = vmatmul.mubr.f32.gmra.mrb[110].mxu1 %v16079_v40  ;;  %10343 = vmatprep.subr.bf16.mxu1 %v17937_v46  ;;  %v7030_v46 = vld [vmem:[%s17502_s4 + $0x3f0] sm:$0xff] }
 0x951   :  { %8002 = vmatprep.mubr.f32.mxu1 %v15756_v18  ;;  %v16098_v18 = vld [vmem:[#allocation2 + $0x151] sm:$0xff] }
 0x954   :  { %8003 = vmatmul.mubr.f32.gmra.mrb[112].mxu1 %v16083_v8 }
 0x955   :  { %8007 = vmatprep.mubr.f32.mxu1 %v15760_v28  ;;  %v16106_v28 = vld [vmem:[#allocation2 + $0x169] sm:$0xff] }
 0x956   :  { %18077 = vst [vmem:[#allocation34_spill] sm:$0xff] %v16106_v28 }
 0x958   :  { %8008 = vmatmul.mubr.f32.gmra.mrb[114].mxu1 %v16093_v53 }
 0x959   :  { %8012 = vmatprep.mubr.f32.mxu1 %v15764_v20  ;;  %v7031_v20 = vld [vmem:[%s17502_s4 + $0x3f8] sm:$0xff] }
 0x95c   :  { %8013 = vmatmul.mubr.f32.gmra.mrb[116].mxu1 %v16098_v18 }
 0x95d   :  { %8017 = vmatprep.mubr.f32.mxu1 %v15774_v16  ;;  %v10344_v16 = vpack.c.bf16 %v7031_v20, %v7030_v46  ;;  %v5721_v46 = vld [vmem:[#allocation2 + $0x1d1] sm:$0xff]  ;;  %v16129_v20 = vld [vmem:[#allocation2 + $0x1e1] sm:$0xff] }
 0x95f   :  { %10345 = vmatpush1.bf16.msra.mxu1 %v10344_v16  ;;  %v16246_v16 = vld [vmem:[#allocation2 + $0x33a] sm:$0xff] }
 0x960   :  { %8018 = vmatmul.mubr.f32.gmra.mrb[118].mxu1 %v16102_v30  ;;  %10378 = vmatprep.subr.bf16.mxu1 %v18078_v43  ;;  %v16123_v30 = vld [vmem:[#allocation2 + $0x189] sm:$0xff]  ;;  %18079 = vst [vmem:[#allocation35_spill] sm:$0xff] %v16246_v16 }
 0x961   :  { %8022 = vmatprep.mubr.f32.mxu1 %v15778_v33  ;;  %v5846_v33 = vld [vmem:[#allocation2 + $0x182] sm:$0xff] }
 0x964   :  { %8023 = vmatmul.mubr.f32.gmra.mrb[120].mxu1 %v16106_v28  ;;  %v5847_v28 = vld [vmem:[#allocation2 + $0x18a] sm:$0xff] }
 0x965   :  { %8027 = vmatprep.mubr.f32.mxu1 %v15781_v3  ;;  %v5720_v3 = vld [vmem:[#allocation2 + $0x1c9] sm:$0xff] }
 0x968   :  { %8028 = vmatmul.mubr.f32.gmra.mrb[122].mxu1 %v16116_v27 }
 0x969   :  { %8032 = vmatprep.mubr.f32.mxu1 %v5846_v33  ;;  %v18080_v33 = vld [vmem:[#allocation17_spill] sm:$0xff] }
 0x96c   :  { %8033 = vmatmul.mubr.f32.gmra.mrb[124].mxu1 %v16120_v54 }
 0x96d   :  { %8037 = vmatprep.mubr.f32.mxu1 %v5847_v28  ;;  %v16133_v28 = vld [vmem:[#allocation2 + $0x1e9] sm:$0xff] }
 0x970   :  { %8038 = vmatmul.mubr.f32.gmra.mrb[126].mxu1 %v16123_v30 }
 0x971   :  { %8042 = vmatprep.mubr.f32.mxu1 %v15787_v10  ;;  %v16137_v10 = vld [vmem:[#allocation2 + $0x1f9] sm:$0xff] }
 0x974   :  { %8043 = vmatmul.mubr.f32.gmra.mrb[128].mxu1 %v5720_v3  ;;  %v5945_v3 = vld [vmem:[#allocation2 + $0x38] sm:$0xff] }
 0x975   :  { %8047 = vmatprep.mubr.f32.mxu1 %v15791_v23  ;;  %v16141_v23 = vld [vmem:[#allocation2 + $0x201] sm:$0xff] }
 0x978   :  { %8048 = vmatmul.mubr.f32.gmra.mrb[130].mxu1 %v5721_v46  ;;  %v18081_v46 = vld [vmem:[#allocation21_spill] sm:$0xff] }
 0x979   :  { %8052 = vmatprep.mubr.f32.mxu1 %v15795_v12  ;;  %v16145_v12 = vld [vmem:[#allocation2 + $0x211] sm:$0xff] }
 0x97c   :  { %8053 = vmatmul.mubr.f32.gmra.mrb[132].mxu1 %v16129_v20 }
 0x97d   :  { %8057 = vmatprep.mubr.f32.mxu1 %v15799_v47  ;;  %v16149_v47 = vld [vmem:[#allocation2 + $0x219] sm:$0xff] }
 0x980   :  { %8058 = vmatmul.mubr.f32.gmra.mrb[134].mxu1 %v16133_v28 }
 0x981   :  { %8062 = vmatprep.mubr.f32.mxu1 %v15803_v32  ;;  %v16153_v32 = vld [vmem:[#allocation2 + $0x229] sm:$0xff] }
 0x984   :  { %8063 = vmatmul.mubr.f32.gmra.mrb[136].mxu1 %v16137_v10 }
 0x985   :  { %8067 = vmatprep.mubr.f32.mxu1 %v15807_v35  ;;  %v16157_v35 = vld [vmem:[#allocation2 + $0x231] sm:$0xff] }
 0x988   :  { %8068 = vmatmul.mubr.f32.gmra.mrb[138].mxu1 %v16141_v23 }
 0x989   :  { %8072 = vmatprep.mubr.f32.mxu1 %v15811_v49  ;;  %v16161_v49 = vld [vmem:[#allocation2 + $0x241] sm:$0xff] }
 0x98c   :  { %8073 = vmatmul.mubr.f32.gmra.mrb[140].mxu1 %v16145_v12 }
 0x98d   :  { %8077 = vmatprep.mubr.f32.mxu1 %v15815_v57  ;;  %v16165_v57 = vld [vmem:[#allocation2 + $0x249] sm:$0xff] }
 0x990   :  { %8078 = vmatmul.mubr.f32.gmra.mrb[142].mxu1 %v16149_v47 }
 0x991   :  { %8082 = vmatprep.mubr.f32.mxu1 %v15819_v7  ;;  %v16169_v7 = vld [vmem:[#allocation2 + $0x259] sm:$0xff] }
 0x994   :  { %8083 = vmatmul.mubr.f32.gmra.mrb[144].mxu1 %v16153_v32 }
 0x995   :  { %8087 = vmatprep.mubr.f32.mxu1 %v15823_v9  ;;  %v16173_v9 = vld [vmem:[#allocation2 + $0x261] sm:$0xff] }
 0x998   :  { %8088 = vmatmul.mubr.f32.gmra.mrb[146].mxu1 %v16157_v35 }
 0x999   :  { %8092 = vmatprep.mubr.f32.mxu1 %v15827_v4  ;;  %v16177_v4 = vld [vmem:[#allocation2 + $0x271] sm:$0xff] }
 0x99c   :  { %8093 = vmatmul.mubr.f32.gmra.mrb[148].mxu1 %v16161_v49 }
 0x99d   :  { %8097 = vmatprep.mubr.f32.mxu1 %v15831_v25  ;;  %v16181_v25 = vld [vmem:[#allocation2 + $0x279] sm:$0xff] }
 0x9a0   :  { %8098 = vmatmul.mubr.f32.gmra.mrb[150].mxu1 %v16165_v57 }
 0x9a1   :  { %8102 = vmatprep.mubr.f32.mxu1 %v15835_v34  ;;  %v16185_v34 = vld [vmem:[#allocation2 + $0x289] sm:$0xff] }
 0x9a4   :  { %8103 = vmatmul.mubr.f32.gmra.mrb[152].mxu1 %v16169_v7 }
 0x9a5   :  { %8107 = vmatprep.mubr.f32.mxu1 %v15839_v44  ;;  %v16189_v44 = vld [vmem:[#allocation2 + $0x291] sm:$0xff] }
 0x9a8   :  { %8108 = vmatmul.mubr.f32.gmra.mrb[154].mxu1 %v16173_v9 }
 0x9a9   :  { %8112 = vmatprep.mubr.f32.mxu1 %v15843_v42  ;;  %v16193_v42 = vld [vmem:[#allocation2 + $0x2a1] sm:$0xff] }
 0x9ac   :  { %8113 = vmatmul.mubr.f32.gmra.mrb[156].mxu1 %v16177_v4 }
 0x9ad   :  { %8117 = vmatprep.mubr.f32.mxu1 %v15847_v63  ;;  %v16197_v63 = vld [vmem:[#allocation2 + $0x2a9] sm:$0xff] }
 0x9b0   :  { %8118 = vmatmul.mubr.f32.gmra.mrb[158].mxu1 %v16181_v25 }
 0x9b1   :  { %8122 = vmatprep.mubr.f32.mxu1 %v15851_v61  ;;  %v16201_v61 = vld [vmem:[#allocation2 + $0x2b9] sm:$0xff] }
 0x9b4   :  { %8123 = vmatmul.mubr.f32.gmra.mrb[160].mxu1 %v16185_v34 }
 0x9b5   :  { %8127 = vmatprep.mubr.f32.mxu1 %v15855_v39  ;;  %v16205_v39 = vld [vmem:[#allocation2 + $0x2c1] sm:$0xff] }
 0x9b8   :  { %8128 = vmatmul.mubr.f32.gmra.mrb[162].mxu1 %v16189_v44 }
 0x9b9   :  { %8132 = vmatprep.mubr.f32.mxu1 %v15859_v31  ;;  %v16209_v31 = vld [vmem:[#allocation2 + $0x2d1] sm:$0xff] }
 0x9bc   :  { %8133 = vmatmul.mubr.f32.gmra.mrb[164].mxu1 %v16193_v42 }
 0x9bd   :  { %8137 = vmatprep.mubr.f32.mxu1 %v15863_v55  ;;  %v16213_v55 = vld [vmem:[#allocation2 + $0x2d9] sm:$0xff] }
 0x9c0   :  { %8138 = vmatmul.mubr.f32.gmra.mrb[166].mxu1 %v16197_v63 }
 0x9c1   :  { %8142 = vmatprep.mubr.f32.mxu1 %v15867_v52  ;;  %v16217_v52 = vld [vmem:[#allocation2 + $0x2e9] sm:$0xff] }
 0x9c4   :  { %8143 = vmatmul.mubr.f32.gmra.mrb[168].mxu1 %v16201_v61 }
 0x9c5   :  { %8147 = vmatprep.mubr.f32.mxu1 %v15871_v1  ;;  %v16221_v1 = vld [vmem:[#allocation2 + $0x2f1] sm:$0xff] }
 0x9c8   :  { %8148 = vmatmul.mubr.f32.gmra.mrb[170].mxu1 %v16205_v39 }
 0x9c9   :  { %8152 = vmatprep.mubr.f32.mxu1 %v15875_v48  ;;  %v16225_v48 = vld [vmem:[#allocation2 + $0x301] sm:$0xff] }
 0x9cc   :  { %8153 = vmatmul.mubr.f32.gmra.mrb[172].mxu1 %v16209_v31 }
 0x9cd   :  { %8157 = vmatprep.mubr.f32.mxu1 %v15879_v62  ;;  %v16229_v62 = vld [vmem:[#allocation2 + $0x309] sm:$0xff] }
 0x9d0   :  { %8158 = vmatmul.mubr.f32.gmra.mrb[174].mxu1 %v16213_v55 }
 0x9d1   :  { %8162 = vmatprep.mubr.f32.mxu1 %v15883_v11  ;;  %v16233_v11 = vld [vmem:[#allocation2 + $0x319] sm:$0xff] }
 0x9d4   :  { %8163 = vmatmul.mubr.f32.gmra.mrb[176].mxu1 %v16217_v52 }
 0x9d5   :  { %8167 = vmatprep.mubr.f32.mxu1 %v15887_v5  ;;  %v16237_v5 = vld [vmem:[#allocation2 + $0x321] sm:$0xff] }
 0x9d8   :  { %8168 = vmatmul.mubr.f32.gmra.mrb[178].mxu1 %v16221_v1 }
 0x9d9   :  { %8172 = vmatprep.mubr.f32.mxu1 %v15891_v38  ;;  %v16240_v38 = vld [vmem:[#allocation2 + $0x332] sm:$0xff] }
 0x9dc   :  { %8173 = vmatmul.mubr.f32.gmra.mrb[180].mxu1 %v16225_v48 }
 0x9dd   :  { %8177 = vmatprep.mubr.f32.mxu1 %v15895_v60  ;;  %v16243_v60 = vld [vmem:[#allocation2 + $0x331] sm:$0xff] }
 0x9e0   :  { %8178 = vmatmul.mubr.f32.gmra.mrb[182].mxu1 %v16229_v62 }
 0x9e1   :  { %8182 = vmatprep.mubr.f32.mxu1 %v15898_v2  ;;  %v16249_v2 = vld [vmem:[#allocation2 + $0x339] sm:$0xff] }
 0x9e4   :  { %8183 = vmatmul.mubr.f32.gmra.mrb[184].mxu1 %v16233_v11 }
 0x9e5   :  { %8187 = vmatprep.mubr.f32.mxu1 %v15907_v15  ;;  %v5944_v15 = vld [vmem:[#allocation2 + $0x30] sm:$0xff] }
 0x9e8   :  { %8188 = vmatmul.mubr.f32.gmra.mrb[186].mxu1 %v16237_v5 }
 0x9e9   :  { %8192 = vmatprep.mubr.f32.mxu1 %v16240_v38 }
 0x9ec   :  { %8193 = vmatmul.mubr.f32.gmra.mrb[188].mxu1 %v16243_v60 }
 0x9ed   :  { %8197 = vmatprep.mubr.f32.mxu1 %v16246_v16  ;;  %v5946_v16 = vld [vmem:[#allocation2 + $0x48] sm:$0xff] }
 0x9f0   :  { %8198 = vmatmul.mubr.f32.gmra.mrb[190].mxu1 %v16249_v2 }
 0x9f1   :  { %8267 = vmatprep.mubr.f32.mxu1 %v15932_v56  ;;  %v18082_v56 = vld [vmem:[#allocation20_spill] sm:$0xff] }
 0x9f4   :  { %8268 = vmatmul.mubr.f32.vlgmr.msra.gmra.mrb[64].mxu1 %v5944_v15  ;;  %v18084_v15 = vld [vmem:[#allocation16_spill] sm:$0xff] }
 0x9f5   :  { %10386 = vmatpush3.bf16.msra.mxu1 %v18078_v43  ;;  %8272 = vmatprep.mubr.f32.mxu1 %v15942_v41  ;;  %v5947_v43 = vld [vmem:[#allocation2 + $0x50] sm:$0xff]  ;;  %v18083_v41 = vld [vmem:[#allocation19_spill] sm:$0xff] }
 0x9f6   :  { %10379 = vmatprep.subr.bf16.mxu1 %v18080_v33 }
 0x9f8   :  { %8273 = vmatmul.mubr.f32.gmra.mrb[66].mxu1 %v5945_v3  ;;  %v18087_v3 = vld [vmem:[#allocation38_spill] sm:$0xff] }
 0x9f9   :  { %8277 = vmatprep.mubr.f32.mxu1 %v15952_v19  ;;  %10387 = vmatpush3.bf16.msra.mxu1 %v18080_v33  ;;  %v5948_v19 = vld [vmem:[#allocation2 + $0x60] sm:$0xff]  ;;  %v18086_v33 = vld [vmem:[#allocation37_spill] sm:$0xff] }
 0x9fa   :  { %10380 = vmatprep.subr.bf16.mxu1 %v18081_v46 }
 0x9fc   :  { %8278 = vmatmul.mubr.f32.gmra.mrb[68].mxu1 %v5946_v16  ;;  %v18085_v16 = vld [vmem:[#allocation25_spill] sm:$0xff] }
 0x9fd   :  { %8282 = vmatprep.mubr.f32.mxu1 %v15962_v21  ;;  %10388 = vmatpush3.bf16.msra.mxu1 %v18081_v46  ;;  %v5949_v21 = vld [vmem:[#allocation2 + $0x68] sm:$0xff]  ;;  %v5951_v46 = vld [vmem:[#allocation2 + $0x80] sm:$0xff] }
 0x9fe   :  { %10381 = vmatprep.subr.bf16.mxu1 %v18082_v56 }
 0xa00   :  { %8283 = vmatmul.mubr.f32.gmra.mrb[70].mxu1 %v5947_v43  ;;  %v5954_v43 = vld [vmem:[#allocation2 + $0xa8] sm:$0xff] }
 0xa01   :  { %8287 = vmatprep.mubr.f32.mxu1 %v15972_v0  ;;  %10389 = vmatpush3.bf16.msra.mxu1 %v18082_v56  ;;  %v5950_v0 = vld [vmem:[#allocation2 + $0x78] sm:$0xff]  ;;  %v5952_v56 = vld [vmem:[#allocation2 + $0x90] sm:$0xff] }
 0xa02   :  { %10382 = vmatprep.subr.bf16.mxu1 %v18083_v41 }
 0xa04   :  { %8288 = vmatmul.mubr.f32.gmra.mrb[72].mxu1 %v5948_v19  ;;  %v18088_v19 = vld [vmem:[#allocation15_spill] sm:$0xff] }
 0xa05   :  { %8292 = vmatprep.mubr.f32.mxu1 %v18084_v15  ;;  %10390 = vmatpush3.bf16.msra.mxu1 %v18083_v41  ;;  %v5956_v41 = vld [vmem:[#allocation2 + $0xc0] sm:$0xff]  ;;  %v18089_v15 = vld [vmem:[#allocation34_spill] sm:$0xff] }
 0xa06   :  { %10383 = vmatprep.subr.bf16.mxu1 %v18085_v16 }
 0xa08   :  { %8293 = vmatmul.mubr.f32.gmra.mrb[74].mxu1 %v5949_v21  ;;  %v5974_v21 = vld [vmem:[#allocation2 + $0x198] sm:$0xff] }
 0xa09   :  { %8297 = vmatprep.mubr.f32.mxu1 %v15992_v22  ;;  %10391 = vmatpush3.bf16.msra.mxu1 %v18085_v16  ;;  %v5953_v22 = vld [vmem:[#allocation2 + $0x98] sm:$0xff]  ;;  %v5973_v16 = vld [vmem:[#allocation2 + $0x188] sm:$0xff] }
 0xa0a   :  { %10384 = vmatprep.subr.bf16.mxu1 %v18086_v33 }
 0xa0c   :  { %8298 = vmatmul.mubr.f32.gmra.mrb[76].mxu1 %v5950_v0  ;;  %v16297_v0 = vld [vmem:[#allocation2 + $0x8] sm:$0xff] }
 0xa0d   :  { %8302 = vmatprep.mubr.f32.mxu1 %v16002_v29  ;;  %10392 = vmatpush3.bf16.msra.mxu1 %v18086_v33  ;;  %v5955_v29 = vld [vmem:[#allocation2 + $0xb0] sm:$0xff]  ;;  %v6103_v33 = vld [vmem:[#allocation2 + $0x1a1] sm:$0xff] }
 0xa0e   :  { %10385 = vmatprep.subr.bf16.mxu1 %v18087_v3 }
 0xa10   :  { %8303 = vmatmul.mubr.f32.gmra.mrb[78].mxu1 %v5951_v46  ;;  %v5980_v46 = vld [vmem:[#allocation2 + $0x210] sm:$0xff] }
 0xa11   :  { %8307 = vmatprep.mubr.f32.mxu1 %v16006_v45  ;;  %10393 = vmatpush3.bf16.msra.mxu1 %v18087_v3  ;;  %v5957_v45 = vld [vmem:[#allocation2 + $0xc8] sm:$0xff]  ;;  %v5979_v3 = vld [vmem:[#allocation2 + $0x200] sm:$0xff] }
 0xa14   :  { %8308 = vmatmul.mubr.f32.gmra.mrb[80].mxu1 %v5952_v56  ;;  %v5997_v56 = vld [vmem:[#allocation2 + $0x2d8] sm:$0xff] }
 0xa15   :  { %8312 = vmatprep.mubr.f32.mxu1 %v16010_v58  ;;  %v5958_v58 = vld [vmem:[#allocation2 + $0xd8] sm:$0xff] }
 0xa18   :  { %8313 = vmatmul.mubr.f32.gmra.mrb[82].mxu1 %v5953_v22  ;;  %v18090_v22 = vld [vmem:[#allocation5_spill] sm:$0xff] }
 0xa19   :  { %8317 = vmatprep.mubr.f32.mxu1 %v16014_v17  ;;  %v5959_v17 = vld [vmem:[#allocation2 + $0xe0] sm:$0xff] }
 0xa1c   :  { %8318 = vmatmul.mubr.f32.gmra.mrb[84].mxu1 %v5954_v43 }
 0xa1d   :  { %8322 = vmatprep.mubr.f32.mxu1 %v16024_v6  ;;  %v5960_v6 = vld [vmem:[#allocation2 + $0xf0] sm:$0xff] }
 0xa20   :  { %8323 = vmatmul.mubr.f32.gmra.mrb[86].mxu1 %v5955_v29  ;;  %v5998_v29 = vld [vmem:[#allocation2 + $0x2e8] sm:$0xff] }
 0xa21   :  { %8327 = vmatprep.mubr.f32.mxu1 %v16029_v37  ;;  %v5961_v37 = vld [vmem:[#allocation2 + $0xf8] sm:$0xff] }
 0xa24   :  { %8328 = vmatmul.mubr.f32.gmra.mrb[88].mxu1 %v5956_v41 }
 0xa25   :  { %8332 = vmatprep.mubr.f32.mxu1 %v16033_v26  ;;  %v5962_v26 = vld [vmem:[#allocation2 + $0x108] sm:$0xff] }
 0xa28   :  { %8333 = vmatmul.mubr.f32.gmra.mrb[90].mxu1 %v5957_v45 }
 0xa29   :  { %8337 = vmatprep.mubr.f32.mxu1 %v16037_v51  ;;  %v5963_v51 = vld [vmem:[#allocation2 + $0x110] sm:$0xff] }
 0xa2c   :  { %8338 = vmatmul.mubr.f32.gmra.mrb[92].mxu1 %v5958_v58  ;;  %v18092_v58 = vld [vmem:[#allocation28_spill] sm:$0xff] }
 0xa2d   :  { %8342 = vmatprep.mubr.f32.mxu1 %v16047_v59  ;;  %v5964_v59 = vld [vmem:[#allocation2 + $0x120] sm:$0xff] }
 0xa30   :  { %8343 = vmatmul.mubr.f32.gmra.mrb[94].mxu1 %v5959_v17 }
 0xa31   :  { %8347 = vmatprep.mubr.f32.mxu1 %v16052_v13  ;;  %v5965_v13 = vld [vmem:[#allocation2 + $0x128] sm:$0xff] }
 0xa34   :  { %8348 = vmatmul.mubr.f32.gmra.mrb[96].mxu1 %v5960_v6 }
 0xa35   :  { %8352 = vmatprep.mubr.f32.mxu1 %v16056_v14  ;;  %v5966_v14 = vld [vmem:[#allocation2 + $0x138] sm:$0xff] }
 0xa38   :  { %8353 = vmatmul.mubr.f32.gmra.mrb[98].mxu1 %v5961_v37 }
 0xa39   :  { %8357 = vmatprep.mubr.f32.mxu1 %v16060_v24  ;;  %v5967_v24 = vld [vmem:[#allocation2 + $0x140] sm:$0xff] }
 0xa3c   :  { %8358 = vmatmul.mubr.f32.gmra.mrb[100].mxu1 %v5962_v26  ;;  %v18093_v26 = vld [vmem:[#allocation27_spill] sm:$0xff] }
 0xa3d   :  { %8362 = vmatprep.mubr.f32.mxu1 %v16070_v50  ;;  %v5968_v50 = vld [vmem:[#allocation2 + $0x150] sm:$0xff] }
 0xa40   :  { %8363 = vmatmul.mubr.f32.gmra.mrb[102].mxu1 %v5963_v51 }
 0xa41   :  { %8367 = vmatprep.mubr.f32.mxu1 %v16075_v36  ;;  %v5969_v36 = vld [vmem:[#allocation2 + $0x158] sm:$0xff] }
 0xa44   :  { %8368 = vmatmul.mubr.f32.gmra.mrb[104].mxu1 %v5964_v59 }
 0xa45   :  { %8372 = vmatprep.mubr.f32.mxu1 %v16079_v40  ;;  %v5970_v40 = vld [vmem:[#allocation2 + $0x168] sm:$0xff] }
 0xa48   :  { %8373 = vmatmul.mubr.f32.gmra.mrb[106].mxu1 %v5965_v13 }
 0xa49   :  { %8377 = vmatprep.mubr.f32.mxu1 %v16083_v8  ;;  %v5971_v8 = vld [vmem:[#allocation2 + $0x170] sm:$0xff] }
 0xa4c   :  { %8378 = vmatmul.mubr.f32.gmra.mrb[108].mxu1 %v5966_v14  ;;  %v18095_v14 = vld [vmem:[#allocation31_spill] sm:$0xff] }
 0xa4d   :  { %8382 = vmatprep.mubr.f32.mxu1 %v16093_v53  ;;  %v5972_v53 = vld [vmem:[#allocation2 + $0x180] sm:$0xff] }
 0xa50   :  { %8383 = vmatmul.mubr.f32.gmra.mrb[110].mxu1 %v5967_v24 }
 0xa51   :  { %8387 = vmatprep.mubr.f32.mxu1 %v16098_v18  ;;  %v6102_v18 = vld [vmem:[#allocation2 + $0x199] sm:$0xff] }
 0xa54   :  { %8388 = vmatmul.mubr.f32.gmra.mrb[112].mxu1 %v5968_v50 }
 0xa55   :  { %8392 = vmatprep.mubr.f32.mxu1 %v18088_v19 }
 0xa58   :  { %8393 = vmatmul.mubr.f32.gmra.mrb[114].mxu1 %v5969_v36  ;;  %v18097_v36 = vld [vmem:[#allocation30_spill] sm:$0xff] }
 0xa59   :  { %8397 = vmatprep.mubr.f32.mxu1 %v18089_v15 }
 0xa5c   :  { %8398 = vmatmul.mubr.f32.gmra.mrb[116].mxu1 %v5970_v40 }
 0xa5d   :  { %8402 = vmatprep.mubr.f32.mxu1 %v16116_v27  ;;  %v5976_v27 = vld [vmem:[#allocation2 + $0x1e0] sm:$0xff] }
 0xa60   :  { %8403 = vmatmul.mubr.f32.gmra.mrb[118].mxu1 %v5971_v8 }
 0xa61   :  { %8407 = vmatprep.mubr.f32.mxu1 %v16120_v54  ;;  %v5977_v54 = vld [vmem:[#allocation2 + $0x1e8] sm:$0xff] }
 0xa64   :  { %8408 = vmatmul.mubr.f32.gmra.mrb[120].mxu1 %v5972_v53  ;;  %v18098_v53 = vld [vmem:[#allocation22_spill] sm:$0xff] }
 0xa65   :  { %8412 = vmatprep.mubr.f32.mxu1 %v16123_v30  ;;  %v5978_v30 = vld [vmem:[#allocation2 + $0x1f8] sm:$0xff] }
 0xa68   :  { %8413 = vmatmul.mubr.f32.gmra.mrb[122].mxu1 %v5973_v16 }
 0xa69   :  { %8417 = vmatprep.mubr.f32.mxu1 %v6102_v18 }
 0xa6c   :  { %8418 = vmatmul.mubr.f32.gmra.mrb[124].mxu1 %v5974_v21 }
 0xa6d   :  { %8422 = vmatprep.mubr.f32.mxu1 %v6103_v33  ;;  %v18099_v33 = vld [vmem:[#allocation33_spill] sm:$0xff] }
 0xa70   :  { %8423 = vmatmul.mubr.f32.gmra.mrb[126].mxu1 %v16297_v0 }
 0xa71   :  { %8427 = vmatprep.mubr.f32.mxu1 %v16129_v20  ;;  %v5981_v20 = vld [vmem:[#allocation2 + $0x218] sm:$0xff] }
 0xa74   :  { %8428 = vmatmul.mubr.f32.gmra.mrb[128].mxu1 %v5976_v27 }
 0xa75   :  { %8432 = vmatprep.mubr.f32.mxu1 %v16133_v28  ;;  %v5982_v28 = vld [vmem:[#allocation2 + $0x228] sm:$0xff] }
 0xa78   :  { %8433 = vmatmul.mubr.f32.gmra.mrb[130].mxu1 %v5977_v54 }
 0xa79   :  { %8437 = vmatprep.mubr.f32.mxu1 %v16137_v10  ;;  %v5983_v10 = vld [vmem:[#allocation2 + $0x230] sm:$0xff] }
 0xa7c   :  { %8438 = vmatmul.mubr.f32.gmra.mrb[132].mxu1 %v5978_v30  ;;  %v6134_v30 = vld [vmem:[#allocation2 + $0x349] sm:$0xff] }
 0xa7d   :  { %8442 = vmatprep.mubr.f32.mxu1 %v16141_v23  ;;  %v5984_v23 = vld [vmem:[#allocation2 + $0x240] sm:$0xff] }
 0xa80   :  { %8443 = vmatmul.mubr.f32.gmra.mrb[134].mxu1 %v5979_v3  ;;  %v6005_v3 = vld [vmem:[#allocation2 + $0x338] sm:$0xff] }
 0xa81   :  { %8447 = vmatprep.mubr.f32.mxu1 %v16145_v12  ;;  %v5985_v12 = vld [vmem:[#allocation2 + $0x248] sm:$0xff] }
 0xa84   :  { %8448 = vmatmul.mubr.f32.gmra.mrb[136].mxu1 %v5980_v46  ;;  %v18100_v46 = vld [vmem:[#allocation24_spill] sm:$0xff] }
 0xa85   :  { %8452 = vmatprep.mubr.f32.mxu1 %v16149_v47  ;;  %v5986_v47 = vld [vmem:[#allocation2 + $0x258] sm:$0xff] }
 0xa88   :  { %8453 = vmatmul.mubr.f32.gmra.mrb[138].mxu1 %v5981_v20 }
 0xa89   :  { %8457 = vmatprep.mubr.f32.mxu1 %v16153_v32  ;;  %v5987_v32 = vld [vmem:[#allocation2 + $0x260] sm:$0xff] }
 0xa8c   :  { %8458 = vmatmul.mubr.f32.gmra.mrb[140].mxu1 %v5982_v28 }
 0xa8d   :  { %8462 = vmatprep.mubr.f32.mxu1 %v16157_v35  ;;  %v5988_v35 = vld [vmem:[#allocation2 + $0x270] sm:$0xff] }
 0xa90   :  { %8463 = vmatmul.mubr.f32.gmra.mrb[142].mxu1 %v5983_v10  ;;  %v6006_v10 = vld [vmem:[#allocation2 + $0x348] sm:$0xff] }
 0xa91   :  { %8467 = vmatprep.mubr.f32.mxu1 %v16161_v49  ;;  %v5989_v49 = vld [vmem:[#allocation2 + $0x278] sm:$0xff] }
 0xa94   :  { %8468 = vmatmul.mubr.f32.gmra.mrb[144].mxu1 %v5984_v23 }
 0xa95   :  { %8472 = vmatprep.mubr.f32.mxu1 %v16165_v57  ;;  %v5990_v57 = vld [vmem:[#allocation2 + $0x288] sm:$0xff] }
 0xa98   :  { %8473 = vmatmul.mubr.f32.gmra.mrb[146].mxu1 %v5985_v12  ;;  %v18101_v12 = vld [vmem:[#allocation23_spill] sm:$0xff] }
 0xa99   :  { %8477 = vmatprep.mubr.f32.mxu1 %v16169_v7  ;;  %v5991_v7 = vld [vmem:[#allocation2 + $0x290] sm:$0xff] }
 0xa9c   :  { %8478 = vmatmul.mubr.f32.gmra.mrb[148].mxu1 %v5986_v47 }
 0xa9d   :  { %8482 = vmatprep.mubr.f32.mxu1 %v16173_v9  ;;  %v5992_v9 = vld [vmem:[#allocation2 + $0x2a0] sm:$0xff] }
 0xaa0   :  { %8483 = vmatmul.mubr.f32.gmra.mrb[150].mxu1 %v5987_v32 }
 0xaa1   :  { %8487 = vmatprep.mubr.f32.mxu1 %v16177_v4  ;;  %v5993_v4 = vld [vmem:[#allocation2 + $0x2a8] sm:$0xff] }
 0xaa4   :  { %8488 = vmatmul.mubr.f32.gmra.mrb[152].mxu1 %v5988_v35 }
 0xaa5   :  { %8492 = vmatprep.mubr.f32.mxu1 %v16181_v25  ;;  %v5994_v25 = vld [vmem:[#allocation2 + $0x2b8] sm:$0xff] }
 0xaa8   :  { %8493 = vmatmul.mubr.f32.gmra.mrb[154].mxu1 %v5989_v49 }
 0xaa9   :  { %8497 = vmatprep.mubr.f32.mxu1 %v16185_v34  ;;  %v5995_v34 = vld [vmem:[#allocation2 + $0x2c0] sm:$0xff] }
 0xaac   :  { %8498 = vmatmul.mubr.f32.gmra.mrb[156].mxu1 %v5990_v57 }
 0xaad   :  { %8502 = vmatprep.mubr.f32.mxu1 %v16189_v44  ;;  %v5996_v44 = vld [vmem:[#allocation2 + $0x2d0] sm:$0xff] }
 0xab0   :  { %8503 = vmatmul.mubr.f32.gmra.mrb[158].mxu1 %v5991_v7  ;;  %v6256_v7 = vld [vmem:[#allocation2 + $0x302] sm:$0xff] }
 0xab1   :  { %8507 = vmatprep.mubr.f32.mxu1 %v16193_v42 }
 0xab4   :  { %8508 = vmatmul.mubr.f32.gmra.mrb[160].mxu1 %v5992_v9 }
 0xab5   :  { %8512 = vmatprep.mubr.f32.mxu1 %v16197_v63 }
 0xab8   :  { %8513 = vmatmul.mubr.f32.gmra.mrb[162].mxu1 %v5993_v4  ;;  %v6257_v4 = vld [vmem:[#allocation2 + $0x30a] sm:$0xff] }
 0xab9   :  { %8517 = vmatprep.mubr.f32.mxu1 %v16201_v61 }
 0xabc   :  { %8518 = vmatmul.mubr.f32.gmra.mrb[164].mxu1 %v5994_v25  ;;  %v18103_v25 = vld [vmem:[#allocation39_spill] sm:$0xff] }
 0xabd   :  { %8522 = vmatprep.mubr.f32.mxu1 %v16205_v39  ;;  %v18091_v39 = vld [vmem:[#allocation13_spill] sm:$0xff] }
 0xac0   :  { %8523 = vmatmul.mubr.f32.gmra.mrb[166].mxu1 %v5995_v34 }
 0xac1   :  { %8527 = vmatprep.mubr.f32.mxu1 %v16209_v31 }
 0xac4   :  { %8528 = vmatmul.mubr.f32.gmra.mrb[168].mxu1 %v5996_v44 }
 0xac5   :  { %8532 = vmatprep.mubr.f32.mxu1 %v16213_v55  ;;  %v5999_v55 = vld [vmem:[#allocation2 + $0x2f0] sm:$0xff] }
 0xac7   :  { %v8269_v42 = vpop.f32.mrb[64].mxu1 }
 0xac8   :  { %v16323_v63 = vadd.f32 %v18090_v22, %v8269_v42  ;;  %v8271_v43 = vpop.f32.mrb[65].mxu1  ;;  %8533 = vmatmul.mubr.f32.gmra.mrb[170].mxu1 %v5997_v56  ;;  %v6258_v42 = vld [vmem:[#allocation2 + $0x31a] sm:$0xff]  ;;  %v6259_v22 = vld [vmem:[#allocation2 + $0x322] sm:$0xff] }
 0xac9   :  { %8537 = vmatprep.mubr.f32.mxu1 %v16217_v52  ;;  %v6000_v52 = vld [vmem:[#allocation2 + $0x300] sm:$0xff]  ;;  %v18104_v43 = vld [vmem:[#allocation43_spill] sm:$0xff] }
 0xacb   :  { %v8274_v61 = vpop.f32.mrb[66].mxu1 }
 0xacc   :  { %v16327_v41 = vadd.f32 %v18091_v39, %v8274_v61  ;;  %v8276_v45 = vpop.f32.mrb[67].mxu1  ;;  %8538 = vmatmul.mubr.f32.gmra.mrb[172].mxu1 %v5998_v29 }
 0xacd   :  { %8542 = vmatprep.mubr.f32.mxu1 %v16221_v1  ;;  %v6001_v1 = vld [vmem:[#allocation2 + $0x308] sm:$0xff]  ;;  %v18105_v45 = vld [vmem:[#allocation42_spill] sm:$0xff] }
 0xacf   :  { %v8279_v31 = vpop.f32.mrb[68].mxu1 }
 0xad0   :  { %v16331_v17 = vadd.f32 %v18092_v58, %v8279_v31  ;;  %v8281_v6 = vpop.f32.mrb[69].mxu1  ;;  %8543 = vmatmul.mubr.f32.gmra.mrb[174].mxu1 %v5999_v55  ;;  %v18106_v58 = vld [vmem:[#allocation35_spill] sm:$0xff] }
 0xad1   :  { %8547 = vmatprep.mubr.f32.mxu1 %v16225_v48  ;;  %v6002_v48 = vld [vmem:[#allocation2 + $0x318] sm:$0xff] }
 0xad2   :  { %v6263_v6 = vld [vmem:[#allocation2 + $0x352] sm:$0xff] }
 0xad3   :  { %v8284_v37 = vpop.f32.mrb[70].mxu1 }
 0xad4   :  { %v16335_v51 = vadd.f32 %v18093_v26, %v8284_v37  ;;  %v8286_v59 = vpop.f32.mrb[71].mxu1  ;;  %8548 = vmatmul.mubr.f32.gmra.mrb[176].mxu1 %v6000_v52  ;;  %v18107_v52 = vld [vmem:[#allocation46_spill] sm:$0xff] }
 0xad5   :  { %8552 = vmatprep.mubr.f32.mxu1 %v16229_v62  ;;  %v6003_v62 = vld [vmem:[#allocation2 + $0x320] sm:$0xff] }
 0xad6   :  { %18094 = vst [vmem:[#allocation11_spill] sm:$0xff] %v16335_v51 }
 0xad7   :  { %v8289_v13 = vpop.f32.mrb[72].mxu1 }
 0xad8   :  { %v16339_v24 = vadd.f32 %v18095_v14, %v8289_v13  ;;  %v8291_v50 = vpop.f32.mrb[73].mxu1  ;;  %8553 = vmatmul.mubr.f32.gmra.mrb[178].mxu1 %v6001_v1  ;;  %v18108_v1 = vld [vmem:[#allocation45_spill] sm:$0xff] }
 0xad9   :  { %8557 = vmatprep.mubr.f32.mxu1 %v16233_v11  ;;  %v6004_v11 = vld [vmem:[#allocation2 + $0x330] sm:$0xff] }
 0xada   :  { %18096 = vst [vmem:[#allocation14_spill] sm:$0xff] %v16339_v24 }
 0xadb   :  { %v8294_v19 = vpop.f32.mrb[74].mxu1 }
 0xadc   :  { %v16343_v15 = vadd.f32 %v18097_v36, %v8294_v19  ;;  %v8296_v40 = vpop.f32.mrb[75].mxu1  ;;  %8558 = vmatmul.mubr.f32.gmra.mrb[180].mxu1 %v6002_v48  ;;  %v18109_v19 = vld [vmem:[#allocation36_spill] sm:$0xff] }
 0xadd   :  { %8562 = vmatprep.mubr.f32.mxu1 %v16237_v5 }
 0xadf   :  { %v8299_v8 = vpop.f32.mrb[76].mxu1 }
 0xae0   :  { %v16347_v18 = vadd.f32 %v18098_v53, %v8299_v8  ;;  %v8301_v16 = vpop.f32.mrb[77].mxu1  ;;  %8563 = vmatmul.mubr.f32.gmra.mrb[182].mxu1 %v6003_v62  ;;  %v18110_v8 = vld [vmem:[#allocation48_spill] sm:$0xff] }
 0xae1   :  { %8567 = vmatprep.mubr.f32.mxu1 %v16243_v60  ;;  %v6135_v60 = vld [vmem:[#allocation2 + $0x351] sm:$0xff] }
 0xae3   :  { %v8304_v21 = vpop.f32.mrb[78].mxu1 }
 0xae4   :  { %v16351_v27 = vadd.f32 %v18099_v33, %v8304_v21  ;;  %v8306_v54 = vpop.f32.mrb[79].mxu1  ;;  %8568 = vmatmul.mubr.f32.gmra.mrb[184].mxu1 %v6004_v11  ;;  %v18111_v21 = vld [vmem:[#allocation12_spill] sm:$0xff] }
 0xae5   :  { %8572 = vmatprep.mubr.f32.mxu1 %v16249_v2  ;;  %v18102_v2 = vld [vmem:[#allocation40_spill] sm:$0xff] }
 0xae7   :  { %v8309_v5 = vpop.f32.mrb[80].mxu1 }
 0xae8   :  { %v16355_v20 = vadd.f32 %v18100_v46, %v8309_v5  ;;  %v8311_v28 = vpop.f32.mrb[81].mxu1  ;;  %8573 = vmatmul.mubr.f32.gmra.mrb[186].mxu1 %v6005_v3 }
 0xae9   :  { %8577 = vmatprep.mubr.f32.mxu1 %v6134_v30  ;;  %v18112_v30 = vld [vmem:[#allocation49_spill] sm:$0xff]  ;;  %v18113_v28 = vld [vmem:[#allocation51_spill] sm:$0xff] }
 0xaeb   :  { %v8314_v23 = vpop.f32.mrb[82].mxu1 }
 0xaec   :  { %v16358_v47 = vadd.f32 %v18101_v12, %v8314_v23  ;;  %v8316_v32 = vpop.f32.mrb[83].mxu1  ;;  %8578 = vmatmul.mubr.f32.gmra.mrb[188].mxu1 %v6006_v10  ;;  %v18115_v12 = vld [vmem:[#allocation50_spill] sm:$0xff] }
 0xaed   :  { %8582 = vmatprep.mubr.f32.mxu1 %v6135_v60 }
 0xaef   :  { %v8319_v35 = vpop.f32.mrb[84].mxu1 }
 0xaf0   :  { %v16361_v49 = vadd.f32 %v18102_v2, %v8319_v35  ;;  %v8321_v57 = vpop.f32.mrb[85].mxu1  ;;  %8583 = vmatmul.mubr.f32.gmra.mrb[190].mxu1 %v16297_v0  ;;  %v6262_v0 = vld [vmem:[#allocation2 + $0x34a] sm:$0xff] }
 0xaf1   :  { %9918 = vmatprep.mubr.f32.mxu1 %v6256_v7  ;;  %v18116_v57 = vld [vmem:[#allocation53_spill] sm:$0xff] }
 0xaf3   :  { %v8324_v9 = vpop.f32.mrb[86].mxu1 }
 0xaf4   :  { %v16365_v34 = vadd.f32 %v18103_v25, %v8324_v9  ;;  %v8326_v44 = vpop.f32.mrb[87].mxu1  ;;  %9919 = vmatmul.mubr.f32.vlgmr.msra.gmra.mrb[192].mxu1 %v6257_v4  ;;  %v18118_v25 = vld [vmem:[#allocation52_spill] sm:$0xff] }
 0xaf5   :  { %9921 = vmatprep.mubr.f32.mxu1 %v6258_v42 }
 0xaf7   :  { %v8329_v56 = vpop.f32.mrb[88].mxu1 }
 0xaf8   :  { %v16368_v61 = vadd.f32 %v18104_v43, %v8329_v56  ;;  %v8331_v29 = vpop.f32.mrb[89].mxu1  ;;  %9922 = vmatmul.mubr.f32.gmra.mrb[194].mxu1 %v6259_v22  ;;  %v18119_v22 = vld [vmem:[#allocation55_spill] sm:$0xff] }
 0xaf9   :  { %9924 = vmatprep.mubr.f32.mxu1 %v16240_v38 }
 0xafb   :  { %v8334_v39 = vpop.f32.mrb[90].mxu1 }
 0xafc   :  { %v16372_v31 = vadd.f32 %v18105_v45, %v8334_v39  ;;  %v8336_v55 = vpop.f32.mrb[91].mxu1  ;;  %9925 = vmatmul.mubr.f32.gmra.mrb[196].mxu1 %v18106_v58  ;;  %v18121_v39 = vld [vmem:[#allocation54_spill] sm:$0xff] }
 0xafd   :  { %9927 = vmatprep.mubr.f32.mxu1 %v6262_v0 }
 0xaff   :  { %v8339_v37 = vpop.f32.mrb[92].mxu1 }
 0xb00   :  { %v16376_v26 = vadd.f32 %v18107_v52, %v8339_v37  ;;  %v8341_v59 = vpop.f32.mrb[93].mxu1  ;;  %9928 = vmatmul.mubr.f32.gmra.mrb[198].mxu1 %v6263_v6  ;;  %v18122_v6 = vld [vmem:[#allocation56_spill] sm:$0xff] }
 0xb03   :  { %v8344_v13 = vpop.f32.mrb[94].mxu1 }
 0xb04   :  { %v16379_v14 = vadd.f32 %v18108_v1, %v8344_v13  ;;  %v8346_v38 = vpop.f32.mrb[95].mxu1  ;;  %v18124_v13 = vld [vmem:[#allocation7_spill] sm:$0xff] }
 0xb07   :  { %v8349_v50 = vpop.f32.mrb[96].mxu1 }
 0xb08   :  { %v16382_v48 = vadd.f32 %v18109_v19, %v8349_v50  ;;  %v8351_v36 = vpop.f32.mrb[97].mxu1  ;;  %v18125_v19 = vld [vmem:[#allocation57_spill] sm:$0xff] }
 0xb0b   :  { %v8354_v40 = vpop.f32.mrb[98].mxu1 }
 0xb0c   :  { %v16385_v62 = vadd.f32 %v18110_v8, %v8354_v40  ;;  %v8356_v53 = vpop.f32.mrb[99].mxu1 }
 0xb0d   :  { %v18127_v53 = vld [vmem:[#allocation9_spill] sm:$0xff] }
 0xb0f   :  { %v8359_v16 = vpop.f32.mrb[100].mxu1 }
 0xb10   :  { %v16388_v11 = vadd.f32 %v18111_v21, %v8359_v16  ;;  %v8361_v33 = vpop.f32.mrb[101].mxu1 }
 0xb13   :  { %v8364_v54 = vpop.f32.mrb[102].mxu1 }
 0xb14   :  { %v16391_v5 = vadd.f32 %v18112_v30, %v8364_v54  ;;  %v8366_v3 = vpop.f32.mrb[103].mxu1  ;;  %v18128_v54 = vld [vmem:[#allocation58_spill] sm:$0xff] }
 0xb17   :  { %v8369_v46 = vpop.f32.mrb[104].mxu1 }
 0xb18   :  { %v16394_v10 = vadd.f32 %v18113_v28, %v8369_v46  ;;  %v8371_v60 = vpop.f32.mrb[105].mxu1  ;;  %v18130_v28 = vld [vmem:[#allocation8_spill] sm:$0xff] }
 0xb1a   :  { %18114 = vst [vmem:[#allocation6_spill] sm:$0xff] %v16394_v10 }
 0xb1b   :  { %v8374_v23 = vpop.f32.mrb[106].mxu1 }
 0xb1c   :  { %v16397_v32 = vadd.f32 %v18115_v12, %v8374_v23  ;;  %v8376_v35 = vpop.f32.mrb[107].mxu1 }
 0xb1d   :  { %v18131_v35 = vld [vmem:[#allocation60_spill] sm:$0xff] }
 0xb1f   :  { %v8379_v2 = vpop.f32.mrb[108].mxu1 }
 0xb20   :  { %v16400_v7 = vadd.f32 %v18116_v57, %v8379_v2  ;;  %v8381_v9 = vpop.f32.mrb[109].mxu1 }
 0xb22   :  { %18117 = vst [vmem:[#allocation29_spill] sm:$0xff] %v16400_v7 }
 0xb23   :  { %v8384_v4 = vpop.f32.mrb[110].mxu1 }
 0xb24   :  { %v16403_v44 = vadd.f32 %v18118_v25, %v8384_v4  ;;  %v8386_v42 = vpop.f32.mrb[111].mxu1  ;;  %v18133_v4 = vld [vmem:[#allocation59_spill] sm:$0xff] }
 0xb27   :  { %v8389_v56 = vpop.f32.mrb[112].mxu1 }
 0xb28   :  { %v16406_v43 = vadd.f32 %v18119_v22, %v8389_v56  ;;  %v8391_v29 = vpop.f32.mrb[113].mxu1  ;;  %v18134_v22 = vld [vmem:[#allocation62_spill] sm:$0xff] }
 0xb2a   :  { %18120 = vst [vmem:[#allocation32_spill] sm:$0xff] %v16406_v43 }
 0xb2b   :  { %v8394_v0 = vpop.f32.mrb[114].mxu1 }
 0xb2c   :  { %v16409_v45 = vadd.f32 %v18121_v39, %v8394_v0  ;;  %v8396_v55 = vpop.f32.mrb[115].mxu1 }
 0xb2d   :  { %v18136_v55 = vld [vmem:[#allocation61_spill] sm:$0xff] }
 0xb2f   :  { %v8399_v58 = vpop.f32.mrb[116].mxu1 }
 0xb30   :  { %v16412_v37 = vadd.f32 %v18122_v6, %v8399_v58  ;;  %v8401_v52 = vpop.f32.mrb[117].mxu1 }
 0xb32   :  { %18123 = vst [vmem:[#allocation4_spill] sm:$0xff] %v16412_v37 }
 0xb33   :  { %v8404_v59 = vpop.f32.mrb[118].mxu1 }
 0xb34   :  { %v16415_v1 = vadd.f32 %v18124_v13, %v8404_v59  ;;  %v8406_v38 = vpop.f32.mrb[119].mxu1  ;;  %v18138_v59 = vld [vmem:[#allocation64_spill] sm:$0xff] }
 0xb37   :  { %v8409_v50 = vpop.f32.mrb[120].mxu1 }
 0xb38   :  { %v16418_v36 = vadd.f32 %v18125_v19, %v8409_v50  ;;  %v8411_v40 = vpop.f32.mrb[121].mxu1  ;;  %v18140_v19 = vld [vmem:[#allocation63_spill] sm:$0xff] }
 0xb3a   :  { %18126 = vst [vmem:[#allocation26_spill] sm:$0xff] %v16418_v36 }
 0xb3b   :  { %v8414_v8 = vpop.f32.mrb[122].mxu1 }
 0xb3c   :  { %v16421_v16 = vadd.f32 %v18127_v53, %v8414_v8  ;;  %v8416_v21 = vpop.f32.mrb[123].mxu1  ;;  %v8973_v53 = vadd.f32 %v16327_v41, %v16323_v63 }
 0xb3e   :  { %v8974_v21 = vadd.f32 %v8973_v53, %v16331_v17 }
 0xb3f   :  { %v8419_v33 = vpop.f32.mrb[124].mxu1 }
 0xb40   :  { %v16424_v30 = vadd.f32 %v18128_v54, %v8419_v33  ;;  %v8421_v3 = vpop.f32.mrb[125].mxu1  ;;  %v18142_v54 = vld [vmem:[#allocation66_spill] sm:$0xff] }
 0xb42   :  { %18129 = vst [vmem:[#allocation41_spill] sm:$0xff] %v16424_v30 }
 0xb43   :  { %v8424_v46 = vpop.f32.mrb[126].mxu1 }
 0xb44   :  { %v16427_v60 = vadd.f32 %v18130_v28, %v8424_v46  ;;  %v8426_v23 = vpop.f32.mrb[127].mxu1  ;;  %v8975_v28 = vadd.f32 %v8974_v21, %v16335_v51  ;;  %v18148_v21 = vld [vmem:[#allocation70_spill] sm:$0xff] }
 0xb46   :  { %v8976_v23 = vadd.f32 %v8975_v28, %v16339_v24 }
 0xb47   :  { %v8429_v12 = vpop.f32.mrb[128].mxu1 }
 0xb48   :  { %v16430_v2 = vadd.f32 %v18131_v35, %v8429_v12  ;;  %v8431_v57 = vpop.f32.mrb[129].mxu1  ;;  %v18143_v35 = vld [vmem:[#allocation65_spill] sm:$0xff] }
 0xb4a   :  { %18132 = vst [vmem:[#allocation44_spill] sm:$0xff] %v16430_v2 }
 0xb4b   :  { %v8434_v9 = vpop.f32.mrb[130].mxu1 }
 0xb4c   :  { %v16433_v25 = vadd.f32 %v18133_v4, %v8434_v9  ;;  %v8436_v42 = vpop.f32.mrb[131].mxu1  ;;  %v8977_v4 = vadd.f32 %v8976_v23, %v16343_v15 }
 0xb4e   :  { %v8978_v42 = vadd.f32 %v8977_v4, %v16347_v18 }
 0xb4f   :  { %v8439_v56 = vpop.f32.mrb[132].mxu1 }
 0xb50   :  { %v16436_v29 = vadd.f32 %v18134_v22, %v8439_v56  ;;  %v8441_v0 = vpop.f32.mrb[133].mxu1  ;;  %v18145_v22 = vld [vmem:[#allocation68_spill] sm:$0xff] }
 0xb52   :  { %18135 = vst [vmem:[#allocation47_spill] sm:$0xff] %v16436_v29 }
 0xb53   :  { %v8444_v39 = vpop.f32.mrb[134].mxu1 }
 0xb54   :  { %v16439_v58 = vadd.f32 %v18136_v55, %v8444_v39  ;;  %v8446_v6 = vpop.f32.mrb[135].mxu1  ;;  %v8979_v55 = vadd.f32 %v8978_v42, %v16351_v27 }
 0xb56   :  { %18137 = vst [vmem:[#allocation18_spill] sm:$0xff] %v16439_v58  ;;  %v8980_v6 = vadd.f32 %v8979_v55, %v16355_v20 }
 0xb57   :  { %v8449_v52 = vpop.f32.mrb[136].mxu1 }
 0xb58   :  { %v16442_v13 = vadd.f32 %v18138_v59, %v8449_v52  ;;  %v8451_v38 = vpop.f32.mrb[137].mxu1  ;;  %v18146_v59 = vld [vmem:[#allocation67_spill] sm:$0xff] }
 0xb5a   :  { %18139 = vst [vmem:[#allocation17_spill] sm:$0xff] %v16442_v13 }
 0xb5b   :  { %v8454_v50 = vpop.f32.mrb[138].mxu1 }
 0xb5c   :  { %v16445_v40 = vadd.f32 %v18140_v19, %v8454_v50  ;;  %v8456_v8 = vpop.f32.mrb[139].mxu1  ;;  %v8981_v19 = vadd.f32 %v8980_v6, %v16358_v47 }
 0xb5e   :  { %18141 = vst [vmem:[#allocation21_spill] sm:$0xff] %v16445_v40  ;;  %v8982_v8 = vadd.f32 %v8981_v19, %v16361_v49 }
 0xb5f   :  { %v8459_v33 = vpop.f32.mrb[140].mxu1 }
 0xb60   :  { %v16451_v3 = vadd.f32 %v18142_v54, %v8459_v33  ;;  %v8461_v46 = vpop.f32.mrb[141].mxu1 }
 0xb61   :  { %v8983_v46 = vadd.f32 %v8982_v8, %v16365_v34 }
 0xb63   :  { %v8464_v12 = vpop.f32.mrb[142].mxu1  ;;  %v8984_v28 = vadd.f32 %v8983_v46, %v16368_v61  ;;  %v18154_v46 = vld [vmem:[#allocation74_spill] sm:$0xff] }
 0xb64   :  { %v16456_v57 = vadd.f32 %v18143_v35, %v8464_v12  ;;  %v8466_v9 = vpop.f32.mrb[143].mxu1  ;;  %v18149_v12 = vld [vmem:[#allocation69_spill] sm:$0xff] }
 0xb65   :  { %v8985_v4 = vadd.f32 %v8984_v28, %v16372_v31 }
 0xb66   :  { %18144 = vst [vmem:[#allocation20_spill] sm:$0xff] %v16456_v57 }
 0xb67   :  { %v8469_v56 = vpop.f32.mrb[144].mxu1  ;;  %v8986_v42 = vadd.f32 %v8985_v4, %v16376_v26 }
 0xb68   :  { %v16461_v0 = vadd.f32 %v18145_v22, %v8469_v56  ;;  %v8471_v39 = vpop.f32.mrb[145].mxu1  ;;  %v18151_v22 = vld [vmem:[#allocation72_spill] sm:$0xff] }
 0xb69   :  { %v8987_v6 = vadd.f32 %v8986_v42, %v16379_v14  ;;  %v18155_v42 = vld [vmem:[#allocation73_spill] sm:$0xff] }
 0xb6b   :  { %v8474_v52 = vpop.f32.mrb[146].mxu1 }
 0xb6c   :  { %v16466_v38 = vadd.f32 %v18146_v59, %v8474_v52  ;;  %v8476_v50 = vpop.f32.mrb[147].mxu1  ;;  %v8988_v52 = vadd.f32 %v8987_v6, %v16382_v48 }
 0xb6d   :  { %v18152_v50 = vld [vmem:[#allocation71_spill] sm:$0xff] }
 0xb6e   :  { %18147 = vst [vmem:[#allocation19_spill] sm:$0xff] %v16466_v38 }
 0xb6f   :  { %v8479_v53 = vpop.f32.mrb[148].mxu1 }
 0xb70   :  { %v16471_v33 = vadd.f32 %v18148_v21, %v8479_v53  ;;  %v8481_v54 = vpop.f32.mrb[149].mxu1  ;;  %v8989_v53 = vadd.f32 %v8988_v52, %v16385_v62 }
 0xb72   :  { %v8990_v21 = vadd.f32 %v8989_v53, %v16388_v11 }
 0xb73   :  { %v8484_v23 = vpop.f32.mrb[150].mxu1 }
 0xb74   :  { %v16476_v35 = vadd.f32 %v18149_v12, %v8484_v23  ;;  %v8486_v9 = vpop.f32.mrb[151].mxu1  ;;  %v8991_v12 = vadd.f32 %v8990_v21, %v16391_v5 }
 0xb76   :  { %18150 = vst [vmem:[#allocation16_spill] sm:$0xff] %v16476_v35  ;;  %v8992_v9 = vadd.f32 %v8991_v12, %v16394_v10 }
 0xb77   :  { %v8489_v56 = vpop.f32.mrb[152].mxu1 }
 0xb78   :  { %v16481_v39 = vadd.f32 %v18151_v22, %v8489_v56  ;;  %v8491_v55 = vpop.f32.mrb[153].mxu1 }
 0xb79   :  { %v8993_v55 = vadd.f32 %v8992_v9, %v16397_v32 }
 0xb7b   :  { %v8494_v59 = vpop.f32.mrb[154].mxu1  ;;  %v8994_v6 = vadd.f32 %v8993_v55, %v16400_v7 }
 0xb7c   :  { %v16486_v19 = vadd.f32 %v18152_v50, %v8494_v59  ;;  %v8496_v8 = vpop.f32.mrb[155].mxu1  ;;  %v18157_v59 = vld [vmem:[#allocation76_spill] sm:$0xff] }
 0xb7d   :  { %v8995_v53 = vadd.f32 %v8994_v6, %v16403_v44 }
 0xb7e   :  { %18153 = vst [vmem:[#allocation25_spill] sm:$0xff] %v16486_v19 }
 0xb7f   :  { %v8499_v54 = vpop.f32.mrb[156].mxu1  ;;  %v8996_v21 = vadd.f32 %v8995_v53, %v16406_v43  ;;  %v18163_v53 = vld [vmem:[#allocation77_spill] sm:$0xff] }
 0xb80   :  { %v16491_v28 = vadd.f32 %v18154_v46, %v8499_v54  ;;  %v8501_v23 = vpop.f32.mrb[157].mxu1  ;;  %v18159_v46 = vld [vmem:[#allocation75_spill] sm:$0xff] }
 0xb83   :  { %v8504_v4 = vpop.f32.mrb[158].mxu1 }
 0xb84   :  { %v16496_v56 = vadd.f32 %v18155_v42, %v8504_v4  ;;  %v8506_v22 = vpop.f32.mrb[159].mxu1  ;;  %v8997_v4 = vadd.f32 %v8996_v21, %v16409_v45 }
 0xb85   :  { %v18161_v22 = vld [vmem:[#allocation78_spill] sm:$0xff] }
 0xb86   :  { %18156 = vst [vmem:[#allocation37_spill] sm:$0xff] %v16496_v56  ;;  %v8998_v9 = vadd.f32 %v8997_v4, %v16412_v37  ;;  %v18164_v4 = vld [vmem:[#allocation80_spill] sm:$0xff] }
 0xb87   :  { %v8509_v52 = vpop.f32.mrb[160].mxu1 }
 0xb88   :  { %v16501_v50 = vadd.f32 %v18157_v59, %v8509_v52  ;;  %v8511_v8 = vpop.f32.mrb[161].mxu1  ;;  %v8999_v59 = vadd.f32 %v8998_v9, %v16415_v1 }
 0xb8a   :  { %18158 = vst [vmem:[#allocation38_spill] sm:$0xff] %v16501_v50  ;;  %v9000_v6 = vadd.f32 %v8999_v59, %v16418_v36  ;;  %v18166_v59 = vld [vmem:[#allocation79_spill] sm:$0xff] }
 0xb8b   :  { %v8514_v54 = vpop.f32.mrb[162].mxu1 }
 0xb8c   :  { %v16506_v23 = vadd.f32 %v18159_v46, %v8514_v54  ;;  %v8516_v12 = vpop.f32.mrb[163].mxu1  ;;  %v9001_v46 = vadd.f32 %v9000_v6, %v16421_v16 }
 0xb8e   :  { %18160 = vst [vmem:[#allocation15_spill] sm:$0xff] %v16506_v23  ;;  %v9002_v21 = vadd.f32 %v9001_v46, %v16424_v30  ;;  %v18167_v46 = vld [vmem:[#allocation82_spill] sm:$0xff] }
 0xb8f   :  { %v8519_v42 = vpop.f32.mrb[164].mxu1 }
 0xb90   :  { %v16511_v55 = vadd.f32 %v18161_v22, %v8519_v42  ;;  %v8521_v52 = vpop.f32.mrb[165].mxu1  ;;  %v9003_v22 = vadd.f32 %v9002_v21, %v16427_v60 }
 0xb92   :  { %18162 = vst [vmem:[#allocation34_spill] sm:$0xff] %v16511_v55  ;;  %v9004_v9 = vadd.f32 %v9003_v22, %v16430_v2  ;;  %v18169_v22 = vld [vmem:[#allocation81_spill] sm:$0xff] }
 0xb93   :  { %v8524_v8 = vpop.f32.mrb[166].mxu1 }
 0xb94   :  { %v16516_v43 = vadd.f32 %v18163_v53, %v8524_v8  ;;  %v8526_v54 = vpop.f32.mrb[167].mxu1  ;;  %v9005_v53 = vadd.f32 %v9004_v9, %v16433_v25 }
 0xb96   :  { %v9006_v6 = vadd.f32 %v9005_v53, %v16436_v29 }
 0xb97   :  { %v8529_v12 = vpop.f32.mrb[168].mxu1 }
 0xb98   :  { %v16521_v37 = vadd.f32 %v18164_v4, %v8529_v12  ;;  %v8531_v42 = vpop.f32.mrb[169].mxu1  ;;  %v9007_v4 = vadd.f32 %v9006_v6, %v16439_v58 }
 0xb9a   :  { %18165 = vst [vmem:[#allocation5_spill] sm:$0xff] %v16521_v37  ;;  %v9008_v21 = vadd.f32 %v9007_v4, %v16442_v13 }
 0xb9b   :  { %v8534_v52 = vpop.f32.mrb[170].mxu1 }
 0xb9c   :  { %v16526_v36 = vadd.f32 %v18166_v59, %v8534_v52  ;;  %v8536_v8 = vpop.f32.mrb[171].mxu1  ;;  %v9009_v59 = vadd.f32 %v9008_v21, %v16445_v40 }
 0xb9e   :  { %v9010_v9 = vadd.f32 %v9009_v59, %v16451_v3 }
 0xb9f   :  { %v8539_v54 = vpop.f32.mrb[172].mxu1 }
 0xba0   :  { %v16531_v30 = vadd.f32 %v18167_v46, %v8539_v54  ;;  %v8541_v12 = vpop.f32.mrb[173].mxu1  ;;  %v9011_v29 = vadd.f32 %v9010_v9, %v16456_v57 }
 0xba2   :  { %18168 = vst [vmem:[#allocation13_spill] sm:$0xff] %v16531_v30  ;;  %v9012_v54 = vadd.f32 %v9011_v29, %v16461_v0 }
 0xba3   :  { %v8544_v42 = vpop.f32.mrb[174].mxu1 }
 0xba4   :  { %v16536_v2 = vadd.f32 %v18169_v22, %v8544_v42  ;;  %v8546_v52 = vpop.f32.mrb[175].mxu1  ;;  %v9013_v6 = vadd.f32 %v9012_v54, %v16466_v38 }
 0xba6   :  { %18170 = vst [vmem:[#allocation28_spill] sm:$0xff] %v16536_v2  ;;  %v9014_v4 = vadd.f32 %v9013_v6, %v16471_v33 }
 0xba7   :  { %v8549_v8 = vpop.f32.mrb[176].mxu1 }
 0xba8   :  { %v8551_v53 = vpop.f32.mrb[177].mxu1  ;;  %v9015_v22 = vadd.f32 %v9014_v4, %v16476_v35 }
 0xbaa   :  { %v9016_v21 = vadd.f32 %v9015_v22, %v16481_v39 }
 0xbab   :  { %v8554_v46 = vpop.f32.mrb[178].mxu1 }
 0xbac   :  { %v8556_v12 = vpop.f32.mrb[179].mxu1  ;;  %v9017_v53 = vadd.f32 %v9016_v21, %v16486_v19 }
 0xbae   :  { %v9018_v9 = vadd.f32 %v9017_v53, %v16491_v28 }
 0xbaf   :  { %v8559_v13 = vpop.f32.mrb[180].mxu1 }
 0xbb0   :  { %v8561_v42 = vpop.f32.mrb[181].mxu1  ;;  %v9019_v12 = vadd.f32 %v9018_v9, %v16496_v56 }
 0xbb2   :  { %v9020_v54 = vadd.f32 %v9019_v12, %v16501_v50 }
 0xbb3   :  { %v8564_v52 = vpop.f32.mrb[182].mxu1 }
 0xbb4   :  { %v8566_v59 = vpop.f32.mrb[183].mxu1  ;;  %v9021_v42 = vadd.f32 %v9020_v54, %v16506_v23 }
 0xbb6   :  { %v9022_v4 = vadd.f32 %v9021_v42, %v16511_v55 }
 0xbb7   :  { %v8569_v57 = vpop.f32.mrb[184].mxu1 }
 0xbb8   :  { %v8571_v29 = vpop.f32.mrb[185].mxu1  ;;  %v9023_v59 = vadd.f32 %v9022_v4, %v16516_v43 }
 0xbba   :  { %v9024_v21 = vadd.f32 %v9023_v59, %v16521_v37 }
 0xbbb   :  { %v8574_v38 = vpop.f32.mrb[186].mxu1 }
 0xbbc   :  { %v8576_v6 = vpop.f32.mrb[187].mxu1  ;;  %v9025_v29 = vadd.f32 %v9024_v21, %v16526_v36 }
 0xbbe   :  { %v9026_v9 = vadd.f32 %v9025_v29, %v16531_v30 }
 0xbbf   :  { %v8579_v35 = vpop.f32.mrb[188].mxu1 }
 0xbc0   :  { %v8581_v22 = vpop.f32.mrb[189].mxu1  ;;  %v9027_v54 = vadd.f32 %v9026_v9, %v16536_v2 }
 0xbc3   :  { %v8584_v19 = vpop.f32.mrb[190].mxu1 }
 0xbc4   :  { %v8586_v53 = vpop.f32.mrb[191].mxu1 }
 0xbc7   :  { %v9920_v56 = vpop.f32.mrb[192].mxu1 }
 0xbc8   :  { %v16556_v12 = vadd.f32 %v9920_v56, %v8554_v46  ;;  %v8934_v6 = vpop.f32.mrb[193].mxu1 }
 0xbc9   :  { %v16559_v23 = vadd.f32 %v8934_v6, %v8549_v8 }
 0xbca   :  { %18171 = vst [vmem:[#allocation27_spill] sm:$0xff] %v16556_v12 }
 0xbcb   :  { %v9028_v42 = vadd.f32 %v9027_v54, %v16559_v23  ;;  %v9923_v22 = vpop.f32.mrb[194].mxu1 }
 0xbcc   :  { %v16562_v4 = vadd.f32 %v9923_v22, %v8564_v52  ;;  %v8944_v59 = vpop.f32.mrb[195].mxu1 }
 0xbcd   :  { %v16564_v37 = vadd.f32 %v8944_v59, %v8559_v13  ;;  %v9029_v21 = vadd.f32 %v9028_v42, %v16556_v12 }
 0xbce   :  { %18172 = vst [vmem:[#allocation31_spill] sm:$0xff] %v16562_v4 }
 0xbcf   :  { %18173 = vst [vmem:[#allocation30_spill] sm:$0xff] %v16564_v37  ;;  %v9030_v53 = vadd.f32 %v9029_v21, %v16564_v37  ;;  %v9926_v29 = vpop.f32.mrb[196].mxu1 }
 0xbd0   :  { %v16568_v56 = vadd.f32 %v9926_v29, %v8574_v38  ;;  %v8954_v46 = vpop.f32.mrb[197].mxu1 }
 0xbd1   :  { %v16570_v30 = vadd.f32 %v8954_v46, %v8569_v57  ;;  %v9031_v8 = vadd.f32 %v9030_v53, %v16562_v4 }
 0xbd2   :  { %18174 = vst [vmem:[#allocation22_spill] sm:$0xff] %v16568_v56 }
 0xbd3   :  { %18175 = vst [vmem:[#allocation33_spill] sm:$0xff] %v16570_v30  ;;  %v9929_v9 = vpop.f32.mrb[198].mxu1  ;;  %v9032_v54 = vadd.f32 %v9031_v8, %v16570_v30 }
 0xbd4   :  { %v16573_v6 = vadd.f32 %v9929_v9, %v8584_v19  ;;  %v8964_v52 = vpop.f32.mrb[199].mxu1 }
 0xbd5   :  { %v16576_v13 = vadd.f32 %v8964_v52, %v8579_v35  ;;  %v9033_v42 = vadd.f32 %v9032_v54, %v16568_v56 }
 0xbd7   :  { %18176 = vst [vmem:[#allocation24_spill] sm:$0xff] %v16576_v13  ;;  %v9034_v22 = vadd.f32 %v9033_v42, %v16576_v13 }
 0xbd9   :  { %v9035_v38 = vadd.f32 %v9034_v22, %v16573_v6 }
 0xbdb   :  { %v9036_v59 = vrot.slane %v9035_v38, 4 }
 0xbdd   :  { %v9037_v21 = vadd.f32 %v9036_v59, %v9035_v38 }
 0xbdf   :  { %v9038_v57 = vrot.slane %v9037_v21, 2 }
 0xbe1   :  { %v9039_v29 = vadd.f32 %v9038_v57, %v9037_v21 }
 0xbe3   :  { %v9040_v46 = vrot.slane %v9039_v29, 1 }
 0xbe5   :  { %v9041_v53 = vadd.f32 %v9040_v46, %v9039_v29 }
 0xbe7   :  { %v16581_v4 = vmul.f32 0.001953125, %v9041_v53 }
 0xbe9   :  { %v9043_v19 = vsub.f32 %v16323_v63, %v16581_v4  ;;  %v9044_v35 = vsub.f32 %v16327_v41, %v16581_v4  ;;  %v9045_v8 = vsub.f32 %v16331_v17, %v16581_v4  ;;  %v9046_v54 = vsub.f32 %v16335_v51, %v16581_v4 }
 0xbea   :  { %v9047_v42 = vsub.f32 %v16339_v24, %v16581_v4  ;;  %v9048_v59 = vsub.f32 %v16343_v15, %v16581_v4  ;;  %v9049_v29 = vsub.f32 %v16347_v18, %v16581_v4  ;;  %v9051_v24 = vsub.f32 %v16355_v20, %v16581_v4 }
 0xbeb   :  { %v9107_v9 = vmul.f32 %v9043_v19, %v9043_v19  ;;  %v9108_v52 = vmul.f32 %v9044_v35, %v9044_v35  ;;  %v9109_v22 = vmul.f32 %v9045_v8, %v9045_v8  ;;  %v9110_v21 = vmul.f32 %v9046_v54, %v9046_v54 }
 0xbec   :  { %v9111_v46 = vmul.f32 %v9047_v42, %v9047_v42  ;;  %v9050_v19 = vsub.f32 %v16351_v27, %v16581_v4  ;;  %v9112_v35 = vmul.f32 %v9048_v59, %v9048_v59  ;;  %v9113_v8 = vmul.f32 %v9049_v29, %v9049_v29 }
 0xbed   :  { %v9171_v38 = vadd.f32 %v9108_v52, %v9107_v9  ;;  %v9052_v52 = vsub.f32 %v16358_v47, %v16581_v4  ;;  %v9115_v42 = vmul.f32 %v9051_v24, %v9051_v24 }
 0xbee   :  { %v9114_v54 = vmul.f32 %v9050_v19, %v9050_v19 }
 0xbef   :  { %v9172_v57 = vadd.f32 %v9171_v38, %v9109_v22  ;;  %v9053_v38 = vsub.f32 %v16361_v49, %v16581_v4  ;;  %v9116_v59 = vmul.f32 %v9052_v52, %v9052_v52 }
 0xbf1   :  { %v9173_v53 = vadd.f32 %v9172_v57, %v9110_v21  ;;  %v9054_v57 = vsub.f32 %v16365_v34, %v16581_v4  ;;  %v9117_v29 = vmul.f32 %v9053_v38, %v9053_v38 }
 0xbf3   :  { %v9174_v51 = vadd.f32 %v9173_v53, %v9111_v46  ;;  %v9055_v53 = vsub.f32 %v16368_v61, %v16581_v4  ;;  %v9118_v19 = vmul.f32 %v9054_v57, %v9054_v57 }
 0xbf5   :  { %v9175_v9 = vadd.f32 %v9174_v51, %v9112_v35  ;;  %v9056_v35 = vsub.f32 %v16372_v31, %v16581_v4  ;;  %v9119_v24 = vmul.f32 %v9055_v53, %v9055_v53 }
 0xbf7   :  { %v9176_v22 = vadd.f32 %v9175_v9, %v9113_v8  ;;  %v9057_v9 = vsub.f32 %v16376_v26, %v16581_v4  ;;  %v9120_v52 = vmul.f32 %v9056_v35, %v9056_v35 }
 0xbf9   :  { %v9177_v21 = vadd.f32 %v9176_v22, %v9114_v54  ;;  %v9058_v22 = vsub.f32 %v16379_v14, %v16581_v4  ;;  %v9121_v38 = vmul.f32 %v9057_v9, %v9057_v9 }
 0xbfb   :  { %v9178_v46 = vadd.f32 %v9177_v21, %v9115_v42  ;;  %v9059_v21 = vsub.f32 %v16382_v48, %v16581_v4  ;;  %v9122_v57 = vmul.f32 %v9058_v22, %v9058_v22 }
 0xbfd   :  { %v9179_v51 = vadd.f32 %v9178_v46, %v9116_v59  ;;  %v9060_v46 = vsub.f32 %v16385_v62, %v16581_v4  ;;  %v9123_v53 = vmul.f32 %v9059_v21, %v9059_v21 }
 0xbff   :  { %v9180_v8 = vadd.f32 %v9179_v51, %v9117_v29  ;;  %v9061_v51 = vsub.f32 %v16388_v11, %v16581_v4  ;;  %v9124_v35 = vmul.f32 %v9060_v46, %v9060_v46 }
 0xc01   :  { %v9181_v54 = vadd.f32 %v9180_v8, %v9118_v19  ;;  %v9062_v8 = vsub.f32 %v16391_v5, %v16581_v4  ;;  %v9125_v9 = vmul.f32 %v9061_v51, %v9061_v51 }
 0xc03   :  { %v9182_v42 = vadd.f32 %v9181_v54, %v9119_v24  ;;  %v9063_v54 = vsub.f32 %v16394_v10, %v16581_v4  ;;  %v9126_v22 = vmul.f32 %v9062_v8, %v9062_v8 }
 0xc05   :  { %v9183_v59 = vadd.f32 %v9182_v42, %v9120_v52  ;;  %v9064_v42 = vsub.f32 %v16397_v32, %v16581_v4  ;;  %v9127_v21 = vmul.f32 %v9063_v54, %v9063_v54 }
 0xc07   :  { %v9184_v29 = vadd.f32 %v9183_v59, %v9121_v38  ;;  %v9065_v59 = vsub.f32 %v16400_v7, %v16581_v4  ;;  %v9128_v46 = vmul.f32 %v9064_v42, %v9064_v42 }
 0xc09   :  { %v9185_v19 = vadd.f32 %v9184_v29, %v9122_v57  ;;  %v9066_v29 = vsub.f32 %v16403_v44, %v16581_v4  ;;  %v9129_v51 = vmul.f32 %v9065_v59, %v9065_v59 }
 0xc0b   :  { %v9186_v24 = vadd.f32 %v9185_v19, %v9123_v53  ;;  %v18177_v19 = vld [vmem:[#allocation32_spill] sm:$0xff]  ;;  %v9130_v8 = vmul.f32 %v9066_v29, %v9066_v29 }
 0xc0c   :  { %v9067_v10 = vsub.f32 %v18177_v19, %v16581_v4 }
 0xc0d   :  { %v9187_v52 = vadd.f32 %v9186_v24, %v9124_v35  ;;  %v9068_v24 = vsub.f32 %v16409_v45, %v16581_v4 }
 0xc0e   :  { %v9131_v54 = vmul.f32 %v9067_v10, %v9067_v10 }
 0xc0f   :  { %v9188_v38 = vadd.f32 %v9187_v52, %v9125_v9  ;;  %v18178_v52 = vld [vmem:[#allocation4_spill] sm:$0xff]  ;;  %v9132_v42 = vmul.f32 %v9068_v24, %v9068_v24 }
 0xc10   :  { %v9069_v7 = vsub.f32 %v18178_v52, %v16581_v4 }
 0xc11   :  { %v9189_v57 = vadd.f32 %v9188_v38, %v9126_v22  ;;  %v9070_v38 = vsub.f32 %v16415_v1, %v16581_v4 }
 0xc12   :  { %v9133_v59 = vmul.f32 %v9069_v7, %v9069_v7 }
 0xc13   :  { %v9190_v53 = vadd.f32 %v9189_v57, %v9127_v21  ;;  %v18179_v57 = vld [vmem:[#allocation26_spill] sm:$0xff]  ;;  %v9134_v29 = vmul.f32 %v9070_v38, %v9070_v38 }
 0xc14   :  { %v9071_v19 = vsub.f32 %v18179_v57, %v16581_v4 }
 0xc15   :  { %v9191_v35 = vadd.f32 %v9190_v53, %v9128_v46  ;;  %v9072_v53 = vsub.f32 %v16421_v16, %v16581_v4 }
 0xc16   :  { %v9135_v10 = vmul.f32 %v9071_v19, %v9071_v19 }
 0xc17   :  { %v9192_v9 = vadd.f32 %v9191_v35, %v9129_v51  ;;  %v18180_v35 = vld [vmem:[#allocation41_spill] sm:$0xff]  ;;  %v9136_v24 = vmul.f32 %v9072_v53, %v9072_v53 }
 0xc18   :  { %v9073_v52 = vsub.f32 %v18180_v35, %v16581_v4 }
 0xc19   :  { %v9193_v22 = vadd.f32 %v9192_v9, %v9130_v8  ;;  %v9074_v9 = vsub.f32 %v16427_v60, %v16581_v4 }
 0xc1a   :  { %v9137_v7 = vmul.f32 %v9073_v52, %v9073_v52 }
 0xc1b   :  { %v9194_v21 = vadd.f32 %v9193_v22, %v9131_v54  ;;  %v18181_v22 = vld [vmem:[#allocation44_spill] sm:$0xff]  ;;  %v9138_v38 = vmul.f32 %v9074_v9, %v9074_v9 }
 0xc1c   :  { %v9075_v57 = vsub.f32 %v18181_v22, %v16581_v4 }
 0xc1d   :  { %v9195_v46 = vadd.f32 %v9194_v21, %v9132_v42  ;;  %v9076_v21 = vsub.f32 %v16433_v25, %v16581_v4 }
 0xc1e   :  { %v9139_v19 = vmul.f32 %v9075_v57, %v9075_v57 }
 0xc1f   :  { %v9196_v51 = vadd.f32 %v9195_v46, %v9133_v59  ;;  %v18182_v46 = vld [vmem:[#allocation47_spill] sm:$0xff]  ;;  %v9140_v53 = vmul.f32 %v9076_v21, %v9076_v21 }
 0xc20   :  { %v9077_v35 = vsub.f32 %v18182_v46, %v16581_v4 }
 0xc21   :  { %v9197_v8 = vadd.f32 %v9196_v51, %v9134_v29  ;;  %v9078_v51 = vsub.f32 %v16439_v58, %v16581_v4 }
 0xc22   :  { %v9141_v52 = vmul.f32 %v9077_v35, %v9077_v35 }
 0xc23   :  { %v9198_v54 = vadd.f32 %v9197_v8, %v9135_v10  ;;  %v18183_v8 = vld [vmem:[#allocation17_spill] sm:$0xff]  ;;  %v9142_v9 = vmul.f32 %v9078_v51, %v9078_v51 }
 0xc24   :  { %v9079_v22 = vsub.f32 %v18183_v8, %v16581_v4 }
 0xc25   :  { %v9199_v42 = vadd.f32 %v9198_v54, %v9136_v24  ;;  %v9080_v54 = vsub.f32 %v16445_v40, %v16581_v4 }
 0xc26   :  { %v9143_v57 = vmul.f32 %v9079_v22, %v9079_v22 }
 0xc27   :  { %v9200_v59 = vadd.f32 %v9199_v42, %v9137_v7  ;;  %v9081_v42 = vsub.f32 %v16451_v3, %v16581_v4  ;;  %v9144_v21 = vmul.f32 %v9080_v54, %v9080_v54 }
 0xc29   :  { %v9201_v29 = vadd.f32 %v9200_v59, %v9138_v38  ;;  %v18184_v59 = vld [vmem:[#allocation20_spill] sm:$0xff]  ;;  %v9145_v35 = vmul.f32 %v9081_v42, %v9081_v42 }
 0xc2a   :  { %v9082_v58 = vsub.f32 %v18184_v59, %v16581_v4 }
 0xc2b   :  { %v9202_v10 = vadd.f32 %v9201_v29, %v9139_v19  ;;  %v9083_v29 = vsub.f32 %v16461_v0, %v16581_v4 }
 0xc2c   :  { %v9146_v51 = vmul.f32 %v9082_v58, %v9082_v58 }
 0xc2d   :  { %v9203_v24 = vadd.f32 %v9202_v10, %v9140_v53  ;;  %v18185_v10 = vld [vmem:[#allocation19_spill] sm:$0xff]  ;;  %v9147_v22 = vmul.f32 %v9083_v29, %v9083_v29 }
 0xc2e   :  { %v9084_v40 = vsub.f32 %v18185_v10, %v16581_v4 }
 0xc2f   :  { %v9204_v7 = vadd.f32 %v9203_v24, %v9141_v52  ;;  %v9085_v24 = vsub.f32 %v16471_v33, %v16581_v4 }
 0xc30   :  { %v9148_v54 = vmul.f32 %v9084_v40, %v9084_v40 }
 0xc31   :  { %v9205_v38 = vadd.f32 %v9204_v7, %v9142_v9  ;;  %v18186_v7 = vld [vmem:[#allocation16_spill] sm:$0xff]  ;;  %v9149_v42 = vmul.f32 %v9085_v24, %v9085_v24 }
 0xc32   :  { %v9086_v59 = vsub.f32 %v18186_v7, %v16581_v4 }
 0xc33   :  { %v9206_v19 = vadd.f32 %v9205_v38, %v9143_v57  ;;  %v9087_v38 = vsub.f32 %v16481_v39, %v16581_v4 }
 0xc34   :  { %v9150_v58 = vmul.f32 %v9086_v59, %v9086_v59 }
 0xc35   :  { %v9207_v53 = vadd.f32 %v9206_v19, %v9144_v21  ;;  %v18187_v19 = vld [vmem:[#allocation25_spill] sm:$0xff]  ;;  %v9151_v29 = vmul.f32 %v9087_v38, %v9087_v38 }
 0xc36   :  { %v9088_v10 = vsub.f32 %v18187_v19, %v16581_v4 }
 0xc37   :  { %v9208_v52 = vadd.f32 %v9207_v53, %v9145_v35  ;;  %v9089_v53 = vsub.f32 %v16491_v28, %v16581_v4 }
 0xc38   :  { %v9152_v40 = vmul.f32 %v9088_v10, %v9088_v10 }
 0xc39   :  { %v9209_v9 = vadd.f32 %v9208_v52, %v9146_v51  ;;  %v18188_v52 = vld [vmem:[#allocation37_spill] sm:$0xff]  ;;  %v9153_v24 = vmul.f32 %v9089_v53, %v9089_v53 }
 0xc3a   :  { %v9090_v7 = vsub.f32 %v18188_v52, %v16581_v4 }
 0xc3b   :  { %v9210_v57 = vadd.f32 %v9209_v9, %v9147_v22  ;;  %v9091_v9 = vsub.f32 %v16501_v50, %v16581_v4 }
 0xc3c   :  { %v9154_v59 = vmul.f32 %v9090_v7, %v9090_v7 }
 0xc3d   :  { %v9211_v21 = vadd.f32 %v9210_v57, %v9148_v54  ;;  %v18189_v57 = vld [vmem:[#allocation15_spill] sm:$0xff]  ;;  %v9155_v38 = vmul.f32 %v9091_v9, %v9091_v9 }
 0xc3e   :  { %v9092_v19 = vsub.f32 %v18189_v57, %v16581_v4 }
 0xc3f   :  { %v9212_v35 = vadd.f32 %v9211_v21, %v9149_v42  ;;  %v9093_v21 = vsub.f32 %v16511_v55, %v16581_v4 }
 0xc40   :  { %v9156_v10 = vmul.f32 %v9092_v19, %v9092_v19 }
 0xc41   :  { %v9213_v51 = vadd.f32 %v9212_v35, %v9150_v58  ;;  %v9094_v35 = vsub.f32 %v16516_v43, %v16581_v4  ;;  %v9157_v53 = vmul.f32 %v9093_v21, %v9093_v21 }
 0xc43   :  { %v9214_v22 = vadd.f32 %v9213_v51, %v9151_v29  ;;  %v18190_v51 = vld [vmem:[#allocation5_spill] sm:$0xff]  ;;  %v9158_v7 = vmul.f32 %v9094_v35, %v9094_v35 }
 0xc44   :  { %v9095_v50 = vsub.f32 %v18190_v51, %v16581_v4 }
 0xc45   :  { %v9215_v54 = vadd.f32 %v9214_v22, %v9152_v40  ;;  %v9096_v22 = vsub.f32 %v16526_v36, %v16581_v4 }
 0xc46   :  { %v9159_v9 = vmul.f32 %v9095_v50, %v9095_v50 }
 0xc47   :  { %v9216_v42 = vadd.f32 %v9215_v54, %v9153_v24  ;;  %v18191_v54 = vld [vmem:[#allocation13_spill] sm:$0xff]  ;;  %v9160_v19 = vmul.f32 %v9096_v22, %v9096_v22 }
 0xc48   :  { %v9097_v55 = vsub.f32 %v18191_v54, %v16581_v4 }
 0xc49   :  { %v9217_v58 = vadd.f32 %v9216_v42, %v9154_v59  ;;  %v9098_v42 = vsub.f32 %v16536_v2, %v16581_v4 }
 0xc4a   :  { %v9161_v21 = vmul.f32 %v9097_v55, %v9097_v55 }
 0xc4b   :  { %v9218_v29 = vadd.f32 %v9217_v58, %v9155_v38  ;;  %v9099_v58 = vsub.f32 %v16559_v23, %v16581_v4  ;;  %v9162_v35 = vmul.f32 %v9098_v42, %v9098_v42 }
 0xc4d   :  { %v9219_v40 = vadd.f32 %v9218_v29, %v9156_v10  ;;  %v9100_v29 = vsub.f32 %v16556_v12, %v16581_v4  ;;  %v9163_v50 = vmul.f32 %v9099_v58, %v9099_v58 }
 0xc4f   :  { %v9220_v24 = vadd.f32 %v9219_v40, %v9157_v53  ;;  %v9101_v40 = vsub.f32 %v16564_v37, %v16581_v4  ;;  %v9164_v22 = vmul.f32 %v9100_v29, %v9100_v29 }
 0xc51   :  { %v9221_v59 = vadd.f32 %v9220_v24, %v9158_v7  ;;  %v18192_v24 = vld [vmem:[#allocation31_spill] sm:$0xff]  ;;  %v9165_v55 = vmul.f32 %v9101_v40, %v9101_v40 }
 0xc52   :  { %v9102_v2 = vsub.f32 %v18192_v24, %v16581_v4 }
 0xc53   :  { %v9222_v38 = vadd.f32 %v9221_v59, %v9159_v9  ;;  %v9103_v59 = vsub.f32 %v16570_v30, %v16581_v4 }
 0xc54   :  { %v9166_v42 = vmul.f32 %v9102_v2, %v9102_v2 }
 0xc55   :  { %v9223_v10 = vadd.f32 %v9222_v38, %v9160_v19  ;;  %v9104_v38 = vsub.f32 %v16568_v56, %v16581_v4  ;;  %v9167_v58 = vmul.f32 %v9103_v59, %v9103_v59  ;;  %v24_v59 = vld [vmem:[%s17500_s2 + $0x4] sm:$0x1] }
 0xc57   :  { %v9224_v53 = vadd.f32 %v9223_v10, %v9161_v21  ;;  %v9105_v10 = vsub.f32 %v16576_v13, %v16581_v4  ;;  %v9168_v29 = vmul.f32 %v9104_v38, %v9104_v38 }
 0xc59   :  { %v9225_v7 = vadd.f32 %v9224_v53, %v9162_v35  ;;  %v9106_v53 = vsub.f32 %v16573_v6, %v16581_v4 }
 0xc5b   :  { %v9226_v9 = vadd.f32 %v9225_v7, %v9163_v50  ;;  %v9169_v7 = vmul.f32 %v9105_v10, %v9105_v10  ;;  %v9170_v30 = vmul.f32 %v9106_v53, %v9106_v53 }
 0xc5d   :  { %v9227_v19 = vadd.f32 %v9226_v9, %v9164_v22 }
 0xc5f   :  { %v9228_v21 = vadd.f32 %v9227_v19, %v9165_v55 }
 0xc61   :  { %v9229_v35 = vadd.f32 %v9228_v21, %v9166_v42 }
 0xc63   :  { %v9230_v50 = vadd.f32 %v9229_v35, %v9167_v58  ;;  %v18195_v35 = vld [vmem:[#allocation14_spill] sm:$0xff] }
 0xc65   :  { %v9231_v24 = vadd.f32 %v9230_v50, %v9168_v29 }
 0xc67   :  { %v9232_v40 = vadd.f32 %v9231_v24, %v9169_v7  ;;  %v16717_v24 = vld [vmem:[%s17500_s2 + $0x5] sm:$0x1]  ;;  %v18196_v7 = vld [vmem:[#allocation6_spill] sm:$0xff] }
 0xc69   :  { %v9233_v22 = vadd.f32 %v9232_v40, %v9170_v30  ;;  %v18197_v40 = vld [vmem:[#allocation29_spill] sm:$0xff] }
 0xc6b   :  { %v9234_v9 = vrot.slane %v9233_v22, 4 }
 0xc6d   :  { %v9235_v37 = vadd.f32 %v9234_v9, %v9233_v22  ;;  %v18198_v22 = vld [vmem:[#allocation32_spill] sm:$0xff] }
 0xc6f   :  { %v9236_v56 = vrot.slane %v9235_v37, 2 }
 0xc71   :  { %v9237_v2 = vadd.f32 %v9236_v56, %v9235_v37  ;;  %v18193_v37 = vld [vmem:[#allocation10_spill] sm:$0xff] }
 0xc73   :  { %v9238_v55 = vrot.slane %v9237_v2, 1 }
 0xc75   :  { %v9239_v19 = vadd.f32 %v9238_v55, %v9237_v2  ;;  %v18199_v2 = vld [vmem:[#allocation4_spill] sm:$0xff] }
 0xc77   :  { %v9240_v12 = vmul.f32 0.001953125, %v9239_v19  ;;  %v18200_v19 = vld [vmem:[#allocation26_spill] sm:$0xff] }
 0xc79   :  { %v9241_v13 = vadd.f32 1e-05, %v9240_v12 }
 0xc7b   :  { %11168 = vrsqrt.f32 %v9241_v13 }
 0xc85   :  { %v11169_v38 = vpop.eup %11168 }
 0xc86   :  { %v9243_v42 = vmul.f32 %v11169_v38, %v24_v59  ;;  %v18201_v38 = vld [vmem:[#allocation41_spill] sm:$0xff] }
 0xc88   :  { %v16720_v30 = vmul.f32 %v9243_v42, %v16581_v4  ;;  %v16723_v56 = vrot.slane %v9243_v42, %v18193_v37  ;;  %v18194_v4 = vld [vmem:[#allocation11_spill] sm:$0xff] }
 0xc8a   :  { %v9245_v12 = vsub.f32 %v16717_v24, %v16720_v30  ;;  %v16729_v13 = vmul.f32 %v16723_v56, %v16323_v63  ;;  %v16733_v21 = vmul.f32 %v16723_v56, %v16327_v41  ;;  %v16737_v10 = vmul.f32 %v16723_v56, %v16331_v17  ;;  %v18202_v24 = vld [vmem:[#allocation44_spill] sm:$0xff] }
 0xc8b   :  { %v16741_v58 = vmul.f32 %v16723_v56, %v18194_v4  ;;  %v16745_v53 = vmul.f32 %v16723_v56, %v18195_v35  ;;  %v16749_v63 = vmul.f32 %v16723_v56, %v16343_v15  ;;  %v16753_v41 = vmul.f32 %v16723_v56, %v16347_v18  ;;  %v18203_v4 = vld [vmem:[#allocation18_spill] sm:$0xff] }
 0xc8c   :  { %v16757_v17 = vmul.f32 %v16723_v56, %v16351_v27  ;;  %v16761_v29 = vmul.f32 %v16723_v56, %v16355_v20  ;;  %v16765_v50 = vmul.f32 %v16723_v56, %v16358_v47  ;;  %v16769_v15 = vmul.f32 %v16723_v56, %v16361_v49 }
 0xc8d   :  { %v16773_v18 = vmul.f32 %v16723_v56, %v16365_v34  ;;  %v16777_v27 = vmul.f32 %v16723_v56, %v16368_v61  ;;  %v16781_v20 = vmul.f32 %v16723_v56, %v16372_v31  ;;  %v16785_v47 = vmul.f32 %v16723_v56, %v16376_v26 }
 0xc8e   :  { %v16789_v49 = vmul.f32 %v16723_v56, %v16379_v14  ;;  %v16793_v34 = vmul.f32 %v16723_v56, %v16382_v48  ;;  %v16797_v61 = vmul.f32 %v16723_v56, %v16385_v62  ;;  %v16801_v31 = vmul.f32 %v16723_v56, %v16388_v11 }
 0xc8f   :  { %v16805_v26 = vmul.f32 %v16723_v56, %v16391_v5  ;;  %v16809_v14 = vmul.f32 %v16723_v56, %v18196_v7  ;;  %v16813_v48 = vmul.f32 %v16723_v56, %v16397_v32  ;;  %v16817_v62 = vmul.f32 %v16723_v56, %v18197_v40  ;;  %v18204_v7 = vld [vmem:[#allocation21_spill] sm:$0xff] }
 0xc90   :  { %v16821_v11 = vmul.f32 %v16723_v56, %v16403_v44  ;;  %v16825_v5 = vmul.f32 %v16723_v56, %v18198_v22  ;;  %v16829_v9 = vmul.f32 %v16723_v56, %v16409_v45  ;;  %v16833_v32 = vmul.f32 %v16723_v56, %v18199_v2  ;;  %v18205_v22 = vld [vmem:[#allocation20_spill] sm:$0xff] }
 0xc91   :  { %v16837_v55 = vmul.f32 %v16723_v56, %v16415_v1  ;;  %v16841_v44 = vmul.f32 %v16723_v56, %v18200_v19  ;;  %v16845_v59 = vmul.f32 %v16723_v56, %v16421_v16  ;;  %v16849_v45 = vmul.f32 %v16723_v56, %v18201_v38  ;;  %v18206_v19 = vld [vmem:[#allocation19_spill] sm:$0xff] }
 0xc92   :  { %v16853_v42 = vmul.f32 %v16723_v56, %v16427_v60  ;;  %v16857_v1 = vmul.f32 %v16723_v56, %v18202_v24  ;;  %v16861_v30 = vmul.f32 %v16723_v56, %v16433_v25  ;;  %v16865_v16 = vmul.f32 %v16723_v56, %v18182_v46  ;;  %v18207_v24 = vld [vmem:[#allocation16_spill] sm:$0xff] }
 0xc93   :  { %v16869_v35 = vmul.f32 %v16723_v56, %v18203_v4  ;;  %v16873_v60 = vmul.f32 %v16723_v56, %v18183_v8  ;;  %v16877_v40 = vmul.f32 %v16723_v56, %v18204_v7  ;;  %v16881_v25 = vmul.f32 %v16723_v56, %v16451_v3  ;;  %v18209_v7 = vld [vmem:[#allocation25_spill] sm:$0xff] }
 0xc94   :  { %v16885_v46 = vmul.f32 %v16723_v56, %v18205_v22  ;;  %v16889_v2 = vmul.f32 %v16723_v56, %v16461_v0  ;;  %v16893_v8 = vmul.f32 %v16723_v56, %v18206_v19  ;;  %v16897_v38 = vmul.f32 %v16723_v56, %v16471_v33  ;;  %v18210_v19 = vld [vmem:[#allocation38_spill] sm:$0xff] }
 0xc95   :  { %v16901_v3 = vmul.f32 %v16723_v56, %v18207_v24  ;;  %v16905_v4 = vmul.f32 %v16723_v56, %v16481_v39  ;;  %v16909_v0 = vmul.f32 %v16723_v56, %v18209_v7  ;;  %v16913_v22 = vmul.f32 %v16723_v56, %v16491_v28 }
 0xc96   :  { %v16917_v33 = vmul.f32 %v16723_v56, %v18188_v52  ;;  %v16921_v24 = vmul.f32 %v16723_v56, %v18210_v19  ;;  %v16925_v39 = vmul.f32 %v16723_v56, %v18189_v57  ;;  %v16933_v28 = vmul.f32 %v16723_v56, %v16516_v43 }
 0xc97   :  { %18208 = vst [vmem:[#allocation23_spill] sm:$0xff] %v16905_v4  ;;  %v18212_v4 = vld [vmem:[#allocation34_spill] sm:$0xff]  ;;  %v16937_v52 = vmul.f32 %v16723_v56, %v18190_v51  ;;  %v16941_v19 = vmul.f32 %v16723_v56, %v16526_v36  ;;  %v16945_v57 = vmul.f32 %v16723_v56, %v18191_v54  ;;  %v16953_v43 = vmul.f32 %v16723_v56, %v16559_v23 }
 0xc98   :  { %18211 = vst [vmem:[#allocation40_spill] sm:$0xff] %v16925_v39  ;;  %v16929_v7 = vmul.f32 %v16723_v56, %v18212_v4  ;;  %18213 = vst [vmem:[#allocation39_spill] sm:$0xff] %v16933_v28  ;;  %v18217_v39 = vld [vmem:[#allocation28_spill] sm:$0xff]  ;;  %v18220_v28 = vld [vmem:[#allocation27_spill] sm:$0xff] }
 0xc99   :  { %18214 = vst [vmem:[#allocation43_spill] sm:$0xff] %v16937_v52  ;;  %18215 = vst [vmem:[#allocation42_spill] sm:$0xff] %v16941_v19  ;;  %v16949_v4 = vmul.f32 %v16723_v56, %v18217_v39  ;;  %v16957_v51 = vmul.f32 %v16723_v56, %v18220_v28  ;;  %v18222_v52 = vld [vmem:[#allocation30_spill] sm:$0xff]  ;;  %v18223_v19 = vld [vmem:[#allocation31_spill] sm:$0xff] }
 0xc9a   :  { %18216 = vst [vmem:[#allocation35_spill] sm:$0xff] %v16945_v57  ;;  %18219 = vst [vmem:[#allocation45_spill] sm:$0xff] %v16953_v43  ;;  %v16961_v36 = vmul.f32 %v16723_v56, %v18222_v52  ;;  %v16965_v54 = vmul.f32 %v16723_v56, %v18223_v19  ;;  %v16968_v57 = vrot.slane %v9245_v12, %v18193_v37  ;;  %v18224_v39 = vld [vmem:[#allocation33_spill] sm:$0xff]  ;;  %v18225_v23 = vld [vmem:[#allocation22_spill] sm:$0xff] }
 0xc9b   :  { %18218 = vst [vmem:[#allocation46_spill] sm:$0xff] %v16949_v4  ;;  %18221 = vst [vmem:[#allocation36_spill] sm:$0xff] %v16957_v51  ;;  %v16972_v4 = vmul.f32 %v16723_v56, %v18224_v39  ;;  %v16976_v43 = vmul.f32 %v16723_v56, %v18225_v23  ;;  %v18226_v28 = vld [vmem:[#allocation24_spill] sm:$0xff]  ;;  %v16984_v52 = vmul.f32 %v16723_v56, %v16573_v6 }
 0xc9c   :  { %v16980_v51 = vmul.f32 %v16723_v56, %v18226_v28  ;;  %v16988_v37 = vadd.f32 %v16968_v57, %v16729_v13  ;;  %v16992_v12 = vadd.f32 %v16968_v57, %v16733_v21  ;;  %v16996_v19 = vadd.f32 %v16968_v57, %v16737_v10 }
 0xc9d   :  { %v17000_v39 = vadd.f32 %v16968_v57, %v16741_v58  ;;  %v17004_v6 = vadd.f32 %v16968_v57, %v16745_v53  ;;  %v17008_v56 = vadd.f32 %v16968_v57, %v16749_v63  ;;  %v17012_v13 = vadd.f32 %v16968_v57, %v16753_v41 }
 0xc9e   :  { %v17016_v21 = vadd.f32 %v16968_v57, %v16757_v17  ;;  %v17020_v10 = vadd.f32 %v16968_v57, %v16761_v29  ;;  %v17024_v58 = vadd.f32 %v16968_v57, %v16765_v50  ;;  %v17028_v53 = vadd.f32 %v16968_v57, %v16769_v15 }
 0xc9f   :  { %v17032_v63 = vadd.f32 %v16968_v57, %v16773_v18  ;;  %v17036_v41 = vadd.f32 %v16968_v57, %v16777_v27  ;;  %v17040_v17 = vadd.f32 %v16968_v57, %v16781_v20  ;;  %v17044_v29 = vadd.f32 %v16968_v57, %v16785_v47  ;;  %v18231_v23 = vld [vmem:[#allocation40_spill] sm:$0xff] }
 0xca0   :  { %v17048_v50 = vadd.f32 %v16968_v57, %v16789_v49  ;;  %v17052_v15 = vadd.f32 %v16968_v57, %v16793_v34  ;;  %v17056_v18 = vadd.f32 %v16968_v57, %v16797_v61  ;;  %v17060_v27 = vadd.f32 %v16968_v57, %v16801_v31 }
 0xca1   :  { %v17064_v20 = vadd.f32 %v16968_v57, %v16805_v26  ;;  %v17068_v47 = vadd.f32 %v16968_v57, %v16809_v14  ;;  %v17072_v49 = vadd.f32 %v16968_v57, %v16813_v48  ;;  %v17076_v34 = vadd.f32 %v16968_v57, %v16817_v62 }
 0xca2   :  { %v17080_v61 = vadd.f32 %v16968_v57, %v16821_v11  ;;  %v17084_v31 = vadd.f32 %v16968_v57, %v16825_v5  ;;  %v17088_v26 = vadd.f32 %v16968_v57, %v16829_v9  ;;  %v17092_v14 = vadd.f32 %v16968_v57, %v16833_v32 }
 0xca3   :  { %v17096_v48 = vadd.f32 %v16968_v57, %v16837_v55  ;;  %v17100_v62 = vadd.f32 %v16968_v57, %v16841_v44  ;;  %v17104_v11 = vadd.f32 %v16968_v57, %v16845_v59  ;;  %v17108_v5 = vadd.f32 %v16968_v57, %v16849_v45 }
 0xca4   :  { %v17112_v9 = vadd.f32 %v16968_v57, %v16853_v42  ;;  %v17116_v32 = vadd.f32 %v16968_v57, %v16857_v1  ;;  %v17120_v55 = vadd.f32 %v16968_v57, %v16861_v30  ;;  %v17124_v44 = vadd.f32 %v16968_v57, %v16865_v16 }
 0xca5   :  { %v17128_v59 = vadd.f32 %v16968_v57, %v16869_v35  ;;  %v17132_v45 = vadd.f32 %v16968_v57, %v16873_v60  ;;  %v17136_v42 = vadd.f32 %v16968_v57, %v16877_v40  ;;  %v17140_v1 = vadd.f32 %v16968_v57, %v16881_v25  ;;  %v18227_v25 = vld [vmem:[#allocation23_spill] sm:$0xff] }
 0xca6   :  { %v17144_v30 = vadd.f32 %v16968_v57, %v16885_v46  ;;  %v17148_v16 = vadd.f32 %v16968_v57, %v16889_v2  ;;  %v17152_v35 = vadd.f32 %v16968_v57, %v16893_v8  ;;  %v17156_v60 = vadd.f32 %v16968_v57, %v16897_v38 }
 0xca7   :  { %v17160_v40 = vadd.f32 %v16968_v57, %v16901_v3  ;;  %v17164_v46 = vadd.f32 %v16968_v57, %v18227_v25  ;;  %v17168_v2 = vadd.f32 %v16968_v57, %v16909_v0  ;;  %v17172_v8 = vadd.f32 %v16968_v57, %v16913_v22  ;;  %v18234_v25 = vld [vmem:[#allocation39_spill] sm:$0xff] }
 0xca8   :  { %v17176_v38 = vadd.f32 %v16968_v57, %v16917_v33  ;;  %v17180_v3 = vadd.f32 %v16968_v57, %v16921_v24  ;;  %v17184_v28 = vadd.f32 %v16968_v57, %v18231_v23  ;;  %v17188_v0 = vadd.f32 %v16968_v57, %v16929_v7 }
 0xca9   :  { %18228 = vst [vmem:[#allocation48_spill] sm:$0xff] %v17172_v8  ;;  %v17192_v22 = vadd.f32 %v16968_v57, %v18234_v25  ;;  %v18236_v8 = vld [vmem:[#allocation43_spill] sm:$0xff] }
 0xcaa   :  { %18229 = vst [vmem:[#allocation12_spill] sm:$0xff] %v17176_v38  ;;  %18230 = vst [vmem:[#allocation49_spill] sm:$0xff] %v17180_v3  ;;  %v17196_v33 = vadd.f32 %v16968_v57, %v18236_v8  ;;  %v18237_v38 = vld [vmem:[#allocation42_spill] sm:$0xff]  ;;  %v18238_v3 = vld [vmem:[#allocation35_spill] sm:$0xff] }
 0xcab   :  { %18232 = vst [vmem:[#allocation51_spill] sm:$0xff] %v17184_v28  ;;  %18233 = vst [vmem:[#allocation50_spill] sm:$0xff] %v17188_v0  ;;  %v17200_v24 = vadd.f32 %v16968_v57, %v18237_v38  ;;  %v17204_v23 = vadd.f32 %v16968_v57, %v18238_v3  ;;  %v18239_v28 = vld [vmem:[#allocation46_spill] sm:$0xff]  ;;  %v18240_v0 = vld [vmem:[#allocation45_spill] sm:$0xff]  ;;  %v17220_v38 = vadd.f32 %v16968_v57, %v16961_v36 }
 0xcac   :  { %18235 = vst [vmem:[#allocation53_spill] sm:$0xff] %v17192_v22  ;;  %v17208_v7 = vadd.f32 %v16968_v57, %v18239_v28  ;;  %v17212_v25 = vadd.f32 %v16968_v57, %v18240_v0  ;;  %v18241_v22 = vld [vmem:[#allocation36_spill] sm:$0xff]  ;;  %v17224_v3 = vadd.f32 %v16968_v57, %v16965_v54  ;;  %v17228_v28 = vadd.f32 %v16968_v57, %v16972_v4 }
 0xcad   :  { %v17216_v8 = vadd.f32 %v16968_v57, %v18241_v22  ;;  %18242 = vst [vmem:[#allocation52_spill] sm:$0xff] %v17220_v38  ;;  %v17232_v0 = vadd.f32 %v16968_v57, %v16976_v43  ;;  %v17236_v22 = vadd.f32 %v16968_v57, %v16980_v51  ;;  %v17240_v36 = vadd.f32 %v16968_v57, %v16984_v52 }
 0xcae   :  { %18243 = vst [vmem:[#allocation55_spill] sm:$0xff] %v17224_v3  ;;  %18244 = vst [vmem:[#allocation54_spill] sm:$0xff] %v17228_v28  ;;  %v9382_v38 = vmax.f32 %v16988_v37, 0.0  ;;  %v9383_v54 = vmax.f32 %v16992_v12, 0.0  ;;  %v9384_v3 = vmax.f32 %v16996_v19, 0.0  ;;  %v9385_v4 = vmax.f32 %v17000_v39, 0.0 }
 0xcaf   :  { %18245 = vst [vmem:[#allocation56_spill] sm:$0xff] %v17232_v0  ;;  %18246 = vst [vmem:[#allocation7_spill] sm:$0xff] %v17236_v22  ;;  %v9386_v28 = vmax.f32 %v17004_v6, 0.0  ;;  %v9387_v43 = vmax.f32 %v17008_v56, 0.0  ;;  %v9388_v0 = vmax.f32 %v17012_v13, 0.0  ;;  %v9389_v51 = vmax.f32 %v17016_v21, 0.0 }
 0xcb0   :  { %v9390_v22 = vmax.f32 %v17020_v10, 0.0  ;;  %v9391_v57 = vmax.f32 %v17024_v58, 0.0  ;;  %v9392_v52 = vmax.f32 %v17028_v53, 0.0  ;;  %v9393_v37 = vmax.f32 %v17032_v63, 0.0  ;;  %9446 = vst [vmem:[%s17503_s5] sm:$0xff] %v9382_v38  ;;  %9447 = vst [vmem:[%s17503_s5 + $0x8] sm:$0xff] %v9383_v54 }
 0xcb1   :  { %9448 = vst [vmem:[%s17503_s5 + $0x10] sm:$0xff] %v9384_v3  ;;  %9449 = vst [vmem:[%s17503_s5 + $0x18] sm:$0xff] %v9385_v4  ;;  %v9394_v12 = vmax.f32 %v17036_v41, 0.0  ;;  %v9395_v19 = vmax.f32 %v17040_v17, 0.0  ;;  %v9396_v39 = vmax.f32 %v17044_v29, 0.0  ;;  %v9397_v6 = vmax.f32 %v17048_v50, 0.0 }
 0xcb2   :  { %9450 = vst [vmem:[%s17503_s5 + $0x20] sm:$0xff] %v9386_v28  ;;  %9451 = vst [vmem:[%s17503_s5 + $0x28] sm:$0xff] %v9387_v43  ;;  %v9398_v56 = vmax.f32 %v17052_v15, 0.0  ;;  %v9399_v13 = vmax.f32 %v17056_v18, 0.0  ;;  %v9400_v21 = vmax.f32 %v17060_v27, 0.0  ;;  %v9401_v10 = vmax.f32 %v17064_v20, 0.0 }
 0xcb3   :  { %9452 = vst [vmem:[%s17503_s5 + $0x30] sm:$0xff] %v9388_v0  ;;  %9453 = vst [vmem:[%s17503_s5 + $0x38] sm:$0xff] %v9389_v51  ;;  %v9402_v58 = vmax.f32 %v17068_v47, 0.0  ;;  %v9403_v53 = vmax.f32 %v17072_v49, 0.0  ;;  %v9404_v63 = vmax.f32 %v17076_v34, 0.0  ;;  %v9405_v41 = vmax.f32 %v17080_v61, 0.0 }
 0xcb4   :  { %9454 = vst [vmem:[%s17503_s5 + $0x40] sm:$0xff] %v9390_v22  ;;  %9455 = vst [vmem:[%s17503_s5 + $0x48] sm:$0xff] %v9391_v57  ;;  %v9406_v17 = vmax.f32 %v17084_v31, 0.0  ;;  %v9407_v29 = vmax.f32 %v17088_v26, 0.0  ;;  %v9408_v50 = vmax.f32 %v17092_v14, 0.0  ;;  %v9409_v15 = vmax.f32 %v17096_v48, 0.0 }
 0xcb5   :  { %9456 = vst [vmem:[%s17503_s5 + $0x50] sm:$0xff] %v9392_v52  ;;  %9457 = vst [vmem:[%s17503_s5 + $0x58] sm:$0xff] %v9393_v37  ;;  %v9410_v18 = vmax.f32 %v17100_v62, 0.0  ;;  %v9411_v27 = vmax.f32 %v17104_v11, 0.0  ;;  %v9412_v20 = vmax.f32 %v17108_v5, 0.0  ;;  %v9413_v47 = vmax.f32 %v17112_v9, 0.0 }
 0xcb6   :  { %9458 = vst [vmem:[%s17503_s5 + $0x60] sm:$0xff] %v9394_v12  ;;  %9459 = vst [vmem:[%s17503_s5 + $0x68] sm:$0xff] %v9395_v19  ;;  %v9414_v49 = vmax.f32 %v17116_v32, 0.0  ;;  %v9415_v34 = vmax.f32 %v17120_v55, 0.0  ;;  %v9416_v61 = vmax.f32 %v17124_v44, 0.0  ;;  %v9417_v31 = vmax.f32 %v17128_v59, 0.0 }
 0xcb7   :  { %9460 = vst [vmem:[%s17503_s5 + $0x70] sm:$0xff] %v9396_v39  ;;  %9461 = vst [vmem:[%s17503_s5 + $0x78] sm:$0xff] %v9397_v6  ;;  %v9418_v26 = vmax.f32 %v17132_v45, 0.0  ;;  %v9419_v14 = vmax.f32 %v17136_v42, 0.0  ;;  %v9420_v48 = vmax.f32 %v17140_v1, 0.0  ;;  %v9421_v62 = vmax.f32 %v17144_v30, 0.0 }
 0xcb8   :  { %9462 = vst [vmem:[%s17503_s5 + $0x80] sm:$0xff] %v9398_v56  ;;  %9463 = vst [vmem:[%s17503_s5 + $0x88] sm:$0xff] %v9399_v13  ;;  %v9422_v11 = vmax.f32 %v17148_v16, 0.0  ;;  %v9423_v5 = vmax.f32 %v17152_v35, 0.0  ;;  %v9424_v9 = vmax.f32 %v17156_v60, 0.0  ;;  %v9425_v32 = vmax.f32 %v17160_v40, 0.0 }
 0xcb9   :  { %9464 = vst [vmem:[%s17503_s5 + $0x90] sm:$0xff] %v9400_v21  ;;  %9465 = vst [vmem:[%s17503_s5 + $0x98] sm:$0xff] %v9401_v10  ;;  %v9426_v55 = vmax.f32 %v17164_v46, 0.0  ;;  %v9427_v44 = vmax.f32 %v17168_v2, 0.0  ;;  %v18247_v59 = vld [vmem:[#allocation48_spill] sm:$0xff]  ;;  %v18249_v30 = vld [vmem:[#allocation49_spill] sm:$0xff] }
 0xcba   :  { %9466 = vst [vmem:[%s17503_s5 + $0xa0] sm:$0xff] %v9402_v58  ;;  %9467 = vst [vmem:[%s17503_s5 + $0xa8] sm:$0xff] %v9403_v53  ;;  %v9428_v45 = vmax.f32 %v18247_v59, 0.0  ;;  %v18248_v42 = vld [vmem:[#allocation12_spill] sm:$0xff]  ;;  %v9430_v16 = vmax.f32 %v18249_v30, 0.0  ;;  %v18250_v35 = vld [vmem:[#allocation51_spill] sm:$0xff] }
 0xcbb   :  { %9468 = vst [vmem:[%s17503_s5 + $0xb0] sm:$0xff] %v9404_v63  ;;  %9469 = vst [vmem:[%s17503_s5 + $0xb8] sm:$0xff] %v9405_v41  ;;  %v9429_v1 = vmax.f32 %v18248_v42, 0.0  ;;  %v9431_v60 = vmax.f32 %v18250_v35, 0.0  ;;  %v18251_v40 = vld [vmem:[#allocation50_spill] sm:$0xff]  ;;  %v18252_v2 = vld [vmem:[#allocation53_spill] sm:$0xff] }
 0xcbc   :  { %9470 = vst [vmem:[%s17503_s5 + $0xc0] sm:$0xff] %v9406_v17  ;;  %9471 = vst [vmem:[%s17503_s5 + $0xc8] sm:$0xff] %v9407_v29  ;;  %v9432_v46 = vmax.f32 %v18251_v40, 0.0  ;;  %v9433_v38 = vmax.f32 %v18252_v2, 0.0  ;;  %v9434_v3 = vmax.f32 %v17196_v33, 0.0  ;;  %v9435_v28 = vmax.f32 %v17200_v24, 0.0 }
 0xcbd   :  { %9472 = vst [vmem:[%s17503_s5 + $0xd0] sm:$0xff] %v9408_v50  ;;  %9473 = vst [vmem:[%s17503_s5 + $0xd8] sm:$0xff] %v9409_v15  ;;  %v9436_v0 = vmax.f32 %v17204_v23, 0.0  ;;  %v9437_v22 = vmax.f32 %v17208_v7, 0.0  ;;  %v9438_v33 = vmax.f32 %v17212_v25, 0.0  ;;  %v9439_v24 = vmax.f32 %v17216_v8, 0.0 }
 0xcbe   :  { %9474 = vst [vmem:[%s17503_s5 + $0xe0] sm:$0xff] %v9410_v18  ;;  %9475 = vst [vmem:[%s17503_s5 + $0xe8] sm:$0xff] %v9411_v27  ;;  %v18253_v23 = vld [vmem:[#allocation52_spill] sm:$0xff]  ;;  %v18254_v54 = vld [vmem:[#allocation55_spill] sm:$0xff]  ;;  %v9445_v37 = vmax.f32 %v17240_v36, 0.0 }
 0xcbf   :  { %9476 = vst [vmem:[%s17503_s5 + $0xf0] sm:$0xff] %v9412_v20  ;;  %9477 = vst [vmem:[%s17503_s5 + $0xf8] sm:$0xff] %v9413_v47  ;;  %v9440_v7 = vmax.f32 %v18253_v23, 0.0  ;;  %v9441_v4 = vmax.f32 %v18254_v54, 0.0  ;;  %v18255_v25 = vld [vmem:[#allocation54_spill] sm:$0xff]  ;;  %v18256_v43 = vld [vmem:[#allocation56_spill] sm:$0xff] }
 0xcc0   :  { %9478 = vst [vmem:[%s17503_s5 + $0x100] sm:$0xff] %v9414_v49  ;;  %9479 = vst [vmem:[%s17503_s5 + $0x108] sm:$0xff] %v9415_v34  ;;  %v9442_v8 = vmax.f32 %v18255_v25, 0.0  ;;  %v9443_v51 = vmax.f32 %v18256_v43, 0.0  ;;  %v18257_v57 = vld [vmem:[#allocation7_spill] sm:$0xff] }
 0xcc1   :  { %9480 = vst [vmem:[%s17503_s5 + $0x110] sm:$0xff] %v9416_v61  ;;  %9481 = vst [vmem:[%s17503_s5 + $0x118] sm:$0xff] %v9417_v31  ;;  %v9444_v52 = vmax.f32 %v18257_v57, 0.0 }
 0xcc2   :  { %9482 = vst [vmem:[%s17503_s5 + $0x120] sm:$0xff] %v9418_v26  ;;  %9483 = vst [vmem:[%s17503_s5 + $0x128] sm:$0xff] %v9419_v14 }
 0xcc3   :  { %9484 = vst [vmem:[%s17503_s5 + $0x130] sm:$0xff] %v9420_v48  ;;  %9485 = vst [vmem:[%s17503_s5 + $0x138] sm:$0xff] %v9421_v62 }
 0xcc4   :  { %9486 = vst [vmem:[%s17503_s5 + $0x140] sm:$0xff] %v9422_v11  ;;  %9487 = vst [vmem:[%s17503_s5 + $0x148] sm:$0xff] %v9423_v5 }
 0xcc5   :  { %9488 = vst [vmem:[%s17503_s5 + $0x150] sm:$0xff] %v9424_v9  ;;  %9489 = vst [vmem:[%s17503_s5 + $0x158] sm:$0xff] %v9425_v32 }
 0xcc6   :  { %9490 = vst [vmem:[%s17503_s5 + $0x160] sm:$0xff] %v9426_v55  ;;  %9491 = vst [vmem:[%s17503_s5 + $0x168] sm:$0xff] %v9427_v44 }
 0xcc7   :  { %9492 = vst [vmem:[%s17503_s5 + $0x170] sm:$0xff] %v9428_v45  ;;  %9493 = vst [vmem:[%s17503_s5 + $0x178] sm:$0xff] %v9429_v1 }
 0xcc8   :  { %9494 = vst [vmem:[%s17503_s5 + $0x180] sm:$0xff] %v9430_v16  ;;  %9495 = vst [vmem:[%s17503_s5 + $0x188] sm:$0xff] %v9431_v60 }
 0xcc9   :  { %9496 = vst [vmem:[%s17503_s5 + $0x190] sm:$0xff] %v9432_v46  ;;  %9497 = vst [vmem:[%s17503_s5 + $0x198] sm:$0xff] %v9433_v38 }
 0xcca   :  { %9498 = vst [vmem:[%s17503_s5 + $0x1a0] sm:$0xff] %v9434_v3  ;;  %9499 = vst [vmem:[%s17503_s5 + $0x1a8] sm:$0xff] %v9435_v28 }
 0xccb   :  { %9500 = vst [vmem:[%s17503_s5 + $0x1b0] sm:$0xff] %v9436_v0  ;;  %9501 = vst [vmem:[%s17503_s5 + $0x1b8] sm:$0xff] %v9437_v22 }
 0xccc   :  { %9502 = vst [vmem:[%s17503_s5 + $0x1c0] sm:$0xff] %v9438_v33  ;;  %9503 = vst [vmem:[%s17503_s5 + $0x1c8] sm:$0xff] %v9439_v24 }
 0xccd   :  { %9504 = vst [vmem:[%s17503_s5 + $0x1d0] sm:$0xff] %v9440_v7  ;;  %9505 = vst [vmem:[%s17503_s5 + $0x1d8] sm:$0xff] %v9441_v4 }
 0xcce   :  { %9506 = vst [vmem:[%s17503_s5 + $0x1e0] sm:$0xff] %v9442_v8  ;;  %9507 = vst [vmem:[%s17503_s5 + $0x1e8] sm:$0xff] %v9443_v51 }
 0xccf   :  { %9508 = vst [vmem:[%s17503_s5 + $0x1f0] sm:$0xff] %v9444_v52  ;;  %9509 = vst [vmem:[%s17503_s5 + $0x1f8] sm:$0xff] %v9445_v37 }

</bundles_post_ra>
